<compile_context>
chip_gen: v7x
topology: tpu7x:2x2x1
jax: 0.10.0
libtpu: 0.0.40
codegen_flags: <defaults>
</compile_context>

<pallas_src>
import functools

import jax
import jax.numpy as jnp
from jax.experimental import pallas as pl
from jax.experimental.pallas import tpu as pltpu


# ------------------------------ sizing helpers ------------------------------

def _vmem_limit_bytes():
    cap = 64 * 1024 * 1024
    try:
        info = pltpu.get_tpu_info()
        for name in ("vmem_capacity_bytes", "vmem_size_bytes", "vmem_bytes"):
            v = getattr(info, name, None)
            if v:
                cap = int(v)
                break
    except Exception:
        pass
    # Leave headroom below physical capacity (v7x: 64 MiB, v5e/v6e: 128 MiB).
    return int(min(max(cap - 16 * 1024 * 1024, 32 * 1024 * 1024), 96 * 1024 * 1024))


def _pick_row_tile(h_out, w_in, cin, cout, pad, vmem_limit):
    """Largest multiple-of-8 divisor of h_out whose double-buffered conv blocks
    (3x row-stacked bf16 input + bf16 output) stay well inside the VMEM budget."""
    per_row = 2 * (3 * (w_in + 2 * pad) * max(cin, 1) * 2 + w_in * max(cout, 1) * 2)
    target = max(8, vmem_limit // 8 // max(per_row, 1))
    if h_out % 8 != 0:
        # TODO(synk): pad H to a multiple of 8 and mask instead of whole-image tiles.
        return h_out
    best = 8
    for t in range(8, h_out + 1, 8):
        if h_out % t == 0 and t <= target:
            best = t
    return best


def _stack_row_views(xpad, taps, dil, h_out, axis):
    """taps row-shifted views of a spatially padded tensor, stacked on `axis`."""
    views = [jax.lax.slice_in_dim(xpad, t * dil, t * dil + h_out, axis=axis)
             for t in range(taps)]
    return jnp.stack(views, axis=axis)


# ------------------------------ Pallas kernels ------------------------------

def _conv3x3_mxu(x_ref, w_ref, b_ref, *, dil, w_out):
    """3x3 conv on a (1, 3, TH, Wp, Cin) bf16 block of row-shifted views.

    The 9 taps are folded into the matmul K dimension: one MXU matmul with
    K = 9*Cin (instead of nine K = Cin matmuls).  Returns f32 (TH*w_out, Cout)
    with the bias already added."""
    th = x_ref.shape[2]
    cin = x_ref.shape[4]
    taps = []
    for ti in range(3):                                   # row taps (pre-shifted views)
        xt = x_ref[0, ti]                                 # (TH, Wp, Cin) bf16
        for tj in range(3):                               # column taps (static slices)
            taps.append(xt[:, tj * dil: tj * dil + w_out, :])
    xcat = jnp.concatenate(taps, axis=-1)                 # (TH, w_out, 9*Cin)
    a = xcat.reshape(th * w_out, 9 * cin)
    acc = jnp.dot(a, w_ref[...], preferred_element_type=jnp.float32)
    return acc + b_ref[...]                               # (1, Cout) broadcast


def _conv_relu_kernel(x_ref, w_ref, b_ref, o_ref, *, dil, w_out):
    """conv1: 3x3 conv + bias + fused ReLU (f32 epilogue, single bf16 cast)."""
    acc = jnp.maximum(_conv3x3_mxu(x_ref, w_ref, b_ref, dil=dil, w_out=w_out), 0.0)
    o_ref[0] = acc.reshape(o_ref.shape[1], w_out, -1).astype(o_ref.dtype)


def _conv_stats_kernel(x_ref, w_ref, b_ref, o_ref, sum_ref, max_ref, *, dil, w_out):
    """conv2: 3x3 conv + bias, plus per-row-tile channel sum/max (the pooling
    inputs of ChannelAttention).  Per-tile stats keep both grid axes parallel
    (v7x megacore); the tiny cross-tile reduction is done in plain JAX."""
    acc = _conv3x3_mxu(x_ref, w_ref, b_ref, dil=dil, w_out=w_out)
    o_ref[0] = acc.reshape(o_ref.shape[1], w_out, -1).astype(o_ref.dtype)
    sum_ref[0, 0] = jnp.sum(acc, axis=0, keepdims=True)
    max_ref[0, 0] = jnp.max(acc, axis=0, keepdims=True)


def _smap_kernel(o2_ref, gate_ref, smap_ref):
    """Apply the precomputed CA gate and emit the per-pixel channel mean/max
    planes, channel-planes-first so W sits on the lane axis (bf16 store)."""
    y = o2_ref[0].astype(jnp.float32) * gate_ref[0]                 # (TH, W, C)
    smap_ref[0, 0] = jnp.mean(y, axis=2).astype(smap_ref.dtype)     # (TH, W)
    smap_ref[0, 1] = jnp.max(y, axis=2).astype(smap_ref.dtype)      # (TH, W)


def _final_kernel(o2_ref, s_ref, x_ref, gate_ref, eye_ref, wsa_ref, o_ref, *,
                  w_out, nchw_out):
    """Fused epilogue: CA gate apply + 7x7 SpatialAttention conv (reading the
    VMEM-resident padded mean/max planes) + sigmoid + multiply + residual add
    + ReLU + (optionally) the NHWC->NCHW transpose via an MXU identity matmul."""
    th = o2_ref.shape[1]
    c = o2_ref.shape[3]
    y = o2_ref[0].astype(jnp.float32) * gate_ref[0]                 # (TH, W, C)

    row0 = pl.program_id(1) * th
    if th % 8 == 0:
        row0 = pl.multiple_of(row0, 8)

    sa = jnp.zeros((th, w_out), jnp.float32)
    for ci in range(2):                                   # mean / max planes
        win = s_ref[0, ci, pl.ds(row0, th + 6), :].astype(jnp.float32)  # (TH+6, W+6)
        for ti in range(7):                               # row taps (static slices)
            slab = win[ti:ti + th, :]                     # (TH, W+6)
            for tj in range(7):                           # column taps
                sa = sa + slab[:, tj:tj + w_out] * wsa_ref[ci, ti * 7 + tj]
    attn = jax.nn.sigmoid(sa)                             # (TH, W)

    y = jnp.maximum(y * attn[:, :, None] + x_ref[0], 0.0)  # (TH, W, C)

    if nchw_out:
        # Lane-dense NCHW store: transpose (TH*W, C) -> (C, TH*W) on the MXU.
        y2 = y.reshape(th * w_out, c)
        yt = jax.lax.dot_general(eye_ref[...], y2,
                                 (((1,), (1,)), ((), ())),
                                 preferred_element_type=jnp.float32)
        o_ref[0] = yt.astype(o_ref.dtype)
    else:
        o_ref[0] = y.astype(o_ref.dtype)


# --------------------------------- JAX glue ----------------------------------

def _conv3x3(x_bf16, w_oihw, bias, *, pad, dil, row_tile, fuse, vmem_limit):
    """3x3 conv (stride 1) as a tiled, pipelined Pallas kernel.

    fuse == "relu":  conv + bias + ReLU                    -> bf16 output
    fuse == "stats": conv + bias + per-tile channel stats  -> (bf16, sums, maxs)
    """
    B, H, W, Cin = x_bf16.shape
    Cout = w_oihw.shape[0]
    Hout = H + 2 * pad - 2 * dil
    Wout = W + 2 * pad - 2 * dil
    Wp = W + 2 * pad
    assert Hout % row_tile == 0

    xpad = jnp.pad(x_bf16, ((0, 0), (pad, pad), (pad, pad), (0, 0)))
    xs = _stack_row_views(xpad, 3, dil, Hout, axis=1)        # (B,3,Hout,Wp,Cin) bf16
    # (ki, kj, ic, oc) -> (9*Cin, Cout); K index = (ki*3 + kj)*Cin + ic matches
    # the in-kernel concatenation order of the 9 shifted taps.
    wm = jnp.transpose(w_oihw, (2, 3, 1, 0)).reshape(9 * Cin, Cout).astype(jnp.bfloat16)
    bm = bias.reshape(1, Cout).astype(jnp.float32)

    grid = (B, Hout // row_tile)
    cp = pltpu.CompilerParams(dimension_semantics=("parallel", "parallel"),
                              vmem_limit_bytes=vmem_limit)
    in_specs = [
        pl.BlockSpec((1, 3, row_tile, Wp, Cin), lambda b, i: (b, 0, i, 0, 0)),
        pl.BlockSpec((9 * Cin, Cout), lambda b, i: (0, 0)),
        pl.BlockSpec((1, Cout), lambda b, i: (0, 0)),
    ]
    o_spec = pl.BlockSpec((1, row_tile, Wout, Cout), lambda b, i: (b, i, 0, 0))

    if fuse == "stats":
        ntiles = Hout // row_tile
        return pl.pallas_call(
            functools.partial(_conv_stats_kernel, dil=dil, w_out=Wout),
            grid=grid,
            in_specs=in_specs,
            out_specs=(o_spec,
                       pl.BlockSpec((1, 1, 1, Cout), lambda b, i: (b, i, 0, 0)),
                       pl.BlockSpec((1, 1, 1, Cout), lambda b, i: (b, i, 0, 0))),
            out_shape=(jax.ShapeDtypeStruct((B, Hout, Wout, Cout), jnp.bfloat16),
                       jax.ShapeDtypeStruct((B, ntiles, 1, Cout), jnp.float32),
                       jax.ShapeDtypeStruct((B, ntiles, 1, Cout), jnp.float32)),
            compiler_params=cp,
        )(xs, wm, bm)

    return pl.pallas_call(
        functools.partial(_conv_relu_kernel, dil=dil, w_out=Wout),
        grid=grid,
        in_specs=in_specs,
        out_specs=o_spec,
        out_shape=jax.ShapeDtypeStruct((B, Hout, Wout, Cout), jnp.bfloat16),
        compiler_params=cp,
    )(xs, wm, bm)


def basic_block1_forward(x_nchw, params, *, stride=1, pad=1, dilation=1,
                         downsample=None, row_tile=None):
    # TODO(synk): stride>1 / downsample branch not implemented; the residual add
    # of BasicBlock1 only type-checks with downsample=None (stride=1, pad=dil).
    assert downsample is None and stride == 1
    B, Cin, H, W = x_nchw.shape
    planes = params["w_conv2"].shape[0]

    x_nhwc = jnp.transpose(x_nchw, (0, 2, 3, 1)).astype(jnp.float32)
    x_bf16 = x_nhwc.astype(jnp.bfloat16)          # pre-cast before pad / row-stack

    H1 = H + 2 * pad - 2 * dilation
    W1 = W + 2 * pad - 2 * dilation
    H2 = H1 + 2 * pad - 2 * dilation
    W2 = W1 + 2 * pad - 2 * dilation
    assert (H2, W2, planes) == (H, W, Cin), \
        "residual add requires matching shapes when downsample is None"

    vmem_limit = _vmem_limit_bytes()
    th = row_tile if row_tile is not None else \
        _pick_row_tile(H2, W, max(Cin, planes), planes, pad, vmem_limit)
    assert H1 % th == 0 and H2 % th == 0

    # Pass A: conv1 (3x3, single K=9*Cin MXU matmul per tile) + ReLU -> bf16.
    out1 = _conv3x3(x_bf16, params["w_conv1"], params["b_conv1"],
                    pad=pad, dil=dilation, row_tile=th, fuse="relu",
                    vmem_limit=vmem_limit)

    # Pass B: conv2 (3x3) + per-row-tile channel sum/max (CA pooling inputs).
    out2, tsum, tmax = _conv3x3(out1, params["w_conv2"], params["b_conv2"],
                                pad=pad, dil=dilation, row_tile=th, fuse="stats",
                                vmem_limit=vmem_limit)

    # ChannelAttention gate, computed once per batch from the tiny per-tile stats.
    avg = jnp.sum(tsum, axis=(1, 2)) * (1.0 / float(H2 * W2))       # (B, C)
    mx = jnp.max(tmax, axis=(1, 2))                                 # (B, C)
    w1 = params["w_ca1"][:, :, 0, 0].astype(jnp.float32)            # (r, C)
    w2 = params["w_ca2"][:, :, 0, 0].astype(jnp.float32)            # (C, r)

    def fc(v):                                                      # (B, C) -> (B, C)
        h = jnp.maximum(v @ w1.T, 0.0)                              # (B, r)
        return h @ w2.T                                             # (B, C)

    gate = jax.nn.sigmoid(fc(avg) + fc(mx))[:, None, :]             # (B, 1, C) f32

    grid = (B, H2 // th)
    cp = pltpu.CompilerParams(dimension_semantics=("parallel", "parallel"),
                              vmem_limit_bytes=vmem_limit)

    # Pass C: apply CA gate, emit per-pixel channel mean/max planes (bf16,
    # channel-planes-first so W sits on the lane axis).
    smap = pl.pallas_call(
        _smap_kernel,
        grid=grid,
        in_specs=[pl.BlockSpec((1, th, W2, planes), lambda b, i: (b, i, 0, 0)),
                  pl.BlockSpec((1, 1, planes), lambda b, i: (b, 0, 0))],
        out_specs=pl.BlockSpec((1, 2, th, W2), lambda b, i: (b, 0, i, 0)),
        out_shape=jax.ShapeDtypeStruct((B, 2, H2, W2), jnp.bfloat16),
        compiler_params=cp,
    )(out2, gate)

    # Zero-pad once (bf16, tiny); in Pass D the padded planes stay VMEM-resident
    # per batch, so no 7x row-stacked HBM materialization is needed.
    spad = jnp.pad(smap, ((0, 0), (0, 0), (3, 3), (3, 3)))           # (B,2,H+6,W+6)

    w_sam = params["w_sa"][0].reshape(2, 49).astype(jnp.float32)
    eye = jnp.eye(planes, dtype=jnp.float32)

    ntiles = H2 // th
    nchw_out = (th * W2) % 128 == 0 or ntiles == 1      # lane-dense fused-transpose path

    in_specs = [pl.BlockSpec((1, th, W2, planes), lambda b, i: (b, i, 0, 0)),
                pl.BlockSpec((1, 2, H2 + 6, W2 + 6), lambda b, i: (b, 0, 0, 0)),
                pl.BlockSpec((1, th, W, Cin), lambda b, i: (b, i, 0, 0)),
                pl.BlockSpec((1, 1, planes), lambda b, i: (b, 0, 0)),
                pl.BlockSpec((planes, planes), lambda b, i: (0, 0)),
                pl.BlockSpec(memory_space=pltpu.MemorySpace.SMEM)]

    if nchw_out:
        out_specs = pl.BlockSpec((1, planes, th * W2), lambda b, i: (b, 0, i))
        out_shape = jax.ShapeDtypeStruct((B, planes, H2 * W2), jnp.float32)
    else:
        out_specs = pl.BlockSpec((1, th, W2, planes), lambda b, i: (b, i, 0, 0))
        out_shape = jax.ShapeDtypeStruct((B, H2, W2, planes), jnp.float32)

    # Pass D: CA gate apply + 7x7 SA conv + sigmoid + residual + ReLU
    # (+ fused NHWC->NCHW transpose when the flat tile is lane-aligned).
    out = pl.pallas_call(
        functools.partial(_final_kernel, w_out=W2, nchw_out=nchw_out),
        grid=grid,
        in_specs=in_specs,
        out_specs=out_specs,
        out_shape=out_shape,
        compiler_params=cp,
    )(out2, spad, x_nhwc, gate, eye, w_sam)

    if nchw_out:
        return out.reshape(B, planes, H2, W2)     # free row-major split, no transpose
    return jnp.transpose(out, (0, 3, 1, 2))


# ----------------------- pure-JAX reference (for check) ----------------------

def ref_forward(x, params, *, stride, pad, dilation):
    def conv2d(xi, w, b, s, p, d):
        out = jax.lax.conv_general_dilated(
            xi, w, window_strides=(s, s), padding=((p, p), (p, p)),
            rhs_dilation=(d, d), dimension_numbers=("NCHW", "OIHW", "NCHW"))
        if b is not None:
            out = out + b[None, :, None, None]
        return out

    out = jnp.maximum(conv2d(x, params["w_conv1"], params["b_conv1"],
                             stride, pad, dilation), 0.0)
    out = conv2d(out, params["w_conv2"], params["b_conv2"], 1, pad, dilation)

    avg = jnp.mean(out, axis=(2, 3), keepdims=True)
    mx = jnp.max(out, axis=(2, 3), keepdims=True)

    def fc(v):
        h = jnp.maximum(conv2d(v, params["w_ca1"], None, 1, 0, 1), 0.0)
        return conv2d(h, params["w_ca2"], None, 1, 0, 1)

    out = out * jax.nn.sigmoid(fc(avg) + fc(mx))

    avg_c = jnp.mean(out, axis=1, keepdims=True)
    max_c = jnp.max(out, axis=1, keepdims=True)
    s = jnp.concatenate([avg_c, max_c], axis=1)
    out = out * jax.nn.sigmoid(conv2d(s, params["w_sa"], None, 1, 3, 1))

    return jnp.maximum(out + x, 0.0)


# -------------------------------- parameters ---------------------------------

def init_params(key, inplanes, planes):
    assert planes >= 16, "ChannelAttention uses planes // 16 hidden channels"
    r = planes // 16
    ks = jax.random.split(key, 7)
    scale = 0.1
    return {
        "w_conv1": scale * jax.random.normal(ks[0], (planes, inplanes, 3, 3), jnp.float32),
        "b_conv1": scale * jax.random.normal(ks[1], (planes,), jnp.float32),
        "w_conv2": scale * jax.random.normal(ks[2], (planes, planes, 3, 3), jnp.float32),
        "b_conv2": scale * jax.random.normal(ks[3], (planes,), jnp.float32),
        "w_ca1": scale * jax.random.normal(ks[4], (r, planes, 1, 1), jnp.float32),
        "w_ca2": scale * jax.random.normal(ks[5], (planes, r, 1, 1), jnp.float32),
        "w_sa": scale * jax.random.normal(ks[6], (1, 2, 7, 7), jnp.float32),
    }


if __name__ == "__main__":
    key = jax.random.PRNGKey(0)
    B, Cin, H, W = 2, 16, 16, 16
    planes, stride, pad, dilation = 16, 1, 1, 1

    k_x, k_p = jax.random.split(key)
    x = jax.random.normal(k_x, (B, Cin, H, W), dtype=jnp.float32)
    params = init_params(k_p, Cin, planes)

    fwd = jax.jit(functools.partial(
        basic_block1_forward, stride=stride, pad=pad, dilation=dilation,
        downsample=None, row_tile=8))     # row_tile=8 exercises the multi-tile path
    out = jax.block_until_ready(fwd(x, params))

    ref = jax.block_until_ready(
        ref_forward(x, params, stride=stride, pad=pad, dilation=dilation))

    assert out.shape == ref.shape == (B, planes, H, W)
    max_err = float(jnp.max(jnp.abs(out - ref)))
    # bf16 matmul inputs / bf16 smap with f32 accumulation vs. pure-f32 reference.
    if max_err > 5e-2:
        raise SystemExit(f"mismatch vs reference, max abs err = {max_err}")
    print("KERNEL_OK")
</pallas_src>

<mosaic_0001>
module attributes {stable_mosaic.version = 11 : i64} {
  func.func @_conv_relu_kernel(%arg0: i32, %arg1: i32, %arg2: memref<1x3x8x18x16xbf16, #tpu.memory_space<vmem>>, %arg3: memref<144x16xbf16, #tpu.memory_space<vmem>>, %arg4: memref<1x16xf32, #tpu.memory_space<vmem>>, %arg5: memref<1x8x16x16xbf16, #tpu.memory_space<vmem>>) attributes {dimension_semantics = [#tpu.dimension_semantics<parallel>, #tpu.dimension_semantics<parallel>], iteration_bounds = array<i64: 2, 2>, scalar_prefetch = 0 : i64, scratch_operands = 0 : i64, tpu.core_type = #tpu.core_type<tc>, window_params = [{transform_indices = @transform_0, window_bounds = array<i64: 1, 3, 8, 18, 16>}, {pipeline_mode = #tpu.pipeline_mode<synchronous>, transform_indices = @transform_1, window_bounds = array<i64: 144, 16>}, {pipeline_mode = #tpu.pipeline_mode<synchronous>, transform_indices = @transform_2, window_bounds = array<i64: 1, 16>}, {transform_indices = @transform_3, window_bounds = array<i64: 1, 8, 16, 16>}]} {
    %c0 = arith.constant 0 : index
    %c0_0 = arith.constant 0 : index
    %c0_1 = arith.constant 0 : index
    %c0_2 = arith.constant 0 : index
    %c0_3 = arith.constant 0 : index
    %0 = vector.load %arg2[%c0, %c0_0, %c0_1, %c0_2, %c0_3] : memref<1x3x8x18x16xbf16, #tpu.memory_space<vmem>>, vector<1x1x8x18x16xbf16>
    %1 = vector.shape_cast %0 : vector<1x1x8x18x16xbf16> to vector<8x18x16xbf16>
    %2 = vector.extract_strided_slice %1 {offsets = [0, 0, 0], sizes = [8, 16, 16], strides = [1, 1, 1]} : vector<8x18x16xbf16> to vector<8x16x16xbf16>
    %3 = vector.extract_strided_slice %1 {offsets = [0, 1, 0], sizes = [8, 16, 16], strides = [1, 1, 1]} : vector<8x18x16xbf16> to vector<8x16x16xbf16>
    %4 = vector.extract_strided_slice %1 {offsets = [0, 2, 0], sizes = [8, 16, 16], strides = [1, 1, 1]} : vector<8x18x16xbf16> to vector<8x16x16xbf16>
    %c0_4 = arith.constant 0 : index
    %c1 = arith.constant 1 : index
    %c0_5 = arith.constant 0 : index
    %c0_6 = arith.constant 0 : index
    %c0_7 = arith.constant 0 : index
    %5 = vector.load %arg2[%c0_4, %c1, %c0_5, %c0_6, %c0_7] : memref<1x3x8x18x16xbf16, #tpu.memory_space<vmem>>, vector<1x1x8x18x16xbf16>
    %6 = vector.shape_cast %5 : vector<1x1x8x18x16xbf16> to vector<8x18x16xbf16>
    %7 = vector.extract_strided_slice %6 {offsets = [0, 0, 0], sizes = [8, 16, 16], strides = [1, 1, 1]} : vector<8x18x16xbf16> to vector<8x16x16xbf16>
    %8 = vector.extract_strided_slice %6 {offsets = [0, 1, 0], sizes = [8, 16, 16], strides = [1, 1, 1]} : vector<8x18x16xbf16> to vector<8x16x16xbf16>
    %9 = vector.extract_strided_slice %6 {offsets = [0, 2, 0], sizes = [8, 16, 16], strides = [1, 1, 1]} : vector<8x18x16xbf16> to vector<8x16x16xbf16>
    %c0_8 = arith.constant 0 : index
    %c2 = arith.constant 2 : index
    %c0_9 = arith.constant 0 : index
    %c0_10 = arith.constant 0 : index
    %c0_11 = arith.constant 0 : index
    %10 = vector.load %arg2[%c0_8, %c2, %c0_9, %c0_10, %c0_11] : memref<1x3x8x18x16xbf16, #tpu.memory_space<vmem>>, vector<1x1x8x18x16xbf16>
    %11 = vector.shape_cast %10 : vector<1x1x8x18x16xbf16> to vector<8x18x16xbf16>
    %12 = vector.extract_strided_slice %11 {offsets = [0, 0, 0], sizes = [8, 16, 16], strides = [1, 1, 1]} : vector<8x18x16xbf16> to vector<8x16x16xbf16>
    %13 = vector.extract_strided_slice %11 {offsets = [0, 1, 0], sizes = [8, 16, 16], strides = [1, 1, 1]} : vector<8x18x16xbf16> to vector<8x16x16xbf16>
    %14 = vector.extract_strided_slice %11 {offsets = [0, 2, 0], sizes = [8, 16, 16], strides = [1, 1, 1]} : vector<8x18x16xbf16> to vector<8x16x16xbf16>
    %15 = tpu.concatenate %2, %3, %4, %7, %8, %9, %12, %13, %14 in 2 : vector<8x16x16xbf16>, vector<8x16x16xbf16>, vector<8x16x16xbf16>, vector<8x16x16xbf16>, vector<8x16x16xbf16>, vector<8x16x16xbf16>, vector<8x16x16xbf16>, vector<8x16x16xbf16>, vector<8x16x16xbf16> -> vector<8x16x144xbf16>
    %16 = vector.shape_cast %15 : vector<8x16x144xbf16> to vector<128x144xbf16>
    %c0_12 = arith.constant 0 : index
    %c0_13 = arith.constant 0 : index
    %17 = vector.load %arg3[%c0_12, %c0_13] : memref<144x16xbf16, #tpu.memory_space<vmem>>, vector<144x16xbf16>
    %cst = arith.constant dense<0.000000e+00> : vector<128x16xf32>
    %18 = tpu.matmul %16, %17, %cst {dimension_numbers = #tpu.dot_dimension_numbers<[1], [0], [0], [1], [0, 0, 1, 1], [], []>} : vector<128x144xbf16>, vector<144x16xbf16>, vector<128x16xf32> -> vector<128x16xf32>
    %c0_14 = arith.constant 0 : index
    %c0_15 = arith.constant 0 : index
    %19 = vector.load %arg4[%c0_14, %c0_15] : memref<1x16xf32, #tpu.memory_space<vmem>>, vector<1x16xf32>
    %20 = vector.broadcast %19 : vector<1x16xf32> to vector<128x16xf32>
    %21 = arith.addf %18, %20 : vector<128x16xf32>
    %cst_16 = arith.constant 0.000000e+00 : f32
    %22 = vector.broadcast %cst_16 : f32 to vector<128x16xf32>
    %23 = arith.maximumf %21, %22 : vector<128x16xf32>
    %24 = vector.shape_cast %23 : vector<128x16xf32> to vector<8x16x16xf32>
    %25 = arith.truncf %24 : vector<8x16x16xf32> to vector<8x16x16xbf16>
    %c0_17 = arith.constant 0 : index
    %c0_18 = arith.constant 0 : index
    %c0_19 = arith.constant 0 : index
    %c0_20 = arith.constant 0 : index
    %26 = vector.load %arg5[%c0_17, %c0_18, %c0_19, %c0_20] : memref<1x8x16x16xbf16, #tpu.memory_space<vmem>>, vector<1x8x16x16xbf16>
    %27 = vector.shape_cast %26 : vector<1x8x16x16xbf16> to vector<8x16x16xbf16>
    %28 = vector.shape_cast %25 : vector<8x16x16xbf16> to vector<1x8x16x16xbf16>
    tpu.vector_store %arg5[%c0_17, %c0_18, %c0_19, %c0_20], %28 {strides = array<i32>} : memref<1x8x16x16xbf16, #tpu.memory_space<vmem>>, vector<1x8x16x16xbf16>,
    return
  }
  func.func @transform_0(%arg0: i32, %arg1: i32) -> (i32, i32, i32, i32, i32) {
    %c0_i32 = arith.constant 0 : i32
    %c0_i32_0 = arith.constant 0 : i32
    %c0_i32_1 = arith.constant 0 : i32
    %c0_i32_2 = arith.constant 0 : i32
    return %arg0, %c0_i32, %arg1, %c0_i32_0, %c0_i32_1 : i32, i32, i32, i32, i32
  }
  func.func @transform_1(%arg0: i32, %arg1: i32) -> (i32, i32) {
    %c0_i32 = arith.constant 0 : i32
    %c0_i32_0 = arith.constant 0 : i32
    %c0_i32_1 = arith.constant 0 : i32
    return %c0_i32, %c0_i32_0 : i32, i32
  }
  func.func @transform_2(%arg0: i32, %arg1: i32) -> (i32, i32) {
    %c0_i32 = arith.constant 0 : i32
    %c0_i32_0 = arith.constant 0 : i32
    %c0_i32_1 = arith.constant 0 : i32
    return %c0_i32, %c0_i32_0 : i32, i32
  }
  func.func @transform_3(%arg0: i32, %arg1: i32) -> (i32, i32, i32, i32) {
    %c0_i32 = arith.constant 0 : i32
    %c0_i32_0 = arith.constant 0 : i32
    %c0_i32_1 = arith.constant 0 : i32
    return %arg0, %arg1, %c0_i32, %c0_i32_0 : i32, i32, i32, i32
  }
}

module attributes {stable_mosaic.version = 11 : i64} {
  func.func @_conv_stats_kernel(%arg0: i32, %arg1: i32, %arg2: memref<1x3x8x18x16xbf16, #tpu.memory_space<vmem>>, %arg3: memref<144x16xbf16, #tpu.memory_space<vmem>>, %arg4: memref<1x16xf32, #tpu.memory_space<vmem>>, %arg5: memref<1x8x16x16xbf16, #tpu.memory_space<vmem>>, %arg6: memref<1x1x1x16xf32, #tpu.memory_space<vmem>>, %arg7: memref<1x1x1x16xf32, #tpu.memory_space<vmem>>) attributes {dimension_semantics = [#tpu.dimension_semantics<parallel>, #tpu.dimension_semantics<parallel>], iteration_bounds = array<i64: 2, 2>, scalar_prefetch = 0 : i64, scratch_operands = 0 : i64, tpu.core_type = #tpu.core_type<tc>, window_params = [{transform_indices = @transform_0, window_bounds = array<i64: 1, 3, 8, 18, 16>}, {pipeline_mode = #tpu.pipeline_mode<synchronous>, transform_indices = @transform_1, window_bounds = array<i64: 144, 16>}, {pipeline_mode = #tpu.pipeline_mode<synchronous>, transform_indices = @transform_2, window_bounds = array<i64: 1, 16>}, {transform_indices = @transform_3, window_bounds = array<i64: 1, 8, 16, 16>}, {transform_indices = @transform_4, window_bounds = array<i64: 1, 1, 1, 16>}, {transform_indices = @transform_5, window_bounds = array<i64: 1, 1, 1, 16>}]} {
    %c0 = arith.constant 0 : index
    %c0_0 = arith.constant 0 : index
    %c0_1 = arith.constant 0 : index
    %c0_2 = arith.constant 0 : index
    %c0_3 = arith.constant 0 : index
    %0 = vector.load %arg2[%c0, %c0_0, %c0_1, %c0_2, %c0_3] : memref<1x3x8x18x16xbf16, #tpu.memory_space<vmem>>, vector<1x1x8x18x16xbf16>
    %1 = vector.shape_cast %0 : vector<1x1x8x18x16xbf16> to vector<8x18x16xbf16>
    %2 = vector.extract_strided_slice %1 {offsets = [0, 0, 0], sizes = [8, 16, 16], strides = [1, 1, 1]} : vector<8x18x16xbf16> to vector<8x16x16xbf16>
    %3 = vector.extract_strided_slice %1 {offsets = [0, 1, 0], sizes = [8, 16, 16], strides = [1, 1, 1]} : vector<8x18x16xbf16> to vector<8x16x16xbf16>
    %4 = vector.extract_strided_slice %1 {offsets = [0, 2, 0], sizes = [8, 16, 16], strides = [1, 1, 1]} : vector<8x18x16xbf16> to vector<8x16x16xbf16>
    %c0_4 = arith.constant 0 : index
    %c1 = arith.constant 1 : index
    %c0_5 = arith.constant 0 : index
    %c0_6 = arith.constant 0 : index
    %c0_7 = arith.constant 0 : index
    %5 = vector.load %arg2[%c0_4, %c1, %c0_5, %c0_6, %c0_7] : memref<1x3x8x18x16xbf16, #tpu.memory_space<vmem>>, vector<1x1x8x18x16xbf16>
    %6 = vector.shape_cast %5 : vector<1x1x8x18x16xbf16> to vector<8x18x16xbf16>
    %7 = vector.extract_strided_slice %6 {offsets = [0, 0, 0], sizes = [8, 16, 16], strides = [1, 1, 1]} : vector<8x18x16xbf16> to vector<8x16x16xbf16>
    %8 = vector.extract_strided_slice %6 {offsets = [0, 1, 0], sizes = [8, 16, 16], strides = [1, 1, 1]} : vector<8x18x16xbf16> to vector<8x16x16xbf16>
    %9 = vector.extract_strided_slice %6 {offsets = [0, 2, 0], sizes = [8, 16, 16], strides = [1, 1, 1]} : vector<8x18x16xbf16> to vector<8x16x16xbf16>
    %c0_8 = arith.constant 0 : index
    %c2 = arith.constant 2 : index
    %c0_9 = arith.constant 0 : index
    %c0_10 = arith.constant 0 : index
    %c0_11 = arith.constant 0 : index
    %10 = vector.load %arg2[%c0_8, %c2, %c0_9, %c0_10, %c0_11] : memref<1x3x8x18x16xbf16, #tpu.memory_space<vmem>>, vector<1x1x8x18x16xbf16>
    %11 = vector.shape_cast %10 : vector<1x1x8x18x16xbf16> to vector<8x18x16xbf16>
    %12 = vector.extract_strided_slice %11 {offsets = [0, 0, 0], sizes = [8, 16, 16], strides = [1, 1, 1]} : vector<8x18x16xbf16> to vector<8x16x16xbf16>
    %13 = vector.extract_strided_slice %11 {offsets = [0, 1, 0], sizes = [8, 16, 16], strides = [1, 1, 1]} : vector<8x18x16xbf16> to vector<8x16x16xbf16>
    %14 = vector.extract_strided_slice %11 {offsets = [0, 2, 0], sizes = [8, 16, 16], strides = [1, 1, 1]} : vector<8x18x16xbf16> to vector<8x16x16xbf16>
    %15 = tpu.concatenate %2, %3, %4, %7, %8, %9, %12, %13, %14 in 2 : vector<8x16x16xbf16>, vector<8x16x16xbf16>, vector<8x16x16xbf16>, vector<8x16x16xbf16>, vector<8x16x16xbf16>, vector<8x16x16xbf16>, vector<8x16x16xbf16>, vector<8x16x16xbf16>, vector<8x16x16xbf16> -> vector<8x16x144xbf16>
    %16 = vector.shape_cast %15 : vector<8x16x144xbf16> to vector<128x144xbf16>
    %c0_12 = arith.constant 0 : index
    %c0_13 = arith.constant 0 : index
    %17 = vector.load %arg3[%c0_12, %c0_13] : memref<144x16xbf16, #tpu.memory_space<vmem>>, vector<144x16xbf16>
    %cst = arith.constant dense<0.000000e+00> : vector<128x16xf32>
    %18 = tpu.matmul %16, %17, %cst {dimension_numbers = #tpu.dot_dimension_numbers<[1], [0], [0], [1], [0, 0, 1, 1], [], []>} : vector<128x144xbf16>, vector<144x16xbf16>, vector<128x16xf32> -> vector<128x16xf32>
    %c0_14 = arith.constant 0 : index
    %c0_15 = arith.constant 0 : index
    %19 = vector.load %arg4[%c0_14, %c0_15] : memref<1x16xf32, #tpu.memory_space<vmem>>, vector<1x16xf32>
    %20 = vector.broadcast %19 : vector<1x16xf32> to vector<128x16xf32>
    %21 = arith.addf %18, %20 : vector<128x16xf32>
    %22 = vector.shape_cast %21 : vector<128x16xf32> to vector<8x16x16xf32>
    %23 = arith.truncf %22 : vector<8x16x16xf32> to vector<8x16x16xbf16>
    %c0_16 = arith.constant 0 : index
    %c0_17 = arith.constant 0 : index
    %c0_18 = arith.constant 0 : index
    %c0_19 = arith.constant 0 : index
    %24 = vector.load %arg5[%c0_16, %c0_17, %c0_18, %c0_19] : memref<1x8x16x16xbf16, #tpu.memory_space<vmem>>, vector<1x8x16x16xbf16>
    %25 = vector.shape_cast %24 : vector<1x8x16x16xbf16> to vector<8x16x16xbf16>
    %26 = vector.shape_cast %23 : vector<8x16x16xbf16> to vector<1x8x16x16xbf16>
    tpu.vector_store %arg5[%c0_16, %c0_17, %c0_18, %c0_19], %26 {strides = array<i32>} : memref<1x8x16x16xbf16, #tpu.memory_space<vmem>>, vector<1x8x16x16xbf16>,
    %cst_20 = arith.constant dense<0.000000e+00> : vector<16xf32>
    %27 = vector.multi_reduction <add>, %21, %cst_20 [0] : vector<128x16xf32> to vector<16xf32>
    %28 = vector.shape_cast %27 : vector<16xf32> to vector<1x16xf32>
    %c0_21 = arith.constant 0 : index
    %c0_22 = arith.constant 0 : index
    %c0_23 = arith.constant 0 : index
    %c0_24 = arith.constant 0 : index
    %29 = vector.load %arg6[%c0_21, %c0_22, %c0_23, %c0_24] : memref<1x1x1x16xf32, #tpu.memory_space<vmem>>, vector<1x1x1x16xf32>
    %30 = vector.shape_cast %29 : vector<1x1x1x16xf32> to vector<1x16xf32>
    %31 = vector.shape_cast %28 : vector<1x16xf32> to vector<1x1x1x16xf32>
    tpu.vector_store %arg6[%c0_21, %c0_22, %c0_23, %c0_24], %31 {strides = array<i32>} : memref<1x1x1x16xf32, #tpu.memory_space<vmem>>, vector<1x1x1x16xf32>,
    %cst_25 = arith.constant dense<0xFF800000> : vector<16xf32>
    %32 = vector.multi_reduction <maximumf>, %21, %cst_25 [0] : vector<128x16xf32> to vector<16xf32>
    %33 = vector.shape_cast %32 : vector<16xf32> to vector<1x16xf32>
    %c0_26 = arith.constant 0 : index
    %c0_27 = arith.constant 0 : index
    %c0_28 = arith.constant 0 : index
    %c0_29 = arith.constant 0 : index
    %34 = vector.load %arg7[%c0_26, %c0_27, %c0_28, %c0_29] : memref<1x1x1x16xf32, #tpu.memory_space<vmem>>, vector<1x1x1x16xf32>
    %35 = vector.shape_cast %34 : vector<1x1x1x16xf32> to vector<1x16xf32>
    %36 = vector.shape_cast %33 : vector<1x16xf32> to vector<1x1x1x16xf32>
    tpu.vector_store %arg7[%c0_26, %c0_27, %c0_28, %c0_29], %36 {strides = array<i32>} : memref<1x1x1x16xf32, #tpu.memory_space<vmem>>, vector<1x1x1x16xf32>,
    return
  }
  func.func @transform_0(%arg0: i32, %arg1: i32) -> (i32, i32, i32, i32, i32) {
    %c0_i32 = arith.constant 0 : i32
    %c0_i32_0 = arith.constant 0 : i32
    %c0_i32_1 = arith.constant 0 : i32
    %c0_i32_2 = arith.constant 0 : i32
    return %arg0, %c0_i32, %arg1, %c0_i32_0, %c0_i32_1 : i32, i32, i32, i32, i32
  }
  func.func @transform_1(%arg0: i32, %arg1: i32) -> (i32, i32) {
    %c0_i32 = arith.constant 0 : i32
    %c0_i32_0 = arith.constant 0 : i32
    %c0_i32_1 = arith.constant 0 : i32
    return %c0_i32, %c0_i32_0 : i32, i32
  }
  func.func @transform_2(%arg0: i32, %arg1: i32) -> (i32, i32) {
    %c0_i32 = arith.constant 0 : i32
    %c0_i32_0 = arith.constant 0 : i32
    %c0_i32_1 = arith.constant 0 : i32
    return %c0_i32, %c0_i32_0 : i32, i32
  }
  func.func @transform_3(%arg0: i32, %arg1: i32) -> (i32, i32, i32, i32) {
    %c0_i32 = arith.constant 0 : i32
    %c0_i32_0 = arith.constant 0 : i32
    %c0_i32_1 = arith.constant 0 : i32
    return %arg0, %arg1, %c0_i32, %c0_i32_0 : i32, i32, i32, i32
  }
  func.func @transform_4(%arg0: i32, %arg1: i32) -> (i32, i32, i32, i32) {
    %c0_i32 = arith.constant 0 : i32
    %c0_i32_0 = arith.constant 0 : i32
    %c0_i32_1 = arith.constant 0 : i32
    return %arg0, %arg1, %c0_i32, %c0_i32_0 : i32, i32, i32, i32
  }
  func.func @transform_5(%arg0: i32, %arg1: i32) -> (i32, i32, i32, i32) {
    %c0_i32 = arith.constant 0 : i32
    %c0_i32_0 = arith.constant 0 : i32
    %c0_i32_1 = arith.constant 0 : i32
    return %arg0, %arg1, %c0_i32, %c0_i32_0 : i32, i32, i32, i32
  }
}

module attributes {stable_mosaic.version = 11 : i64} {
  func.func @_smap_kernel(%arg0: i32, %arg1: i32, %arg2: memref<1x8x16x16xbf16, #tpu.memory_space<vmem>>, %arg3: memref<1x1x16xf32, #tpu.memory_space<vmem>>, %arg4: memref<1x2x8x16xbf16, #tpu.memory_space<vmem>>) attributes {dimension_semantics = [#tpu.dimension_semantics<parallel>, #tpu.dimension_semantics<parallel>], iteration_bounds = array<i64: 2, 2>, scalar_prefetch = 0 : i64, scratch_operands = 0 : i64, tpu.core_type = #tpu.core_type<tc>, window_params = [{transform_indices = @transform_0, window_bounds = array<i64: 1, 8, 16, 16>}, {transform_indices = @transform_1, window_bounds = array<i64: 1, 1, 16>}, {transform_indices = @transform_2, window_bounds = array<i64: 1, 2, 8, 16>}]} {
    %c0 = arith.constant 0 : index
    %c0_0 = arith.constant 0 : index
    %c0_1 = arith.constant 0 : index
    %c0_2 = arith.constant 0 : index
    %0 = vector.load %arg2[%c0, %c0_0, %c0_1, %c0_2] : memref<1x8x16x16xbf16, #tpu.memory_space<vmem>>, vector<1x8x16x16xbf16>
    %1 = vector.shape_cast %0 : vector<1x8x16x16xbf16> to vector<8x16x16xbf16>
    %2 = arith.extf %1 : vector<8x16x16xbf16> to vector<8x16x16xf32>
    %c0_3 = arith.constant 0 : index
    %c0_4 = arith.constant 0 : index
    %c0_5 = arith.constant 0 : index
    %3 = vector.load %arg3[%c0_3, %c0_4, %c0_5] : memref<1x1x16xf32, #tpu.memory_space<vmem>>, vector<1x1x16xf32>
    %4 = vector.shape_cast %3 : vector<1x1x16xf32> to vector<1x16xf32>
    %5 = vector.shape_cast %4 : vector<1x16xf32> to vector<1x1x16xf32>
    %6 = vector.broadcast %5 : vector<1x1x16xf32> to vector<8x16x16xf32>
    %7 = arith.mulf %2, %6 : vector<8x16x16xf32>
    %cst = arith.constant dense<0.000000e+00> : vector<8x16xf32>
    %8 = vector.multi_reduction <add>, %7, %cst [2] : vector<8x16x16xf32> to vector<8x16xf32>
    %cst_6 = arith.constant 1.600000e+01 : f32
    %9 = vector.broadcast %cst_6 : f32 to vector<8x16xf32>
    %10 = arith.divf %8, %9 : vector<8x16xf32>
    %11 = arith.truncf %10 : vector<8x16xf32> to vector<8x16xbf16>
    %c0_7 = arith.constant 0 : index
    %c0_8 = arith.constant 0 : index
    %c0_9 = arith.constant 0 : index
    %c0_10 = arith.constant 0 : index
    %12 = vector.load %arg4[%c0_7, %c0_8, %c0_9, %c0_10] : memref<1x2x8x16xbf16, #tpu.memory_space<vmem>>, vector<1x1x8x16xbf16>
    %13 = vector.shape_cast %12 : vector<1x1x8x16xbf16> to vector<8x16xbf16>
    %14 = vector.shape_cast %11 : vector<8x16xbf16> to vector<1x1x8x16xbf16>
    tpu.vector_store %arg4[%c0_7, %c0_8, %c0_9, %c0_10], %14 {strides = array<i32>} : memref<1x2x8x16xbf16, #tpu.memory_space<vmem>>, vector<1x1x8x16xbf16>,
    %cst_11 = arith.constant dense<0xFF800000> : vector<8x16xf32>
    %15 = vector.multi_reduction <maximumf>, %7, %cst_11 [2] : vector<8x16x16xf32> to vector<8x16xf32>
    %16 = arith.truncf %15 : vector<8x16xf32> to vector<8x16xbf16>
    %c0_12 = arith.constant 0 : index
    %c1 = arith.constant 1 : index
    %c0_13 = arith.constant 0 : index
    %c0_14 = arith.constant 0 : index
    %17 = vector.load %arg4[%c0_12, %c1, %c0_13, %c0_14] : memref<1x2x8x16xbf16, #tpu.memory_space<vmem>>, vector<1x1x8x16xbf16>
    %18 = vector.shape_cast %17 : vector<1x1x8x16xbf16> to vector<8x16xbf16>
    %19 = vector.shape_cast %16 : vector<8x16xbf16> to vector<1x1x8x16xbf16>
    tpu.vector_store %arg4[%c0_12, %c1, %c0_13, %c0_14], %19 {strides = array<i32>} : memref<1x2x8x16xbf16, #tpu.memory_space<vmem>>, vector<1x1x8x16xbf16>,
    return
  }
  func.func @transform_0(%arg0: i32, %arg1: i32) -> (i32, i32, i32, i32) {
    %c0_i32 = arith.constant 0 : i32
    %c0_i32_0 = arith.constant 0 : i32
    %c0_i32_1 = arith.constant 0 : i32
    return %arg0, %arg1, %c0_i32, %c0_i32_0 : i32, i32, i32, i32
  }
  func.func @transform_1(%arg0: i32, %arg1: i32) -> (i32, i32, i32) {
    %c0_i32 = arith.constant 0 : i32
    %c0_i32_0 = arith.constant 0 : i32
    %c0_i32_1 = arith.constant 0 : i32
    return %arg0, %c0_i32, %c0_i32_0 : i32, i32, i32
  }
  func.func @transform_2(%arg0: i32, %arg1: i32) -> (i32, i32, i32, i32) {
    %c0_i32 = arith.constant 0 : i32
    %c0_i32_0 = arith.constant 0 : i32
    %c0_i32_1 = arith.constant 0 : i32
    return %arg0, %c0_i32, %arg1, %c0_i32_0 : i32, i32, i32, i32
  }
}

module attributes {stable_mosaic.version = 11 : i64} {
  func.func @_final_kernel(%arg0: i32, %arg1: i32, %arg2: memref<1x8x16x16xbf16, #tpu.memory_space<vmem>>, %arg3: memref<1x2x22x22xbf16, #tpu.memory_space<vmem>>, %arg4: memref<1x8x16x16xf32, #tpu.memory_space<vmem>>, %arg5: memref<1x1x16xf32, #tpu.memory_space<vmem>>, %arg6: memref<16x16xf32, #tpu.memory_space<vmem>>, %arg7: memref<2x49xf32, #tpu.memory_space<smem>>, %arg8: memref<1x16x128xf32, #tpu.memory_space<vmem>>) attributes {dimension_semantics = [#tpu.dimension_semantics<parallel>, #tpu.dimension_semantics<parallel>], iteration_bounds = array<i64: 2, 2>, scalar_prefetch = 0 : i64, scratch_operands = 0 : i64, tpu.core_type = #tpu.core_type<tc>, window_params = [{transform_indices = @transform_0, window_bounds = array<i64: 1, 8, 16, 16>}, {transform_indices = @transform_1, window_bounds = array<i64: 1, 2, 22, 22>}, {transform_indices = @transform_2, window_bounds = array<i64: 1, 8, 16, 16>}, {transform_indices = @transform_3, window_bounds = array<i64: 1, 1, 16>}, {pipeline_mode = #tpu.pipeline_mode<synchronous>, transform_indices = @transform_4, window_bounds = array<i64: 16, 16>}, {transform_indices = @transform_5, window_bounds = array<i64: 2, 49>}, {transform_indices = @transform_6, window_bounds = array<i64: 1, 16, 128>}]} {
    %c0 = arith.constant 0 : index
    %c0_0 = arith.constant 0 : index
    %c0_1 = arith.constant 0 : index
    %c0_2 = arith.constant 0 : index
    %0 = vector.load %arg2[%c0, %c0_0, %c0_1, %c0_2] : memref<1x8x16x16xbf16, #tpu.memory_space<vmem>>, vector<1x8x16x16xbf16>
    %1 = vector.shape_cast %0 : vector<1x8x16x16xbf16> to vector<8x16x16xbf16>
    %2 = arith.extf %1 : vector<8x16x16xbf16> to vector<8x16x16xf32>
    %c0_3 = arith.constant 0 : index
    %c0_4 = arith.constant 0 : index
    %c0_5 = arith.constant 0 : index
    %3 = vector.load %arg5[%c0_3, %c0_4, %c0_5] : memref<1x1x16xf32, #tpu.memory_space<vmem>>, vector<1x1x16xf32>
    %4 = vector.shape_cast %3 : vector<1x1x16xf32> to vector<1x16xf32>
    %5 = vector.shape_cast %4 : vector<1x16xf32> to vector<1x1x16xf32>
    %6 = vector.broadcast %5 : vector<1x1x16xf32> to vector<8x16x16xf32>
    %7 = arith.mulf %2, %6 : vector<8x16x16xf32>
    %c8_i32 = arith.constant 8 : i32
    %8 = arith.muli %arg1, %c8_i32 : i32
    %9 = tpu.assume_multiple %8, 8 : i32
    %cst = arith.constant 0.000000e+00 : f32
    %10 = vector.broadcast %cst : f32 to vector<8x16xf32>
    %c0_6 = arith.constant 0 : index
    %c0_7 = arith.constant 0 : index
    %11 = arith.index_cast %9 : i32 to index
    %c0_8 = arith.constant 0 : index
    %12 = vector.load %arg3[%c0_6, %c0_7, %11, %c0_8] : memref<1x2x22x22xbf16, #tpu.memory_space<vmem>>, vector<1x1x14x22xbf16>
    %13 = vector.shape_cast %12 : vector<1x1x14x22xbf16> to vector<14x22xbf16>
    %14 = arith.extf %13 : vector<14x22xbf16> to vector<14x22xf32>
    %15 = vector.extract_strided_slice %14 {offsets = [0, 0], sizes = [8, 22], strides = [1, 1]} : vector<14x22xf32> to vector<8x22xf32>
    %16 = vector.extract_strided_slice %15 {offsets = [0, 0], sizes = [8, 16], strides = [1, 1]} : vector<8x22xf32> to vector<8x16xf32>
    %c0_9 = arith.constant 0 : index
    %c0_10 = arith.constant 0 : index
    %17 = memref.load %arg7[%c0_9, %c0_10] : memref<2x49xf32, #tpu.memory_space<smem>>
    %18 = vector.broadcast %17 : f32 to vector<8x16xf32>
    %19 = arith.mulf %16, %18 : vector<8x16xf32>
    %20 = arith.addf %10, %19 : vector<8x16xf32>
    %21 = vector.extract_strided_slice %15 {offsets = [0, 1], sizes = [8, 16], strides = [1, 1]} : vector<8x22xf32> to vector<8x16xf32>
    %c0_11 = arith.constant 0 : index
    %c1 = arith.constant 1 : index
    %22 = memref.load %arg7[%c0_11, %c1] : memref<2x49xf32, #tpu.memory_space<smem>>
    %23 = vector.broadcast %22 : f32 to vector<8x16xf32>
    %24 = arith.mulf %21, %23 : vector<8x16xf32>
    %25 = arith.addf %20, %24 : vector<8x16xf32>
    %26 = vector.extract_strided_slice %15 {offsets = [0, 2], sizes = [8, 16], strides = [1, 1]} : vector<8x22xf32> to vector<8x16xf32>
    %c0_12 = arith.constant 0 : index
    %c2 = arith.constant 2 : index
    %27 = memref.load %arg7[%c0_12, %c2] : memref<2x49xf32, #tpu.memory_space<smem>>
    %28 = vector.broadcast %27 : f32 to vector<8x16xf32>
    %29 = arith.mulf %26, %28 : vector<8x16xf32>
    %30 = arith.addf %25, %29 : vector<8x16xf32>
    %31 = vector.extract_strided_slice %15 {offsets = [0, 3], sizes = [8, 16], strides = [1, 1]} : vector<8x22xf32> to vector<8x16xf32>
    %c0_13 = arith.constant 0 : index
    %c3 = arith.constant 3 : index
    %32 = memref.load %arg7[%c0_13, %c3] : memref<2x49xf32, #tpu.memory_space<smem>>
    %33 = vector.broadcast %32 : f32 to vector<8x16xf32>
    %34 = arith.mulf %31, %33 : vector<8x16xf32>
    %35 = arith.addf %30, %34 : vector<8x16xf32>
    %36 = vector.extract_strided_slice %15 {offsets = [0, 4], sizes = [8, 16], strides = [1, 1]} : vector<8x22xf32> to vector<8x16xf32>
    %c0_14 = arith.constant 0 : index
    %c4 = arith.constant 4 : index
    %37 = memref.load %arg7[%c0_14, %c4] : memref<2x49xf32, #tpu.memory_space<smem>>
    %38 = vector.broadcast %37 : f32 to vector<8x16xf32>
    %39 = arith.mulf %36, %38 : vector<8x16xf32>
    %40 = arith.addf %35, %39 : vector<8x16xf32>
    %41 = vector.extract_strided_slice %15 {offsets = [0, 5], sizes = [8, 16], strides = [1, 1]} : vector<8x22xf32> to vector<8x16xf32>
    %c0_15 = arith.constant 0 : index
    %c5 = arith.constant 5 : index
    %42 = memref.load %arg7[%c0_15, %c5] : memref<2x49xf32, #tpu.memory_space<smem>>
    %43 = vector.broadcast %42 : f32 to vector<8x16xf32>
    %44 = arith.mulf %41, %43 : vector<8x16xf32>
    %45 = arith.addf %40, %44 : vector<8x16xf32>
    %46 = vector.extract_strided_slice %15 {offsets = [0, 6], sizes = [8, 16], strides = [1, 1]} : vector<8x22xf32> to vector<8x16xf32>
    %c0_16 = arith.constant 0 : index
    %c6 = arith.constant 6 : index
    %47 = memref.load %arg7[%c0_16, %c6] : memref<2x49xf32, #tpu.memory_space<smem>>
    %48 = vector.broadcast %47 : f32 to vector<8x16xf32>
    %49 = arith.mulf %46, %48 : vector<8x16xf32>
    %50 = arith.addf %45, %49 : vector<8x16xf32>
    %51 = vector.extract_strided_slice %14 {offsets = [1, 0], sizes = [8, 22], strides = [1, 1]} : vector<14x22xf32> to vector<8x22xf32>
    %52 = vector.extract_strided_slice %51 {offsets = [0, 0], sizes = [8, 16], strides = [1, 1]} : vector<8x22xf32> to vector<8x16xf32>
    %c0_17 = arith.constant 0 : index
    %c7 = arith.constant 7 : index
    %53 = memref.load %arg7[%c0_17, %c7] : memref<2x49xf32, #tpu.memory_space<smem>>
    %54 = vector.broadcast %53 : f32 to vector<8x16xf32>
    %55 = arith.mulf %52, %54 : vector<8x16xf32>
    %56 = arith.addf %50, %55 : vector<8x16xf32>
    %57 = vector.extract_strided_slice %51 {offsets = [0, 1], sizes = [8, 16], strides = [1, 1]} : vector<8x22xf32> to vector<8x16xf32>
    %c0_18 = arith.constant 0 : index
    %c8 = arith.constant 8 : index
    %58 = memref.load %arg7[%c0_18, %c8] : memref<2x49xf32, #tpu.memory_space<smem>>
    %59 = vector.broadcast %58 : f32 to vector<8x16xf32>
    %60 = arith.mulf %57, %59 : vector<8x16xf32>
    %61 = arith.addf %56, %60 : vector<8x16xf32>
    %62 = vector.extract_strided_slice %51 {offsets = [0, 2], sizes = [8, 16], strides = [1, 1]} : vector<8x22xf32> to vector<8x16xf32>
    %c0_19 = arith.constant 0 : index
    %c9 = arith.constant 9 : index
    %63 = memref.load %arg7[%c0_19, %c9] : memref<2x49xf32, #tpu.memory_space<smem>>
    %64 = vector.broadcast %63 : f32 to vector<8x16xf32>
    %65 = arith.mulf %62, %64 : vector<8x16xf32>
    %66 = arith.addf %61, %65 : vector<8x16xf32>
    %67 = vector.extract_strided_slice %51 {offsets = [0, 3], sizes = [8, 16], strides = [1, 1]} : vector<8x22xf32> to vector<8x16xf32>
    %c0_20 = arith.constant 0 : index
    %c10 = arith.constant 10 : index
    %68 = memref.load %arg7[%c0_20, %c10] : memref<2x49xf32, #tpu.memory_space<smem>>
    %69 = vector.broadcast %68 : f32 to vector<8x16xf32>
    %70 = arith.mulf %67, %69 : vector<8x16xf32>
    %71 = arith.addf %66, %70 : vector<8x16xf32>
    %72 = vector.extract_strided_slice %51 {offsets = [0, 4], sizes = [8, 16], strides = [1, 1]} : vector<8x22xf32> to vector<8x16xf32>
    %c0_21 = arith.constant 0 : index
    %c11 = arith.constant 11 : index
    %73 = memref.load %arg7[%c0_21, %c11] : memref<2x49xf32, #tpu.memory_space<smem>>
    %74 = vector.broadcast %73 : f32 to vector<8x16xf32>
    %75 = arith.mulf %72, %74 : vector<8x16xf32>
    %76 = arith.addf %71, %75 : vector<8x16xf32>
    %77 = vector.extract_strided_slice %51 {offsets = [0, 5], sizes = [8, 16], strides = [1, 1]} : vector<8x22xf32> to vector<8x16xf32>
    %c0_22 = arith.constant 0 : index
    %c12 = arith.constant 12 : index
    %78 = memref.load %arg7[%c0_22, %c12] : memref<2x49xf32, #tpu.memory_space<smem>>
    %79 = vector.broadcast %78 : f32 to vector<8x16xf32>
    %80 = arith.mulf %77, %79 : vector<8x16xf32>
    %81 = arith.addf %76, %80 : vector<8x16xf32>
    %82 = vector.extract_strided_slice %51 {offsets = [0, 6], sizes = [8, 16], strides = [1, 1]} : vector<8x22xf32> to vector<8x16xf32>
    %c0_23 = arith.constant 0 : index
    %c13 = arith.constant 13 : index
    %83 = memref.load %arg7[%c0_23, %c13] : memref<2x49xf32, #tpu.memory_space<smem>>
    %84 = vector.broadcast %83 : f32 to vector<8x16xf32>
    %85 = arith.mulf %82, %84 : vector<8x16xf32>
    %86 = arith.addf %81, %85 : vector<8x16xf32>
    %87 = vector.extract_strided_slice %14 {offsets = [2, 0], sizes = [8, 22], strides = [1, 1]} : vector<14x22xf32> to vector<8x22xf32>
    %88 = vector.extract_strided_slice %87 {offsets = [0, 0], sizes = [8, 16], strides = [1, 1]} : vector<8x22xf32> to vector<8x16xf32>
    %c0_24 = arith.constant 0 : index
    %c14 = arith.constant 14 : index
    %89 = memref.load %arg7[%c0_24, %c14] : memref<2x49xf32, #tpu.memory_space<smem>>
    %90 = vector.broadcast %89 : f32 to vector<8x16xf32>
    %91 = arith.mulf %88, %90 : vector<8x16xf32>
    %92 = arith.addf %86, %91 : vector<8x16xf32>
    %93 = vector.extract_strided_slice %87 {offsets = [0, 1], sizes = [8, 16], strides = [1, 1]} : vector<8x22xf32> to vector<8x16xf32>
    %c0_25 = arith.constant 0 : index
    %c15 = arith.constant 15 : index
    %94 = memref.load %arg7[%c0_25, %c15] : memref<2x49xf32, #tpu.memory_space<smem>>
    %95 = vector.broadcast %94 : f32 to vector<8x16xf32>
    %96 = arith.mulf %93, %95 : vector<8x16xf32>
    %97 = arith.addf %92, %96 : vector<8x16xf32>
    %98 = vector.extract_strided_slice %87 {offsets = [0, 2], sizes = [8, 16], strides = [1, 1]} : vector<8x22xf32> to vector<8x16xf32>
    %c0_26 = arith.constant 0 : index
    %c16 = arith.constant 16 : index
    %99 = memref.load %arg7[%c0_26, %c16] : memref<2x49xf32, #tpu.memory_space<smem>>
    %100 = vector.broadcast %99 : f32 to vector<8x16xf32>
    %101 = arith.mulf %98, %100 : vector<8x16xf32>
    %102 = arith.addf %97, %101 : vector<8x16xf32>
    %103 = vector.extract_strided_slice %87 {offsets = [0, 3], sizes = [8, 16], strides = [1, 1]} : vector<8x22xf32> to vector<8x16xf32>
    %c0_27 = arith.constant 0 : index
    %c17 = arith.constant 17 : index
    %104 = memref.load %arg7[%c0_27, %c17] : memref<2x49xf32, #tpu.memory_space<smem>>
    %105 = vector.broadcast %104 : f32 to vector<8x16xf32>
    %106 = arith.mulf %103, %105 : vector<8x16xf32>
    %107 = arith.addf %102, %106 : vector<8x16xf32>
    %108 = vector.extract_strided_slice %87 {offsets = [0, 4], sizes = [8, 16], strides = [1, 1]} : vector<8x22xf32> to vector<8x16xf32>
    %c0_28 = arith.constant 0 : index
    %c18 = arith.constant 18 : index
    %109 = memref.load %arg7[%c0_28, %c18] : memref<2x49xf32, #tpu.memory_space<smem>>
    %110 = vector.broadcast %109 : f32 to vector<8x16xf32>
    %111 = arith.mulf %108, %110 : vector<8x16xf32>
    %112 = arith.addf %107, %111 : vector<8x16xf32>
    %113 = vector.extract_strided_slice %87 {offsets = [0, 5], sizes = [8, 16], strides = [1, 1]} : vector<8x22xf32> to vector<8x16xf32>
    %c0_29 = arith.constant 0 : index
    %c19 = arith.constant 19 : index
    %114 = memref.load %arg7[%c0_29, %c19] : memref<2x49xf32, #tpu.memory_space<smem>>
    %115 = vector.broadcast %114 : f32 to vector<8x16xf32>
    %116 = arith.mulf %113, %115 : vector<8x16xf32>
    %117 = arith.addf %112, %116 : vector<8x16xf32>
    %118 = vector.extract_strided_slice %87 {offsets = [0, 6], sizes = [8, 16], strides = [1, 1]} : vector<8x22xf32> to vector<8x16xf32>
    %c0_30 = arith.constant 0 : index
    %c20 = arith.constant 20 : index
    %119 = memref.load %arg7[%c0_30, %c20] : memref<2x49xf32, #tpu.memory_space<smem>>
    %120 = vector.broadcast %119 : f32 to vector<8x16xf32>
    %121 = arith.mulf %118, %120 : vector<8x16xf32>
    %122 = arith.addf %117, %121 : vector<8x16xf32>
    %123 = vector.extract_strided_slice %14 {offsets = [3, 0], sizes = [8, 22], strides = [1, 1]} : vector<14x22xf32> to vector<8x22xf32>
    %124 = vector.extract_strided_slice %123 {offsets = [0, 0], sizes = [8, 16], strides = [1, 1]} : vector<8x22xf32> to vector<8x16xf32>
    %c0_31 = arith.constant 0 : index
    %c21 = arith.constant 21 : index
    %125 = memref.load %arg7[%c0_31, %c21] : memref<2x49xf32, #tpu.memory_space<smem>>
    %126 = vector.broadcast %125 : f32 to vector<8x16xf32>
    %127 = arith.mulf %124, %126 : vector<8x16xf32>
    %128 = arith.addf %122, %127 : vector<8x16xf32>
    %129 = vector.extract_strided_slice %123 {offsets = [0, 1], sizes = [8, 16], strides = [1, 1]} : vector<8x22xf32> to vector<8x16xf32>
    %c0_32 = arith.constant 0 : index
    %c22 = arith.constant 22 : index
    %130 = memref.load %arg7[%c0_32, %c22] : memref<2x49xf32, #tpu.memory_space<smem>>
    %131 = vector.broadcast %130 : f32 to vector<8x16xf32>
    %132 = arith.mulf %129, %131 : vector<8x16xf32>
    %133 = arith.addf %128, %132 : vector<8x16xf32>
    %134 = vector.extract_strided_slice %123 {offsets = [0, 2], sizes = [8, 16], strides = [1, 1]} : vector<8x22xf32> to vector<8x16xf32>
    %c0_33 = arith.constant 0 : index
    %c23 = arith.constant 23 : index
    %135 = memref.load %arg7[%c0_33, %c23] : memref<2x49xf32, #tpu.memory_space<smem>>
    %136 = vector.broadcast %135 : f32 to vector<8x16xf32>
    %137 = arith.mulf %134, %136 : vector<8x16xf32>
    %138 = arith.addf %133, %137 : vector<8x16xf32>
    %139 = vector.extract_strided_slice %123 {offsets = [0, 3], sizes = [8, 16], strides = [1, 1]} : vector<8x22xf32> to vector<8x16xf32>
    %c0_34 = arith.constant 0 : index
    %c24 = arith.constant 24 : index
    %140 = memref.load %arg7[%c0_34, %c24] : memref<2x49xf32, #tpu.memory_space<smem>>
    %141 = vector.broadcast %140 : f32 to vector<8x16xf32>
    %142 = arith.mulf %139, %141 : vector<8x16xf32>
    %143 = arith.addf %138, %142 : vector<8x16xf32>
    %144 = vector.extract_strided_slice %123 {offsets = [0, 4], sizes = [8, 16], strides = [1, 1]} : vector<8x22xf32> to vector<8x16xf32>
    %c0_35 = arith.constant 0 : index
    %c25 = arith.constant 25 : index
    %145 = memref.load %arg7[%c0_35, %c25] : memref<2x49xf32, #tpu.memory_space<smem>>
    %146 = vector.broadcast %145 : f32 to vector<8x16xf32>
    %147 = arith.mulf %144, %146 : vector<8x16xf32>
    %148 = arith.addf %143, %147 : vector<8x16xf32>
    %149 = vector.extract_strided_slice %123 {offsets = [0, 5], sizes = [8, 16], strides = [1, 1]} : vector<8x22xf32> to vector<8x16xf32>
    %c0_36 = arith.constant 0 : index
    %c26 = arith.constant 26 : index
    %150 = memref.load %arg7[%c0_36, %c26] : memref<2x49xf32, #tpu.memory_space<smem>>
    %151 = vector.broadcast %150 : f32 to vector<8x16xf32>
    %152 = arith.mulf %149, %151 : vector<8x16xf32>
    %153 = arith.addf %148, %152 : vector<8x16xf32>
    %154 = vector.extract_strided_slice %123 {offsets = [0, 6], sizes = [8, 16], strides = [1, 1]} : vector<8x22xf32> to vector<8x16xf32>
    %c0_37 = arith.constant 0 : index
    %c27 = arith.constant 27 : index
    %155 = memref.load %arg7[%c0_37, %c27] : memref<2x49xf32, #tpu.memory_space<smem>>
    %156 = vector.broadcast %155 : f32 to vector<8x16xf32>
    %157 = arith.mulf %154, %156 : vector<8x16xf32>
    %158 = arith.addf %153, %157 : vector<8x16xf32>
    %159 = vector.extract_strided_slice %14 {offsets = [4, 0], sizes = [8, 22], strides = [1, 1]} : vector<14x22xf32> to vector<8x22xf32>
    %160 = vector.extract_strided_slice %159 {offsets = [0, 0], sizes = [8, 16], strides = [1, 1]} : vector<8x22xf32> to vector<8x16xf32>
    %c0_38 = arith.constant 0 : index
    %c28 = arith.constant 28 : index
    %161 = memref.load %arg7[%c0_38, %c28] : memref<2x49xf32, #tpu.memory_space<smem>>
    %162 = vector.broadcast %161 : f32 to vector<8x16xf32>
    %163 = arith.mulf %160, %162 : vector<8x16xf32>
    %164 = arith.addf %158, %163 : vector<8x16xf32>
    %165 = vector.extract_strided_slice %159 {offsets = [0, 1], sizes = [8, 16], strides = [1, 1]} : vector<8x22xf32> to vector<8x16xf32>
    %c0_39 = arith.constant 0 : index
    %c29 = arith.constant 29 : index
    %166 = memref.load %arg7[%c0_39, %c29] : memref<2x49xf32, #tpu.memory_space<smem>>
    %167 = vector.broadcast %166 : f32 to vector<8x16xf32>
    %168 = arith.mulf %165, %167 : vector<8x16xf32>
    %169 = arith.addf %164, %168 : vector<8x16xf32>
    %170 = vector.extract_strided_slice %159 {offsets = [0, 2], sizes = [8, 16], strides = [1, 1]} : vector<8x22xf32> to vector<8x16xf32>
    %c0_40 = arith.constant 0 : index
    %c30 = arith.constant 30 : index
    %171 = memref.load %arg7[%c0_40, %c30] : memref<2x49xf32, #tpu.memory_space<smem>>
    %172 = vector.broadcast %171 : f32 to vector<8x16xf32>
    %173 = arith.mulf %170, %172 : vector<8x16xf32>
    %174 = arith.addf %169, %173 : vector<8x16xf32>
    %175 = vector.extract_strided_slice %159 {offsets = [0, 3], sizes = [8, 16], strides = [1, 1]} : vector<8x22xf32> to vector<8x16xf32>
    %c0_41 = arith.constant 0 : index
    %c31 = arith.constant 31 : index
    %176 = memref.load %arg7[%c0_41, %c31] : memref<2x49xf32, #tpu.memory_space<smem>>
    %177 = vector.broadcast %176 : f32 to vector<8x16xf32>
    %178 = arith.mulf %175, %177 : vector<8x16xf32>
    %179 = arith.addf %174, %178 : vector<8x16xf32>
    %180 = vector.extract_strided_slice %159 {offsets = [0, 4], sizes = [8, 16], strides = [1, 1]} : vector<8x22xf32> to vector<8x16xf32>
    %c0_42 = arith.constant 0 : index
    %c32 = arith.constant 32 : index
    %181 = memref.load %arg7[%c0_42, %c32] : memref<2x49xf32, #tpu.memory_space<smem>>
    %182 = vector.broadcast %181 : f32 to vector<8x16xf32>
    %183 = arith.mulf %180, %182 : vector<8x16xf32>
    %184 = arith.addf %179, %183 : vector<8x16xf32>
    %185 = vector.extract_strided_slice %159 {offsets = [0, 5], sizes = [8, 16], strides = [1, 1]} : vector<8x22xf32> to vector<8x16xf32>
    %c0_43 = arith.constant 0 : index
    %c33 = arith.constant 33 : index
    %186 = memref.load %arg7[%c0_43, %c33] : memref<2x49xf32, #tpu.memory_space<smem>>
    %187 = vector.broadcast %186 : f32 to vector<8x16xf32>
    %188 = arith.mulf %185, %187 : vector<8x16xf32>
    %189 = arith.addf %184, %188 : vector<8x16xf32>
    %190 = vector.extract_strided_slice %159 {offsets = [0, 6], sizes = [8, 16], strides = [1, 1]} : vector<8x22xf32> to vector<8x16xf32>
    %c0_44 = arith.constant 0 : index
    %c34 = arith.constant 34 : index
    %191 = memref.load %arg7[%c0_44, %c34] : memref<2x49xf32, #tpu.memory_space<smem>>
    %192 = vector.broadcast %191 : f32 to vector<8x16xf32>
    %193 = arith.mulf %190, %192 : vector<8x16xf32>
    %194 = arith.addf %189, %193 : vector<8x16xf32>
    %195 = vector.extract_strided_slice %14 {offsets = [5, 0], sizes = [8, 22], strides = [1, 1]} : vector<14x22xf32> to vector<8x22xf32>
    %196 = vector.extract_strided_slice %195 {offsets = [0, 0], sizes = [8, 16], strides = [1, 1]} : vector<8x22xf32> to vector<8x16xf32>
    %c0_45 = arith.constant 0 : index
    %c35 = arith.constant 35 : index
    %197 = memref.load %arg7[%c0_45, %c35] : memref<2x49xf32, #tpu.memory_space<smem>>
    %198 = vector.broadcast %197 : f32 to vector<8x16xf32>
    %199 = arith.mulf %196, %198 : vector<8x16xf32>
    %200 = arith.addf %194, %199 : vector<8x16xf32>
    %201 = vector.extract_strided_slice %195 {offsets = [0, 1], sizes = [8, 16], strides = [1, 1]} : vector<8x22xf32> to vector<8x16xf32>
    %c0_46 = arith.constant 0 : index
    %c36 = arith.constant 36 : index
    %202 = memref.load %arg7[%c0_46, %c36] : memref<2x49xf32, #tpu.memory_space<smem>>
    %203 = vector.broadcast %202 : f32 to vector<8x16xf32>
    %204 = arith.mulf %201, %203 : vector<8x16xf32>
    %205 = arith.addf %200, %204 : vector<8x16xf32>
    %206 = vector.extract_strided_slice %195 {offsets = [0, 2], sizes = [8, 16], strides = [1, 1]} : vector<8x22xf32> to vector<8x16xf32>
    %c0_47 = arith.constant 0 : index
    %c37 = arith.constant 37 : index
    %207 = memref.load %arg7[%c0_47, %c37] : memref<2x49xf32, #tpu.memory_space<smem>>
    %208 = vector.broadcast %207 : f32 to vector<8x16xf32>
    %209 = arith.mulf %206, %208 : vector<8x16xf32>
    %210 = arith.addf %205, %209 : vector<8x16xf32>
    %211 = vector.extract_strided_slice %195 {offsets = [0, 3], sizes = [8, 16], strides = [1, 1]} : vector<8x22xf32> to vector<8x16xf32>
    %c0_48 = arith.constant 0 : index
    %c38 = arith.constant 38 : index
    %212 = memref.load %arg7[%c0_48, %c38] : memref<2x49xf32, #tpu.memory_space<smem>>
    %213 = vector.broadcast %212 : f32 to vector<8x16xf32>
    %214 = arith.mulf %211, %213 : vector<8x16xf32>
    %215 = arith.addf %210, %214 : vector<8x16xf32>
    %216 = vector.extract_strided_slice %195 {offsets = [0, 4], sizes = [8, 16], strides = [1, 1]} : vector<8x22xf32> to vector<8x16xf32>
    %c0_49 = arith.constant 0 : index
    %c39 = arith.constant 39 : index
    %217 = memref.load %arg7[%c0_49, %c39] : memref<2x49xf32, #tpu.memory_space<smem>>
    %218 = vector.broadcast %217 : f32 to vector<8x16xf32>
    %219 = arith.mulf %216, %218 : vector<8x16xf32>
    %220 = arith.addf %215, %219 : vector<8x16xf32>
    %221 = vector.extract_strided_slice %195 {offsets = [0, 5], sizes = [8, 16], strides = [1, 1]} : vector<8x22xf32> to vector<8x16xf32>
    %c0_50 = arith.constant 0 : index
    %c40 = arith.constant 40 : index
    %222 = memref.load %arg7[%c0_50, %c40] : memref<2x49xf32, #tpu.memory_space<smem>>
    %223 = vector.broadcast %222 : f32 to vector<8x16xf32>
    %224 = arith.mulf %221, %223 : vector<8x16xf32>
    %225 = arith.addf %220, %224 : vector<8x16xf32>
    %226 = vector.extract_strided_slice %195 {offsets = [0, 6], sizes = [8, 16], strides = [1, 1]} : vector<8x22xf32> to vector<8x16xf32>
    %c0_51 = arith.constant 0 : index
    %c41 = arith.constant 41 : index
    %227 = memref.load %arg7[%c0_51, %c41] : memref<2x49xf32, #tpu.memory_space<smem>>
    %228 = vector.broadcast %227 : f32 to vector<8x16xf32>
    %229 = arith.mulf %226, %228 : vector<8x16xf32>
    %230 = arith.addf %225, %229 : vector<8x16xf32>
    %231 = vector.extract_strided_slice %14 {offsets = [6, 0], sizes = [8, 22], strides = [1, 1]} : vector<14x22xf32> to vector<8x22xf32>
    %232 = vector.extract_strided_slice %231 {offsets = [0, 0], sizes = [8, 16], strides = [1, 1]} : vector<8x22xf32> to vector<8x16xf32>
    %c0_52 = arith.constant 0 : index
    %c42 = arith.constant 42 : index
    %233 = memref.load %arg7[%c0_52, %c42] : memref<2x49xf32, #tpu.memory_space<smem>>
    %234 = vector.broadcast %233 : f32 to vector<8x16xf32>
    %235 = arith.mulf %232, %234 : vector<8x16xf32>
    %236 = arith.addf %230, %235 : vector<8x16xf32>
    %237 = vector.extract_strided_slice %231 {offsets = [0, 1], sizes = [8, 16], strides = [1, 1]} : vector<8x22xf32> to vector<8x16xf32>
    %c0_53 = arith.constant 0 : index
    %c43 = arith.constant 43 : index
    %238 = memref.load %arg7[%c0_53, %c43] : memref<2x49xf32, #tpu.memory_space<smem>>
    %239 = vector.broadcast %238 : f32 to vector<8x16xf32>
    %240 = arith.mulf %237, %239 : vector<8x16xf32>
    %241 = arith.addf %236, %240 : vector<8x16xf32>
    %242 = vector.extract_strided_slice %231 {offsets = [0, 2], sizes = [8, 16], strides = [1, 1]} : vector<8x22xf32> to vector<8x16xf32>
    %c0_54 = arith.constant 0 : index
    %c44 = arith.constant 44 : index
    %243 = memref.load %arg7[%c0_54, %c44] : memref<2x49xf32, #tpu.memory_space<smem>>
    %244 = vector.broadcast %243 : f32 to vector<8x16xf32>
    %245 = arith.mulf %242, %244 : vector<8x16xf32>
    %246 = arith.addf %241, %245 : vector<8x16xf32>
    %247 = vector.extract_strided_slice %231 {offsets = [0, 3], sizes = [8, 16], strides = [1, 1]} : vector<8x22xf32> to vector<8x16xf32>
    %c0_55 = arith.constant 0 : index
    %c45 = arith.constant 45 : index
    %248 = memref.load %arg7[%c0_55, %c45] : memref<2x49xf32, #tpu.memory_space<smem>>
    %249 = vector.broadcast %248 : f32 to vector<8x16xf32>
    %250 = arith.mulf %247, %249 : vector<8x16xf32>
    %251 = arith.addf %246, %250 : vector<8x16xf32>
    %252 = vector.extract_strided_slice %231 {offsets = [0, 4], sizes = [8, 16], strides = [1, 1]} : vector<8x22xf32> to vector<8x16xf32>
    %c0_56 = arith.constant 0 : index
    %c46 = arith.constant 46 : index
    %253 = memref.load %arg7[%c0_56, %c46] : memref<2x49xf32, #tpu.memory_space<smem>>
    %254 = vector.broadcast %253 : f32 to vector<8x16xf32>
    %255 = arith.mulf %252, %254 : vector<8x16xf32>
    %256 = arith.addf %251, %255 : vector<8x16xf32>
    %257 = vector.extract_strided_slice %231 {offsets = [0, 5], sizes = [8, 16], strides = [1, 1]} : vector<8x22xf32> to vector<8x16xf32>
    %c0_57 = arith.constant 0 : index
    %c47 = arith.constant 47 : index
    %258 = memref.load %arg7[%c0_57, %c47] : memref<2x49xf32, #tpu.memory_space<smem>>
    %259 = vector.broadcast %258 : f32 to vector<8x16xf32>
    %260 = arith.mulf %257, %259 : vector<8x16xf32>
    %261 = arith.addf %256, %260 : vector<8x16xf32>
    %262 = vector.extract_strided_slice %231 {offsets = [0, 6], sizes = [8, 16], strides = [1, 1]} : vector<8x22xf32> to vector<8x16xf32>
    %c0_58 = arith.constant 0 : index
    %c48 = arith.constant 48 : index
    %263 = memref.load %arg7[%c0_58, %c48] : memref<2x49xf32, #tpu.memory_space<smem>>
    %264 = vector.broadcast %263 : f32 to vector<8x16xf32>
    %265 = arith.mulf %262, %264 : vector<8x16xf32>
    %266 = arith.addf %261, %265 : vector<8x16xf32>
    %c0_59 = arith.constant 0 : index
    %c1_60 = arith.constant 1 : index
    %267 = arith.index_cast %9 : i32 to index
    %c0_61 = arith.constant 0 : index
    %268 = vector.load %arg3[%c0_59, %c1_60, %267, %c0_61] : memref<1x2x22x22xbf16, #tpu.memory_space<vmem>>, vector<1x1x14x22xbf16>
    %269 = vector.shape_cast %268 : vector<1x1x14x22xbf16> to vector<14x22xbf16>
    %270 = arith.extf %269 : vector<14x22xbf16> to vector<14x22xf32>
    %271 = vector.extract_strided_slice %270 {offsets = [0, 0], sizes = [8, 22], strides = [1, 1]} : vector<14x22xf32> to vector<8x22xf32>
    %272 = vector.extract_strided_slice %271 {offsets = [0, 0], sizes = [8, 16], strides = [1, 1]} : vector<8x22xf32> to vector<8x16xf32>
    %c1_62 = arith.constant 1 : index
    %c0_63 = arith.constant 0 : index
    %273 = memref.load %arg7[%c1_62, %c0_63] : memref<2x49xf32, #tpu.memory_space<smem>>
    %274 = vector.broadcast %273 : f32 to vector<8x16xf32>
    %275 = arith.mulf %272, %274 : vector<8x16xf32>
    %276 = arith.addf %266, %275 : vector<8x16xf32>
    %277 = vector.extract_strided_slice %271 {offsets = [0, 1], sizes = [8, 16], strides = [1, 1]} : vector<8x22xf32> to vector<8x16xf32>
    %c1_64 = arith.constant 1 : index
    %c1_65 = arith.constant 1 : index
    %278 = memref.load %arg7[%c1_64, %c1_65] : memref<2x49xf32, #tpu.memory_space<smem>>
    %279 = vector.broadcast %278 : f32 to vector<8x16xf32>
    %280 = arith.mulf %277, %279 : vector<8x16xf32>
    %281 = arith.addf %276, %280 : vector<8x16xf32>
    %282 = vector.extract_strided_slice %271 {offsets = [0, 2], sizes = [8, 16], strides = [1, 1]} : vector<8x22xf32> to vector<8x16xf32>
    %c1_66 = arith.constant 1 : index
    %c2_67 = arith.constant 2 : index
    %283 = memref.load %arg7[%c1_66, %c2_67] : memref<2x49xf32, #tpu.memory_space<smem>>
    %284 = vector.broadcast %283 : f32 to vector<8x16xf32>
    %285 = arith.mulf %282, %284 : vector<8x16xf32>
    %286 = arith.addf %281, %285 : vector<8x16xf32>
    %287 = vector.extract_strided_slice %271 {offsets = [0, 3], sizes = [8, 16], strides = [1, 1]} : vector<8x22xf32> to vector<8x16xf32>
    %c1_68 = arith.constant 1 : index
    %c3_69 = arith.constant 3 : index
    %288 = memref.load %arg7[%c1_68, %c3_69] : memref<2x49xf32, #tpu.memory_space<smem>>
    %289 = vector.broadcast %288 : f32 to vector<8x16xf32>
    %290 = arith.mulf %287, %289 : vector<8x16xf32>
    %291 = arith.addf %286, %290 : vector<8x16xf32>
    %292 = vector.extract_strided_slice %271 {offsets = [0, 4], sizes = [8, 16], strides = [1, 1]} : vector<8x22xf32> to vector<8x16xf32>
    %c1_70 = arith.constant 1 : index
    %c4_71 = arith.constant 4 : index
    %293 = memref.load %arg7[%c1_70, %c4_71] : memref<2x49xf32, #tpu.memory_space<smem>>
    %294 = vector.broadcast %293 : f32 to vector<8x16xf32>
    %295 = arith.mulf %292, %294 : vector<8x16xf32>
    %296 = arith.addf %291, %295 : vector<8x16xf32>
    %297 = vector.extract_strided_slice %271 {offsets = [0, 5], sizes = [8, 16], strides = [1, 1]} : vector<8x22xf32> to vector<8x16xf32>
    %c1_72 = arith.constant 1 : index
    %c5_73 = arith.constant 5 : index
    %298 = memref.load %arg7[%c1_72, %c5_73] : memref<2x49xf32, #tpu.memory_space<smem>>
    %299 = vector.broadcast %298 : f32 to vector<8x16xf32>
    %300 = arith.mulf %297, %299 : vector<8x16xf32>
    %301 = arith.addf %296, %300 : vector<8x16xf32>
    %302 = vector.extract_strided_slice %271 {offsets = [0, 6], sizes = [8, 16], strides = [1, 1]} : vector<8x22xf32> to vector<8x16xf32>
    %c1_74 = arith.constant 1 : index
    %c6_75 = arith.constant 6 : index
    %303 = memref.load %arg7[%c1_74, %c6_75] : memref<2x49xf32, #tpu.memory_space<smem>>
    %304 = vector.broadcast %303 : f32 to vector<8x16xf32>
    %305 = arith.mulf %302, %304 : vector<8x16xf32>
    %306 = arith.addf %301, %305 : vector<8x16xf32>
    %307 = vector.extract_strided_slice %270 {offsets = [1, 0], sizes = [8, 22], strides = [1, 1]} : vector<14x22xf32> to vector<8x22xf32>
    %308 = vector.extract_strided_slice %307 {offsets = [0, 0], sizes = [8, 16], strides = [1, 1]} : vector<8x22xf32> to vector<8x16xf32>
    %c1_76 = arith.constant 1 : index
    %c7_77 = arith.constant 7 : index
    %309 = memref.load %arg7[%c1_76, %c7_77] : memref<2x49xf32, #tpu.memory_space<smem>>
    %310 = vector.broadcast %309 : f32 to vector<8x16xf32>
    %311 = arith.mulf %308, %310 : vector<8x16xf32>
    %312 = arith.addf %306, %311 : vector<8x16xf32>
    %313 = vector.extract_strided_slice %307 {offsets = [0, 1], sizes = [8, 16], strides = [1, 1]} : vector<8x22xf32> to vector<8x16xf32>
    %c1_78 = arith.constant 1 : index
    %c8_79 = arith.constant 8 : index
    %314 = memref.load %arg7[%c1_78, %c8_79] : memref<2x49xf32, #tpu.memory_space<smem>>
    %315 = vector.broadcast %314 : f32 to vector<8x16xf32>
    %316 = arith.mulf %313, %315 : vector<8x16xf32>
    %317 = arith.addf %312, %316 : vector<8x16xf32>
    %318 = vector.extract_strided_slice %307 {offsets = [0, 2], sizes = [8, 16], strides = [1, 1]} : vector<8x22xf32> to vector<8x16xf32>
    %c1_80 = arith.constant 1 : index
    %c9_81 = arith.constant 9 : index
    %319 = memref.load %arg7[%c1_80, %c9_81] : memref<2x49xf32, #tpu.memory_space<smem>>
    %320 = vector.broadcast %319 : f32 to vector<8x16xf32>
    %321 = arith.mulf %318, %320 : vector<8x16xf32>
    %322 = arith.addf %317, %321 : vector<8x16xf32>
    %323 = vector.extract_strided_slice %307 {offsets = [0, 3], sizes = [8, 16], strides = [1, 1]} : vector<8x22xf32> to vector<8x16xf32>
    %c1_82 = arith.constant 1 : index
    %c10_83 = arith.constant 10 : index
    %324 = memref.load %arg7[%c1_82, %c10_83] : memref<2x49xf32, #tpu.memory_space<smem>>
    %325 = vector.broadcast %324 : f32 to vector<8x16xf32>
    %326 = arith.mulf %323, %325 : vector<8x16xf32>
    %327 = arith.addf %322, %326 : vector<8x16xf32>
    %328 = vector.extract_strided_slice %307 {offsets = [0, 4], sizes = [8, 16], strides = [1, 1]} : vector<8x22xf32> to vector<8x16xf32>
    %c1_84 = arith.constant 1 : index
    %c11_85 = arith.constant 11 : index
    %329 = memref.load %arg7[%c1_84, %c11_85] : memref<2x49xf32, #tpu.memory_space<smem>>
    %330 = vector.broadcast %329 : f32 to vector<8x16xf32>
    %331 = arith.mulf %328, %330 : vector<8x16xf32>
    %332 = arith.addf %327, %331 : vector<8x16xf32>
    %333 = vector.extract_strided_slice %307 {offsets = [0, 5], sizes = [8, 16], strides = [1, 1]} : vector<8x22xf32> to vector<8x16xf32>
    %c1_86 = arith.constant 1 : index
    %c12_87 = arith.constant 12 : index
    %334 = memref.load %arg7[%c1_86, %c12_87] : memref<2x49xf32, #tpu.memory_space<smem>>
    %335 = vector.broadcast %334 : f32 to vector<8x16xf32>
    %336 = arith.mulf %333, %335 : vector<8x16xf32>
    %337 = arith.addf %332, %336 : vector<8x16xf32>
    %338 = vector.extract_strided_slice %307 {offsets = [0, 6], sizes = [8, 16], strides = [1, 1]} : vector<8x22xf32> to vector<8x16xf32>
    %c1_88 = arith.constant 1 : index
    %c13_89 = arith.constant 13 : index
    %339 = memref.load %arg7[%c1_88, %c13_89] : memref<2x49xf32, #tpu.memory_space<smem>>
    %340 = vector.broadcast %339 : f32 to vector<8x16xf32>
    %341 = arith.mulf %338, %340 : vector<8x16xf32>
    %342 = arith.addf %337, %341 : vector<8x16xf32>
    %343 = vector.extract_strided_slice %270 {offsets = [2, 0], sizes = [8, 22], strides = [1, 1]} : vector<14x22xf32> to vector<8x22xf32>
    %344 = vector.extract_strided_slice %343 {offsets = [0, 0], sizes = [8, 16], strides = [1, 1]} : vector<8x22xf32> to vector<8x16xf32>
    %c1_90 = arith.constant 1 : index
    %c14_91 = arith.constant 14 : index
    %345 = memref.load %arg7[%c1_90, %c14_91] : memref<2x49xf32, #tpu.memory_space<smem>>
    %346 = vector.broadcast %345 : f32 to vector<8x16xf32>
    %347 = arith.mulf %344, %346 : vector<8x16xf32>
    %348 = arith.addf %342, %347 : vector<8x16xf32>
    %349 = vector.extract_strided_slice %343 {offsets = [0, 1], sizes = [8, 16], strides = [1, 1]} : vector<8x22xf32> to vector<8x16xf32>
    %c1_92 = arith.constant 1 : index
    %c15_93 = arith.constant 15 : index
    %350 = memref.load %arg7[%c1_92, %c15_93] : memref<2x49xf32, #tpu.memory_space<smem>>
    %351 = vector.broadcast %350 : f32 to vector<8x16xf32>
    %352 = arith.mulf %349, %351 : vector<8x16xf32>
    %353 = arith.addf %348, %352 : vector<8x16xf32>
    %354 = vector.extract_strided_slice %343 {offsets = [0, 2], sizes = [8, 16], strides = [1, 1]} : vector<8x22xf32> to vector<8x16xf32>
    %c1_94 = arith.constant 1 : index
    %c16_95 = arith.constant 16 : index
    %355 = memref.load %arg7[%c1_94, %c16_95] : memref<2x49xf32, #tpu.memory_space<smem>>
    %356 = vector.broadcast %355 : f32 to vector<8x16xf32>
    %357 = arith.mulf %354, %356 : vector<8x16xf32>
    %358 = arith.addf %353, %357 : vector<8x16xf32>
    %359 = vector.extract_strided_slice %343 {offsets = [0, 3], sizes = [8, 16], strides = [1, 1]} : vector<8x22xf32> to vector<8x16xf32>
    %c1_96 = arith.constant 1 : index
    %c17_97 = arith.constant 17 : index
    %360 = memref.load %arg7[%c1_96, %c17_97] : memref<2x49xf32, #tpu.memory_space<smem>>
    %361 = vector.broadcast %360 : f32 to vector<8x16xf32>
    %362 = arith.mulf %359, %361 : vector<8x16xf32>
    %363 = arith.addf %358, %362 : vector<8x16xf32>
    %364 = vector.extract_strided_slice %343 {offsets = [0, 4], sizes = [8, 16], strides = [1, 1]} : vector<8x22xf32> to vector<8x16xf32>
    %c1_98 = arith.constant 1 : index
    %c18_99 = arith.constant 18 : index
    %365 = memref.load %arg7[%c1_98, %c18_99] : memref<2x49xf32, #tpu.memory_space<smem>>
    %366 = vector.broadcast %365 : f32 to vector<8x16xf32>
    %367 = arith.mulf %364, %366 : vector<8x16xf32>
    %368 = arith.addf %363, %367 : vector<8x16xf32>
    %369 = vector.extract_strided_slice %343 {offsets = [0, 5], sizes = [8, 16], strides = [1, 1]} : vector<8x22xf32> to vector<8x16xf32>
    %c1_100 = arith.constant 1 : index
    %c19_101 = arith.constant 19 : index
    %370 = memref.load %arg7[%c1_100, %c19_101] : memref<2x49xf32, #tpu.memory_space<smem>>
    %371 = vector.broadcast %370 : f32 to vector<8x16xf32>
    %372 = arith.mulf %369, %371 : vector<8x16xf32>
    %373 = arith.addf %368, %372 : vector<8x16xf32>
    %374 = vector.extract_strided_slice %343 {offsets = [0, 6], sizes = [8, 16], strides = [1, 1]} : vector<8x22xf32> to vector<8x16xf32>
    %c1_102 = arith.constant 1 : index
    %c20_103 = arith.constant 20 : index
    %375 = memref.load %arg7[%c1_102, %c20_103] : memref<2x49xf32, #tpu.memory_space<smem>>
    %376 = vector.broadcast %375 : f32 to vector<8x16xf32>
    %377 = arith.mulf %374, %376 : vector<8x16xf32>
    %378 = arith.addf %373, %377 : vector<8x16xf32>
    %379 = vector.extract_strided_slice %270 {offsets = [3, 0], sizes = [8, 22], strides = [1, 1]} : vector<14x22xf32> to vector<8x22xf32>
    %380 = vector.extract_strided_slice %379 {offsets = [0, 0], sizes = [8, 16], strides = [1, 1]} : vector<8x22xf32> to vector<8x16xf32>
    %c1_104 = arith.constant 1 : index
    %c21_105 = arith.constant 21 : index
    %381 = memref.load %arg7[%c1_104, %c21_105] : memref<2x49xf32, #tpu.memory_space<smem>>
    %382 = vector.broadcast %381 : f32 to vector<8x16xf32>
    %383 = arith.mulf %380, %382 : vector<8x16xf32>
    %384 = arith.addf %378, %383 : vector<8x16xf32>
    %385 = vector.extract_strided_slice %379 {offsets = [0, 1], sizes = [8, 16], strides = [1, 1]} : vector<8x22xf32> to vector<8x16xf32>
    %c1_106 = arith.constant 1 : index
    %c22_107 = arith.constant 22 : index
    %386 = memref.load %arg7[%c1_106, %c22_107] : memref<2x49xf32, #tpu.memory_space<smem>>
    %387 = vector.broadcast %386 : f32 to vector<8x16xf32>
    %388 = arith.mulf %385, %387 : vector<8x16xf32>
    %389 = arith.addf %384, %388 : vector<8x16xf32>
    %390 = vector.extract_strided_slice %379 {offsets = [0, 2], sizes = [8, 16], strides = [1, 1]} : vector<8x22xf32> to vector<8x16xf32>
    %c1_108 = arith.constant 1 : index
    %c23_109 = arith.constant 23 : index
    %391 = memref.load %arg7[%c1_108, %c23_109] : memref<2x49xf32, #tpu.memory_space<smem>>
    %392 = vector.broadcast %391 : f32 to vector<8x16xf32>
    %393 = arith.mulf %390, %392 : vector<8x16xf32>
    %394 = arith.addf %389, %393 : vector<8x16xf32>
    %395 = vector.extract_strided_slice %379 {offsets = [0, 3], sizes = [8, 16], strides = [1, 1]} : vector<8x22xf32> to vector<8x16xf32>
    %c1_110 = arith.constant 1 : index
    %c24_111 = arith.constant 24 : index
    %396 = memref.load %arg7[%c1_110, %c24_111] : memref<2x49xf32, #tpu.memory_space<smem>>
    %397 = vector.broadcast %396 : f32 to vector<8x16xf32>
    %398 = arith.mulf %395, %397 : vector<8x16xf32>
    %399 = arith.addf %394, %398 : vector<8x16xf32>
    %400 = vector.extract_strided_slice %379 {offsets = [0, 4], sizes = [8, 16], strides = [1, 1]} : vector<8x22xf32> to vector<8x16xf32>
    %c1_112 = arith.constant 1 : index
    %c25_113 = arith.constant 25 : index
    %401 = memref.load %arg7[%c1_112, %c25_113] : memref<2x49xf32, #tpu.memory_space<smem>>
    %402 = vector.broadcast %401 : f32 to vector<8x16xf32>
    %403 = arith.mulf %400, %402 : vector<8x16xf32>
    %404 = arith.addf %399, %403 : vector<8x16xf32>
    %405 = vector.extract_strided_slice %379 {offsets = [0, 5], sizes = [8, 16], strides = [1, 1]} : vector<8x22xf32> to vector<8x16xf32>
    %c1_114 = arith.constant 1 : index
    %c26_115 = arith.constant 26 : index
    %406 = memref.load %arg7[%c1_114, %c26_115] : memref<2x49xf32, #tpu.memory_space<smem>>
    %407 = vector.broadcast %406 : f32 to vector<8x16xf32>
    %408 = arith.mulf %405, %407 : vector<8x16xf32>
    %409 = arith.addf %404, %408 : vector<8x16xf32>
    %410 = vector.extract_strided_slice %379 {offsets = [0, 6], sizes = [8, 16], strides = [1, 1]} : vector<8x22xf32> to vector<8x16xf32>
    %c1_116 = arith.constant 1 : index
    %c27_117 = arith.constant 27 : index
    %411 = memref.load %arg7[%c1_116, %c27_117] : memref<2x49xf32, #tpu.memory_space<smem>>
    %412 = vector.broadcast %411 : f32 to vector<8x16xf32>
    %413 = arith.mulf %410, %412 : vector<8x16xf32>
    %414 = arith.addf %409, %413 : vector<8x16xf32>
    %415 = vector.extract_strided_slice %270 {offsets = [4, 0], sizes = [8, 22], strides = [1, 1]} : vector<14x22xf32> to vector<8x22xf32>
    %416 = vector.extract_strided_slice %415 {offsets = [0, 0], sizes = [8, 16], strides = [1, 1]} : vector<8x22xf32> to vector<8x16xf32>
    %c1_118 = arith.constant 1 : index
    %c28_119 = arith.constant 28 : index
    %417 = memref.load %arg7[%c1_118, %c28_119] : memref<2x49xf32, #tpu.memory_space<smem>>
    %418 = vector.broadcast %417 : f32 to vector<8x16xf32>
    %419 = arith.mulf %416, %418 : vector<8x16xf32>
    %420 = arith.addf %414, %419 : vector<8x16xf32>
    %421 = vector.extract_strided_slice %415 {offsets = [0, 1], sizes = [8, 16], strides = [1, 1]} : vector<8x22xf32> to vector<8x16xf32>
    %c1_120 = arith.constant 1 : index
    %c29_121 = arith.constant 29 : index
    %422 = memref.load %arg7[%c1_120, %c29_121] : memref<2x49xf32, #tpu.memory_space<smem>>
    %423 = vector.broadcast %422 : f32 to vector<8x16xf32>
    %424 = arith.mulf %421, %423 : vector<8x16xf32>
    %425 = arith.addf %420, %424 : vector<8x16xf32>
    %426 = vector.extract_strided_slice %415 {offsets = [0, 2], sizes = [8, 16], strides = [1, 1]} : vector<8x22xf32> to vector<8x16xf32>
    %c1_122 = arith.constant 1 : index
    %c30_123 = arith.constant 30 : index
    %427 = memref.load %arg7[%c1_122, %c30_123] : memref<2x49xf32, #tpu.memory_space<smem>>
    %428 = vector.broadcast %427 : f32 to vector<8x16xf32>
    %429 = arith.mulf %426, %428 : vector<8x16xf32>
    %430 = arith.addf %425, %429 : vector<8x16xf32>
    %431 = vector.extract_strided_slice %415 {offsets = [0, 3], sizes = [8, 16], strides = [1, 1]} : vector<8x22xf32> to vector<8x16xf32>
    %c1_124 = arith.constant 1 : index
    %c31_125 = arith.constant 31 : index
    %432 = memref.load %arg7[%c1_124, %c31_125] : memref<2x49xf32, #tpu.memory_space<smem>>
    %433 = vector.broadcast %432 : f32 to vector<8x16xf32>
    %434 = arith.mulf %431, %433 : vector<8x16xf32>
    %435 = arith.addf %430, %434 : vector<8x16xf32>
    %436 = vector.extract_strided_slice %415 {offsets = [0, 4], sizes = [8, 16], strides = [1, 1]} : vector<8x22xf32> to vector<8x16xf32>
    %c1_126 = arith.constant 1 : index
    %c32_127 = arith.constant 32 : index
    %437 = memref.load %arg7[%c1_126, %c32_127] : memref<2x49xf32, #tpu.memory_space<smem>>
    %438 = vector.broadcast %437 : f32 to vector<8x16xf32>
    %439 = arith.mulf %436, %438 : vector<8x16xf32>
    %440 = arith.addf %435, %439 : vector<8x16xf32>
    %441 = vector.extract_strided_slice %415 {offsets = [0, 5], sizes = [8, 16], strides = [1, 1]} : vector<8x22xf32> to vector<8x16xf32>
    %c1_128 = arith.constant 1 : index
    %c33_129 = arith.constant 33 : index
    %442 = memref.load %arg7[%c1_128, %c33_129] : memref<2x49xf32, #tpu.memory_space<smem>>
    %443 = vector.broadcast %442 : f32 to vector<8x16xf32>
    %444 = arith.mulf %441, %443 : vector<8x16xf32>
    %445 = arith.addf %440, %444 : vector<8x16xf32>
    %446 = vector.extract_strided_slice %415 {offsets = [0, 6], sizes = [8, 16], strides = [1, 1]} : vector<8x22xf32> to vector<8x16xf32>
    %c1_130 = arith.constant 1 : index
    %c34_131 = arith.constant 34 : index
    %447 = memref.load %arg7[%c1_130, %c34_131] : memref<2x49xf32, #tpu.memory_space<smem>>
    %448 = vector.broadcast %447 : f32 to vector<8x16xf32>
    %449 = arith.mulf %446, %448 : vector<8x16xf32>
    %450 = arith.addf %445, %449 : vector<8x16xf32>
    %451 = vector.extract_strided_slice %270 {offsets = [5, 0], sizes = [8, 22], strides = [1, 1]} : vector<14x22xf32> to vector<8x22xf32>
    %452 = vector.extract_strided_slice %451 {offsets = [0, 0], sizes = [8, 16], strides = [1, 1]} : vector<8x22xf32> to vector<8x16xf32>
    %c1_132 = arith.constant 1 : index
    %c35_133 = arith.constant 35 : index
    %453 = memref.load %arg7[%c1_132, %c35_133] : memref<2x49xf32, #tpu.memory_space<smem>>
    %454 = vector.broadcast %453 : f32 to vector<8x16xf32>
    %455 = arith.mulf %452, %454 : vector<8x16xf32>
    %456 = arith.addf %450, %455 : vector<8x16xf32>
    %457 = vector.extract_strided_slice %451 {offsets = [0, 1], sizes = [8, 16], strides = [1, 1]} : vector<8x22xf32> to vector<8x16xf32>
    %c1_134 = arith.constant 1 : index
    %c36_135 = arith.constant 36 : index
    %458 = memref.load %arg7[%c1_134, %c36_135] : memref<2x49xf32, #tpu.memory_space<smem>>
    %459 = vector.broadcast %458 : f32 to vector<8x16xf32>
    %460 = arith.mulf %457, %459 : vector<8x16xf32>
    %461 = arith.addf %456, %460 : vector<8x16xf32>
    %462 = vector.extract_strided_slice %451 {offsets = [0, 2], sizes = [8, 16], strides = [1, 1]} : vector<8x22xf32> to vector<8x16xf32>
    %c1_136 = arith.constant 1 : index
    %c37_137 = arith.constant 37 : index
    %463 = memref.load %arg7[%c1_136, %c37_137] : memref<2x49xf32, #tpu.memory_space<smem>>
    %464 = vector.broadcast %463 : f32 to vector<8x16xf32>
    %465 = arith.mulf %462, %464 : vector<8x16xf32>
    %466 = arith.addf %461, %465 : vector<8x16xf32>
    %467 = vector.extract_strided_slice %451 {offsets = [0, 3], sizes = [8, 16], strides = [1, 1]} : vector<8x22xf32> to vector<8x16xf32>
    %c1_138 = arith.constant 1 : index
    %c38_139 = arith.constant 38 : index
    %468 = memref.load %arg7[%c1_138, %c38_139] : memref<2x49xf32, #tpu.memory_space<smem>>
    %469 = vector.broadcast %468 : f32 to vector<8x16xf32>
    %470 = arith.mulf %467, %469 : vector<8x16xf32>
    %471 = arith.addf %466, %470 : vector<8x16xf32>
    %472 = vector.extract_strided_slice %451 {offsets = [0, 4], sizes = [8, 16], strides = [1, 1]} : vector<8x22xf32> to vector<8x16xf32>
    %c1_140 = arith.constant 1 : index
    %c39_141 = arith.constant 39 : index
    %473 = memref.load %arg7[%c1_140, %c39_141] : memref<2x49xf32, #tpu.memory_space<smem>>
    %474 = vector.broadcast %473 : f32 to vector<8x16xf32>
    %475 = arith.mulf %472, %474 : vector<8x16xf32>
    %476 = arith.addf %471, %475 : vector<8x16xf32>
    %477 = vector.extract_strided_slice %451 {offsets = [0, 5], sizes = [8, 16], strides = [1, 1]} : vector<8x22xf32> to vector<8x16xf32>
    %c1_142 = arith.constant 1 : index
    %c40_143 = arith.constant 40 : index
    %478 = memref.load %arg7[%c1_142, %c40_143] : memref<2x49xf32, #tpu.memory_space<smem>>
    %479 = vector.broadcast %478 : f32 to vector<8x16xf32>
    %480 = arith.mulf %477, %479 : vector<8x16xf32>
    %481 = arith.addf %476, %480 : vector<8x16xf32>
    %482 = vector.extract_strided_slice %451 {offsets = [0, 6], sizes = [8, 16], strides = [1, 1]} : vector<8x22xf32> to vector<8x16xf32>
    %c1_144 = arith.constant 1 : index
    %c41_145 = arith.constant 41 : index
    %483 = memref.load %arg7[%c1_144, %c41_145] : memref<2x49xf32, #tpu.memory_space<smem>>
    %484 = vector.broadcast %483 : f32 to vector<8x16xf32>
    %485 = arith.mulf %482, %484 : vector<8x16xf32>
    %486 = arith.addf %481, %485 : vector<8x16xf32>
    %487 = vector.extract_strided_slice %270 {offsets = [6, 0], sizes = [8, 22], strides = [1, 1]} : vector<14x22xf32> to vector<8x22xf32>
    %488 = vector.extract_strided_slice %487 {offsets = [0, 0], sizes = [8, 16], strides = [1, 1]} : vector<8x22xf32> to vector<8x16xf32>
    %c1_146 = arith.constant 1 : index
    %c42_147 = arith.constant 42 : index
    %489 = memref.load %arg7[%c1_146, %c42_147] : memref<2x49xf32, #tpu.memory_space<smem>>
    %490 = vector.broadcast %489 : f32 to vector<8x16xf32>
    %491 = arith.mulf %488, %490 : vector<8x16xf32>
    %492 = arith.addf %486, %491 : vector<8x16xf32>
    %493 = vector.extract_strided_slice %487 {offsets = [0, 1], sizes = [8, 16], strides = [1, 1]} : vector<8x22xf32> to vector<8x16xf32>
    %c1_148 = arith.constant 1 : index
    %c43_149 = arith.constant 43 : index
    %494 = memref.load %arg7[%c1_148, %c43_149] : memref<2x49xf32, #tpu.memory_space<smem>>
    %495 = vector.broadcast %494 : f32 to vector<8x16xf32>
    %496 = arith.mulf %493, %495 : vector<8x16xf32>
    %497 = arith.addf %492, %496 : vector<8x16xf32>
    %498 = vector.extract_strided_slice %487 {offsets = [0, 2], sizes = [8, 16], strides = [1, 1]} : vector<8x22xf32> to vector<8x16xf32>
    %c1_150 = arith.constant 1 : index
    %c44_151 = arith.constant 44 : index
    %499 = memref.load %arg7[%c1_150, %c44_151] : memref<2x49xf32, #tpu.memory_space<smem>>
    %500 = vector.broadcast %499 : f32 to vector<8x16xf32>
    %501 = arith.mulf %498, %500 : vector<8x16xf32>
    %502 = arith.addf %497, %501 : vector<8x16xf32>
    %503 = vector.extract_strided_slice %487 {offsets = [0, 3], sizes = [8, 16], strides = [1, 1]} : vector<8x22xf32> to vector<8x16xf32>
    %c1_152 = arith.constant 1 : index
    %c45_153 = arith.constant 45 : index
    %504 = memref.load %arg7[%c1_152, %c45_153] : memref<2x49xf32, #tpu.memory_space<smem>>
    %505 = vector.broadcast %504 : f32 to vector<8x16xf32>
    %506 = arith.mulf %503, %505 : vector<8x16xf32>
    %507 = arith.addf %502, %506 : vector<8x16xf32>
    %508 = vector.extract_strided_slice %487 {offsets = [0, 4], sizes = [8, 16], strides = [1, 1]} : vector<8x22xf32> to vector<8x16xf32>
    %c1_154 = arith.constant 1 : index
    %c46_155 = arith.constant 46 : index
    %509 = memref.load %arg7[%c1_154, %c46_155] : memref<2x49xf32, #tpu.memory_space<smem>>
    %510 = vector.broadcast %509 : f32 to vector<8x16xf32>
    %511 = arith.mulf %508, %510 : vector<8x16xf32>
    %512 = arith.addf %507, %511 : vector<8x16xf32>
    %513 = vector.extract_strided_slice %487 {offsets = [0, 5], sizes = [8, 16], strides = [1, 1]} : vector<8x22xf32> to vector<8x16xf32>
    %c1_156 = arith.constant 1 : index
    %c47_157 = arith.constant 47 : index
    %514 = memref.load %arg7[%c1_156, %c47_157] : memref<2x49xf32, #tpu.memory_space<smem>>
    %515 = vector.broadcast %514 : f32 to vector<8x16xf32>
    %516 = arith.mulf %513, %515 : vector<8x16xf32>
    %517 = arith.addf %512, %516 : vector<8x16xf32>
    %518 = vector.extract_strided_slice %487 {offsets = [0, 6], sizes = [8, 16], strides = [1, 1]} : vector<8x22xf32> to vector<8x16xf32>
    %c1_158 = arith.constant 1 : index
    %c48_159 = arith.constant 48 : index
    %519 = memref.load %arg7[%c1_158, %c48_159] : memref<2x49xf32, #tpu.memory_space<smem>>
    %520 = vector.broadcast %519 : f32 to vector<8x16xf32>
    %521 = arith.mulf %518, %520 : vector<8x16xf32>
    %522 = arith.addf %517, %521 : vector<8x16xf32>
    %523 = arith.negf %522 : vector<8x16xf32>
    %524 = math.exp %523 : vector<8x16xf32>
    %cst_160 = arith.constant 1.000000e+00 : f32
    %525 = vector.broadcast %cst_160 : f32 to vector<8x16xf32>
    %526 = arith.addf %525, %524 : vector<8x16xf32>
    %527 = arith.divf %525, %526 : vector<8x16xf32>
    %528 = vector.shape_cast %527 : vector<8x16xf32> to vector<8x16x1xf32>
    %529 = vector.broadcast %528 : vector<8x16x1xf32> to vector<8x16x16xf32>
    %530 = arith.mulf %7, %529 : vector<8x16x16xf32>
    %c0_161 = arith.constant 0 : index
    %c0_162 = arith.constant 0 : index
    %c0_163 = arith.constant 0 : index
    %c0_164 = arith.constant 0 : index
    %531 = vector.load %arg4[%c0_161, %c0_162, %c0_163, %c0_164] : memref<1x8x16x16xf32, #tpu.memory_space<vmem>>, vector<1x8x16x16xf32>
    %532 = vector.shape_cast %531 : vector<1x8x16x16xf32> to vector<8x16x16xf32>
    %533 = arith.addf %530, %532 : vector<8x16x16xf32>
    %cst_165 = arith.constant 0.000000e+00 : f32
    %534 = vector.broadcast %cst_165 : f32 to vector<8x16x16xf32>
    %535 = arith.maximumf %533, %534 : vector<8x16x16xf32>
    %536 = vector.shape_cast %535 : vector<8x16x16xf32> to vector<128x16xf32>
    %c0_166 = arith.constant 0 : index
    %c0_167 = arith.constant 0 : index
    %537 = vector.load %arg6[%c0_166, %c0_167] : memref<16x16xf32, #tpu.memory_space<vmem>>, vector<16x16xf32>
    %cst_168 = arith.constant dense<0.000000e+00> : vector<16x128xf32>
    %538 = tpu.matmul %537, %536, %cst_168 {dimension_numbers = #tpu.dot_dimension_numbers<[1], [1], [0], [0], [0, 0, 1, 0], [], []>} : vector<16x16xf32>, vector<128x16xf32>, vector<16x128xf32> -> vector<16x128xf32>
    %c0_169 = arith.constant 0 : index
    %c0_170 = arith.constant 0 : index
    %c0_171 = arith.constant 0 : index
    %539 = vector.load %arg8[%c0_169, %c0_170, %c0_171] : memref<1x16x128xf32, #tpu.memory_space<vmem>>, vector<1x16x128xf32>
    %540 = vector.shape_cast %539 : vector<1x16x128xf32> to vector<16x128xf32>
    %541 = vector.shape_cast %538 : vector<16x128xf32> to vector<1x16x128xf32>
    tpu.vector_store %arg8[%c0_169, %c0_170, %c0_171], %541 {strides = array<i32>} : memref<1x16x128xf32, #tpu.memory_space<vmem>>, vector<1x16x128xf32>,
    return
  }
  func.func @transform_0(%arg0: i32, %arg1: i32) -> (i32, i32, i32, i32) {
    %c0_i32 = arith.constant 0 : i32
    %c0_i32_0 = arith.constant 0 : i32
    %c0_i32_1 = arith.constant 0 : i32
    return %arg0, %arg1, %c0_i32, %c0_i32_0 : i32, i32, i32, i32
  }
  func.func @transform_1(%arg0: i32, %arg1: i32) -> (i32, i32, i32, i32) {
    %c0_i32 = arith.constant 0 : i32
    %c0_i32_0 = arith.constant 0 : i32
    %c0_i32_1 = arith.constant 0 : i32
    %c0_i32_2 = arith.constant 0 : i32
    return %arg0, %c0_i32, %c0_i32_0, %c0_i32_1 : i32, i32, i32, i32
  }
  func.func @transform_2(%arg0: i32, %arg1: i32) -> (i32, i32, i32, i32) {
    %c0_i32 = arith.constant 0 : i32
    %c0_i32_0 = arith.constant 0 : i32
    %c0_i32_1 = arith.constant 0 : i32
    return %arg0, %arg1, %c0_i32, %c0_i32_0 : i32, i32, i32, i32
  }
  func.func @transform_3(%arg0: i32, %arg1: i32) -> (i32, i32, i32) {
    %c0_i32 = arith.constant 0 : i32
    %c0_i32_0 = arith.constant 0 : i32
    %c0_i32_1 = arith.constant 0 : i32
    return %arg0, %c0_i32, %c0_i32_0 : i32, i32, i32
  }
  func.func @transform_4(%arg0: i32, %arg1: i32) -> (i32, i32) {
    %c0_i32 = arith.constant 0 : i32
    %c0_i32_0 = arith.constant 0 : i32
    %c0_i32_1 = arith.constant 0 : i32
    return %c0_i32, %c0_i32_0 : i32, i32
  }
  func.func @transform_5(%arg0: i32, %arg1: i32) -> (i32, i32) {
    %c0_i32 = arith.constant 0 : i32
    %c0_i32_0 = arith.constant 0 : i32
    %c0_i32_1 = arith.constant 0 : i32
    return %c0_i32, %c0_i32_0 : i32, i32
  }
  func.func @transform_6(%arg0: i32, %arg1: i32) -> (i32, i32, i32) {
    %c0_i32 = arith.constant 0 : i32
    %c0_i32_0 = arith.constant 0 : i32
    return %arg0, %c0_i32, %arg1 : i32, i32, i32
  }
}

</mosaic_0001>

<bundles_post_ra>
// kernel: basic_block1_forward.4
= control target key start
LH: loop header
LB: loop body
LE: loop exit
PB: predicated region body
PF: predicated region fallthrough
CT: control target
= control target key end

     0   :  { %s2179_s12 = smov 0   ;;  %s2181_s13 = smov 0   ;;  %s2931_s0 = inlined_call_operand.vmem [shape: bf16[2,3,16,18,16], index: 0, kind: input, shape index: {}]   ;;  %s2932_s1 = inlined_call_operand.vmem [shape: bf16[144,16], index: 1, kind: input, shape index: {}]   ;;  %s2933_s2 = inlined_call_operand.vmem [shape: f32[1,16], index: 2, kind: input, shape index: {}]   ;;  %s2934_s3 = inlined_call_operand.vmem [shape: bf16[2,16,16,16], index: 3, kind: output, shape index: {}]  }
   0x1   :  { %s2183_s14 = smov 0   ;;  %s2185_s15 = smov 0  }
   0x2   :  { %s2187_s16 = smov 0   ;;  %s2189_s17 = smov 0  }
   0x3   :  { %s2191_s18 = smov 0  }
   0x4 LB: > { %s22_s19 = sadd.s32 1, %s2141_s16  ;;  %s25_s20 = sadd.s32 1, %s2145_s17  ;;  %s2149_s18 = sphi %s2191_s18, %s13_s18   ;;  %s2145_s17 = sphi %s2189_s17, %s2940_s17   ;;  %s2141_s16 = sphi %s2187_s16, %s2939_s16   ;;  %s2137_s15 = sphi %s2185_s15, %s2938_s15   ;;  %s2133_s14 = sphi %s2183_s14, %s2937_s14   ;;  %s2129_s13 = sphi %s2181_s13, %s2936_s13   ;;  %s2125_s12 = sphi %s2179_s12, %s2935_s12  }
   0x5   : > { %p23_p0 = scmp.ge.s32.totalorder %s22_s19, 2  ;;  %p41_p1 = scmp.ne.s32.totalorder %s2129_s13, %s2125_s12 }
   0x6   : > { %p42_p2 = scmp.eq.s32.totalorder %s2149_s18, 0  ;;  %s34_s24 = sadd.s32 1, %s2129_s13 }
   0x7   : > { %s2942_s19 = smov (%p23_p0, %s22_s19), 0  ;;  %s2944_s20 = smov (!%p23_p0, %s25_s20), %s2145_s17 }
   0x8   : > { %p43_p3 = por %p42_p2, %p41_p1  ;;  %p27_p4 = scmp.ge.s32.totalorder %s2944_s20, 2 }
   0x9   : > { %s30_s21 = ssub.s32 %s2141_s16, %s2942_s19  ;;  %p1795_p6 = scmp.ge.s32.totalorder %s2149_s18, 4 }
   0xa   : > { %s2946_s20 = smov (%p27_p4, %s2944_s20), 0 }
   0xb   : > { %s29_s22 = ssub.s32 %s2145_s17, %s2946_s20  ;;  %143 = sbr.rel (%p1795_p6) target bundleno = 45 (0x2d), region = 24 }
   0xc   : > { %s31_s23 = sor.u32 %s30_s21, %s29_s22 }
   0xd   : > { %p32_p5 = scmp.eq.s32.totalorder %s31_s23, 0 }
   0xf   : > { %s2230_s25 = scalar_select %p32_p5, %s2129_s13, %s34_s24  }
  0x12   : > { %146 = sbr.rel (!%p43_p3) target bundleno = 45 (0x2d), region = 28  ;;  %s148_s26 = sand.u32 (%p43_p3), 1, %s2129_s13  }
  0x13   : > { %s1971_s27 = smul.u32 (%p43_p3), 24, %s2141_s16 }
  0x14   : > { %s1970_s28 = smul.u32 (%p43_p3), 288, %s148_s26 }
  0x15   : > { %s1972_s29 = smul.u32 (%p43_p3), 144, %s2145_s17 }
  0x16   : > { %s2244_s8 = scalar_lea.vmem (%p43_p3), [#allocation2], %s1970_s28 }
  0x17   : > { %s154_s30 = sadd.s32 (%p43_p3), %s1972_s29, %s1971_s27 }
  0x18   : > { %s1798_s4 = sshll.u32 (%p43_p3), %s154_s30, 2 }
  0x19   : > { %s2239_s7 = scalar_lea.vmem %s2931_s0, %s1798_s4 }
  0x1a   : > { %v172_v0 = vld [vmem:[%s2239_s7] sm:$0xff]   ;;  %v176_v1 = vld [vmem:[%s2239_s7 + $0x8] sm:$0xff]   ;;  %v180_v2 = vld [vmem:[%s2239_s7 + $0x10] sm:$0xff]  }
  0x1b   : > { %173 = vst [vmem:[%s2244_s8] sm:$0xff] %v172_v0   ;;  %177 = vst [vmem:[%s2244_s8 + $0x8] sm:$0xff] %v176_v1   ;;  %v184_v3 = vld [vmem:[%s2239_s7 + $0x18] sm:$0xff]   ;;  %v188_v4 = vld [vmem:[%s2239_s7 + $0x20] sm:$0xff]  }
  0x1c   : > { %181 = vst [vmem:[%s2244_s8 + $0x10] sm:$0xff] %v180_v2   ;;  %v192_v5 = vld [vmem:[%s2239_s7 + $0x28] sm:$0xff]   ;;  %185 = vst [vmem:[%s2244_s8 + $0x18] sm:$0xff] %v184_v3   ;;  %v196_v6 = vld [vmem:[%s2239_s7 + $0x30] sm:$0xff]  }
  0x1d   : > { %189 = vst [vmem:[%s2244_s8 + $0x20] sm:$0xff] %v188_v4   ;;  %193 = vst [vmem:[%s2244_s8 + $0x28] sm:$0xff] %v192_v5   ;;  %v200_v7 = vld [vmem:[%s2239_s7 + $0x38] sm:$0xff]   ;;  %v204_v8 = vld [vmem:[%s2239_s7 + $0x40] sm:$0xff]  }
  0x1e   : > { %197 = vst [vmem:[%s2244_s8 + $0x30] sm:$0xff] %v196_v6   ;;  %201 = vst [vmem:[%s2244_s8 + $0x38] sm:$0xff] %v200_v7   ;;  %v208_v9 = vld [vmem:[%s2239_s7 + $0x48] sm:$0xff]   ;;  %v212_v10 = vld [vmem:[%s2239_s7 + $0x50] sm:$0xff]  }
  0x1f   : > { %205 = vst [vmem:[%s2244_s8 + $0x40] sm:$0xff] %v204_v8   ;;  %v216_v11 = vld [vmem:[%s2239_s7 + $0x58] sm:$0xff]   ;;  %209 = vst [vmem:[%s2244_s8 + $0x48] sm:$0xff] %v208_v9   ;;  %v220_v12 = vld [vmem:[%s2239_s7 + $0xc0] sm:$0xff]  }
  0x20   : > { %213 = vst [vmem:[%s2244_s8 + $0x50] sm:$0xff] %v212_v10   ;;  %217 = vst [vmem:[%s2244_s8 + $0x58] sm:$0xff] %v216_v11   ;;  %v224_v13 = vld [vmem:[%s2239_s7 + $0xc8] sm:$0xff]   ;;  %v228_v14 = vld [vmem:[%s2239_s7 + $0xd0] sm:$0xff]  }
  0x21   : > { %221 = vst [vmem:[%s2244_s8 + $0x60] sm:$0xff] %v220_v12   ;;  %225 = vst [vmem:[%s2244_s8 + $0x68] sm:$0xff] %v224_v13   ;;  %v232_v15 = vld [vmem:[%s2239_s7 + $0xd8] sm:$0xff]   ;;  %v236_v16 = vld [vmem:[%s2239_s7 + $0xe0] sm:$0xff]  }
  0x22   : > { %229 = vst [vmem:[%s2244_s8 + $0x70] sm:$0xff] %v228_v14   ;;  %v240_v17 = vld [vmem:[%s2239_s7 + $0xe8] sm:$0xff]   ;;  %233 = vst [vmem:[%s2244_s8 + $0x78] sm:$0xff] %v232_v15   ;;  %v244_v18 = vld [vmem:[%s2239_s7 + $0xf0] sm:$0xff]  }
  0x23   : > { %237 = vst [vmem:[%s2244_s8 + $0x80] sm:$0xff] %v236_v16   ;;  %241 = vst [vmem:[%s2244_s8 + $0x88] sm:$0xff] %v240_v17   ;;  %v248_v19 = vld [vmem:[%s2239_s7 + $0xf8] sm:$0xff]   ;;  %v252_v20 = vld [vmem:[%s2239_s7 + $0x100] sm:$0xff]  }
  0x24   : > { %245 = vst [vmem:[%s2244_s8 + $0x90] sm:$0xff] %v244_v18   ;;  %249 = vst [vmem:[%s2244_s8 + $0x98] sm:$0xff] %v248_v19   ;;  %v256_v21 = vld [vmem:[%s2239_s7 + $0x108] sm:$0xff]   ;;  %v260_v22 = vld [vmem:[%s2239_s7 + $0x110] sm:$0xff]  }
  0x25   : > { %253 = vst [vmem:[%s2244_s8 + $0xa0] sm:$0xff] %v252_v20   ;;  %v264_v23 = vld [vmem:[%s2239_s7 + $0x118] sm:$0xff]   ;;  %257 = vst [vmem:[%s2244_s8 + $0xa8] sm:$0xff] %v256_v21   ;;  %v268_v24 = vld [vmem:[%s2239_s7 + $0x180] sm:$0xff]  }
  0x26   : > { %261 = vst [vmem:[%s2244_s8 + $0xb0] sm:$0xff] %v260_v22   ;;  %265 = vst [vmem:[%s2244_s8 + $0xb8] sm:$0xff] %v264_v23   ;;  %v272_v25 = vld [vmem:[%s2239_s7 + $0x188] sm:$0xff]   ;;  %v276_v26 = vld [vmem:[%s2239_s7 + $0x190] sm:$0xff]  }
  0x27   : > { %269 = vst [vmem:[%s2244_s8 + $0xc0] sm:$0xff] %v268_v24   ;;  %273 = vst [vmem:[%s2244_s8 + $0xc8] sm:$0xff] %v272_v25   ;;  %v280_v27 = vld [vmem:[%s2239_s7 + $0x198] sm:$0xff]   ;;  %v284_v28 = vld [vmem:[%s2239_s7 + $0x1a0] sm:$0xff]  }
  0x28   : > { %277 = vst [vmem:[%s2244_s8 + $0xd0] sm:$0xff] %v276_v26   ;;  %v288_v29 = vld [vmem:[%s2239_s7 + $0x1a8] sm:$0xff]   ;;  %281 = vst [vmem:[%s2244_s8 + $0xd8] sm:$0xff] %v280_v27   ;;  %v292_v30 = vld [vmem:[%s2239_s7 + $0x1b0] sm:$0xff]  }
  0x29   : > { %285 = vst [vmem:[%s2244_s8 + $0xe0] sm:$0xff] %v284_v28   ;;  %289 = vst [vmem:[%s2244_s8 + $0xe8] sm:$0xff] %v288_v29   ;;  %v296_v31 = vld [vmem:[%s2239_s7 + $0x1b8] sm:$0xff]   ;;  %v300_v32 = vld [vmem:[%s2239_s7 + $0x1c0] sm:$0xff]  }
  0x2a   : > { %293 = vst [vmem:[%s2244_s8 + $0xf0] sm:$0xff] %v292_v30   ;;  %297 = vst [vmem:[%s2244_s8 + $0xf8] sm:$0xff] %v296_v31   ;;  %v304_v33 = vld [vmem:[%s2239_s7 + $0x1c8] sm:$0xff]   ;;  %v308_v34 = vld [vmem:[%s2239_s7 + $0x1d0] sm:$0xff]  }
  0x2b   : > { %301 = vst [vmem:[%s2244_s8 + $0x100] sm:$0xff] %v300_v32   ;;  %v312_v35 = vld [vmem:[%s2239_s7 + $0x1d8] sm:$0xff]   ;;  %305 = vst [vmem:[%s2244_s8 + $0x108] sm:$0xff] %v304_v33  }
  0x2c   : > { %309 = vst [vmem:[%s2244_s8 + $0x110] sm:$0xff] %v308_v34   ;;  %313 = vst [vmem:[%s2244_s8 + $0x118] sm:$0xff] %v312_v35  }
  0x2d PF: > { %p1799_p7 = scmp.ge.s32.totalorder %s2149_s18, 1  ;;  %p481_p8 = scmp.lt.s32.totalorder %s2149_s18, 5 }
  0x2f   : > { %p482_p9 = pnand %p1799_p7, %p481_p8 }
  0x30   : > { %s488_s9 = sand.u32 (!%p482_p9), 1, %s2125_s12   ;;  %v2151_v36 = vmov (!%p482_p9), 0   ;;  %v2083_v37 = vld [vmem:[%s2932_s1] sm:$0xff] (!%p482_p9)   ;;  %v2086_v38 = vld [vmem:[%s2932_s1 + $0x8] sm:$0xff] (!%p482_p9)   ;;  %vm780_vm0 = vcmask (!%p482_p9), 1046528   ;;  %s2152_s12 = smov (!%p482_p9), 48  }
  0x31   : > { %485 = sbr.rel (%p482_p9) target bundleno = 503 (0x1f7), region = 69  ;;  %1952 = vmatprep.subr.bf16.mxu1 (!%p482_p9), %v2151_v36  ;;  %1499 = vmatprep.subr.bf16.mxu0 (!%p482_p9), %v2151_v36  ;;  %vm667_vm1 = vsmask.f32 (!%p482_p9), 7424  ;;  %s2153_s26 = smov (!%p482_p9), 32   ;;  %vm1269_vm2 = vcmask (!%p482_p9), 130048   ;;  %vm1286_vm3 = vcmask (!%p482_p9), 261120  }
  0x32   : > { %s1973_s10 = smul.u32 (!%p482_p9), 288, %s488_s9  ;;  %1961 = vmatpush1.bf16.msra.mxu1 (!%p482_p9), %v2083_v37  ;;  %1500 = vmatpush1.bf16.msra.mxu0 (!%p482_p9), %v2083_v37  ;;  %s2154_s27 = smov (!%p482_p9), 16   ;;  %vm1303_vm4 = vcmask (!%p482_p9), 392192   ;;  %vm1320_vm5 = vcmask (!%p482_p9), 523264   ;;  %vm1337_vm6 = vcmask (!%p482_p9), 654336   ;;  %vm1354_vm7 = vcmask (!%p482_p9), 785408  }
  0x33   : > { %1953 = vmatprep.subr.bf16.mxu1 (!%p482_p9), %v2151_v36  ;;  %1501 = vmatprep.subr.bf16.mxu0 (!%p482_p9), %v2151_v36  ;;  %s2155_s28 = smov (!%p482_p9), 64   ;;  %s2156_s29 = smov (!%p482_p9), 80   ;;  %vm1371_vm8 = vcmask (!%p482_p9), 916480   ;;  %vm1676_vm9 = vcmask (!%p482_p9), 125952  }
  0x34   : > { %s2326_s24 = scalar_lea.vmem (!%p482_p9), [#allocation2], %s1973_s10  ;;  %s2157_s30 = smov (!%p482_p9), 96  }
  0x35   : > { %v2329_v39 = vld [vmem:[%s2326_s24 + $0x90] sm:$0xff] (!%p482_p9)   ;;  %v2332_v40 = vld [vmem:[%s2326_s24 + $0x60] sm:$0xff] (!%p482_p9)   ;;  %v2041_v42 = vld [vmem:[%s2326_s24 + $0x8] ss:$0 sps:$4 sm:$0x11] (!%p482_p9)   ;;  %s2158_s4 = smov (!%p482_p9), 112  }
  0x36   : > { %869 = vrot.lane.b32.xlu1 (!%p482_p9), %v2329_v39, %s2152_s12  ;;  %861 = vrot.lane.b32.xlu0 (!%p482_p9), %v2332_v40, %s2152_s12  ;;  %v2341_v41 = vld [vmem:[%s2326_s24] sm:$0xff] (!%p482_p9)   ;;  %v2345_v43 = vld [vmem:[%s2326_s24 + $0x30] sm:$0xff] (!%p482_p9)   ;;  %v950_v44 = vshrl.u32 (!%p482_p9), %v2329_v39, 16  ;;  %v782_v46 = vrot.slane (!%p482_p9), %v2041_v42, 1  ;;  %v676_v49 = vshll.u32 (!%p482_p9), %v2041_v42, 16  ;;  %v952_v57 = vshll.u32 (!%p482_p9), %v2329_v39, 16 }
  0x37   : > { %1962 = vmatpush1.bf16.msra.mxu1 (!%p482_p9), %v2086_v38  ;;  %1502 = vmatpush1.bf16.msra.mxu0 (!%p482_p9), %v2086_v38  ;;  %v781_v45 = vrot.slane (!%p482_p9), %v2341_v41, 1  ;;  %v669_v47 = vshrl.u32 (!%p482_p9), %v2341_v41, 16  ;;  %v671_v48 = vshll.u32 (!%p482_p9), %v2341_v41, 16  ;;  %v2043_v50 = vld [vmem:[%s2326_s24 + $0x38] ss:$0 sps:$4 sm:$0x11] (!%p482_p9)  }
  0x38   : > { %1954 = vmatprep.subr.bf16.mxu1 %v2151_v36  ;;  %1503 = vmatprep.subr.bf16.mxu0 %v2151_v36  ;;  %v793_v51 = vrot.slane %v2345_v43, 1  ;;  %v717_v52 = vshrl.u32 %v2345_v43, 16  ;;  %v719_v55 = vshll.u32 %v2345_v43, 16  ;;  %v2044_v56 = vld [vmem:[%s2326_s24 + $0x98] ss:$0 sps:$4 sm:$0x11]  }
  0x39   : > { %v783_v53 = vsel %vm780_vm0, %v781_v45, %v782_v46  ;;  %v673_v54 = vrot.slane %v671_v48, 1  ;;  %v678_v58 = vrot.slane %v676_v49, 1  ;;  %v794_v59 = vrot.slane %v2043_v50, 1  ;;  %v2045_v1 = vld [vmem:[%s2326_s24 + $0x68] ss:$0 sps:$4 sm:$0x11]  }
  0x3a   : > { %805 = vrot.lane.b32.xlu1 %v783_v53, %s2153_s26  ;;  %v724_v60 = vshll.u32 %v2043_v50, 16  ;;  %v721_v62 = vrot.slane %v719_v55, 1  ;;  %v954_v63 = vrot.slane %v952_v57, 1  ;;  %v957_v0 = vshll.u32 %v2044_v56, 16  ;;  %v2367_v10 = vld [vmem:[%s2326_s24 + $0xf0] sm:$0xff]   ;;  %v2373_v14 = vld [vmem:[%s2326_s24 + $0xc0] sm:$0xff]  }
  0x3b   : > { %v674_v61 = vor.u32 %v673_v54, %v669_v47  ;;  %v795_v2 = vsel %vm780_vm0, %v793_v51, %v794_v59  ;;  %v902_v4 = vshrl.u32 %v2332_v40, 16  ;;  %v904_v5 = vshll.u32 %v2332_v40, 16  ;;  %v2378_v18 = vld [vmem:[%s2326_s24 + $0xf8] ss:$0 sps:$4 sm:$0x11]   ;;  %v2393_v31 = vld [vmem:[%s2326_s24 + $0x3c] sm:$0xff]  }
  0x3c   : > { %v726_v3 = vrot.slane %v724_v60, 1  ;;  %v722_v7 = vor.u32 %v721_v62, %v717_v52  ;;  %v955_v8 = vor.u32 %v954_v63, %v950_v44  ;;  %v959_v9 = vrot.slane %v957_v0, 1  ;;  %v2383_v24 = vld [vmem:[%s2326_s24 + $0xc8] ss:$0 sps:$4 sm:$0x11]   ;;  %v2400_v37 = vld [vmem:[%s2326_s24 + $0xc] sm:$0xff]  }
  0x3d   : > { %v679_v6 = vsel %vm667_vm1, %v674_v61, %v678_v58  ;;  %v906_v11 = vrot.slane %v904_v5, 1  ;;  %v909_v12 = vshll.u32 %v2045_v1, 16  ;;  %v1025_v13 = vrot.slane %v2329_v39, 1  ;;  %v2051_v32 = vld [vmem:[%s2326_s24 + $0x44] ss:$0 sps:$4 sm:$0x11]  }
  0x3e   : > { %764 = vrot.lane.b32.xlu0 %v679_v6, %s2154_s27  ;;  %813 = vrot.lane.b32.xlu1 %v795_v2, %s2153_s26  ;;  %v727_v15 = vsel %vm667_vm1, %v722_v7, %v726_v3  ;;  %v960_v16 = vsel %vm667_vm1, %v955_v8, %v959_v9  ;;  %v1026_v17 = vrot.slane %v2044_v56, 1  ;;  %v1013_v21 = vrot.slane %v2332_v40, 1  ;;  %v2053_v44 = vld [vmem:[%s2326_s24 + $0x14] ss:$0 sps:$4 sm:$0x11]   ;;  %v2413_v54 = vld [vmem:[%s2326_s24 + $0x9c] sm:$0xff]  }
  0x3f   : > { %v907_v19 = vor.u32 %v906_v11, %v902_v4  ;;  %v911_v20 = vrot.slane %v909_v12, 1  ;;  %v1014_v22 = vrot.slane %v2045_v1, 1  ;;  %v1184_v23 = vshll.u32 %v2367_v10, 16  ;;  %v2417_v58 = vld [vmem:[%s2326_s24 + $0xa4] ss:$0 sps:$4 sm:$0x11]  }
  0x40   : > { %v1189_v25 = vshll.u32 %v2378_v18, 16  ;;  %v1136_v26 = vshll.u32 %v2373_v14, 16  ;;  %v1027_v28 = vsel %vm780_vm0, %v1025_v13, %v1026_v17  ;;  %v1182_v29 = vshrl.u32 %v2367_v10, 16  ;;  %v2420_v59 = vld [vmem:[%s2326_s24 + $0x6c] sm:$0xff]   ;;  %v2437_v9 = vld [vmem:[%s2326_s24 + $0xfc] sm:$0xff]   ;;  %p518_p10 = scmp.lt.s32.totalorder %s2137_s15, 1 }
  0x41   : > { %v912_v27 = vsel %vm667_vm1, %v907_v19, %v911_v20  ;;  %v1186_v30 = vrot.slane %v1184_v23, 1  ;;  %v1134_v33 = vshrl.u32 %v2373_v14, 16  ;;  %v1141_v34 = vshll.u32 %v2383_v24, 16  ;;  %v2423_v60 = vld [vmem:[%s2326_s24 + $0x74] ss:$0 sps:$4 sm:$0x11]  }
  0x42   : > { %772 = vrot.lane.b32.xlu0 %v727_v15, %s2154_s27  ;;  %1005 = vrot.lane.b32.xlu1 %v960_v16, %s2155_s28  ;;  %v731_v35 = vshll.u32 %v2393_v31, 16  ;;  %v1015_v38 = vsel %vm780_vm0, %v1013_v21, %v1014_v22  ;;  %v1191_v39 = vrot.slane %v1189_v25, 1  ;;  %v1138_v40 = vrot.slane %v1136_v26, 1  ;;  %v2440_v11 = vld [vmem:[%s2326_s24 + $0x104] ss:$0 sps:$4 sm:$0x11]  }
  0x43   : > { %v736_v42 = vshll.u32 %v2051_v32, 16  ;;  %v1187_v45 = vor.u32 %v1186_v30, %v1182_v29  ;;  %v729_v46 = vshrl.u32 %v2393_v31, 16  ;;  %v683_v48 = vshll.u32 %v2400_v37, 16  ;;  %v2448_v17 = vld [vmem:[%s2326_s24 + $0xcc] sm:$0xff]   ;;  %s2948_s15 = smov (!%p518_p10, %s2137_s15), 1 }
  0x44   : > { %v733_v47 = vrot.slane %v731_v35, 1  ;;  %v1143_v49 = vrot.slane %v1141_v34, 1  ;;  %v1139_v50 = vor.u32 %v1138_v40, %v1134_v33  ;;  %v681_v52 = vshrl.u32 %v2400_v37, 16  ;;  %v2451_v19 = vld [vmem:[%s2326_s24 + $0xd4] ss:$0 sps:$4 sm:$0x11]  }
  0x45   : > { %v738_v51 = vrot.slane %v736_v42, 1  ;;  %v688_v53 = vshll.u32 %v2053_v44, 16  ;;  %v1192_v55 = vsel %vm667_vm1, %v1187_v45, %v1191_v39  ;;  %v685_v57 = vrot.slane %v683_v48, 1  ;;  %v2465_v33 = vld [vmem:[%s2326_s24 + $0x50] ss:$0 sps:$4 sm:$0x11]  }
  0x46   : > { %997 = vrot.lane.b32.xlu0 %v912_v27, %s2155_s28  ;;  %1045 = vrot.lane.b32.xlu1 %v1027_v28, %s2156_s29  ;;  %v734_v56 = vor.u32 %v733_v47, %v729_v46  ;;  %v1144_v61 = vsel %vm667_vm1, %v1139_v50, %v1143_v49  ;;  %v796_v62 = vrot.slane %v2393_v31, 1  ;;  %v797_v63 = vrot.slane %v2051_v32, 1  ;;  %v2458_v28 = vld [vmem:[%s2326_s24 + $0x48] sm:$0xff]   ;;  %v2473_v42 = vld [vmem:[%s2326_s24 + $0x20] ss:$0 sps:$4 sm:$0x11]  }
  0x47   : > { %v964_v0 = vshll.u32 %v2413_v54, 16  ;;  %v686_v2 = vor.u32 %v685_v57, %v681_v52  ;;  %v690_v3 = vrot.slane %v688_v53, 1  ;;  %v784_v4 = vrot.slane %v2400_v37, 1  ;;  %v2477_v45 = vld [vmem:[%s2326_s24 + $0x18] sm:$0xff]  }
  0x48   : > { %v739_v1 = vsel %vm667_vm1, %v734_v56, %v738_v51  ;;  %v785_v5 = vrot.slane %v2053_v44, 1  ;;  %v969_v6 = vshll.u32 %v2417_v58, 16  ;;  %v916_v7 = vshll.u32 %v2420_v59, 16  ;;  %v2486_v50 = vld [vmem:[%s2326_s24 + $0x78] sm:$0xff]  }
  0x49   : > { %v921_v8 = vshll.u32 %v2423_v60, 16  ;;  %v962_v12 = vshrl.u32 %v2413_v54, 16  ;;  %v966_v13 = vrot.slane %v964_v0, 1  ;;  %v691_v15 = vsel %vm667_vm1, %v686_v2, %v690_v3  ;;  %v2492_v57 = vld [vmem:[%s2326_s24 + $0x80] ss:$0 sps:$4 sm:$0x11]  }
  0x4a   : > { %1037 = vrot.lane.b32.xlu0 %v1015_v38, %s2156_s29  ;;  %1101 = vrot.lane.b32.xlu1 %v2367_v10, %s2157_s30  ;;  %v798_v16 = vsel %vm780_vm0, %v796_v62, %v797_v63  ;;  %v971_v20 = vrot.slane %v969_v6, 1  ;;  %v914_v21 = vshrl.u32 %v2420_v59, 16  ;;  %v1028_v22 = vrot.slane %v2413_v54, 1  ;;  %v2499_v63 = vld [vmem:[%s2326_s24 + $0x108] sm:$0xff]  }
  0x4b   : > { %v1029_v23 = vrot.slane %v2417_v58, 1  ;;  %v918_v25 = vrot.slane %v916_v7, 1  ;;  %v923_v26 = vrot.slane %v921_v8, 1  ;;  %v1016_v27 = vrot.slane %v2420_v59, 1  ;;  %v2510_v7 = vld [vmem:[%s2326_s24 + $0xd8] sm:$0xff]  }
  0x4c   : > { %v786_v29 = vsel %vm780_vm0, %v784_v4, %v785_v5  ;;  %v967_v30 = vor.u32 %v966_v13, %v962_v12  ;;  %v1017_v32 = vrot.slane %v2423_v60, 1  ;;  %v1196_v34 = vshll.u32 %v2437_v9, 16  ;;  %v2513_v12 = vld [vmem:[%s2326_s24 + $0x110] ss:$0 sps:$4 sm:$0x11]  }
  0x4d   : > { %v1201_v35 = vshll.u32 %v2440_v11, 16  ;;  %v1148_v38 = vshll.u32 %v2448_v17, 16  ;;  %v1153_v39 = vshll.u32 %v2451_v19, 16  ;;  %v1194_v40 = vshrl.u32 %v2437_v9, 16 }
  0x4e   : > { %1093 = vrot.lane.b32.xlu0 %v2373_v14, %s2157_s30  ;;  %1237 = vrot.lane.b32.xlu1 %v1192_v55, %s2158_s4  ;;  %v743_v44 = vshll.u32 %v2458_v28, 16  ;;  %v972_v46 = vsel %vm667_vm1, %v967_v30, %v971_v20  ;;  %v919_v47 = vor.u32 %v918_v25, %v914_v21  ;;  %v1146_v48 = vshrl.u32 %v2448_v17, 16  ;;  %v2519_v21 = vld [vmem:[%s2326_s24 + $0x54] sm:$0xff]   ;;  %v2528_v25 = vld [vmem:[%s2326_s24 + $0xe0] ss:$0 sps:$4 sm:$0x11]  }
  0x4f   : > { %v748_v49 = vshll.u32 %v2465_v33, 16  ;;  %v1198_v51 = vrot.slane %v1196_v34, 1  ;;  %v1203_v52 = vrot.slane %v1201_v35, 1  ;;  %v1150_v53 = vrot.slane %v1148_v38, 1  ;;  %v2537_v38 = vld [vmem:[%s2326_s24 + $0xa8] sm:$0xff]  }
  0x50   : > { %v2488_v55 = vrot.slane %v1153_v39, 1  ;;  %v741_v56 = vshrl.u32 %v2458_v28, 16  ;;  %v928_v58 = vshll.u32 %v2486_v50, 16  ;;  %v745_v60 = vrot.slane %v743_v44, 1 }
  0x51   : > { %v695_v62 = vshll.u32 %v2477_v45, 16  ;;  %v750_v0 = vrot.slane %v748_v49, 1  ;;  %v933_v3 = vshll.u32 %v2492_v57, 16  ;;  %v924_v4 = vsel %vm667_vm1, %v919_v47, %v923_v26  ;;  %v2540_v39 = vld [vmem:[%s2326_s24 + $0xb0] ss:$0 sps:$4 sm:$0x11]  }
  0x52   : > { %1229 = vrot.lane.b32.xlu0 %v1144_v61, %s2158_s4  ;;  %774 = vrot.lane.b32.xlu1 %v739_v1, %s2154_s27  ;;  %v693_v61 = vshrl.u32 %v2477_v45, 16  ;;  %v700_v1 = vshll.u32 %v2473_v42, 16  ;;  %v930_v2 = vrot.slane %v928_v58, 1  ;;  %v1030_v5 = vsel %vm780_vm0, %v1028_v22, %v1029_v23 }
  0x53   : > { %v799_v6 = vrot.slane %v2458_v28, 1  ;;  %v935_v8 = vrot.slane %v933_v3, 1  ;;  %v1199_v13 = vor.u32 %v1198_v51, %v1194_v40  ;;  %v1158_v20 = vshrl.u32 %v2510_v7, 16 }
  0x54   : > { %v1213_v23 = vshll.u32 %v2513_v12, 16  ;;  %v1160_v26 = vshll.u32 %v2510_v7, 16  ;;  %v1018_v30 = vsel %vm780_vm0, %v1016_v27, %v1017_v32  ;;  %v753_v35 = vshrl.u32 %v2519_v21, 16  ;;  %v2546_v27 = vld [vmem:[%s2326_s24 + $0x5c] ss:$0 sps:$4 sm:$0x11]  }
  0x55   : > { %v755_v47 = vshll.u32 %v2519_v21, 16  ;;  %v1204_v49 = vsel %vm667_vm1, %v1199_v13, %v1203_v52  ;;  %v1151_v51 = vor.u32 %v1150_v53, %v1146_v48  ;;  %v746_v32 = vor.u32 %v745_v60, %v741_v56  ;;  %v2556_v52 = vld [vmem:[%s2326_s24 + $0x2c] ss:$0 sps:$4 sm:$0x11]  }
  0x56   : > { %766 = vrot.lane.b32.xlu0 %v691_v15, %s2154_s27  ;;  %815 = vrot.lane.b32.xlu1 %v798_v16, %s2153_s26  ;;  %v1206_v15 = vshrl.u32 %v2499_v63, 16  ;;  %v1208_v16 = vshll.u32 %v2499_v63, 16  ;;  %v1215_v40 = vrot.slane %v1213_v23, 1  ;;  %v1162_v44 = vrot.slane %v1160_v26, 1  ;;  %v2567_v23 = vld [vmem:[%s2326_s24 + $0xb4] sm:$0xff]   ;;  %v2570_v26 = vld [vmem:[%s2326_s24 + $0x84] sm:$0xff]  }
  0x57   : > { %v760_v48 = vshll.u32 %v2546_v27, 16  ;;  %v787_v56 = vrot.slane %v2477_v45, 1  ;;  %v702_v13 = vrot.slane %v700_v1, 1  ;;  %v976_v1 = vshll.u32 %v2537_v38, 16 }
  0x58   : > { %v1210_v34 = vrot.slane %v1208_v16, 1 }
  0x5a   : > { %807 = vrot.lane.b32.xlu0 %v786_v29, %s2153_s26  ;;  %871 = vrot.lane.b32.xlu1 %v2413_v54, %s2152_s12  ;;  %v926_v54 = vshrl.u32 %v2486_v50, 16  ;;  %v2532_v29 = vld [vmem:[%s2326_s24 + $0x24] sm:$0xff]   ;;  %v1211_v58 = vor.u32 %v1210_v34, %v1206_v15  ;;  %v762_v15 = vrot.slane %v760_v48, 1  ;;  %v981_v34 = vshll.u32 %v2540_v39, 16 }
  0x5b   : > { %v705_v53 = vshrl.u32 %v2532_v29, 16 }
  0x5e   : > { %863 = vrot.lane.b32.xlu0 %v2420_v59, %s2152_s12  ;;  %1007 = vrot.lane.b32.xlu1 %v972_v46, %s2155_s28  ;;  %v931_v59 = vor.u32 %v930_v2, %v926_v54  ;;  %v1165_v46 = vshll.u32 %v2528_v25, 16  ;;  %v697_v54 = vrot.slane %v695_v62, 1  ;;  %v1163_v2 = vor.u32 %v1162_v44, %v1158_v20 }
  0x5f   : > { %v707_v62 = vshll.u32 %v2532_v29, 16  ;;  %v712_v20 = vshll.u32 %v2556_v52, 16 }
  0x60   : > { %v2524_v22 = vsel %vm667_vm1, %v931_v59, %v935_v8  ;;  %v1167_v3 = vrot.slane %v1165_v46, 1  ;;  %v800_v59 = vrot.slane %v2465_v33, 1  ;;  %v1156_v33 = vsel %vm667_vm1, %v1151_v51, %v2488_v55 }
  0x61   : > { %v709_v16 = vrot.slane %v707_v62, 1  ;;  %v714_v46 = vrot.slane %v712_v20, 1  ;;  %v986_v55 = vshrl.u32 %v2567_v23, 16  ;;  %v940_v51 = vshll.u32 %v2570_v26, 16  ;;  %v2612_v20 = vld [vmem:[%s2326_s24 + $0xe4] sm:$0xff]  }
  0x62   : > { %999 = vrot.lane.b32.xlu0 %v924_v4, %s2155_s28  ;;  %1047 = vrot.lane.b32.xlu1 %v1030_v5, %s2156_s29  ;;  %v757_v4 = vrot.slane %v755_v47, 1  ;;  %v2552_v5 = vsel %vm667_vm1, %v1211_v58, %v1215_v40  ;;  %v2563_v60 = vsel %vm667_vm1, %v1163_v2, %v1167_v3  ;;  %v2586_v47 = vld [vmem:[%s2326_s24 + $0xbc] ss:$0 sps:$4 sm:$0x11]   ;;  %v788_v58 = vrot.slane %v2473_v42, 1 }
  0x63   : > { %v710_v44 = vor.u32 %v709_v16, %v705_v53  ;;  %v2599_v2 = vld [vmem:[%s2326_s24 + $0x8c] ss:$0 sps:$4 sm:$0x11]   ;;  %v801_v3 = vsel %vm780_vm0, %v799_v6, %v800_v59  ;;  %v978_v42 = vrot.slane %v976_v1, 1  ;;  %v942_v48 = vrot.slane %v940_v51, 1  ;;  %v2607_v53 = vld [vmem:[%s2326_s24 + $0x114] sm:$0xff]  }
  0x64   : > { %v758_v8 = vor.u32 %v757_v4, %v753_v35  ;;  %v698_v35 = vor.u32 %v697_v54, %v693_v61  ;;  %v974_v61 = vshrl.u32 %v2537_v38, 16  ;;  %v945_v16 = vshll.u32 %v2599_v2, 16 }
  0x65   : > { %v2595_v54 = vsel %vm667_vm1, %v710_v44, %v714_v46  ;;  %v2615_v46 = vld [vmem:[%s2326_s24 + $0x11c] ss:$0 sps:$4 sm:$0x11]   ;;  %v1218_v6 = vshrl.u32 %v2607_v53, 16  ;;  %v1220_v59 = vshll.u32 %v2607_v53, 16 }
  0x66   : > { %1039 = vrot.lane.b32.xlu0 %v1018_v30, %s2156_s29  ;;  %1103 = vrot.lane.b32.xlu1 %v2437_v9, %s2157_s30  ;;  %v751_v30 = vsel %vm667_vm1, %v746_v32, %v750_v0  ;;  %v2583_v40 = vsel %vm667_vm1, %v758_v8, %v762_v15  ;;  %v988_v0 = vshll.u32 %v2567_v23, 16  ;;  %v993_v32 = vshll.u32 %v2586_v47, 16 }
  0x67   : > { %v703_v62 = vsel %vm667_vm1, %v698_v35, %v702_v13  ;;  %v983_v8 = vrot.slane %v981_v34, 1  ;;  %v947_v44 = vrot.slane %v945_v16, 1  ;;  %v789_v13 = vsel %vm780_vm0, %v787_v56, %v788_v58  ;;  %v2626_v35 = vld [vmem:[%s2326_s24 + $0xec] ss:$0 sps:$4 sm:$0x11]   ;;  %v2088_v56 = vld [vmem:[%s2932_s1 + $0x10] sm:$0xff]  }
  0x68   : > { %v990_v4 = vrot.slane %v988_v0, 1  ;;  %v995_v15 = vrot.slane %v993_v32, 1  ;;  %v979_v1 = vor.u32 %v978_v42, %v974_v61  ;;  %v1225_v51 = vshll.u32 %v2615_v46, 16  ;;  %v2089_v61 = vld [vmem:[%s2932_s1 + $0x18] sm:$0xff]   ;;  %1963 = vmatpush1.bf16.msra.mxu1 %v2088_v56  ;;  %1504 = vmatpush1.bf16.msra.mxu0 %v2088_v56 }
  0x69   : > { %v1172_v32 = vshll.u32 %v2612_v20, 16  ;;  %v1177_v58 = vshll.u32 %v2626_v35, 16  ;;  %1955 = vmatprep.subr.bf16.mxu1 %v2151_v36  ;;  %1505 = vmatprep.subr.bf16.mxu0 %v2151_v36 }
  0x6a   : > { %1095 = vrot.lane.b32.xlu0 %v2448_v17, %s2157_s30  ;;  %1239 = vrot.lane.b32.xlu1 %v1204_v49, %s2158_s4  ;;  %v938_v49 = vshrl.u32 %v2570_v26, 16  ;;  %v1227_v42 = vrot.slane %v1225_v51, 1  ;;  %v984_v16 = vsel %vm667_vm1, %v979_v1, %v983_v8  ;;  %v1258_v8 = vrot.slane %v2378_v18, 1  ;;  %v2091_v51 = vld [vmem:[%s2932_s1 + $0x28] sm:$0xff]  }
  0x6b   : > { %v1246_v1 = vrot.slane %v2383_v24, 1  ;;  %v1260_v18 = vrot.slane %v2437_v9, 1  ;;  %v1264_v24 = vrot.slane %v2513_v12, 1 }
  0x6c   : > { %1964 = vmatpush1.bf16.msra.mxu1 %v2089_v61  ;;  %1506 = vmatpush1.bf16.msra.mxu0 %v2089_v61  ;;  %v802_v61 = vrot.slane %v2519_v21, 1 }
  0x6d   : > { %1956 = vmatprep.subr.bf16.mxu1 %v2151_v36  ;;  %1507 = vmatprep.subr.bf16.mxu0 %v2151_v36 }
  0x6e   : > { %1231 = vrot.lane.b32.xlu0 %v1156_v33, %s2158_s4  ;;  %776 = vrot.lane.b32.xlu1 %v751_v30, %s2154_s27  ;;  %v991_v33 = vor.u32 %v990_v4, %v986_v55  ;;  %v943_v30 = vor.u32 %v942_v48, %v938_v49  ;;  %v1170_v55 = vshrl.u32 %v2612_v20, 16  ;;  %v1222_v49 = vrot.slane %v1220_v59, 1 }
  0x6f   : > { %v1174_v4 = vrot.slane %v1172_v32, 1  ;;  %v1031_v48 = vrot.slane %v2537_v38, 1  ;;  %v1252_v32 = vrot.slane %v2528_v25, 1  ;;  %v2093_v25 = vld [vmem:[%s2932_s1 + $0x38] sm:$0xff]  }
  0x70   : > { %v2623_v34 = vsel %vm667_vm1, %v991_v33, %v995_v15  ;;  %v2630_v0 = vsel %vm667_vm1, %v943_v30, %v947_v44  ;;  %v1179_v15 = vrot.slane %v1177_v58, 1  ;;  %v1019_v44 = vrot.slane %v2486_v50, 1 }
  0x71   : > { %v1175_v30 = vor.u32 %v1174_v4, %v1170_v55 }
  0x72   : > { %768 = vrot.lane.b32.xlu0 %v703_v62, %s2154_s27  ;;  %817 = vrot.lane.b32.xlu1 %v801_v3, %s2153_s26  ;;  %v1223_v3 = vor.u32 %v1222_v49, %v1218_v6  ;;  %v1032_v62 = vrot.slane %v2540_v39, 1  ;;  %v1257_v6 = vrot.slane %v2367_v10, 1  ;;  %v2090_v39 = vld [vmem:[%s2932_s1 + $0x20] sm:$0xff]   ;;  %v1020_v10 = vrot.slane %v2492_v57, 1 }
  0x73   : > { %v1248_v49 = vrot.slane %v2448_v17, 1  ;;  %v1249_v57 = vrot.slane %v2451_v19, 1  ;;  %1965 = vmatpush1.bf16.msra.mxu1 %v2090_v39  ;;  %1508 = vmatpush1.bf16.msra.mxu0 %v2090_v39  ;;  %v1251_v17 = vrot.slane %v2510_v7, 1 }
  0x74   : > { %v2648_v33 = vsel %vm667_vm1, %v1223_v3, %v1227_v42  ;;  %v1033_v59 = vsel %vm780_vm0, %v1031_v48, %v1032_v62  ;;  %v1259_v55 = vsel %vm780_vm0, %v1257_v6, %v1258_v8  ;;  %v1021_v56 = vsel %vm780_vm0, %v1019_v44, %v1020_v10  ;;  %1957 = vmatprep.subr.bf16.mxu1 %v2151_v36  ;;  %v2094_v3 = vld [vmem:[%s2932_s1 + $0x40] sm:$0xff]  }
  0x75   : > { %1914 = vmatprep.mubr.msk.bf16.mxu1 %vm1269_vm2, %v1259_v55  ;;  %v2691_v19 = vsel %vm780_vm0, %v1248_v49, %v1249_v57  ;;  %1509 = vmatprep.subr.bf16.mxu0 %v2151_v36  ;;  %v2700_v58 = vsel %vm780_vm0, %v1251_v17, %v1252_v32  ;;  %v1267_v42 = vrot.slane %v2615_v46, 1  ;;  %v1255_v48 = vrot.slane %v2626_v35, 1 }
  0x76   : > { %809 = vrot.lane.b32.xlu0 %v789_v13, %s2153_s26  ;;  %873 = vrot.lane.b32.xlu1 %v2537_v38, %s2152_s12  ;;  %v2655_v38 = vsel %vm667_vm1, %v1175_v30, %v1179_v15  ;;  %v1245_v13 = vrot.slane %v2373_v14, 1  ;;  %v1263_v14 = vrot.slane %v2499_v63, 1  ;;  %v1023_v62 = vrot.slane %v2599_v2, 1 }
  0x77   : > { %1966 = vmatpush1.bf16.msra.mxu1 %v2091_v51  ;;  %1510 = vmatpush1.bf16.msra.mxu0 %v2091_v51 }
  0x78   : > { %v1247_v9 = vsel %vm780_vm0, %v1245_v13, %v1246_v1  ;;  %v2694_v12 = vsel %vm780_vm0, %v1263_v14, %v1264_v24  ;;  %1958 = vmatprep.subr.bf16.mxu1 %v2151_v36  ;;  %1511 = vmatprep.subr.bf16.mxu0 %v2151_v36 }
  0x79   : > { %1910 = vmatprep.mubr.msk.bf16.mxu0 %vm1269_vm2, %v1247_v9 }
  0x7a   : > { %865 = vrot.lane.b32.xlu0 %v2486_v50, %s2152_s12  ;;  %1009 = vrot.lane.b32.xlu1 %v984_v16, %s2155_s28  ;;  %v1261_v50 = vrot.slane %v2440_v11, 1 }
  0x7c   : > { %v2683_v11 = vsel %vm780_vm0, %v1260_v18, %v1261_v50 }
  0x7e   : > { %1001 = vrot.lane.b32.xlu0 %v2524_v22, %s2155_s28  ;;  %1049 = vrot.lane.b32.xlu1 %v1033_v59, %s2156_s29  ;;  %v2092_v22 = vld [vmem:[%s2932_s1 + $0x30] sm:$0xff]  }
  0x7f   : > { %1967 = vmatpush1.bf16.msra.mxu1 %v2092_v22  ;;  %1512 = vmatpush1.bf16.msra.mxu0 %v2092_v22 }
  0x80   : > { %1959 = vmatprep.subr.bf16.mxu1 %v2151_v36  ;;  %1513 = vmatprep.subr.bf16.mxu0 %v2151_v36 }
  0x82   : > { %1041 = vrot.lane.b32.xlu0 %v1021_v56, %s2156_s29  ;;  %1105 = vrot.lane.b32.xlu1 %v2499_v63, %s2157_s30  ;;  %v803_v63 = vrot.slane %v2546_v27, 1  ;;  %v790_v27 = vrot.slane %v2532_v29, 1 }
  0x83   : > { %1968 = vmatpush1.bf16.msra.mxu1 %v2093_v25  ;;  %1514 = vmatpush1.bf16.msra.mxu0 %v2093_v25 }
  0x84   : > { %1960 = vmatprep.subr.bf16.mxu1 %v2151_v36  ;;  %1515 = vmatprep.subr.bf16.mxu0 %v2151_v36  ;;  %v1266_v36 = vrot.slane %v2607_v53, 1 }
  0x86   : > { %1097 = vrot.lane.b32.xlu0 %v2510_v7, %s2157_s30  ;;  %1241 = vrot.lane.b32.xlu1 %v2552_v5, %s2158_s4  ;;  %v804_v7 = vsel %vm780_vm0, %v802_v61, %v803_v63  ;;  %v791_v5 = vrot.slane %v2556_v52, 1  ;;  %v1034_v52 = vrot.slane %v2567_v23, 1  ;;  %v2746_v4 = vsel %vm780_vm0, %v1266_v36, %v1267_v42 }
  0x87   : > { %1969 = vmatpush1.bf16.msra.mxu1 %v2094_v3  ;;  %1516 = vmatpush1.bf16.msra.mxu0 %v2094_v3 }
  0x8a   : > { %1233 = vrot.lane.b32.xlu0 %v2563_v60, %s2158_s4  ;;  %778 = vrot.lane.b32.xlu1 %v2583_v40, %s2154_s27  ;;  %v792_v60 = vsel %vm780_vm0, %v790_v27, %v791_v5  ;;  %v1035_v40 = vrot.slane %v2586_v47, 1  ;;  %v1022_v47 = vrot.slane %v2570_v26, 1 }
  0x8e   : > { %770 = vrot.lane.b32.xlu0 %v2595_v54, %s2154_s27  ;;  %819 = vrot.lane.b32.xlu1 %v804_v7, %s2153_s26  ;;  %v1254_v54 = vrot.slane %v2612_v20, 1  ;;  %s1802_s27 = sshll.u32 %s2948_s15, 5 }
  0x90   : > { %v2758_v46 = vsel %vm780_vm0, %v1254_v54, %v1255_v48 }
  0x92   : > { %811 = vrot.lane.b32.xlu0 %v792_v60, %s2153_s26  ;;  %875 = vrot.lane.b32.xlu1 %v2567_v23, %s2152_s12  ;;  %v1036_v23 = vsel %vm780_vm0, %v1034_v52, %v1035_v40 }
  0x96   : > { %867 = vrot.lane.b32.xlu0 %v2570_v26, %s2152_s12  ;;  %1011 = vrot.lane.b32.xlu1 %v2623_v34, %s2155_s28  ;;  %v1024_v34 = vsel %vm780_vm0, %v1022_v47, %v1023_v62  ;;  %s1800_s12 = sshll.u32 %s2133_s14, 3 }
  0x97   : > { %p520_p11 = scmp.lt.s32.totalorder %s1800_s12, 15 }
  0x99   : > { %s2950_s12 = smov (!%p520_p11, %s1800_s12), 15 }
  0x9a   : > { %1003 = vrot.lane.b32.xlu0 %v2630_v0, %s2155_s28  ;;  %1051 = vrot.lane.b32.xlu1 %v1036_v23, %s2156_s29  ;;  %s1801_s26 = sshll.u32 %s2950_s12, 1 }
  0x9b   : > { %s524_s28 = sadd.s32 %s1802_s27, %s1801_s26 }
  0x9e   : > { %1043 = vrot.lane.b32.xlu0 %v1024_v34, %s2156_s29  ;;  %1107 = vrot.lane.b32.xlu1 %v2607_v53, %s2157_s30 }
  0xa2   : > { %1099 = vrot.lane.b32.xlu0 %v2612_v20, %s2157_s30  ;;  %1243 = vrot.lane.b32.xlu1 %v2648_v33, %s2158_s4 }
  0xa6   : > { %1235 = vrot.lane.b32.xlu0 %v2655_v38, %s2158_s4  ;;  %s1803_s4 = sshll.u32 %s524_s28, 2 }
  0xa7   : > { %s2862_s15 = scalar_lea.vmem %s2934_s3, %s1803_s4 }
  0xa8   : > { %v870_v26 = vpop.permute.xlu1 %869  ;;  %v862_v2 = vpop.permute.xlu0 %861 }
  0xac   : > { %v806_v35 = vpop.permute.xlu1 %805 }
  0xb0   : > { %v765_v0 = vpop.permute.xlu0 %764  ;;  %v814_v15 = vpop.permute.xlu1 %813 }
  0xb1   : > { %v1271_v38 = vsel %vm1269_vm2, %v2341_v41, %v765_v0 }
  0xb2   : > { %v1288_v10 = vsel %vm1286_vm3, %v1271_v38, %v806_v35 }
  0xb3   : > { %v1305_v18 = vsel %vm1303_vm4, %v1288_v10, %v862_v2 }
  0xb4   : > { %v773_v16 = vpop.permute.xlu0 %772  ;;  %v1006_v30 = vpop.permute.xlu1 %1005 }
  0xb5   : > { %v1279_v53 = vsel %vm1269_vm2, %v2345_v43, %v773_v16 }
  0xb6   : > { %v1296_v44 = vsel %vm1286_vm3, %v1279_v53, %v814_v15 }
  0xb7   : > { %v1313_v33 = vsel %vm1303_vm4, %v1296_v44, %v870_v26 }
  0xb8   : > { %v998_v20 = vpop.permute.xlu0 %997  ;;  %v1046_v6 = vpop.permute.xlu1 %1045  ;;  %v1330_v39 = vsel %vm1320_vm5, %v1313_v33, %v1006_v30 }
  0xb9   : > { %v1347_v43 = vsel %vm1337_vm6, %v1330_v39, %v1046_v6  ;;  %v1322_v41 = vsel %vm1320_vm5, %v1305_v18, %v998_v20 }
  0xbc   : > { %v1038_v8 = vpop.permute.xlu0 %1037  ;;  %v1102_v59 = vpop.permute.xlu1 %1101 }
  0xbd   : > { %v1364_v13 = vsel %vm1354_vm7, %v1347_v43, %v1102_v59  ;;  %v1339_v49 = vsel %vm1337_vm6, %v1322_v41, %v1038_v8 }
  0xc0   : > { %v1094_v1 = vpop.permute.xlu0 %1093  ;;  %v1238_v55 = vpop.permute.xlu1 %1237 }
  0xc1   : > { %v1385_v50 = vsel %vm1371_vm8, %v1364_v13, %v1238_v55  ;;  %v1356_v57 = vsel %vm1354_vm7, %v1339_v49, %v1094_v1 }
  0xc2   : > { %1564 = vmatmul.mubr.bf16.vlgmr.msra.gmra.mrb[0].mxu1 %v1385_v50 }
  0xc3   : > { %1915 = vmatprep.mubr.msk.bf16.mxu1 %vm1269_vm2, %v2683_v11 }
  0xc4   : > { %v1230_v14 = vpop.permute.xlu0 %1229  ;;  %v775_v24 = vpop.permute.xlu1 %774 }
  0xc5   : > { %v1373_v51 = vsel %vm1371_vm8, %v1356_v57, %v1230_v14  ;;  %v1281_v11 = vsel %vm1269_vm2, %v2393_v31, %v775_v24 }
  0xc6   : > { %1532 = vmatmul.mubr.bf16.vlgmr.msra.gmra.mrb[0].mxu0 %v1373_v51 }
  0xc7   : > { %1911 = vmatprep.mubr.msk.bf16.mxu0 %vm1269_vm2, %v2691_v19 }
  0xc8   : > { %v767_v9 = vpop.permute.xlu0 %766  ;;  %v816_v17 = vpop.permute.xlu1 %815 }
  0xc9   : > { %v1298_v3 = vsel %vm1286_vm3, %v1281_v11, %v816_v17  ;;  %v1273_v19 = vsel %vm1269_vm2, %v2400_v37, %v767_v9 }
  0xcc   : > { %v808_v32 = vpop.permute.xlu0 %807  ;;  %v872_v56 = vpop.permute.xlu1 %871 }
  0xcd   : > { %v1315_v5 = vsel %vm1303_vm4, %v1298_v3, %v872_v56  ;;  %v1290_v40 = vsel %vm1286_vm3, %v1273_v19, %v808_v32 }
  0xd0   : > { %v864_v22 = vpop.permute.xlu0 %863  ;;  %v1008_v25 = vpop.permute.xlu1 %1007 }
  0xd1   : > { %v1332_v60 = vsel %vm1320_vm5, %v1315_v5, %v1008_v25  ;;  %v1307_v31 = vsel %vm1303_vm4, %v1290_v40, %v864_v22 }
  0xd4   : > { %v1000_v61 = vpop.permute.xlu0 %999  ;;  %v1048_v63 = vpop.permute.xlu1 %1047 }
  0xd5   : > { %v1349_v52 = vsel %vm1337_vm6, %v1332_v60, %v1048_v63  ;;  %v1324_v23 = vsel %vm1320_vm5, %v1307_v31, %v1000_v61 }
  0xd8   : > { %v1040_v7 = vpop.permute.xlu0 %1039  ;;  %v1104_v27 = vpop.permute.xlu1 %1103 }
  0xd9   : > { %v1366_v36 = vsel %vm1354_vm7, %v1349_v52, %v1104_v27  ;;  %v1341_v47 = vsel %vm1337_vm6, %v1324_v23, %v1040_v7 }
  0xdc   : > { %v1096_v42 = vpop.permute.xlu0 %1095  ;;  %v1240_v54 = vpop.permute.xlu1 %1239 }
  0xdd   : > { %v1388_v48 = vsel %vm1371_vm8, %v1366_v36, %v1240_v54  ;;  %v1358_v37 = vsel %vm1354_vm7, %v1341_v47, %v1096_v42  ;;  %v2855_v54 = vld [vmem:[%s2933_s2] ss:$0 sm:$0xff] }
  0xde   : > { %1572 = vmatmul.mubr.bf16.gmra.mrb[4].mxu1 %v1388_v48 }
  0xdf   : > { %1916 = vmatprep.mubr.msk.bf16.mxu1 %vm1269_vm2, %v2694_v12 }
  0xe0   : > { %v1232_v62 = vpop.permute.xlu0 %1231  ;;  %v777_v34 = vpop.permute.xlu1 %776 }
  0xe1   : > { %v1376_v26 = vsel %vm1371_vm8, %v1358_v37, %v1232_v62  ;;  %v1283_v12 = vsel %vm1269_vm2, %v2458_v28, %v777_v34 }
  0xe2   : > { %1540 = vmatmul.mubr.bf16.gmra.mrb[4].mxu0 %v1376_v26 }
  0xe3   : > { %1912 = vmatprep.mubr.msk.bf16.mxu0 %vm1269_vm2, %v2700_v58 }
  0xe4   : > { %v769_v2 = vpop.permute.xlu0 %768  ;;  %v818_v35 = vpop.permute.xlu1 %817 }
  0xe5   : > { %v1300_v20 = vsel %vm1286_vm3, %v1283_v12, %v818_v35  ;;  %v1275_v58 = vsel %vm1269_vm2, %v2477_v45, %v769_v2 }
  0xe8   : > { %v810_v0 = vpop.permute.xlu0 %809  ;;  %v874_v15 = vpop.permute.xlu1 %873 }
  0xe9   : > { %v1317_v38 = vsel %vm1303_vm4, %v1300_v20, %v874_v15  ;;  %v1292_v59 = vsel %vm1286_vm3, %v1275_v58, %v810_v0 }
  0xec   : > { %v866_v16 = vpop.permute.xlu0 %865  ;;  %v1010_v30 = vpop.permute.xlu1 %1009 }
  0xed   : > { %v1334_v39 = vsel %vm1320_vm5, %v1317_v38, %v1010_v30  ;;  %v1309_v28 = vsel %vm1303_vm4, %v1292_v59, %v866_v16 }
  0xf0   : > { %v1002_v53 = vpop.permute.xlu0 %1001  ;;  %v1050_v44 = vpop.permute.xlu1 %1049 }
  0xf1   : > { %v1351_v8 = vsel %vm1337_vm6, %v1334_v39, %v1050_v44  ;;  %v1326_v55 = vsel %vm1320_vm5, %v1309_v28, %v1002_v53 }
  0xf4   : > { %v1042_v6 = vpop.permute.xlu0 %1041  ;;  %v1106_v33 = vpop.permute.xlu1 %1105 }
  0xf5   : > { %v1368_v10 = vsel %vm1354_vm7, %v1351_v8, %v1106_v33  ;;  %v1343_v18 = vsel %vm1337_vm6, %v1326_v55, %v1042_v6 }
  0xf8   : > { %v1098_v43 = vpop.permute.xlu0 %1097  ;;  %v1242_v13 = vpop.permute.xlu1 %1241 }
  0xf9   : > { %v1391_v1 = vsel %vm1371_vm8, %v1368_v10, %v1242_v13  ;;  %v1360_v45 = vsel %vm1354_vm7, %v1343_v18, %v1098_v43 }
  0xfa   : > { %1580 = vmatmul.mubr.bf16.gmra.mrb[8].mxu1 %v1391_v1 }
  0xfb   : > { %1917 = vmatprep.mubr.msk.bf16.mxu1 %vm1269_vm2, %v2746_v4 }
  0xfc   : > { %v1234_v50 = vpop.permute.xlu0 %1233  ;;  %v779_v41 = vpop.permute.xlu1 %778 }
  0xfd   : > { %v1379_v49 = vsel %vm1371_vm8, %v1360_v45, %v1234_v50  ;;  %v1285_v4 = vsel %vm1269_vm2, %v2519_v21, %v779_v41 }
  0xfe   : > { %1548 = vmatmul.mubr.bf16.gmra.mrb[8].mxu0 %v1379_v49 }
  0xff   : > { %1913 = vmatprep.mubr.msk.bf16.mxu0 %vm1269_vm2, %v2758_v46 }
 0x100   : > { %v771_v57 = vpop.permute.xlu0 %770  ;;  %v820_v14 = vpop.permute.xlu1 %819 }
 0x101   : > { %v1302_v22 = vsel %vm1286_vm3, %v1285_v4, %v820_v14  ;;  %v1277_v46 = vsel %vm1269_vm2, %v2532_v29, %v771_v57 }
 0x104   : > { %v812_v24 = vpop.permute.xlu0 %811  ;;  %v876_v51 = vpop.permute.xlu1 %875 }
 0x105   : > { %v1319_v63 = vsel %vm1303_vm4, %v1302_v22, %v876_v51  ;;  %v1294_v7 = vsel %vm1286_vm3, %v1277_v46, %v812_v24 }
 0x108   : > { %v868_v9 = vpop.permute.xlu0 %867  ;;  %v1012_v17 = vpop.permute.xlu1 %1011 }
 0x109   : > { %v1336_v11 = vsel %vm1320_vm5, %v1319_v63, %v1012_v17  ;;  %v1311_v60 = vsel %vm1303_vm4, %v1294_v7, %v868_v9 }
 0x10c   : > { %v1004_v32 = vpop.permute.xlu0 %1003  ;;  %v1052_v56 = vpop.permute.xlu1 %1051 }
 0x10d   : > { %v1353_v3 = vsel %vm1337_vm6, %v1336_v11, %v1052_v56  ;;  %v1328_v52 = vsel %vm1320_vm5, %v1311_v60, %v1004_v32 }
 0x110   : > { %v1044_v25 = vpop.permute.xlu0 %1043  ;;  %v1108_v61 = vpop.permute.xlu1 %1107 }
 0x111   : > { %v1370_v21 = vsel %vm1354_vm7, %v1353_v3, %v1108_v61  ;;  %v1345_v40 = vsel %vm1337_vm6, %v1328_v52, %v1044_v25 }
 0x114   : > { %v1100_v27 = vpop.permute.xlu0 %1099  ;;  %v1244_v5 = vpop.permute.xlu1 %1243 }
 0x115   : > { %v1394_v19 = vsel %vm1371_vm8, %v1370_v21, %v1244_v5  ;;  %v1362_v29 = vsel %vm1354_vm7, %v1345_v40, %v1100_v27 }
 0x116   : > { %1588 = vmatmul.mubr.bf16.gmra.mrb[12].mxu1 %v1394_v19 }
 0x118   : > { %v1236_v36 = vpop.permute.xlu0 %1235 }
 0x119   : > { %v1382_v42 = vsel %vm1371_vm8, %v1362_v29, %v1236_v36 }
 0x11a   : > { %1556 = vmatmul.mubr.bf16.gmra.mrb[12].mxu0 %v1382_v42 }
 0x195   : > { %v1565_v31 = vpop.f32.mrb[0].mxu1 }
 0x196   : > { %v1566_v48 = vadd.f32 %v2855_v54, %v1565_v31  ;;  %v1567_v23 = vpop.f32.mrb[1].mxu1 }
 0x197   : > { %v1568_v47 = vpop.f32.mrb[2].mxu1 }
 0x198   : > { %v1604_v37 = vmax.f32 %v1566_v48, 0.0  ;;  %v1569_v62 = vadd.f32 %v2855_v54, %v1568_v47  ;;  %v1570_v34 = vpop.f32.mrb[3].mxu1 }
 0x199   : > { %v1533_v26 = vpop.f32.mrb[0].mxu0 }
 0x19a   : > { %v1944_v2 = vpack.c.bf16 %v1604_v37, %v1604_v37  ;;  %v1605_v35 = vmax.f32 %v1569_v62, 0.0  ;;  %v1534_v0 = vadd.f32 %v2855_v54, %v1533_v26  ;;  %v1535_v15 = vpop.f32.mrb[1].mxu0 }
 0x19b   : > { %v1536_v16 = vpop.f32.mrb[2].mxu0 }
 0x19c   : > { %1685 = vst.msk [vmem:[%s2862_s15 + $0x20] sm:$0xf] %vm1676_vm9, %v1944_v2  ;;  %v1945_v30 = vpack.c.bf16 %v1605_v35, %v1605_v35  ;;  %v1596_v53 = vmax.f32 %v1534_v0, 0.0  ;;  %v1537_v44 = vadd.f32 %v2855_v54, %v1536_v16  ;;  %v1538_v12 = vpop.f32.mrb[3].mxu0 }
 0x19e   : > { %1686 = vst.msk [vmem:[%s2862_s15 + $0x24] sm:$0xf] %vm1676_vm9, %v1945_v30  ;;  %v1936_v20 = vpack.c.bf16 %v1596_v53, %v1596_v53  ;;  %v1597_v6 = vmax.f32 %v1537_v44, 0.0 }
 0x1a0   : > { %1677 = vst.msk [vmem:[%s2862_s15] sm:$0xf] %vm1676_vm9, %v1936_v20  ;;  %v1937_v33 = vpack.c.bf16 %v1597_v6, %v1597_v6 }
 0x1a2   : > { %1678 = vst.msk [vmem:[%s2862_s15 + $0x4] sm:$0xf] %vm1676_vm9, %v1937_v33 }
 0x1b1   : > { %v1573_v38 = vpop.f32.mrb[4].mxu1 }
 0x1b2   : > { %v1574_v39 = vadd.f32 %v2855_v54, %v1573_v38  ;;  %v1575_v58 = vpop.f32.mrb[5].mxu1 }
 0x1b3   : > { %v1576_v8 = vpop.f32.mrb[6].mxu1 }
 0x1b4   : > { %v1606_v59 = vmax.f32 %v1574_v39, 0.0  ;;  %v1577_v10 = vadd.f32 %v2855_v54, %v1576_v8  ;;  %v1578_v43 = vpop.f32.mrb[7].mxu1 }
 0x1b5   : > { %v1541_v13 = vpop.f32.mrb[4].mxu0 }
 0x1b6   : > { %v1946_v28 = vpack.c.bf16 %v1606_v59, %v1606_v59  ;;  %v1607_v1 = vmax.f32 %v1577_v10, 0.0  ;;  %v1542_v55 = vadd.f32 %v2855_v54, %v1541_v13  ;;  %v1543_v18 = vpop.f32.mrb[5].mxu0 }
 0x1b7   : > { %v1544_v45 = vpop.f32.mrb[6].mxu0 }
 0x1b8   : > { %1687 = vst.msk [vmem:[%s2862_s15 + $0x28] sm:$0xf] %vm1676_vm9, %v1946_v28  ;;  %v1947_v50 = vpack.c.bf16 %v1607_v1, %v1607_v1  ;;  %v1598_v41 = vmax.f32 %v1542_v55, 0.0  ;;  %v1545_v49 = vadd.f32 %v2855_v54, %v1544_v45  ;;  %v1546_v57 = vpop.f32.mrb[7].mxu0 }
 0x1ba   : > { %1688 = vst.msk [vmem:[%s2862_s15 + $0x2c] sm:$0xf] %vm1676_vm9, %v1947_v50  ;;  %v1938_v14 = vpack.c.bf16 %v1598_v41, %v1598_v41  ;;  %v1599_v24 = vmax.f32 %v1545_v49, 0.0 }
 0x1bc   : > { %1679 = vst.msk [vmem:[%s2862_s15 + $0x8] sm:$0xf] %vm1676_vm9, %v1938_v14  ;;  %v1939_v51 = vpack.c.bf16 %v1599_v24, %v1599_v24 }
 0x1be   : > { %1680 = vst.msk [vmem:[%s2862_s15 + $0xc] sm:$0xf] %vm1676_vm9, %v1939_v51 }
 0x1cd   : > { %v1581_v9 = vpop.f32.mrb[8].mxu1 }
 0x1ce   : > { %v1582_v17 = vadd.f32 %v2855_v54, %v1581_v9  ;;  %v1583_v32 = vpop.f32.mrb[9].mxu1 }
 0x1cf   : > { %v1584_v56 = vpop.f32.mrb[10].mxu1 }
 0x1d0   : > { %v1608_v4 = vmax.f32 %v1582_v17, 0.0  ;;  %v1585_v22 = vadd.f32 %v2855_v54, %v1584_v56  ;;  %v1586_v25 = vpop.f32.mrb[11].mxu1 }
 0x1d1   : > { %v1549_v61 = vpop.f32.mrb[8].mxu0 }
 0x1d2   : > { %v1948_v63 = vpack.c.bf16 %v1608_v4, %v1608_v4  ;;  %v1609_v11 = vmax.f32 %v1585_v22, 0.0  ;;  %v1550_v46 = vadd.f32 %v2855_v54, %v1549_v61  ;;  %v1551_v3 = vpop.f32.mrb[9].mxu0 }
 0x1d3   : > { %v1552_v7 = vpop.f32.mrb[10].mxu0 }
 0x1d4   : > { %1689 = vst.msk [vmem:[%s2862_s15 + $0x30] sm:$0xf] %vm1676_vm9, %v1948_v63  ;;  %v1949_v21 = vpack.c.bf16 %v1609_v11, %v1609_v11  ;;  %v1600_v27 = vmax.f32 %v1550_v46, 0.0  ;;  %v1553_v5 = vadd.f32 %v2855_v54, %v1552_v7  ;;  %v1554_v60 = vpop.f32.mrb[11].mxu0 }
 0x1d6   : > { %1690 = vst.msk [vmem:[%s2862_s15 + $0x34] sm:$0xf] %vm1676_vm9, %v1949_v21  ;;  %v1940_v19 = vpack.c.bf16 %v1600_v27, %v1600_v27  ;;  %v1601_v52 = vmax.f32 %v1553_v5, 0.0 }
 0x1d8   : > { %1681 = vst.msk [vmem:[%s2862_s15 + $0x10] sm:$0xf] %vm1676_vm9, %v1940_v19  ;;  %v1941_v40 = vpack.c.bf16 %v1601_v52, %v1601_v52 }
 0x1da   : > { %1682 = vst.msk [vmem:[%s2862_s15 + $0x14] sm:$0xf] %vm1676_vm9, %v1941_v40 }
 0x1e9   : > { %v1589_v29 = vpop.f32.mrb[12].mxu1 }
 0x1ea   : > { %v1590_v36 = vadd.f32 %v2855_v54, %v1589_v29  ;;  %v1591_v42 = vpop.f32.mrb[13].mxu1 }
 0x1eb   : > { %v1592_v31 = vpop.f32.mrb[14].mxu1 }
 0x1ec   : > { %v1610_v48 = vmax.f32 %v1590_v36, 0.0  ;;  %v1593_v23 = vadd.f32 %v2855_v54, %v1592_v31  ;;  %v1594_v47 = vpop.f32.mrb[15].mxu1 }
 0x1ed   : > { %v1557_v37 = vpop.f32.mrb[12].mxu0 }
 0x1ee   : > { %v1950_v62 = vpack.c.bf16 %v1610_v48, %v1610_v48  ;;  %v1611_v34 = vmax.f32 %v1593_v23, 0.0  ;;  %v1558_v26 = vadd.f32 %v2855_v54, %v1557_v37  ;;  %v1559_v2 = vpop.f32.mrb[13].mxu0 }
 0x1ef   : > { %v1560_v35 = vpop.f32.mrb[14].mxu0 }
 0x1f0   : > { %1691 = vst.msk [vmem:[%s2862_s15 + $0x38] sm:$0xf] %vm1676_vm9, %v1950_v62  ;;  %v1951_v0 = vpack.c.bf16 %v1611_v34, %v1611_v34  ;;  %v1602_v15 = vmax.f32 %v1558_v26, 0.0  ;;  %v1561_v16 = vadd.f32 %v2855_v54, %v1560_v35  ;;  %v1562_v30 = vpop.f32.mrb[15].mxu0 }
 0x1f2   : > { %1692 = vst.msk [vmem:[%s2862_s15 + $0x3c] sm:$0xf] %vm1676_vm9, %v1951_v0  ;;  %v1942_v53 = vpack.c.bf16 %v1602_v15, %v1602_v15  ;;  %v1603_v44 = vmax.f32 %v1561_v16, 0.0 }
 0x1f4   : > { %1683 = vst.msk [vmem:[%s2862_s15 + $0x18] sm:$0xf] %vm1676_vm9, %v1942_v53  ;;  %v1943_v12 = vpack.c.bf16 %v1603_v44, %v1603_v44 }
 0x1f6   : > { %1684 = vst.msk [vmem:[%s2862_s15 + $0x1c] sm:$0xf] %vm1676_vm9, %v1943_v12 }
 0x1f7 PF: > { %s13_s18 = sadd.s32 1, %s2149_s18   ;;  %s2935_s12 = smov %s2129_s13 }
 0x1f8   : > { %p10_p12 = scmp.ge.s32.totalorder %s13_s18, 6   ;;  %s2936_s13 = smov %s2230_s25 }
 0x1f9   : > { %s2937_s14 = smov %s2141_s16  ;;  %s2938_s15 = smov %s2145_s17 }
 0x1fa   : > { %s2939_s16 = smov %s2942_s19  ;;  %s2940_s17 = smov %s2946_s20 }
 0x1fb   :  { %12 = sbr.rel (!%p10_p12) target bundleno = 4 (0x4), region = 110 }

// kernel: squeeze.9
= control target key start
LH: loop header
LB: loop body
LE: loop exit
PB: predicated region body
PF: predicated region fallthrough
CT: control target
= control target key end

     0   :  { %s7_s6 = smov 3  ;;  %s21_s9 = smov 3  ;;  %vm4_vm0 = vcmask 56320   ;;  %vm11_vm1 = vcmask 400720   ;;  %vm18_vm2 = vcmask 343320   ;;  %vm25_vm3 = vcmask 285920   ;;  %s106_s0 = inlined_call_operand.vmem [shape: f32[1,2,7,7], index: 0, kind: input, shape index: {}]   ;;  %s107_s1 = inlined_call_operand.vmem [shape: f32[2,49], index: 1, kind: output, shape index: {}]  }
   0x1   :  { %v54_v0 = vld [vmem:[%s106_s0 + $0x6] ss:$8 sm:%s7_s6]   ;;  %s66_s10 = smov 42   ;;  %v56_v1 = vld [vmem:[%s106_s0 + $0x4] ss:$8 sm:%s21_s9]   ;;  %s14_s13 = smov 3 }
   0x2   :  { %9 = vrot.lane.b32.xlu0 %v54_v0, %s66_s10  ;;  %s67_s14 = smov 28   ;;  %v55_v2 = vld [vmem:[%s106_s0 + $0x5] ss:$8 sm:%s14_s13]   ;;  %s28_s17 = smov 3  ;;  %vm32_vm4 = vcmask 228520   ;;  %vm39_vm5 = vcmask 171120  }
   0x3   :  { %23 = vrot.lane.b32.xlu1 %v56_v1, %s67_s14  ;;  %v57_v3 = vld [vmem:[%s106_s0 + $0x3] ss:$8 sm:%s28_s17]   ;;  %s35_s20 = smov 3  ;;  %s42_s21 = smov 3  ;;  %vm46_vm6 = vcmask 113720  }
   0x4   :  { %s68_s22 = smov 35   ;;  %v58_v4 = vld [vmem:[%s106_s0 + $0x2] ss:$8 sm:%s35_s20]   ;;  %s2_s25 = smov 3  ;;  %v59_v6 = vld [vmem:[%s106_s0 + $0x1] ss:$8 sm:%s42_s21]  }
   0x5   :  { %s69_s26 = smov 21   ;;  %v3_v5 = vld [vmem:[%s106_s0] ss:$8 sm:%s2_s25]   ;;  %s70_s0 = smov 14  }
   0x6   :  { %16 = vrot.lane.b32.xlu0 %v55_v2, %s68_s22  ;;  %5 = vst.msk [vmem:[#allocation0] sm:$0x3] %vm4_vm0, %v3_v5   ;;  %s71_s2 = smov 7  }
   0x7   :  { %30 = vrot.lane.b32.xlu1 %v57_v3, %s69_s26 }
   0xa   :  { %37 = vrot.lane.b32.xlu0 %v58_v4, %s70_s0 }
   0xb   :  { %44 = vrot.lane.b32.xlu1 %v59_v6, %s71_s2 }
  0x74   :  { %v10_v7 = vpop.permute.xlu0 %9  }
  0x75   :  { %12 = vst.msk [vmem:[#allocation0] sm:$0x3] %vm11_vm1, %v10_v7   ;;  %v24_v8 = vpop.permute.xlu1 %23  }
  0x78   :  { %v17_v9 = vpop.permute.xlu0 %16  }
  0x79   :  { %19 = vst.msk [vmem:[#allocation0] sm:$0x3] %vm18_vm2, %v17_v9   ;;  %v31_v10 = vpop.permute.xlu1 %30  }
  0x7a   :  { %26 = vst.msk [vmem:[#allocation0] sm:$0x3] %vm25_vm3, %v24_v8  }
  0x7b   :  { %33 = vst.msk [vmem:[#allocation0] sm:$0x3] %vm32_vm4, %v31_v10  }
  0x7c   :  { %v38_v11 = vpop.permute.xlu0 %37  }
  0x7d   :  { %40 = vst.msk [vmem:[#allocation0] sm:$0x3] %vm39_vm5, %v38_v11   ;;  %v45_v12 = vpop.permute.xlu1 %44  }
  0x7e   :  { %47 = vst.msk [vmem:[#allocation0] sm:$0x3] %vm46_vm6, %v45_v12  }
  0x85   :  { %v51_v13 = vld [vmem:[#allocation0] sm:$0x3] }
  0x86   :  { %53 = vst [vmem:[%s107_s1] sm:$0x3] %v51_v13 }

// kernel: basic_block1_forward.5
= control target key start
LH: loop header
LB: loop body
LE: loop exit
PB: predicated region body
PF: predicated region fallthrough
CT: control target
= control target key end

     0   :  { %s2425_s18 = smov 0   ;;  %s2427_s19 = smov 0   ;;  %s3118_s0 = inlined_call_operand.vmem [shape: bf16[2,3,16,18,16], index: 0, kind: input, shape index: {}]   ;;  %s3119_s1 = inlined_call_operand.vmem [shape: bf16[144,16], index: 1, kind: input, shape index: {}]   ;;  %s3120_s2 = inlined_call_operand.vmem [shape: f32[1,16], index: 2, kind: input, shape index: {}]   ;;  %s3121_s3 = inlined_call_operand.vmem [shape: bf16[2,16,16,16], index: 3, kind: output, shape index: {0}]   ;;  %s3122_s4 = inlined_call_operand.vmem [shape: f32[2,2,1,16], index: 4, kind: output, shape index: {1}]   ;;  %s3123_s5 = inlined_call_operand.vmem [shape: f32[2,2,1,16], index: 5, kind: output, shape index: {2}]  }
   0x1   :  { %s2429_s20 = smov 0   ;;  %s2431_s21 = smov 0  }
   0x2   :  { %s2433_s22 = smov 0   ;;  %s2435_s23 = smov 0  }
   0x3   :  { %s2437_s24 = smov 0  }
   0x4 LB: > { %s25_s25 = sadd.s32 1, %s2377_s22  ;;  %s28_s26 = sadd.s32 1, %s2381_s23  ;;  %s2385_s24 = sphi %s2437_s24, %s16_s24   ;;  %s2381_s23 = sphi %s2435_s23, %s3129_s23   ;;  %s2377_s22 = sphi %s2433_s22, %s3128_s22   ;;  %s2373_s21 = sphi %s2431_s21, %s3127_s21   ;;  %s2369_s20 = sphi %s2429_s20, %s3126_s20   ;;  %s2365_s19 = sphi %s2427_s19, %s3125_s19   ;;  %s2361_s18 = sphi %s2425_s18, %s3124_s18  }
   0x5   : > { %p26_p0 = scmp.ge.s32.totalorder %s25_s25, 2  ;;  %p44_p1 = scmp.ne.s32.totalorder %s2365_s19, %s2361_s18 }
   0x6   : > { %p45_p2 = scmp.eq.s32.totalorder %s2385_s24, 0  ;;  %s37_s30 = sadd.s32 1, %s2365_s19 }
   0x7   : > { %s3131_s25 = smov (%p26_p0, %s25_s25), 0  ;;  %s3133_s26 = smov (!%p26_p0, %s28_s26), %s2381_s23 }
   0x8   : > { %p46_p3 = por %p45_p2, %p44_p1  ;;  %p30_p4 = scmp.ge.s32.totalorder %s3133_s26, 2 }
   0x9   : > { %s33_s27 = ssub.s32 %s2377_s22, %s3131_s25  ;;  %p2029_p6 = scmp.ge.s32.totalorder %s2385_s24, 4 }
   0xa   : > { %s3135_s26 = smov (%p30_p4, %s3133_s26), 0 }
   0xb   : > { %s32_s28 = ssub.s32 %s2381_s23, %s3135_s26  ;;  %202 = sbr.rel (%p2029_p6) target bundleno = 45 (0x2d), region = 24 }
   0xc   : > { %s34_s29 = sor.u32 %s33_s27, %s32_s28 }
   0xd   : > { %p35_p5 = scmp.eq.s32.totalorder %s34_s29, 0 }
   0xf   : > { %s2476_s6 = scalar_select %p35_p5, %s2365_s19, %s37_s30  }
  0x12   : > { %205 = sbr.rel (!%p46_p3) target bundleno = 45 (0x2d), region = 28  ;;  %s207_s7 = sand.u32 (%p46_p3), 1, %s2365_s19  }
  0x13   : > { %s2207_s8 = smul.u32 (%p46_p3), 24, %s2377_s22 }
  0x14   : > { %s2206_s9 = smul.u32 (%p46_p3), 288, %s207_s7 }
  0x15   : > { %s2208_s10 = smul.u32 (%p46_p3), 144, %s2381_s23 }
  0x16   : > { %s2490_s16 = scalar_lea.vmem (%p46_p3), [#allocation2], %s2206_s9 }
  0x17   : > { %s213_s11 = sadd.s32 (%p46_p3), %s2208_s10, %s2207_s8 }
  0x18   : > { %s2032_s12 = sshll.u32 (%p46_p3), %s213_s11, 2 }
  0x19   : > { %s2485_s15 = scalar_lea.vmem %s3118_s0, %s2032_s12 }
  0x1a   : > { %v231_v0 = vld [vmem:[%s2485_s15] sm:$0xff]   ;;  %v235_v1 = vld [vmem:[%s2485_s15 + $0x8] sm:$0xff]   ;;  %v239_v2 = vld [vmem:[%s2485_s15 + $0x10] sm:$0xff]  }
  0x1b   : > { %232 = vst [vmem:[%s2490_s16] sm:$0xff] %v231_v0   ;;  %236 = vst [vmem:[%s2490_s16 + $0x8] sm:$0xff] %v235_v1   ;;  %v243_v3 = vld [vmem:[%s2485_s15 + $0x18] sm:$0xff]   ;;  %v247_v4 = vld [vmem:[%s2485_s15 + $0x20] sm:$0xff]  }
  0x1c   : > { %240 = vst [vmem:[%s2490_s16 + $0x10] sm:$0xff] %v239_v2   ;;  %v251_v5 = vld [vmem:[%s2485_s15 + $0x28] sm:$0xff]   ;;  %244 = vst [vmem:[%s2490_s16 + $0x18] sm:$0xff] %v243_v3   ;;  %v255_v6 = vld [vmem:[%s2485_s15 + $0x30] sm:$0xff]  }
  0x1d   : > { %248 = vst [vmem:[%s2490_s16 + $0x20] sm:$0xff] %v247_v4   ;;  %252 = vst [vmem:[%s2490_s16 + $0x28] sm:$0xff] %v251_v5   ;;  %v259_v7 = vld [vmem:[%s2485_s15 + $0x38] sm:$0xff]   ;;  %v263_v8 = vld [vmem:[%s2485_s15 + $0x40] sm:$0xff]  }
  0x1e   : > { %256 = vst [vmem:[%s2490_s16 + $0x30] sm:$0xff] %v255_v6   ;;  %260 = vst [vmem:[%s2490_s16 + $0x38] sm:$0xff] %v259_v7   ;;  %v267_v9 = vld [vmem:[%s2485_s15 + $0x48] sm:$0xff]   ;;  %v271_v10 = vld [vmem:[%s2485_s15 + $0x50] sm:$0xff]  }
  0x1f   : > { %264 = vst [vmem:[%s2490_s16 + $0x40] sm:$0xff] %v263_v8   ;;  %v275_v11 = vld [vmem:[%s2485_s15 + $0x58] sm:$0xff]   ;;  %268 = vst [vmem:[%s2490_s16 + $0x48] sm:$0xff] %v267_v9   ;;  %v279_v12 = vld [vmem:[%s2485_s15 + $0xc0] sm:$0xff]  }
  0x20   : > { %272 = vst [vmem:[%s2490_s16 + $0x50] sm:$0xff] %v271_v10   ;;  %276 = vst [vmem:[%s2490_s16 + $0x58] sm:$0xff] %v275_v11   ;;  %v283_v13 = vld [vmem:[%s2485_s15 + $0xc8] sm:$0xff]   ;;  %v287_v14 = vld [vmem:[%s2485_s15 + $0xd0] sm:$0xff]  }
  0x21   : > { %280 = vst [vmem:[%s2490_s16 + $0x60] sm:$0xff] %v279_v12   ;;  %284 = vst [vmem:[%s2490_s16 + $0x68] sm:$0xff] %v283_v13   ;;  %v291_v15 = vld [vmem:[%s2485_s15 + $0xd8] sm:$0xff]   ;;  %v295_v16 = vld [vmem:[%s2485_s15 + $0xe0] sm:$0xff]  }
  0x22   : > { %288 = vst [vmem:[%s2490_s16 + $0x70] sm:$0xff] %v287_v14   ;;  %v299_v17 = vld [vmem:[%s2485_s15 + $0xe8] sm:$0xff]   ;;  %292 = vst [vmem:[%s2490_s16 + $0x78] sm:$0xff] %v291_v15   ;;  %v303_v18 = vld [vmem:[%s2485_s15 + $0xf0] sm:$0xff]  }
  0x23   : > { %296 = vst [vmem:[%s2490_s16 + $0x80] sm:$0xff] %v295_v16   ;;  %300 = vst [vmem:[%s2490_s16 + $0x88] sm:$0xff] %v299_v17   ;;  %v307_v19 = vld [vmem:[%s2485_s15 + $0xf8] sm:$0xff]   ;;  %v311_v20 = vld [vmem:[%s2485_s15 + $0x100] sm:$0xff]  }
  0x24   : > { %304 = vst [vmem:[%s2490_s16 + $0x90] sm:$0xff] %v303_v18   ;;  %308 = vst [vmem:[%s2490_s16 + $0x98] sm:$0xff] %v307_v19   ;;  %v315_v21 = vld [vmem:[%s2485_s15 + $0x108] sm:$0xff]   ;;  %v319_v22 = vld [vmem:[%s2485_s15 + $0x110] sm:$0xff]  }
  0x25   : > { %312 = vst [vmem:[%s2490_s16 + $0xa0] sm:$0xff] %v311_v20   ;;  %v323_v23 = vld [vmem:[%s2485_s15 + $0x118] sm:$0xff]   ;;  %316 = vst [vmem:[%s2490_s16 + $0xa8] sm:$0xff] %v315_v21   ;;  %v327_v24 = vld [vmem:[%s2485_s15 + $0x180] sm:$0xff]  }
  0x26   : > { %320 = vst [vmem:[%s2490_s16 + $0xb0] sm:$0xff] %v319_v22   ;;  %324 = vst [vmem:[%s2490_s16 + $0xb8] sm:$0xff] %v323_v23   ;;  %v331_v25 = vld [vmem:[%s2485_s15 + $0x188] sm:$0xff]   ;;  %v335_v26 = vld [vmem:[%s2485_s15 + $0x190] sm:$0xff]  }
  0x27   : > { %328 = vst [vmem:[%s2490_s16 + $0xc0] sm:$0xff] %v327_v24   ;;  %332 = vst [vmem:[%s2490_s16 + $0xc8] sm:$0xff] %v331_v25   ;;  %v339_v27 = vld [vmem:[%s2485_s15 + $0x198] sm:$0xff]   ;;  %v343_v28 = vld [vmem:[%s2485_s15 + $0x1a0] sm:$0xff]  }
  0x28   : > { %336 = vst [vmem:[%s2490_s16 + $0xd0] sm:$0xff] %v335_v26   ;;  %v347_v29 = vld [vmem:[%s2485_s15 + $0x1a8] sm:$0xff]   ;;  %340 = vst [vmem:[%s2490_s16 + $0xd8] sm:$0xff] %v339_v27   ;;  %v351_v30 = vld [vmem:[%s2485_s15 + $0x1b0] sm:$0xff]  }
  0x29   : > { %344 = vst [vmem:[%s2490_s16 + $0xe0] sm:$0xff] %v343_v28   ;;  %348 = vst [vmem:[%s2490_s16 + $0xe8] sm:$0xff] %v347_v29   ;;  %v355_v31 = vld [vmem:[%s2485_s15 + $0x1b8] sm:$0xff]   ;;  %v359_v32 = vld [vmem:[%s2485_s15 + $0x1c0] sm:$0xff]  }
  0x2a   : > { %352 = vst [vmem:[%s2490_s16 + $0xf0] sm:$0xff] %v351_v30   ;;  %356 = vst [vmem:[%s2490_s16 + $0xf8] sm:$0xff] %v355_v31   ;;  %v363_v33 = vld [vmem:[%s2485_s15 + $0x1c8] sm:$0xff]   ;;  %v367_v34 = vld [vmem:[%s2485_s15 + $0x1d0] sm:$0xff]  }
  0x2b   : > { %360 = vst [vmem:[%s2490_s16 + $0x100] sm:$0xff] %v359_v32   ;;  %v371_v35 = vld [vmem:[%s2485_s15 + $0x1d8] sm:$0xff]   ;;  %364 = vst [vmem:[%s2490_s16 + $0x108] sm:$0xff] %v363_v33  }
  0x2c   : > { %368 = vst [vmem:[%s2490_s16 + $0x110] sm:$0xff] %v367_v34   ;;  %372 = vst [vmem:[%s2490_s16 + $0x118] sm:$0xff] %v371_v35  }
  0x2d PF: > { %p2033_p7 = scmp.ge.s32.totalorder %s2385_s24, 1  ;;  %p540_p8 = scmp.lt.s32.totalorder %s2385_s24, 5 }
  0x2f   : > { %p541_p9 = pnand %p2033_p7, %p540_p8 }
  0x30   : > { %s547_s17 = sand.u32 (!%p541_p9), 1, %s2361_s18   ;;  %v2387_v36 = vmov (!%p541_p9), 0   ;;  %vm871_vm0 = vcmask (!%p541_p9), 1046528   ;;  %v2315_v37 = vld [vmem:[%s3119_s1] sm:$0xff] (!%p541_p9)   ;;  %v2319_v38 = vld [vmem:[%s3119_s1 + $0x8] sm:$0xff] (!%p541_p9)   ;;  %s2388_s18 = smov (!%p541_p9), 48  }
  0x31   : > { %544 = sbr.rel (%p541_p9) target bundleno = 519 (0x207), region = 69  ;;  %1590 = vmatprep.subr.bf16.mxu0 (!%p541_p9), %v2387_v36  ;;  %2188 = vmatprep.subr.bf16.mxu1 (!%p541_p9), %v2387_v36  ;;  %vm758_vm1 = vsmask.f32 (!%p541_p9), 7424  ;;  %s2389_s9 = smov (!%p541_p9), 96   ;;  %vm1360_vm2 = vcmask (!%p541_p9), 130048   ;;  %vm1377_vm3 = vcmask (!%p541_p9), 261120  }
  0x32   : > { %s2209_s27 = smul.u32 (!%p541_p9), 288, %s547_s17  ;;  %1591 = vmatpush1.bf16.msra.mxu0 (!%p541_p9), %v2315_v37  ;;  %2197 = vmatpush1.bf16.msra.mxu1 (!%p541_p9), %v2315_v37  ;;  %s2390_s10 = smov (!%p541_p9), 32   ;;  %vm1394_vm4 = vcmask (!%p541_p9), 392192   ;;  %vm1411_vm5 = vcmask (!%p541_p9), 523264   ;;  %vm1428_vm6 = vcmask (!%p541_p9), 654336   ;;  %vm1445_vm7 = vcmask (!%p541_p9), 785408  }
  0x33   : > { %1592 = vmatprep.subr.bf16.mxu0 (!%p541_p9), %v2387_v36  ;;  %2189 = vmatprep.subr.bf16.mxu1 (!%p541_p9), %v2387_v36  ;;  %s2391_s11 = smov (!%p541_p9), 80   ;;  %s2392_s12 = smov (!%p541_p9), 64   ;;  %vm1462_vm8 = vcmask (!%p541_p9), 916480   ;;  %vm1751_vm9 = vcmask (!%p541_p9), 125952   ;;  %vm1805_vm10 = vcmask (!%p541_p9), 122880  }
  0x34   : > { %s2572_s8 = scalar_lea.vmem (!%p541_p9), [#allocation2], %s2209_s27  ;;  %s2393_s13 = smov (!%p541_p9), 16  }
  0x35   : > { %v2274_v39 = vld [vmem:[%s2572_s8 + $0x60] sm:$0xff] (!%p541_p9)   ;;  %v2276_v41 = vld [vmem:[%s2572_s8 + $0x8] ss:$0 sps:$4 sm:$0x11] (!%p541_p9)   ;;  %v2596_v58 = vld [vmem:[%s2572_s8 + $0xc] sm:$0xff] (!%p541_p9)   ;;  %s2394_s14 = smov (!%p541_p9), 112  }
  0x36   : > { %952 = vrot.lane.b32.xlu1 (!%p541_p9), %v2274_v39, %s2388_s18  ;;  %v2579_v40 = vld [vmem:[%s2572_s8] sm:$0xff] (!%p541_p9)   ;;  %v1104_v43 = vrot.slane (!%p541_p9), %v2274_v39, 1  ;;  %v873_v45 = vrot.slane (!%p541_p9), %v2276_v41, 1  ;;  %v2278_v46 = vld [vmem:[%s2572_s8 + $0x68] ss:$0 sps:$4 sm:$0x11] (!%p541_p9)   ;;  %1593 = vmatpush1.bf16.msra.mxu0 (!%p541_p9), %v2319_v38 }
  0x37   : > { %v2583_v42 = vld [vmem:[%s2572_s8 + $0xc0] sm:$0xff] (!%p541_p9)   ;;  %v872_v44 = vrot.slane (!%p541_p9), %v2579_v40, 1  ;;  %v993_v47 = vshrl.u32 (!%p541_p9), %v2274_v39, 16  ;;  %2198 = vmatpush1.bf16.msra.mxu1 (!%p541_p9), %v2319_v38  ;;  %v995_v48 = vshll.u32 (!%p541_p9), %v2274_v39, 16  ;;  %v760_v49 = vshrl.u32 (!%p541_p9), %v2579_v40, 16  ;;  %1594 = vmatprep.subr.bf16.mxu0 (!%p541_p9), %v2387_v36  ;;  %v2282_v10 = vld [vmem:[%s2572_s8 + $0x6c] sm:$0xff] (!%p541_p9)  }
  0x38   : > { %v762_v50 = vshll.u32 %v2579_v40, 16  ;;  %v767_v51 = vshll.u32 %v2276_v41, 16  ;;  %2190 = vmatprep.subr.bf16.mxu1 %v2387_v36  ;;  %v1105_v53 = vrot.slane %v2278_v46, 1  ;;  %v1000_v54 = vshll.u32 %v2278_v46, 16  ;;  %v2612_v11 = vld [vmem:[%s2572_s8 + $0x30] sm:$0xff]   ;;  %p595_p10 = scmp.lt.s32.totalorder %s2373_s21, 1 }
  0x39   : > { %v874_v52 = vsel %vm871_vm0, %v872_v44, %v873_v45  ;;  %v997_v55 = vrot.slane %v995_v48, 1  ;;  %v2280_v61 = vld [vmem:[%s2572_s8 + $0x14] ss:$0 sps:$4 sm:$0x11]   ;;  %v1225_v62 = vshrl.u32 %v2583_v42, 16  ;;  %v1227_v63 = vshll.u32 %v2583_v42, 16 }
  0x3a   : > { %1184 = vrot.lane.b32.xlu1 %v2583_v42, %s2389_s9  ;;  %896 = vrot.lane.b32.xlu0 %v874_v52, %s2390_s10  ;;  %v764_v56 = vrot.slane %v762_v50, 1  ;;  %v769_v57 = vrot.slane %v767_v51, 1  ;;  %v1106_v59 = vsel %vm871_vm0, %v1104_v43, %v1105_v53  ;;  %v1002_v60 = vrot.slane %v1000_v54, 1  ;;  %v2605_v4 = vld [vmem:[%s2572_s8 + $0xc8] ss:$0 sps:$4 sm:$0x11]  }
  0x3b   : > { %v998_v0 = vor.u32 %v997_v55, %v993_v47  ;;  %v772_v2 = vshrl.u32 %v2596_v58, 16  ;;  %v774_v3 = vshll.u32 %v2596_v58, 16  ;;  %v779_v5 = vshll.u32 %v2280_v61, 16  ;;  %v2284_v17 = vld [vmem:[%s2572_s8 + $0x38] ss:$0 sps:$4 sm:$0x11]  }
  0x3c   : > { %v765_v1 = vor.u32 %v764_v56, %v760_v49  ;;  %v1229_v6 = vrot.slane %v1227_v63, 1  ;;  %v1232_v9 = vshll.u32 %v2605_v4, 16  ;;  %v875_v18 = vrot.slane %v2596_v58, 1  ;;  %v2285_v24 = vld [vmem:[%s2572_s8 + $0x74] ss:$0 sps:$4 sm:$0x11]  }
  0x3d   : > { %v1003_v7 = vsel %vm758_vm1, %v998_v0, %v1002_v60  ;;  %v776_v8 = vrot.slane %v774_v3, 1  ;;  %v781_v13 = vrot.slane %v779_v5, 1  ;;  %v808_v19 = vshrl.u32 %v2612_v11, 16  ;;  %v2286_v32 = vld [vmem:[%s2572_s8 + $0x90] sm:$0xff]   ;;  %v2643_v52 = vld [vmem:[%s2572_s8 + $0x18] sm:$0xff]   ;;  %s3137_s21 = smov (!%p595_p10, %s2373_s21), 1 }
  0x3e   : > { %1128 = vrot.lane.b32.xlu0 %v1106_v59, %s2391_s11  ;;  %1088 = vrot.lane.b32.xlu1 %v1003_v7, %s2392_s12  ;;  %v770_v12 = vsel %vm758_vm1, %v765_v1, %v769_v57  ;;  %v1230_v14 = vor.u32 %v1229_v6, %v1225_v62  ;;  %v1234_v16 = vrot.slane %v1232_v9, 1  ;;  %v810_v20 = vshll.u32 %v2612_v11, 16  ;;  %v2631_v41 = vld [vmem:[%s2572_s8 + $0xcc] sm:$0xff]   ;;  %v2288_v44 = vld [vmem:[%s2572_s8 + $0x98] ss:$0 sps:$4 sm:$0x11]  }
  0x3f   : > { %v777_v15 = vor.u32 %v776_v8, %v772_v2  ;;  %v876_v22 = vrot.slane %v2280_v61, 1  ;;  %v815_v23 = vshll.u32 %v2284_v17, 16  ;;  %v1007_v25 = vshll.u32 %v2282_v10, 16  ;;  %v2637_v47 = vld [vmem:[%s2572_s8 + $0xd4] ss:$0 sps:$4 sm:$0x11]  }
  0x40   : > { %v1235_v26 = vsel %vm758_vm1, %v1230_v14, %v1234_v16  ;;  %v812_v27 = vrot.slane %v810_v20, 1  ;;  %v1005_v28 = vshrl.u32 %v2282_v10, 16  ;;  %v1012_v31 = vshll.u32 %v2285_v24, 16  ;;  %v2291_v56 = vld [vmem:[%s2572_s8 + $0x20] ss:$0 sps:$4 sm:$0x11]  }
  0x41   : > { %v782_v21 = vsel %vm758_vm1, %v777_v15, %v781_v13  ;;  %v817_v29 = vrot.slane %v815_v23, 1  ;;  %v1009_v30 = vrot.slane %v1007_v25, 1  ;;  %v877_v34 = vsel %vm871_vm0, %v875_v18, %v876_v22  ;;  %v2648_v57 = vld [vmem:[%s2572_s8 + $0xf0] sm:$0xff]   ;;  %v2659_v5 = vld [vmem:[%s2572_s8 + $0xf8] ss:$0 sps:$4 sm:$0x11]  }
  0x42   : > { %855 = vrot.lane.b32.xlu0 %v770_v12, %s2393_s13  ;;  %857 = vrot.lane.b32.xlu1 %v782_v21, %s2393_s13  ;;  %v813_v33 = vor.u32 %v812_v27, %v808_v19  ;;  %v1014_v37 = vrot.slane %v1012_v31, 1  ;;  %v884_v38 = vrot.slane %v2612_v11, 1  ;;  %v885_v39 = vrot.slane %v2284_v17, 1  ;;  %v2665_v14 = vld [vmem:[%s2572_s8 + $0x3c] sm:$0xff]   ;;  %p607_p12 = scmp.lt.s32.totalorder %s2369_s20, 1  ;;  %s2038_s15 = sshll.u32 %s3137_s21, 1 }
  0x43   : > { %v1010_v35 = vor.u32 %v1009_v30, %v1005_v28  ;;  %v1043_v45 = vshll.u32 %v2286_v32, 16  ;;  %v1107_v46 = vrot.slane %v2282_v10, 1  ;;  %v1108_v49 = vrot.slane %v2285_v24, 1  ;;  %v2294_v21 = vld [vmem:[%s2572_s8 + $0x78] sm:$0xff]  }
  0x44   : > { %v818_v43 = vsel %vm758_vm1, %v813_v33, %v817_v29  ;;  %v1041_v50 = vshrl.u32 %v2286_v32, 16  ;;  %v1239_v51 = vshll.u32 %v2631_v41, 16  ;;  %v886_v53 = vsel %vm871_vm0, %v884_v38, %v885_v39  ;;  %v2296_v23 = vld [vmem:[%s2572_s8 + $0x44] ss:$0 sps:$4 sm:$0x11]  }
  0x45   : > { %v1015_v48 = vsel %vm758_vm1, %v1010_v35, %v1014_v37  ;;  %v1045_v54 = vrot.slane %v1043_v45, 1  ;;  %v1048_v55 = vshll.u32 %v2288_v44, 16  ;;  %v1237_v59 = vshrl.u32 %v2631_v41, 16  ;;  %v2297_v29 = vld [vmem:[%s2572_s8 + $0x80] ss:$0 sps:$4 sm:$0x11]  }
  0x46   : > { %1320 = vrot.lane.b32.xlu0 %v1235_v26, %s2394_s14  ;;  %954 = vrot.lane.b32.xlu1 %v2282_v10, %s2388_s18  ;;  %v1244_v60 = vshll.u32 %v2637_v47, 16  ;;  %v1109_v61 = vsel %vm871_vm0, %v1107_v46, %v1108_v49  ;;  %v1241_v62 = vrot.slane %v1239_v51, 1  ;;  %v786_v63 = vshll.u32 %v2643_v52, 16  ;;  %v2689_v46 = vld [vmem:[%s2572_s8 + $0x9c] sm:$0xff]  }
  0x47   : > { %v1046_v0 = vor.u32 %v1045_v54, %v1041_v50  ;;  %v1050_v1 = vrot.slane %v1048_v55, 1  ;;  %v784_v3 = vshrl.u32 %v2643_v52, 16  ;;  %v791_v8 = vshll.u32 %v2291_v56, 16  ;;  %v2300_v55 = vld [vmem:[%s2572_s8 + $0xa4] ss:$0 sps:$4 sm:$0x11]  }
  0x48   : > { %v1246_v2 = vrot.slane %v1244_v60, 1  ;;  %v1242_v6 = vor.u32 %v1241_v62, %v1237_v59  ;;  %v788_v7 = vrot.slane %v786_v63, 1  ;;  %v1275_v9 = vshll.u32 %v2648_v57, 16 }
  0x49   : > { %v1051_v10 = vsel %vm758_vm1, %v1046_v0, %v1050_v1  ;;  %v1116_v12 = vrot.slane %v2286_v32, 1  ;;  %v1117_v13 = vrot.slane %v2288_v44, 1  ;;  %v1273_v15 = vshrl.u32 %v2648_v57, 16  ;;  %v2708_v0 = vld [vmem:[%s2572_s8 + $0x24] sm:$0xff]  }
  0x4a   : > { %898 = vrot.lane.b32.xlu0 %v877_v34, %s2390_s10  ;;  %863 = vrot.lane.b32.xlu1 %v818_v43, %s2393_s13  ;;  %v1280_v16 = vshll.u32 %v2659_v5, 16  ;;  %v1247_v17 = vsel %vm758_vm1, %v1242_v6, %v1246_v2  ;;  %v789_v18 = vor.u32 %v788_v7, %v784_v3  ;;  %v793_v19 = vrot.slane %v791_v8, 1  ;;  %v2713_v7 = vld [vmem:[%s2572_s8 + $0x2c] ss:$0 sps:$4 sm:$0x11]   ;;  %v2716_v8 = vld [vmem:[%s2572_s8 + $0xfc] sm:$0xff]  }
  0x4b   : > { %v1277_v20 = vrot.slane %v1275_v9, 1  ;;  %v1118_v22 = vsel %vm871_vm0, %v1116_v12, %v1117_v13  ;;  %v822_v24 = vshll.u32 %v2665_v14, 16  ;;  %v878_v25 = vrot.slane %v2643_v52, 1 }
  0x4c   : > { %v879_v26 = vrot.slane %v2291_v56, 1  ;;  %v1282_v27 = vrot.slane %v1280_v16, 1  ;;  %v794_v28 = vsel %vm758_vm1, %v789_v18, %v793_v19  ;;  %v1019_v30 = vshll.u32 %v2294_v21, 16 }
  0x4d   : > { %v1278_v31 = vor.u32 %v1277_v20, %v1273_v15  ;;  %v824_v33 = vrot.slane %v822_v24, 1  ;;  %v827_v34 = vshll.u32 %v2296_v23, 16  ;;  %v1017_v35 = vshrl.u32 %v2294_v21, 16  ;;  %v2728_v20 = vld [vmem:[%s2572_s8 + $0x104] ss:$0 sps:$4 sm:$0x11]  }
  0x4e   : > { %1090 = vrot.lane.b32.xlu0 %v1015_v48, %s2392_s12  ;;  %904 = vrot.lane.b32.xlu1 %v886_v53, %s2390_s10  ;;  %v880_v37 = vsel %vm871_vm0, %v878_v25, %v879_v26  ;;  %v1021_v38 = vrot.slane %v1019_v30, 1  ;;  %v1024_v39 = vshll.u32 %v2297_v29, 16  ;;  %v887_v50 = vrot.slane %v2665_v14, 1  ;;  %v2695_v53 = vld [vmem:[%s2572_s8 + $0xd8] sm:$0xff]   ;;  %v2737_v26 = vld [vmem:[%s2572_s8 + $0x48] sm:$0xff]  }
  0x4f   : > { %v1283_v43 = vsel %vm758_vm1, %v1278_v31, %v1282_v27  ;;  %v829_v45 = vrot.slane %v827_v34, 1  ;;  %v888_v51 = vrot.slane %v2296_v23, 1  ;;  %v1055_v56 = vshll.u32 %v2689_v46, 16  ;;  %v2744_v34 = vld [vmem:[%s2572_s8 + $0x84] sm:$0xff]  }
  0x50   : > { %v1022_v48 = vor.u32 %v1021_v38, %v1017_v35  ;;  %v1026_v49 = vrot.slane %v1024_v39, 1  ;;  %v1110_v59 = vrot.slane %v2294_v21, 1  ;;  %v1111_v60 = vrot.slane %v2297_v29, 1 }
  0x51   : > { %v1251_v63 = vshll.u32 %v2695_v53, 16  ;;  %v889_v1 = vsel %vm871_vm0, %v887_v50, %v888_v51  ;;  %v1053_v2 = vshrl.u32 %v2689_v46, 16  ;;  %v1057_v3 = vrot.slane %v1055_v56, 1  ;;  %v2326_v50 = vld [vmem:[%s3119_s1 + $0x20] sm:$0xff]  }
  0x52   : > { %1130 = vrot.lane.b32.xlu0 %v1109_v61, %s2391_s11  ;;  %960 = vrot.lane.b32.xlu1 %v2286_v32, %s2388_s18  ;;  %v820_v32 = vshrl.u32 %v2665_v14, 16  ;;  %v2702_v61 = vld [vmem:[%s2572_s8 + $0xe0] ss:$0 sps:$4 sm:$0x11]   ;;  %v1027_v62 = vsel %vm758_vm1, %v1022_v48, %v1026_v49  ;;  %v1060_v6 = vshll.u32 %v2300_v55, 16  ;;  %v1112_v9 = vsel %vm871_vm0, %v1110_v59, %v1111_v60 }
  0x53   : > { %v1253_v12 = vrot.slane %v1251_v63, 1  ;;  %v1256_v13 = vshll.u32 %v2702_v61, 16  ;;  %v798_v15 = vshll.u32 %v2708_v0, 16  ;;  %v1058_v16 = vor.u32 %v1057_v3, %v1053_v2  ;;  %v2763_v48 = vld [vmem:[%s2572_s8 + $0x8c] ss:$0 sps:$4 sm:$0x11]  }
  0x54   : > { %v825_v44 = vor.u32 %v824_v33, %v820_v32  ;;  %v803_v18 = vshll.u32 %v2713_v7, 16  ;;  %v1287_v19 = vshll.u32 %v2716_v8, 16  ;;  %v796_v24 = vshrl.u32 %v2708_v0, 16 }
  0x55   : > { %v1258_v23 = vrot.slane %v1256_v13, 1  ;;  %v800_v25 = vrot.slane %v798_v15, 1  ;;  %v1120_v29 = vrot.slane %v2300_v55, 1  ;;  %v881_v31 = vrot.slane %v2708_v0, 1  ;;  %v2791_v13 = vld [vmem:[%s2572_s8 + $0xa8] sm:$0xff]   ;;  %v2328_v15 = vld [vmem:[%s3119_s1 + $0x30] sm:$0xff]  }
  0x56   : > { %1186 = vrot.lane.b32.xlu0 %v2631_v41, %s2389_s9  ;;  %1096 = vrot.lane.b32.xlu1 %v1051_v10, %s2392_s12  ;;  %v830_v54 = vsel %vm758_vm1, %v825_v44, %v829_v45  ;;  %v1249_v10 = vshrl.u32 %v2695_v53, 16  ;;  %v805_v30 = vrot.slane %v803_v18, 1  ;;  %v1285_v32 = vshrl.u32 %v2716_v8, 16 }
  0x57   : > { %v1289_v33 = vrot.slane %v1287_v19, 1  ;;  %v1292_v35 = vshll.u32 %v2728_v20, 16  ;;  %v801_v39 = vor.u32 %v800_v25, %v796_v24  ;;  %v834_v44 = vshll.u32 %v2737_v26, 16 }
  0x58   : > { %v1031_v49 = vshll.u32 %v2744_v34, 16  ;;  %v1029_v63 = vshrl.u32 %v2744_v34, 16  ;;  %v1336_v3 = vrot.slane %v2583_v42, 1  ;;  %v1349_v18 = vrot.slane %v2659_v5, 1  ;;  %v2311_v5 = vld [vmem:[%s2572_s8 + $0xe4] sm:$0xff]  }
  0x59   : > { %v1294_v51 = vrot.slane %v1292_v35, 1  ;;  %v806_v55 = vsel %vm758_vm1, %v801_v39, %v805_v30  ;;  %v1290_v56 = vor.u32 %v1289_v33, %v1285_v32  ;;  %v836_v59 = vrot.slane %v834_v44, 1 }
  0x5a   : > { %1322 = vrot.lane.b32.xlu0 %v1247_v17, %s2394_s14  ;;  %1136 = vrot.lane.b32.xlu1 %v1118_v22, %s2391_s11  ;;  %v1062_v17 = vrot.slane %v1060_v6, 1  ;;  %v1254_v22 = vor.u32 %v1253_v12, %v1249_v10  ;;  %v1337_v6 = vrot.slane %v2605_v4, 1  ;;  %v1036_v12 = vshll.u32 %v2763_v48, 16 }
  0x5b   : > { %v1339_v4 = vrot.slane %v2631_v41, 1  ;;  %v1342_v19 = vrot.slane %v2695_v53, 1  ;;  %v1114_v32 = vrot.slane %v2763_v48, 1  ;;  %v1065_v33 = vshrl.u32 %v2791_v13, 16 }
  0x5c   : > { %v1063_v27 = vsel %vm758_vm1, %v1058_v16, %v1062_v17  ;;  %v1259_v38 = vsel %vm758_vm1, %v1254_v22, %v1258_v23  ;;  %v1338_v42 = vsel %vm871_vm0, %v1336_v3, %v1337_v6  ;;  %v1340_v16 = vrot.slane %v2637_v47, 1 }
  0x5d   : > { %2146 = vmatprep.mubr.msk.bf16.mxu0 %vm1360_vm2, %v1338_v42  ;;  %v1348_v17 = vrot.slane %v2648_v57, 1  ;;  %v1351_v22 = vrot.slane %v2716_v8, 1  ;;  %v1352_v23 = vrot.slane %v2728_v20, 1  ;;  %v2313_v20 = vld [vmem:[%s2572_s8 + $0xec] ss:$0 sps:$4 sm:$0x11]  }
  0x5e   : > { %859 = vrot.lane.b32.xlu0 %v794_v28, %s2393_s13  ;;  %1192 = vrot.lane.b32.xlu1 %v2648_v57, %s2389_s9  ;;  %v1119_v28 = vrot.slane %v2689_v46, 1  ;;  %v2808_v47 = vsel %vm871_vm0, %v1339_v4, %v1340_v16  ;;  %v1038_v57 = vrot.slane %v1036_v12, 1  ;;  %v1345_v35 = vrot.slane %v2311_v5, 1 }
  0x5f   : > { %v1350_v24 = vsel %vm871_vm0, %v1348_v17, %v1349_v18  ;;  %v2830_v30 = vsel %vm871_vm0, %v1351_v22, %v1352_v23  ;;  %v1263_v44 = vshll.u32 %v2311_v5, 16  ;;  %v1122_v18 = vrot.slane %v2791_v13, 1  ;;  %v2324_v23 = vld [vmem:[%s2572_s8 + $0x114] sm:$0xff]  }
  0x60   : > { %v1121_v45 = vsel %vm871_vm0, %v1119_v28, %v1120_v29  ;;  %v890_v28 = vrot.slane %v2737_v26, 1  ;;  %v2329_v29 = vld [vmem:[%s3119_s1 + $0x38] sm:$0xff]   ;;  %2150 = vmatprep.mubr.msk.bf16.mxu1 %vm1360_vm2, %v1350_v24 }
  0x61   : > { %v2322_v24 = vld [vmem:[%s2572_s8 + $0xbc] ss:$0 sps:$4 sm:$0x11]  }
  0x62   : > { %900 = vrot.lane.b32.xlu0 %v880_v37, %s2390_s10  ;;  %1328 = vrot.lane.b32.xlu1 %v1283_v43, %s2394_s14  ;;  %v2323_v37 = vld [vmem:[%s3119_s1 + $0x18] sm:$0xff]   ;;  %v2757_v43 = vld [vmem:[%s2572_s8 + $0x50] ss:$0 sps:$4 sm:$0x11]  }
  0x63   : > { %v839_v60 = vshll.u32 %v2757_v43, 16 }
  0x65   : > { %v841_v10 = vrot.slane %v839_v60, 1  ;;  %v2316_v60 = vld [vmem:[%s2572_s8 + $0x110] ss:$0 sps:$4 sm:$0x11]  }
  0x66   : > { %956 = vrot.lane.b32.xlu0 %v2294_v21, %s2388_s18  ;;  %865 = vrot.lane.b32.xlu1 %v830_v54, %s2393_s13  ;;  %v2321_v21 = vld [vmem:[%s3119_s1 + $0x10] sm:$0xff]   ;;  %v832_v54 = vshrl.u32 %v2737_v26, 16  ;;  %v1304_v16 = vshll.u32 %v2316_v60, 16 }
  0x67   : > { %1595 = vmatpush1.bf16.msra.mxu0 %v2321_v21  ;;  %2199 = vmatpush1.bf16.msra.mxu1 %v2321_v21  ;;  %v1343_v21 = vrot.slane %v2702_v61, 1  ;;  %v1067_v61 = vshll.u32 %v2791_v13, 16 }
  0x68   : > { %1596 = vmatprep.subr.bf16.mxu0 %v2387_v36  ;;  %2191 = vmatprep.subr.bf16.mxu1 %v2387_v36 }
  0x69   : > { %v2820_v25 = vsel %vm871_vm0, %v1342_v19, %v1343_v21  ;;  %v1069_v39 = vrot.slane %v1067_v61, 1  ;;  %v2320_v21 = vld [vmem:[%s2572_s8 + $0xb4] sm:$0xff]  }
  0x6a   : > { %1092 = vrot.lane.b32.xlu0 %v1027_v62, %s2392_s12  ;;  %906 = vrot.lane.b32.xlu1 %v889_v1, %s2390_s10  ;;  %v2327_v62 = vld [vmem:[%s3119_s1 + $0x28] sm:$0xff]   ;;  %v1033_v1 = vrot.slane %v1031_v49, 1 }
  0x6b   : > { %1597 = vmatpush1.bf16.msra.mxu0 %v2323_v37  ;;  %2200 = vmatpush1.bf16.msra.mxu1 %v2323_v37  ;;  %v1346_v37 = vrot.slane %v2313_v20, 1 }
  0x6c   : > { %1598 = vmatprep.subr.bf16.mxu0 %v2387_v36  ;;  %2192 = vmatprep.subr.bf16.mxu1 %v2387_v36  ;;  %v1034_v41 = vor.u32 %v1033_v1, %v1029_v63 }
  0x6d   : > { %v2851_v48 = vsel %vm871_vm0, %v1345_v35, %v1346_v37  ;;  %v1084_v35 = vshll.u32 %v2322_v24, 16  ;;  %v1357_v37 = vrot.slane %v2324_v23, 1 }
  0x6e   : > { %1132 = vrot.lane.b32.xlu0 %v1112_v9, %s2391_s11  ;;  %962 = vrot.lane.b32.xlu1 %v2689_v46, %s2388_s18  ;;  %v882_v46 = vrot.slane %v2713_v7, 1  ;;  %v1295_v7 = vsel %vm758_vm1, %v1290_v56, %v1294_v51  ;;  %v837_v9 = vor.u32 %v836_v59, %v832_v54  ;;  %v2314_v51 = vld [vmem:[%s2572_s8 + $0x108] sm:$0xff]   ;;  %v1070_v54 = vor.u32 %v1069_v39, %v1065_v33 }
  0x6f   : > { %1599 = vmatpush1.bf16.msra.mxu0 %v2326_v50  ;;  %2201 = vmatpush1.bf16.msra.mxu1 %v2326_v50  ;;  %v1261_v50 = vshrl.u32 %v2311_v5, 16  ;;  %v1265_v56 = vrot.slane %v1263_v44, 1  ;;  %v1268_v59 = vshll.u32 %v2313_v20, 16  ;;  %v1354_v1 = vrot.slane %v2314_v51, 1 }
  0x70   : > { %1600 = vmatprep.subr.bf16.mxu0 %v2387_v36  ;;  %2193 = vmatprep.subr.bf16.mxu1 %v2387_v36  ;;  %v883_v2 = vsel %vm871_vm0, %v881_v31, %v882_v46  ;;  %v1113_v31 = vrot.slane %v2744_v34, 1  ;;  %v2330_v46 = vld [vmem:[%s3119_s1 + $0x40] sm:$0xff]   ;;  %v1297_v42 = vshrl.u32 %v2314_v51, 16  ;;  %v1126_v39 = vrot.slane %v2322_v24, 1 }
  0x71   : > { %v1266_v6 = vor.u32 %v1265_v56, %v1261_v50 }
  0x72   : > { %1188 = vrot.lane.b32.xlu0 %v2695_v53, %s2389_s9  ;;  %1098 = vrot.lane.b32.xlu1 %v1063_v27, %s2392_s12  ;;  %v2815_v53 = vld [vmem:[%s2572_s8 + $0xb0] ss:$0 sps:$4 sm:$0x11]   ;;  %v842_v27 = vsel %vm758_vm1, %v837_v9, %v841_v10  ;;  %v1115_v49 = vsel %vm871_vm0, %v1113_v31, %v1114_v32  ;;  %v1077_v31 = vshrl.u32 %v2320_v21, 16  ;;  %v1125_v32 = vrot.slane %v2320_v21, 1 }
  0x73   : > { %1601 = vmatpush1.bf16.msra.mxu0 %v2327_v62  ;;  %2202 = vmatpush1.bf16.msra.mxu1 %v2327_v62  ;;  %v2318_v62 = vld [vmem:[%s2572_s8 + $0x5c] ss:$0 sps:$4 sm:$0x11]   ;;  %v1123_v19 = vrot.slane %v2815_v53, 1 }
  0x74   : > { %1602 = vmatprep.subr.bf16.mxu0 %v2387_v36  ;;  %2194 = vmatprep.subr.bf16.mxu1 %v2387_v36  ;;  %v851_v12 = vshll.u32 %v2318_v62, 16 }
  0x75   : > { %v1124_v61 = vsel %vm871_vm0, %v1122_v18, %v1123_v19 }
  0x76   : > { %1324 = vrot.lane.b32.xlu0 %v1259_v38, %s2394_s14  ;;  %1138 = vrot.lane.b32.xlu1 %v1121_v45, %s2391_s11  ;;  %v1039_v38 = vsel %vm758_vm1, %v1034_v41, %v1038_v57  ;;  %v853_v22 = vrot.slane %v851_v12, 1 }
  0x77   : > { %1603 = vmatpush1.bf16.msra.mxu0 %v2328_v15  ;;  %2203 = vmatpush1.bf16.msra.mxu1 %v2328_v15 }
  0x78   : > { %1604 = vmatprep.subr.bf16.mxu0 %v2387_v36  ;;  %2195 = vmatprep.subr.bf16.mxu1 %v2387_v36 }
  0x7a   : > { %861 = vrot.lane.b32.xlu0 %v806_v55, %s2393_s13  ;;  %1194 = vrot.lane.b32.xlu1 %v2716_v8, %s2389_s9  ;;  %v891_v8 = vrot.slane %v2757_v43, 1  ;;  %v1072_v43 = vshll.u32 %v2815_v53, 16 }
  0x7b   : > { %1605 = vmatpush1.bf16.msra.mxu0 %v2329_v29  ;;  %2204 = vmatpush1.bf16.msra.mxu1 %v2329_v29  ;;  %v894_v29 = vrot.slane %v2318_v62, 1 }
  0x7c   : > { %v892_v45 = vsel %vm871_vm0, %v890_v28, %v891_v8  ;;  %1606 = vmatprep.subr.bf16.mxu0 %v2387_v36  ;;  %2196 = vmatprep.subr.bf16.mxu1 %v2387_v36  ;;  %v1074_v55 = vrot.slane %v1072_v43, 1  ;;  %v1299_v36 = vshll.u32 %v2314_v51, 16  ;;  %v2325_v8 = vld [vmem:[%s2572_s8 + $0x11c] ss:$0 sps:$4 sm:$0x11]   ;;  %v1309_v43 = vshrl.u32 %v2324_v23, 16 }
  0x7e   : > { %902 = vrot.lane.b32.xlu0 %v883_v2, %s2390_s10  ;;  %1330 = vrot.lane.b32.xlu1 %v1295_v7, %s2394_s14  ;;  %v1355_v2 = vrot.slane %v2316_v60, 1  ;;  %v1075_v3 = vsel %vm758_vm1, %v1070_v54, %v1074_v55  ;;  %v1270_v7 = vrot.slane %v1268_v59, 1  ;;  %v1301_v4 = vrot.slane %v1299_v36, 1 }
  0x7f   : > { %1607 = vmatpush1.bf16.msra.mxu0 %v2330_v46  ;;  %2205 = vmatpush1.bf16.msra.mxu1 %v2330_v46  ;;  %v1127_v54 = vsel %vm871_vm0, %v1125_v32, %v1126_v39 }
  0x80   : > { %v2868_v15 = vsel %vm871_vm0, %v1354_v1, %v1355_v2  ;;  %v1271_v17 = vsel %vm758_vm1, %v1266_v6, %v1270_v7  ;;  %v1302_v57 = vor.u32 %v1301_v4, %v1297_v42 }
  0x82   : > { %958 = vrot.lane.b32.xlu0 %v2744_v34, %s2388_s18  ;;  %867 = vrot.lane.b32.xlu1 %v842_v27, %s2393_s13  ;;  %v2845_v34 = vld [vmem:[%s2572_s8 + $0x54] sm:$0xff]   ;;  %v1079_v27 = vshll.u32 %v2320_v21, 16  ;;  %s2034_s8 = sshll.u32 %s2369_s20, 3  ;;  %s3141_s20 = smov (!%p607_p12, %s2369_s20), 1 }
  0x83   : > { %v846_v63 = vshll.u32 %v2845_v34, 16  ;;  %v844_v9 = vshrl.u32 %v2845_v34, 16  ;;  %v893_v53 = vrot.slane %v2845_v34, 1  ;;  %p597_p11 = scmp.lt.s32.totalorder %s2034_s8, 15  ;;  %s610_s16 = sadd.s32 %s2038_s15, %s3141_s20 }
  0x84   : > { %v1081_v33 = vrot.slane %v1079_v27, 1  ;;  %s611_s28 = scalar_lea.vmem %s3122_s4, %s610_s16 }
  0x85   : > { %v848_v10 = vrot.slane %v846_v63, 1  ;;  %s3139_s8 = smov (!%p597_p11, %s2034_s8), 15 }
  0x86   : > { %1094 = vrot.lane.b32.xlu0 %v1039_v38, %s2392_s12  ;;  %908 = vrot.lane.b32.xlu1 %v892_v45, %s2390_s10  ;;  %v1358_v38 = vrot.slane %v2325_v8, 1  ;;  %v1316_v45 = vshll.u32 %v2325_v8, 16  ;;  %v1082_v50 = vor.u32 %v1081_v33, %v1077_v31 }
  0x87   : > { %v849_v41 = vor.u32 %v848_v10, %v844_v9 }
  0x88   : > { %v2888_v46 = vsel %vm871_vm0, %v1357_v37, %v1358_v38  ;;  %v1318_v56 = vrot.slane %v1316_v45, 1 }
  0x89   : > { %v854_v28 = vsel %vm758_vm1, %v849_v41, %v853_v22 }
  0x8a   : > { %1134 = vrot.lane.b32.xlu0 %v1115_v49, %s2391_s11  ;;  %964 = vrot.lane.b32.xlu1 %v2791_v13, %s2388_s18  ;;  %v1311_v13 = vshll.u32 %v2324_v23, 16  ;;  %v895_v49 = vsel %vm871_vm0, %v893_v53, %v894_v29 }
  0x8c   : > { %v1313_v44 = vrot.slane %v1311_v13, 1 }
  0x8e   : > { %1190 = vrot.lane.b32.xlu0 %v2311_v5, %s2389_s9  ;;  %1100 = vrot.lane.b32.xlu1 %v1075_v3, %s2392_s12  ;;  %v1306_v5 = vrot.slane %v1304_v16, 1  ;;  %v1314_v55 = vor.u32 %v1313_v44, %v1309_v43 }
  0x90   : > { %v1307_v20 = vsel %vm758_vm1, %v1302_v57, %v1306_v5  ;;  %v1319_v60 = vsel %vm758_vm1, %v1314_v55, %v1318_v56 }
  0x92   : > { %1326 = vrot.lane.b32.xlu0 %v1271_v17, %s2394_s14  ;;  %1196 = vrot.lane.b32.xlu1 %v2314_v51, %s2389_s9  ;;  %v1086_v51 = vrot.slane %v1084_v35, 1 }
  0x94   : > { %v1087_v59 = vsel %vm758_vm1, %v1082_v50, %v1086_v51 }
  0x96   : > { %1140 = vrot.lane.b32.xlu0 %v1124_v61, %s2391_s11  ;;  %869 = vrot.lane.b32.xlu1 %v854_v28, %s2393_s13 }
  0x9a   : > { %1332 = vrot.lane.b32.xlu0 %v1307_v20, %s2394_s14  ;;  %966 = vrot.lane.b32.xlu1 %v2320_v21, %s2388_s18  ;;  %s2035_s18 = sshll.u32 %s3139_s8, 1 }
  0x9e   : > { %910 = vrot.lane.b32.xlu0 %v895_v49, %s2390_s10  ;;  %1142 = vrot.lane.b32.xlu1 %v1127_v54, %s2391_s11 }
  0xa2   : > { %1102 = vrot.lane.b32.xlu0 %v1087_v59, %s2392_s12  ;;  %1334 = vrot.lane.b32.xlu1 %v1319_v60, %s2394_s14 }
  0xa6   : > { %1198 = vrot.lane.b32.xlu0 %v2324_v23, %s2389_s9  ;;  %s2036_s9 = sshll.u32 %s3137_s21, 5  ;;  %s618_s21 = scalar_lea.vmem %s3123_s5, %s610_s16 }
  0xa7   : > { %s601_s10 = sadd.s32 %s2036_s9, %s2035_s18 }
  0xa8   : > { %v953_v62 = vpop.permute.xlu1 %952  ;;  %s2037_s13 = sshll.u32 %s601_s10, 2 }
  0xa9   : > { %s2992_s7 = scalar_lea.vmem %s3121_s3, %s2037_s13 }
  0xac   : > { %v1185_v63 = vpop.permute.xlu1 %1184  ;;  %v897_v36 = vpop.permute.xlu0 %896 }
  0xb0   : > { %v1129_v1 = vpop.permute.xlu0 %1128  ;;  %v1089_v2 = vpop.permute.xlu1 %1088 }
  0xb4   : > { %v856_v3 = vpop.permute.xlu0 %855  ;;  %v858_v7 = vpop.permute.xlu1 %857 }
  0xb5   : > { %v1362_v6 = vsel %vm1360_vm2, %v2579_v40, %v856_v3  ;;  %v1364_v23 = vsel %vm1360_vm2, %v2596_v58, %v858_v7 }
  0xb6   : > { %v1379_v9 = vsel %vm1377_vm3, %v1362_v6, %v897_v36 }
  0xb7   : > { %v1396_v10 = vsel %vm1394_vm4, %v1379_v9, %v953_v62 }
  0xb8   : > { %v1321_v12 = vpop.permute.xlu0 %1320  ;;  %v1413_v42 = vsel %vm1411_vm5, %v1396_v10, %v1089_v2  ;;  %v955_v4 = vpop.permute.xlu1 %954 }
  0xb9   : > { %v1430_v16 = vsel %vm1428_vm6, %v1413_v42, %v1129_v1 }
  0xba   : > { %v1447_v17 = vsel %vm1445_vm7, %v1430_v16, %v1185_v63 }
  0xbb   : > { %v1464_v18 = vsel %vm1462_vm8, %v1447_v17, %v1321_v12 }
  0xbc   : > { %1623 = vmatmul.mubr.bf16.vlgmr.msra.gmra.mrb[0].mxu0 %v1464_v18  ;;  %v899_v40 = vpop.permute.xlu0 %898  ;;  %v864_v19 = vpop.permute.xlu1 %863 }
  0xbd   : > { %2147 = vmatprep.mubr.msk.bf16.mxu0 %vm1360_vm2, %v2808_v47  ;;  %v1381_v5 = vsel %vm1377_vm3, %v1364_v23, %v899_v40  ;;  %v1370_v58 = vsel %vm1360_vm2, %v2612_v11, %v864_v19 }
  0xbe   : > { %v1398_v24 = vsel %vm1394_vm4, %v1381_v5, %v955_v4 }
  0xc0   : > { %v1091_v21 = vpop.permute.xlu0 %1090  ;;  %v905_v41 = vpop.permute.xlu1 %904 }
  0xc1   : > { %v1415_v28 = vsel %vm1411_vm5, %v1398_v24, %v1091_v21  ;;  %v1387_v31 = vsel %vm1377_vm3, %v1370_v58, %v905_v41 }
  0xc4   : > { %v1131_v22 = vpop.permute.xlu0 %1130  ;;  %v961_v57 = vpop.permute.xlu1 %960 }
  0xc5   : > { %v1432_v8 = vsel %vm1428_vm6, %v1415_v28, %v1131_v22  ;;  %v1404_v33 = vsel %vm1394_vm4, %v1387_v31, %v961_v57 }
  0xc8   : > { %v1187_v61 = vpop.permute.xlu0 %1186  ;;  %v1097_v27 = vpop.permute.xlu1 %1096 }
  0xc9   : > { %v1449_v13 = vsel %vm1445_vm7, %v1432_v8, %v1187_v61  ;;  %v1421_v35 = vsel %vm1411_vm5, %v1404_v33, %v1097_v27 }
  0xcc   : > { %v1323_v47 = vpop.permute.xlu0 %1322  ;;  %v1137_v53 = vpop.permute.xlu1 %1136 }
  0xcd   : > { %v1467_v20 = vsel %vm1462_vm8, %v1449_v13, %v1323_v47  ;;  %v1438_v37 = vsel %vm1428_vm6, %v1421_v35, %v1137_v53 }
  0xce   : > { %1631 = vmatmul.mubr.bf16.gmra.mrb[4].mxu0 %v1467_v20 }
  0xcf   : > { %2148 = vmatprep.mubr.msk.bf16.mxu0 %vm1360_vm2, %v2820_v25 }
  0xd0   : > { %v860_v29 = vpop.permute.xlu0 %859  ;;  %v1193_v32 = vpop.permute.xlu1 %1192 }
  0xd1   : > { %v1455_v39 = vsel %vm1445_vm7, %v1438_v37, %v1193_v32  ;;  %v1366_v54 = vsel %vm1360_vm2, %v2643_v52, %v860_v29 }
  0xd4   : > { %v901_v38 = vpop.permute.xlu0 %900  ;;  %v1329_v43 = vpop.permute.xlu1 %1328 }
  0xd5   : > { %v1476_v11 = vsel %vm1462_vm8, %v1455_v39, %v1329_v43  ;;  %v1383_v55 = vsel %vm1377_vm3, %v1366_v54, %v901_v38 }
  0xd6   : > { %1655 = vmatmul.mubr.bf16.vlgmr.msra.gmra.mrb[0].mxu1 %v1476_v11 }
  0xd7   : > { %2151 = vmatprep.mubr.msk.bf16.mxu1 %vm1360_vm2, %v2830_v30 }
  0xd8   : > { %v957_v44 = vpop.permute.xlu0 %956  ;;  %v866_v25 = vpop.permute.xlu1 %865 }
  0xd9   : > { %v1400_v59 = vsel %vm1394_vm4, %v1383_v55, %v957_v44  ;;  %v1372_v3 = vsel %vm1360_vm2, %v2665_v14, %v866_v25 }
  0xdc   : > { %v1093_v45 = vpop.permute.xlu0 %1092  ;;  %v907_v49 = vpop.permute.xlu1 %906 }
  0xdd   : > { %v1417_v62 = vsel %vm1411_vm5, %v1400_v59, %v1093_v45  ;;  %v1389_v6 = vsel %vm1377_vm3, %v1372_v3, %v907_v49 }
  0xe0   : > { %v1133_v50 = vpop.permute.xlu0 %1132  ;;  %v963_v51 = vpop.permute.xlu1 %962 }
  0xe1   : > { %v1434_v63 = vsel %vm1428_vm6, %v1417_v62, %v1133_v50  ;;  %v1406_v9 = vsel %vm1394_vm4, %v1389_v6, %v963_v51 }
  0xe4   : > { %v1189_v56 = vpop.permute.xlu0 %1188  ;;  %v1099_v60 = vpop.permute.xlu1 %1098 }
  0xe5   : > { %v1451_v30 = vsel %vm1445_vm7, %v1434_v63, %v1189_v56  ;;  %v1423_v10 = vsel %vm1411_vm5, %v1406_v9, %v1099_v60 }
  0xe8   : > { %v1325_v36 = vpop.permute.xlu0 %1324  ;;  %v1139_v1 = vpop.permute.xlu1 %1138 }
  0xe9   : > { %v1470_v2 = vsel %vm1462_vm8, %v1451_v30, %v1325_v36  ;;  %v1440_v12 = vsel %vm1428_vm6, %v1423_v10, %v1139_v1 }
  0xea   : > { %1639 = vmatmul.mubr.bf16.gmra.mrb[8].mxu0 %v1470_v2 }
  0xeb   : > { %2149 = vmatprep.mubr.msk.bf16.mxu0 %vm1360_vm2, %v2851_v48 }
  0xec   : > { %v862_v52 = vpop.permute.xlu0 %861  ;;  %v1195_v7 = vpop.permute.xlu1 %1194 }
  0xed   : > { %v1457_v4 = vsel %vm1445_vm7, %v1440_v12, %v1195_v7  ;;  %v1368_v41 = vsel %vm1360_vm2, %v2708_v0, %v862_v52 }
  0xf0   : > { %v903_v42 = vpop.permute.xlu0 %902  ;;  %v1331_v16 = vpop.permute.xlu1 %1330 }
  0xf1   : > { %v1479_v14 = vsel %vm1462_vm8, %v1457_v4, %v1331_v16  ;;  %v1385_v22 = vsel %vm1377_vm3, %v1368_v41, %v903_v42 }
  0xf2   : > { %1663 = vmatmul.mubr.bf16.gmra.mrb[4].mxu1 %v1479_v14 }
  0xf3   : > { %2152 = vmatprep.mubr.msk.bf16.mxu1 %vm1360_vm2, %v2868_v15 }
  0xf4   : > { %v959_v17 = vpop.permute.xlu0 %958  ;;  %v868_v48 = vpop.permute.xlu1 %867 }
  0xf5   : > { %v1402_v57 = vsel %vm1394_vm4, %v1385_v22, %v959_v17  ;;  %v1374_v24 = vsel %vm1360_vm2, %v2737_v26, %v868_v48 }
  0xf8   : > { %v1095_v18 = vpop.permute.xlu0 %1094  ;;  %v909_v40 = vpop.permute.xlu1 %908 }
  0xf9   : > { %v1419_v61 = vsel %vm1411_vm5, %v1402_v57, %v1095_v18  ;;  %v1391_v0 = vsel %vm1377_vm3, %v1374_v24, %v909_v40 }
  0xfc   : > { %v1135_v19 = vpop.permute.xlu0 %1134  ;;  %v965_v21 = vpop.permute.xlu1 %964 }
  0xfd   : > { %v1436_v15 = vsel %vm1428_vm6, %v1419_v61, %v1135_v19  ;;  %v1408_v47 = vsel %vm1394_vm4, %v1391_v0, %v965_v21 }
 0x100   : > { %v1191_v23 = vpop.permute.xlu0 %1190  ;;  %v1101_v5 = vpop.permute.xlu1 %1100 }
 0x101   : > { %v1453_v27 = vsel %vm1445_vm7, %v1436_v15, %v1191_v23  ;;  %v1425_v53 = vsel %vm1411_vm5, %v1408_v47, %v1101_v5 }
 0x104   : > { %v1327_v28 = vpop.permute.xlu0 %1326  ;;  %v1197_v13 = vpop.permute.xlu1 %1196 }
 0x105   : > { %v1473_v8 = vsel %vm1462_vm8, %v1453_v27, %v1327_v28 }
 0x106   : > { %1647 = vmatmul.mubr.bf16.gmra.mrb[12].mxu0 %v1473_v8 }
 0x108   : > { %v1141_v20 = vpop.permute.xlu0 %1140  ;;  %v870_v29 = vpop.permute.xlu1 %869 }
 0x109   : > { %v1442_v58 = vsel %vm1428_vm6, %v1425_v53, %v1141_v20  ;;  %v1376_v35 = vsel %vm1360_vm2, %v2845_v34, %v870_v29  ;;  %v2986_v34 = vld [vmem:[%s3120_s2] ss:$0 sm:$0xff] }
 0x10a   : > { %v1459_v26 = vsel %vm1445_vm7, %v1442_v58, %v1197_v13 }
 0x10c   : > { %v1333_v31 = vpop.permute.xlu0 %1332  ;;  %v967_v33 = vpop.permute.xlu1 %966 }
 0x10d   : > { %v1482_v32 = vsel %vm1462_vm8, %v1459_v26, %v1333_v31 }
 0x10e   : > { %1671 = vmatmul.mubr.bf16.gmra.mrb[8].mxu1 %v1482_v32 }
 0x10f   : > { %2153 = vmatprep.mubr.msk.bf16.mxu1 %vm1360_vm2, %v2888_v46 }
 0x110   : > { %v911_v37 = vpop.permute.xlu0 %910  ;;  %v1143_v39 = vpop.permute.xlu1 %1142 }
 0x111   : > { %v1393_v38 = vsel %vm1377_vm3, %v1376_v35, %v911_v37 }
 0x112   : > { %v1410_v43 = vsel %vm1394_vm4, %v1393_v38, %v967_v33 }
 0x114   : > { %v1103_v11 = vpop.permute.xlu0 %1102  ;;  %v1335_v25 = vpop.permute.xlu1 %1334 }
 0x115   : > { %v1427_v44 = vsel %vm1411_vm5, %v1410_v43, %v1103_v11 }
 0x116   : > { %v1444_v45 = vsel %vm1428_vm6, %v1427_v44, %v1143_v39 }
 0x118   : > { %v1199_v49 = vpop.permute.xlu0 %1198 }
 0x119   : > { %v1461_v50 = vsel %vm1445_vm7, %v1444_v45, %v1199_v49 }
 0x11a   : > { %v1485_v46 = vsel %vm1462_vm8, %v1461_v50, %v1335_v25 }
 0x11b   : > { %1679 = vmatmul.mubr.bf16.gmra.mrb[12].mxu1 %v1485_v46 }
 0x18f   : > { %v1624_v51 = vpop.f32.mrb[0].mxu0 }
 0x190   : > { %v1625_v54 = vadd.f32 %v2986_v34, %v1624_v51  ;;  %v1626_v55 = vpop.f32.mrb[1].mxu0 }
 0x191   : > { %v1627_v56 = vpop.f32.mrb[2].mxu0 }
 0x192   : > { %v2172_v59 = vpack.c.bf16 %v1625_v54, %v1625_v54  ;;  %v1628_v60 = vadd.f32 %v2986_v34, %v1627_v56  ;;  %v1629_v62 = vpop.f32.mrb[3].mxu0  ;;  %v1768_v63 = vsel %vm1360_vm2, %v1625_v54, 0.0  ;;  %v1807_v61 = vsel %vm1360_vm2, %v1625_v54, -inf }
 0x194   : > { %1752 = vst.msk [vmem:[%s2992_s7] sm:$0xf] %vm1751_vm9, %v2172_v59  ;;  %v2173_v30 = vpack.c.bf16 %v1628_v60, %v1628_v60  ;;  %v1769_v36 = vsel %vm1360_vm2, %v1628_v60, 0.0  ;;  %v1808_v0 = vsel %vm1360_vm2, %v1628_v60, -inf }
 0x195   : > { %v1770_v1 = vadd.f32 %v1769_v36, %v1768_v63 }
 0x196   : > { %1753 = vst.msk [vmem:[%s2992_s7 + $0x4] sm:$0xf] %vm1751_vm9, %v2173_v30 }
 0x1a1   : > { %v1632_v2 = vpop.f32.mrb[4].mxu0 }
 0x1a2   : > { %v1633_v3 = vadd.f32 %v2986_v34, %v1632_v2  ;;  %v1634_v52 = vpop.f32.mrb[5].mxu0 }
 0x1a3   : > { %v1635_v6 = vpop.f32.mrb[6].mxu0 }
 0x1a4   : > { %v2174_v7 = vpack.c.bf16 %v1633_v3, %v1633_v3  ;;  %v1771_v9 = vsel %vm1360_vm2, %v1633_v3, 0.0  ;;  %v1636_v10 = vadd.f32 %v2986_v34, %v1635_v6  ;;  %v1637_v12 = vpop.f32.mrb[7].mxu0  ;;  %v1809_v54 = vsel %vm1360_vm2, %v1633_v3, -inf }
 0x1a5   : > { %v1772_v42 = vadd.f32 %v1771_v9, %v1770_v1 }
 0x1a6   : > { %1754 = vst.msk [vmem:[%s2992_s7 + $0x8] sm:$0xf] %vm1751_vm9, %v2174_v7  ;;  %v2175_v4 = vpack.c.bf16 %v1636_v10, %v1636_v10  ;;  %v1773_v16 = vsel %vm1360_vm2, %v1636_v10, 0.0  ;;  %v1810_v30 = vsel %vm1360_vm2, %v1636_v10, -inf }
 0x1a7   : > { %v1774_v14 = vadd.f32 %v1773_v16, %v1772_v42 }
 0x1a8   : > { %1755 = vst.msk [vmem:[%s2992_s7 + $0xc] sm:$0xf] %vm1751_vm9, %v2175_v4 }
 0x1a9   : > { %v1656_v17 = vpop.f32.mrb[0].mxu1 }
 0x1aa   : > { %v3010_v48 = vadd.f32 %v2986_v34, %v1656_v17  ;;  %v1658_v18 = vpop.f32.mrb[1].mxu1 }
 0x1ab   : > { %v1659_v40 = vpop.f32.mrb[2].mxu1 }
 0x1ac   : > { %v2180_v19 = vpack.c.bf16 %v3010_v48, %v3010_v48  ;;  %v3015_v21 = vadd.f32 %v2986_v34, %v1659_v40  ;;  %v1661_v41 = vpop.f32.mrb[3].mxu1  ;;  %v1819_v20 = vsel %vm1360_vm2, %v3010_v48, -inf  ;;  %v1783_v42 = vsel %vm1360_vm2, %v3010_v48, 0.0 }
 0x1ae   : > { %1760 = vst.msk [vmem:[%s2992_s7 + $0x20] sm:$0xf] %vm1751_vm9, %v2180_v19  ;;  %v2181_v22 = vpack.c.bf16 %v3015_v21, %v3015_v21  ;;  %v1821_v35 = vsel %vm1360_vm2, %v3015_v21, -inf  ;;  %v1785_v17 = vsel %vm1360_vm2, %v3015_v21, 0.0 }
 0x1b0   : > { %1761 = vst.msk [vmem:[%s2992_s7 + $0x24] sm:$0xf] %vm1751_vm9, %v2181_v22 }
 0x1bd   : > { %v1640_v23 = vpop.f32.mrb[8].mxu0 }
 0x1be   : > { %v1641_v57 = vadd.f32 %v2986_v34, %v1640_v23  ;;  %v1642_v5 = vpop.f32.mrb[9].mxu0 }
 0x1bf   : > { %v1643_v24 = vpop.f32.mrb[10].mxu0 }
 0x1c0   : > { %v2176_v15 = vpack.c.bf16 %v1641_v57, %v1641_v57  ;;  %v1775_v27 = vsel %vm1360_vm2, %v1641_v57, 0.0  ;;  %v1811_v28 = vsel %vm1360_vm2, %v1641_v57, -inf  ;;  %v1644_v8 = vadd.f32 %v2986_v34, %v1643_v24  ;;  %v1645_v13 = vpop.f32.mrb[11].mxu0 }
 0x1c1   : > { %v1776_v47 = vadd.f32 %v1775_v27, %v1774_v14  ;;  %v1812_v53 = vmax.f32 %v1807_v61, %v1811_v28 }
 0x1c2   : > { %1756 = vst.msk [vmem:[%s2992_s7 + $0x10] sm:$0xf] %vm1751_vm9, %v2176_v15  ;;  %v2177_v58 = vpack.c.bf16 %v1644_v8, %v1644_v8  ;;  %v1777_v29 = vsel %vm1360_vm2, %v1644_v8, 0.0  ;;  %v1813_v26 = vsel %vm1360_vm2, %v1644_v8, -inf }
 0x1c3   : > { %v1778_v31 = vadd.f32 %v1777_v29, %v1776_v47  ;;  %v1814_v32 = vmax.f32 %v1808_v0, %v1813_v26  ;;  %v3035_v33 = vmax.f32 %v1812_v53, %v1819_v20 }
 0x1c4   : > { %1757 = vst.msk [vmem:[%s2992_s7 + $0x14] sm:$0xf] %vm1751_vm9, %v2177_v58 }
 0x1c5   : > { %v1822_v37 = vmax.f32 %v1814_v32, %v1821_v35  ;;  %v1664_v38 = vpop.f32.mrb[4].mxu1 }
 0x1c6   : > { %v1665_v39 = vadd.f32 %v2986_v34, %v1664_v38  ;;  %v1666_v43 = vpop.f32.mrb[5].mxu1 }
 0x1c7   : > { %v1667_v11 = vpop.f32.mrb[6].mxu1 }
 0x1c8   : > { %v2182_v44 = vpack.c.bf16 %v1665_v39, %v1665_v39  ;;  %v1668_v25 = vadd.f32 %v2986_v34, %v1667_v11  ;;  %v1669_v45 = vpop.f32.mrb[7].mxu1  ;;  %v1823_v2 = vsel %vm1360_vm2, %v1665_v39, -inf  ;;  %v1787_v22 = vsel %vm1360_vm2, %v1665_v39, 0.0 }
 0x1ca   : > { %1762 = vst.msk [vmem:[%s2992_s7 + $0x28] sm:$0xf] %vm1751_vm9, %v2182_v44  ;;  %v2183_v49 = vpack.c.bf16 %v1668_v25, %v1668_v25  ;;  %v1825_v4 = vsel %vm1360_vm2, %v1668_v25, -inf  ;;  %v1789_v15 = vsel %vm1360_vm2, %v1668_v25, 0.0 }
 0x1cc   : > { %1763 = vst.msk [vmem:[%s2992_s7 + $0x2c] sm:$0xf] %vm1751_vm9, %v2183_v49 }
 0x1d9   : > { %v1648_v50 = vpop.f32.mrb[12].mxu0 }
 0x1da   : > { %v1649_v46 = vadd.f32 %v2986_v34, %v1648_v50  ;;  %v1650_v51 = vpop.f32.mrb[13].mxu0 }
 0x1db   : > { %v1651_v55 = vpop.f32.mrb[14].mxu0 }
 0x1dc   : > { %v2178_v56 = vpack.c.bf16 %v1649_v46, %v1649_v46  ;;  %v1779_v59 = vsel %vm1360_vm2, %v1649_v46, 0.0  ;;  %v1815_v60 = vsel %vm1360_vm2, %v1649_v46, -inf  ;;  %v1652_v62 = vadd.f32 %v2986_v34, %v1651_v55  ;;  %v1653_v63 = vpop.f32.mrb[15].mxu0 }
 0x1dd   : > { %v1780_v36 = vadd.f32 %v1779_v59, %v1778_v31  ;;  %v1816_v1 = vmax.f32 %v1809_v54, %v1815_v60 }
 0x1de   : > { %1758 = vst.msk [vmem:[%s2992_s7 + $0x18] sm:$0xf] %vm1751_vm9, %v2178_v56  ;;  %v2179_v52 = vpack.c.bf16 %v1652_v62, %v1652_v62  ;;  %v1781_v3 = vsel %vm1360_vm2, %v1652_v62, 0.0  ;;  %v1817_v6 = vsel %vm1360_vm2, %v1652_v62, -inf }
 0x1df   : > { %v1782_v7 = vadd.f32 %v1781_v3, %v1780_v36  ;;  %v1818_v9 = vmax.f32 %v1810_v30, %v1817_v6  ;;  %v1824_v12 = vmax.f32 %v1816_v1, %v1823_v2 }
 0x1e0   : > { %1759 = vst.msk [vmem:[%s2992_s7 + $0x1c] sm:$0xf] %vm1751_vm9, %v2179_v52 }
 0x1e1   : > { %v1784_v10 = vadd.f32 %v1783_v42, %v1782_v7  ;;  %v1672_v16 = vpop.f32.mrb[8].mxu1  ;;  %v1826_v14 = vmax.f32 %v1818_v9, %v1825_v4 }
 0x1e2   : > { %v1673_v18 = vadd.f32 %v2986_v34, %v1672_v16  ;;  %v1674_v40 = vpop.f32.mrb[9].mxu1 }
 0x1e3   : > { %v1786_v19 = vadd.f32 %v1785_v17, %v1784_v10  ;;  %v1675_v41 = vpop.f32.mrb[10].mxu1 }
 0x1e4   : > { %v2184_v48 = vpack.c.bf16 %v1673_v18, %v1673_v18  ;;  %v1827_v23 = vsel %vm1360_vm2, %v1673_v18, -inf  ;;  %v1676_v57 = vadd.f32 %v2986_v34, %v1675_v41  ;;  %v1677_v5 = vpop.f32.mrb[11].mxu1  ;;  %v1791_v13 = vsel %vm1360_vm2, %v1673_v18, 0.0 }
 0x1e5   : > { %v1788_v61 = vadd.f32 %v1787_v22, %v1786_v19  ;;  %v1828_v24 = vmax.f32 %v3035_v33, %v1827_v23 }
 0x1e6   : > { %1764 = vst.msk [vmem:[%s2992_s7 + $0x30] sm:$0xf] %vm1751_vm9, %v2184_v48  ;;  %v2185_v21 = vpack.c.bf16 %v1676_v57, %v1676_v57  ;;  %v1829_v27 = vsel %vm1360_vm2, %v1676_v57, -inf  ;;  %v1793_v53 = vsel %vm1360_vm2, %v1676_v57, 0.0 }
 0x1e7   : > { %v1790_v28 = vadd.f32 %v1789_v15, %v1788_v61  ;;  %v1830_v8 = vmax.f32 %v1822_v37, %v1829_v27 }
 0x1e8   : > { %1765 = vst.msk [vmem:[%s2992_s7 + $0x34] sm:$0xf] %vm1751_vm9, %v2185_v21 }
 0x1e9   : > { %v1792_v0 = vadd.f32 %v1791_v13, %v1790_v28  ;;  %v1835_v47 = vmax.f32 %v1828_v24, %v1830_v8 }
 0x1eb   : > { %v1794_v20 = vadd.f32 %v1793_v53, %v1792_v0 }
 0x1ee   : > { %v1680_v58 = vpop.f32.mrb[12].mxu1 }
 0x1ef   : > { %v1681_v29 = vadd.f32 %v2986_v34, %v1680_v58  ;;  %v1682_v26 = vpop.f32.mrb[13].mxu1 }
 0x1f0   : > { %v1683_v31 = vpop.f32.mrb[14].mxu1 }
 0x1f1   : > { %v2186_v32 = vpack.c.bf16 %v1681_v29, %v1681_v29  ;;  %v1795_v33 = vsel %vm1360_vm2, %v1681_v29, 0.0  ;;  %v1831_v35 = vsel %vm1360_vm2, %v1681_v29, -inf  ;;  %v1684_v37 = vadd.f32 %v2986_v34, %v1683_v31  ;;  %v1685_v38 = vpop.f32.mrb[15].mxu1 }
 0x1f2   : > { %v1796_v39 = vadd.f32 %v1795_v33, %v1794_v20  ;;  %v1832_v43 = vmax.f32 %v1824_v12, %v1831_v35 }
 0x1f3   : > { %1766 = vst.msk [vmem:[%s2992_s7 + $0x38] sm:$0xf] %vm1751_vm9, %v2186_v32  ;;  %v2187_v11 = vpack.c.bf16 %v1684_v37, %v1684_v37  ;;  %v1797_v44 = vsel %vm1360_vm2, %v1684_v37, 0.0  ;;  %v1833_v25 = vsel %vm1360_vm2, %v1684_v37, -inf }
 0x1f4   : > { %v1798_v45 = vadd.f32 %v1797_v44, %v1796_v39  ;;  %v1834_v49 = vmax.f32 %v1826_v14, %v1833_v25 }
 0x1f5   : > { %1767 = vst.msk [vmem:[%s2992_s7 + $0x3c] sm:$0xf] %vm1751_vm9, %v2187_v11 }
 0x1f6   : > { %v1799_v50 = vrot.slane %v1798_v45, 4  ;;  %v1836_v46 = vmax.f32 %v1832_v43, %v1834_v49 }
 0x1f8   : > { %v1800_v34 = vadd.f32 %v1799_v50, %v1798_v45  ;;  %v1837_v51 = vmax.f32 %v1835_v47, %v1836_v46 }
 0x1fa   : > { %v1801_v54 = vrot.slane %v1800_v34, 2  ;;  %v1838_v55 = vrot.slane %v1837_v51, 4 }
 0x1fc   : > { %v1802_v56 = vadd.f32 %v1801_v54, %v1800_v34  ;;  %v1839_v59 = vmax.f32 %v1837_v51, %v1838_v55 }
 0x1fe   : > { %v1803_v60 = vrot.slane %v1802_v56, 1  ;;  %v1840_v62 = vrot.slane %v1839_v59, 2 }
 0x200   : > { %v1804_v63 = vadd.f32 %v1803_v60, %v1802_v56  ;;  %v1841_v30 = vmax.f32 %v1839_v59, %v1840_v62 }
 0x202   : > { %1806 = vst.msk [vmem:[%s611_s28] sm:$0x1] %vm1805_vm10, %v1804_v63  ;;  %v1842_v36 = vrot.slane %v1841_v30, 1 }
 0x204   : > { %v1843_v1 = vmax.f32 %v1841_v30, %v1842_v36 }
 0x206   : > { %1844 = vst.msk [vmem:[%s618_s21] sm:$0x1] %vm1805_vm10, %v1843_v1 }
 0x207 PF: > { %s16_s24 = sadd.s32 1, %s2385_s24   ;;  %s3124_s18 = smov %s2365_s19 }
 0x208   : > { %p13_p13 = scmp.ge.s32.totalorder %s16_s24, 6   ;;  %s3125_s19 = smov %s2476_s6 }
 0x209   : > { %s3126_s20 = smov %s2377_s22  ;;  %s3127_s21 = smov %s2381_s23 }
 0x20a   : > { %s3128_s22 = smov %s3131_s25  ;;  %s3129_s23 = smov %s3135_s26 }
 0x20b   :  { %15 = sbr.rel (!%p13_p13) target bundleno = 4 (0x4), region = 134 }

// kernel: basic_block1_forward.6
= control target key start
LH: loop header
LB: loop body
LE: loop exit
PB: predicated region body
PF: predicated region fallthrough
CT: control target
= control target key end

     0   :  { %s1142_s9 = smov 0   ;;  %s1144_s10 = smov 0   ;;  %s1421_s0 = inlined_call_operand.vmem [shape: bf16[2,16,16,16], index: 0, kind: input, shape index: {}]   ;;  %s1422_s1 = inlined_call_operand.vmem [shape: f32[2,1,16], index: 1, kind: input, shape index: {}]   ;;  %s1423_s2 = inlined_call_operand.vmem [shape: bf16[2,2,16,16], index: 2, kind: output, shape index: {}]  }
   0x1   :  { %s1146_s11 = smov 0   ;;  %s1148_s12 = smov 0  }
   0x2   :  { %s1150_s13 = smov 0   ;;  %s1152_s14 = smov 0  }
   0x3   :  { %s1154_s15 = smov 0  }
   0x4 LB: > { %s21_s16 = sadd.s32 1, %s1115_s13  ;;  %s24_s17 = sadd.s32 1, %s1119_s14  ;;  %s1123_s15 = sphi %s1154_s15, %s12_s15   ;;  %s1119_s14 = sphi %s1152_s14, %s1430_s14   ;;  %s1115_s13 = sphi %s1150_s13, %s1429_s13   ;;  %s1111_s12 = sphi %s1148_s12, %s1428_s12   ;;  %s1107_s11 = sphi %s1146_s11, %s1427_s11   ;;  %s1103_s10 = sphi %s1144_s10, %s1426_s10   ;;  %s1099_s9 = sphi %s1142_s9, %s1425_s9  }
   0x5   : > { %p22_p0 = scmp.ge.s32.totalorder %s21_s16, 2  ;;  %s955_s18 = sadd.s32 4294967295, %s1123_s15  }
   0x6   : > { %p97_p1 = scmp.ne.s32.totalorder %s1103_s10, %s1099_s9  ;;  %p98_p2 = scmp.eq.s32.totalorder %s955_s18, 3 }
   0x7   : > { %s1432_s16 = smov (%p22_p0, %s21_s16), 0  ;;  %s1434_s17 = smov (!%p22_p0, %s24_s17), %s1119_s14 }
   0x8   : > { %s83_s19 = ssub.s32 %s1115_s13, %s1432_s16  ;;  %p26_p3 = scmp.ge.s32.totalorder %s1434_s17, 2 }
   0x9   : > { %p959_p4 = scmp.ge.s32.totalorder %s1123_s15, 1  ;;  %p1188_p5 = por %p98_p2, %p97_p1 }
   0xa   : > { %p142_p6 = scmp.lt.s32.totalorder %s1123_s15, 5  ;;  %s1436_s17 = smov (%p26_p3, %s1434_s17), 0 }
   0xb   : > { %s82_s21 = ssub.s32 %s1119_s14, %s1436_s17  ;;  %s87_s23 = sadd.s32 1, %s1103_s10 }
   0xc   : > { %p143_p7 = pnand %p959_p4, %p142_p6  ;;  %s84_s22 = sor.u32 %s83_s19, %s82_s21 }
   0xd   : > { %p85_p8 = scmp.eq.s32.totalorder %s84_s22, 0  ;;  %s961_s25 = sshll.u32 (!%p143_p7), %s1107_s11, 3  ;;  %vm240_vm0 = vcmask (!%p143_p7), 130048   ;;  %vm461_vm1 = vcmask (!%p143_p7), 130112   ;;  %vm526_vm2 = vcmask (!%p143_p7), 1041409   ;;  %vm528_vm3 = vcmask (!%p143_p7), 1042434  }
   0xe   : > { %146 = sbr.rel (%p143_p7) target bundleno = 256 (0x100), region = 28  ;;  %p172_p9 = scmp.lt.s32.totalorder (!%p143_p7), %s1111_s12, 1  ;;  %vm530_vm4 = vcmask (!%p143_p7), 1043459   ;;  %vm532_vm5 = vcmask (!%p143_p7), 1044484   ;;  %vm534_vm6 = vcmask (!%p143_p7), 1045509   ;;  %vm536_vm7 = vcmask (!%p143_p7), 1046534  }
   0xf   : > { %s1199_s24 = scalar_select %p85_p8, %s1103_s10, %s87_s23  }
  0x10   : > { %p174_p10 = scmp.lt.s32.totalorder (!%p143_p7), %s961_s25, 15  ;;  %vm538_vm8 = vcmask (!%p143_p7), 1047559   ;;  %vm542_vm9 = vcmask (!%p143_p7), 125952   ;;  %s168_s18 = sand.u32 (!%p143_p7), 1, %s1099_s9  }
  0x11   : > { %s960_s19 = sshll.u32 (!%p143_p7), %s168_s18, 3 }
  0x12   : > { %s170_s9 = scalar_lea.vmem (!%p143_p7), [#allocation2], %s960_s19 }
  0x15   : > { %s173_s26 = scalar_select %p172_p9, %s1111_s12, 1 }
  0x16   : > { %s1438_s25 = smov (!%p174_p10, %s961_s25), 15  ;;  %s968_s21 = sshll.u32 (%p1188_p5), %s1111_s12, 2 }
  0x17   : > { %s963_s27 = sshll.u32 %s173_s26, 5  ;;  %s962_s28 = sshll.u32 %s1438_s25, 1 }
  0x18   : > { %s184_s3 = scalar_lea.vmem %s1422_s1, %s173_s26  ;;  %s178_s4 = sadd.s32 %s963_s27, %s962_s28 }
  0x19   : > { %s964_s5 = sshll.u32 %s178_s4, 2  ;;  %v1212_v0 = vld [vmem:[%s184_s3] ss:$0 sm:$0xff]  ;;  %s827_s22 = sadd.s32 (%p1188_p5), %s1107_s11, %s968_s21 }
  0x1a   : > { %s1210_s8 = scalar_lea.vmem %s1421_s0, %s964_s5  ;;  %s969_s23 = sshll.u32 (%p1188_p5), %s827_s22, 2 }
  0x1b   : > { %v1004_v1 = vld [vmem:[%s1210_s8 + $0x8] sm:$0xff]   ;;  %v973_v2 = vld [vmem:[%s1210_s8] sm:$0xff]   ;;  %v1005_v3 = vld [vmem:[%s1210_s8 + $0x10] sm:$0xff]   ;;  %s829_s27 = scalar_lea.vmem (%p1188_p5), %s1423_s2, %s969_s23 }
  0x1c   : > { %v978_v4 = vunpack.c.l.bf16 %v1004_v1  ;;  %v974_v5 = vunpack.c.l.bf16 %v973_v2  ;;  %v979_v6 = vunpack.c.h.bf16 %v1004_v1  ;;  %v975_v7 = vunpack.c.h.bf16 %v973_v2  ;;  %v1006_v14 = vld [vmem:[%s1210_s8 + $0x18] sm:$0xff]   ;;  %v1007_v29 = vld [vmem:[%s1210_s8 + $0x20] sm:$0xff]   ;;  %v1008_v38 = vld [vmem:[%s1210_s8 + $0x28] sm:$0xff]  }
  0x1d   : > { %v983_v8 = vunpack.c.h.bf16 %v1005_v3  ;;  %v982_v9 = vunpack.c.l.bf16 %v1005_v3  ;;  %v987_v17 = vunpack.c.h.bf16 %v1006_v14  ;;  %v986_v18 = vunpack.c.l.bf16 %v1006_v14  ;;  %v1009_v47 = vld [vmem:[%s1210_s8 + $0x30] sm:$0xff]   ;;  %v1010_v56 = vld [vmem:[%s1210_s8 + $0x38] sm:$0xff]  }
  0x1e   : > { %v226_v10 = vmul.f32 %v978_v4, %v1212_v0  ;;  %v224_v11 = vmul.f32 %v974_v5, %v1212_v0  ;;  %v227_v12 = vmul.f32 %v979_v6, %v1212_v0  ;;  %v225_v13 = vmul.f32 %v975_v7, %v1212_v0 }
  0x1f   : > { %v229_v21 = vmul.f32 %v983_v8, %v1212_v0  ;;  %v228_v22 = vmul.f32 %v982_v9, %v1212_v0  ;;  %v231_v25 = vmul.f32 %v987_v17, %v1212_v0  ;;  %v230_v26 = vmul.f32 %v986_v18, %v1212_v0 }
  0x20   : > { %v247_v15 = vsel %vm240_vm0, %v226_v10, 0.0  ;;  %v241_v16 = vsel %vm240_vm0, %v224_v11, 0.0  ;;  %v250_v19 = vsel %vm240_vm0, %v227_v12, 0.0  ;;  %v244_v20 = vsel %vm240_vm0, %v225_v13, 0.0 }
  0x21   : > { %248 = vadd.xlane.f32.xlu1 %v247_v15  ;;  %242 = vadd.xlane.f32.xlu0 %v241_v16  ;;  %v256_v23 = vsel %vm240_vm0, %v229_v21, 0.0  ;;  %v253_v24 = vsel %vm240_vm0, %v228_v22, 0.0  ;;  %v262_v27 = vsel %vm240_vm0, %v231_v25, 0.0  ;;  %v259_v28 = vsel %vm240_vm0, %v230_v26, 0.0 }
  0x22   : > { %v547_v30 = vsel %vm240_vm0, %v225_v13, -inf  ;;  %v544_v31 = vsel %vm240_vm0, %v224_v11, -inf  ;;  %v991_v32 = vunpack.c.h.bf16 %v1007_v29  ;;  %v990_v33 = vunpack.c.l.bf16 %v1007_v29 }
  0x23   : > { %v553_v34 = vsel %vm240_vm0, %v227_v12, -inf  ;;  %v550_v35 = vsel %vm240_vm0, %v226_v10, -inf  ;;  %v995_v41 = vunpack.c.h.bf16 %v1008_v38  ;;  %v994_v42 = vunpack.c.l.bf16 %v1008_v38 }
  0x24   : > { %v233_v36 = vmul.f32 %v991_v32, %v1212_v0  ;;  %v232_v37 = vmul.f32 %v990_v33, %v1212_v0  ;;  %v559_v43 = vsel %vm240_vm0, %v229_v21, -inf  ;;  %v556_v44 = vsel %vm240_vm0, %v228_v22, -inf }
  0x25   : > { %251 = vadd.xlane.f32.xlu1 %v250_v19  ;;  %245 = vadd.xlane.f32.xlu0 %v244_v20  ;;  %v235_v45 = vmul.f32 %v995_v41, %v1212_v0  ;;  %v234_v46 = vmul.f32 %v994_v42, %v1212_v0  ;;  %v999_v50 = vunpack.c.h.bf16 %v1009_v47  ;;  %v998_v51 = vunpack.c.l.bf16 %v1009_v47 }
  0x26   : > { %v268_v39 = vsel %vm240_vm0, %v233_v36, 0.0  ;;  %v265_v40 = vsel %vm240_vm0, %v232_v37, 0.0  ;;  %v565_v52 = vsel %vm240_vm0, %v231_v25, -inf  ;;  %v562_v53 = vsel %vm240_vm0, %v230_v26, -inf }
  0x27   : > { %v274_v48 = vsel %vm240_vm0, %v235_v45, 0.0  ;;  %v271_v49 = vsel %vm240_vm0, %v234_v46, 0.0  ;;  %v237_v54 = vmul.f32 %v999_v50, %v1212_v0  ;;  %v236_v55 = vmul.f32 %v998_v51, %v1212_v0 }
  0x28   : > { %v1003_v59 = vunpack.c.h.bf16 %v1010_v56  ;;  %v1002_v60 = vunpack.c.l.bf16 %v1010_v56  ;;  %v571_v61 = vsel %vm240_vm0, %v233_v36, -inf  ;;  %v568_v62 = vsel %vm240_vm0, %v232_v37, -inf }
  0x29   : > { %257 = vadd.xlane.f32.xlu1 %v256_v23  ;;  %254 = vadd.xlane.f32.xlu0 %v253_v24  ;;  %v280_v57 = vsel %vm240_vm0, %v237_v54, 0.0  ;;  %v277_v58 = vsel %vm240_vm0, %v236_v55, 0.0  ;;  %v577_v4 = vsel %vm240_vm0, %v235_v45, -inf  ;;  %v574_v5 = vsel %vm240_vm0, %v234_v46, -inf }
  0x2a   : > { %v239_v63 = vmul.f32 %v1003_v59, %v1212_v0  ;;  %v238_v1 = vmul.f32 %v1002_v60, %v1212_v0  ;;  %v583_v6 = vsel %vm240_vm0, %v237_v54, -inf  ;;  %v580_v7 = vsel %vm240_vm0, %v236_v55, -inf }
  0x2b   : > { %v1125_v17 = vmov 839922192   ;;  %v325_v19 = vlaneseq  ;;  %v1126_v20 = vmov 1985246804  }
  0x2c   : > { %v286_v2 = vsel %vm240_vm0, %v239_v63, 0.0  ;;  %v283_v3 = vsel %vm240_vm0, %v238_v1, 0.0  ;;  %v589_v0 = vsel %vm240_vm0, %v239_v63, -inf  ;;  %v586_v8 = vsel %vm240_vm0, %v238_v1, -inf }
  0x2d   : > { %263 = vadd.xlane.f32.xlu1 %v262_v27  ;;  %260 = vadd.xlane.f32.xlu0 %v259_v28  ;;  %v323_v18 = vunpack.c.l.s4 %v1125_v17  ;;  %v330_v21 = vunpack.c.l.s4 %v1126_v20  ;;  %v326_v25 = vshrl.u32 %v325_v19, 7  ;;  %v451_v37 = vand.u32 127, %v325_v19 }
  0x2f   : > { %v324_v24 = vunpack.c.0.s8 %v323_v18  ;;  %v331_v26 = vunpack.c.0.s8 %v330_v21  ;;  %v456_v45 = vadd.s32 4294967288, %v451_v37  ;;  %v1280_v55 = vsub.s32 %v451_v37, %v326_v25 }
  0x31   : > { %548 = vmax.xlane.f32.xlu1 %v547_v30  ;;  %545 = vmax.xlane.f32.xlu0 %v544_v31  ;;  %v1272_v36 = vsub.s32 %v331_v26, %v326_v25  ;;  %v1282_v56 = vsub.s32 %v456_v45, %v326_v25 }
  0x35   : > { %554 = vmax.xlane.f32.xlu1 %v553_v34  ;;  %551 = vmax.xlane.f32.xlu0 %v550_v35  ;;  %v1270_v35 = vsub.s32 %v324_v24, %v326_v25 }
  0x39   : > { %269 = vadd.xlane.f32.xlu1 %v268_v39  ;;  %266 = vadd.xlane.f32.xlu0 %v265_v40 }
  0x3d   : > { %560 = vmax.xlane.f32.xlu1 %v559_v43  ;;  %557 = vmax.xlane.f32.xlu0 %v556_v44 }
  0x41   : > { %275 = vadd.xlane.f32.xlu1 %v274_v48  ;;  %272 = vadd.xlane.f32.xlu0 %v271_v49 }
  0x45   : > { %566 = vmax.xlane.f32.xlu1 %v565_v52  ;;  %563 = vmax.xlane.f32.xlu0 %v562_v53 }
  0x49   : > { %281 = vadd.xlane.f32.xlu1 %v280_v57  ;;  %278 = vadd.xlane.f32.xlu0 %v277_v58 }
  0x4d   : > { %572 = vmax.xlane.f32.xlu1 %v571_v61  ;;  %569 = vmax.xlane.f32.xlu0 %v568_v62 }
  0x51   : > { %287 = vadd.xlane.f32.xlu1 %v286_v2  ;;  %284 = vadd.xlane.f32.xlu0 %v283_v3 }
  0x55   : > { %578 = vmax.xlane.f32.xlu1 %v577_v4  ;;  %575 = vmax.xlane.f32.xlu0 %v574_v5 }
  0x59   : > { %584 = vmax.xlane.f32.xlu1 %v583_v6  ;;  %581 = vmax.xlane.f32.xlu0 %v580_v7 }
  0x5d   : > { %590 = vmax.xlane.f32.xlu1 %v589_v0  ;;  %587 = vmax.xlane.f32.xlu0 %v586_v8 }
  0xae   : > { %v249_v9 = vpop.xlane.xlu1 %248  ;;  %v243_v10 = vpop.xlane.xlu0 %242 }
  0xaf   : > { %v292_v31 = vmul.f32 0.0625, %v249_v9  ;;  %v290_v34 = vmul.f32 0.0625, %v243_v10 }
  0xb2   : > { %v252_v11 = vpop.xlane.xlu1 %251  ;;  %v246_v12 = vpop.xlane.xlu0 %245 }
  0xb3   : > { %v293_v27 = vmul.f32 0.0625, %v252_v11  ;;  %v291_v28 = vmul.f32 0.0625, %v246_v12 }
  0xb5   : > { %v307_v38 = vpack.c.bf16 %v293_v27, %v292_v31  ;;  %v306_v39 = vpack.c.bf16 %v291_v28, %v290_v34 }
  0xb6   : > { %v258_v13 = vpop.xlane.xlu1 %257  ;;  %v255_v14 = vpop.xlane.xlu0 %254 }
  0xb7   : > { %v295_v32 = vmul.f32 0.0625, %v258_v13  ;;  %v294_v33 = vmul.f32 0.0625, %v255_v14  ;;  %v342_v46 = vrot.slane %v307_v38, %v1270_v35  ;;  %v349_v47 = vrot.slane %v307_v38, %v1272_v36 }
  0xb8   : > { %v328_v48 = vrot.slane %v306_v39, %v1270_v35  ;;  %v335_v49 = vrot.slane %v306_v39, %v1272_v36 }
  0xb9   : > { %v308_v42 = vpack.c.bf16 %v295_v32, %v294_v33  ;;  %v436_v57 = vunpack.c.l.b16 %v342_v46  ;;  %v437_v58 = vunpack.c.l.b16 %v349_v47 }
  0xba   : > { %v264_v15 = vpop.xlane.xlu1 %263  ;;  %v261_v16 = vpop.xlane.xlu0 %260  ;;  %v434_v59 = vunpack.c.l.b16 %v328_v48  ;;  %v435_v60 = vunpack.c.l.b16 %v335_v49 }
  0xbb   : > { %v297_v43 = vmul.f32 0.0625, %v264_v15  ;;  %v296_v44 = vmul.f32 0.0625, %v261_v16  ;;  %v356_v52 = vrot.slane %v308_v42, %v1270_v35  ;;  %v363_v53 = vrot.slane %v308_v42, %v1272_v36 }
  0xbc   : > { %v466_v7 = vrot.slane %v436_v57, %v1280_v55  ;;  %v470_v0 = vrot.slane %v437_v58, %v1282_v56  ;;  %v455_v9 = vrot.slane %v434_v59, %v1280_v55  ;;  %v460_v10 = vrot.slane %v435_v60, %v1282_v56 }
  0xbd   : > { %v309_v54 = vpack.c.bf16 %v297_v43, %v296_v44  ;;  %v438_v63 = vunpack.c.l.b16 %v356_v52  ;;  %v439_v1 = vunpack.c.l.b16 %v363_v53 }
  0xbe   : > { %v549_v22 = vpop.xlane.xlu1 %548  ;;  %v546_v23 = vpop.xlane.xlu0 %545  ;;  %v471_v24 = vsel %vm461_vm1, %v470_v0, %v466_v7  ;;  %v462_v25 = vsel %vm461_vm1, %v460_v10, %v455_v9 }
  0xbf   : > { %v592_v2 = vpack.c.bf16 %v549_v22, %v546_v23  ;;  %v370_v3 = vrot.slane %v309_v54, %v1270_v35  ;;  %v377_v4 = vrot.slane %v309_v54, %v1272_v36  ;;  %v475_v15 = vrot.slane %v438_v63, %v1280_v55 }
  0xc0   : > { %v479_v16 = vrot.slane %v439_v1, %v1282_v56  ;;  %v527_v44 = vsel %vm526_vm2, %v471_v24, %v462_v25 }
  0xc1   : > { %v614_v17 = vrot.slane %v592_v2, %v1270_v35  ;;  %v440_v18 = vunpack.c.l.b16 %v370_v3  ;;  %v441_v19 = vunpack.c.l.b16 %v377_v4  ;;  %v621_v26 = vrot.slane %v592_v2, %v1272_v36 }
  0xc2   : > { %v555_v29 = vpop.xlane.xlu1 %554  ;;  %v552_v30 = vpop.xlane.xlu0 %551 }
  0xc3   : > { %v593_v8 = vpack.c.bf16 %v555_v29, %v552_v30  ;;  %v480_v30 = vsel %vm461_vm1, %v479_v16, %v475_v15  ;;  %v1299_v31 = vunpack.c.l.b16 %v614_v17  ;;  %v484_v34 = vrot.slane %v440_v18, %v1280_v55 }
  0xc4   : > { %v488_v37 = vrot.slane %v441_v19, %v1282_v56  ;;  %v1307_v45 = vunpack.c.l.b16 %v621_v26 }
  0xc5   : > { %v628_v21 = vrot.slane %v593_v8, %v1270_v35  ;;  %v635_v22 = vrot.slane %v593_v8, %v1272_v36 }
  0xc6   : > { %v270_v40 = vpop.xlane.xlu1 %269  ;;  %v267_v41 = vpop.xlane.xlu0 %266  ;;  %v489_v54 = vsel %vm461_vm1, %v488_v37, %v484_v34  ;;  %v743_v1 = vrot.slane %v1307_v45, %v1282_v56 }
  0xc7   : > { %v299_v5 = vmul.f32 0.0625, %v270_v40  ;;  %v298_v6 = vmul.f32 0.0625, %v267_v41  ;;  %v722_v40 = vunpack.c.l.b16 %v628_v21  ;;  %v723_v41 = vunpack.c.l.b16 %v635_v22 }
  0xc9   : > { %v310_v20 = vpack.c.bf16 %v299_v5, %v298_v6  ;;  %v748_v60 = vrot.slane %v722_v40, %v1280_v55 }
  0xca   : > { %v561_v50 = vpop.xlane.xlu1 %560  ;;  %v558_v51 = vpop.xlane.xlu0 %557 }
  0xcb   : > { %v594_v23 = vpack.c.bf16 %v561_v50, %v558_v51  ;;  %v384_v38 = vrot.slane %v310_v20, %v1270_v35  ;;  %v391_v39 = vrot.slane %v310_v20, %v1272_v36  ;;  %v529_v50 = vsel %vm528_vm3, %v480_v30, %v527_v44 }
  0xcc   : > { %v739_v51 = vrot.slane %v1299_v31, %v1280_v55  ;;  %v531_v7 = vsel %vm530_vm4, %v489_v54, %v529_v50 }
  0xcd   : > { %v642_v42 = vrot.slane %v594_v23, %v1270_v35  ;;  %v442_v57 = vunpack.c.l.b16 %v384_v38  ;;  %v443_v58 = vunpack.c.l.b16 %v391_v39  ;;  %v649_v59 = vrot.slane %v594_v23, %v1272_v36 }
  0xce   : > { %v276_v61 = vpop.xlane.xlu1 %275  ;;  %v273_v62 = vpop.xlane.xlu0 %272 }
  0xcf   : > { %v301_v11 = vmul.f32 0.0625, %v276_v61  ;;  %v300_v12 = vmul.f32 0.0625, %v273_v62  ;;  %v752_v61 = vrot.slane %v723_v41, %v1282_v56  ;;  %v1320_v62 = vunpack.c.l.b16 %v642_v42 }
  0xd0   : > { %v493_v10 = vrot.slane %v442_v57, %v1280_v55 }
  0xd1   : > { %v311_v27 = vpack.c.bf16 %v301_v11, %v300_v12  ;;  %v497_v11 = vrot.slane %v443_v58, %v1282_v56  ;;  %v725_v12 = vunpack.c.l.b16 %v649_v59  ;;  %v757_v15 = vrot.slane %v1320_v62, %v1280_v55 }
  0xd2   : > { %v567_v13 = vpop.xlane.xlu1 %566  ;;  %v564_v14 = vpop.xlane.xlu0 %563 }
  0xd3   : > { %v398_v46 = vrot.slane %v311_v27, %v1270_v35  ;;  %v405_v47 = vrot.slane %v311_v27, %v1272_v36  ;;  %v595_v63 = vpack.c.bf16 %v567_v13, %v564_v14  ;;  %v1328_v14 = vsel %vm461_vm1, %v752_v61, %v748_v60 }
  0xd5   : > { %v444_v2 = vunpack.c.l.b16 %v398_v46  ;;  %v445_v3 = vunpack.c.l.b16 %v405_v47  ;;  %v656_v16 = vrot.slane %v595_v63, %v1270_v35  ;;  %v663_v17 = vrot.slane %v595_v63, %v1272_v36 }
  0xd6   : > { %v282_v28 = vpop.xlane.xlu1 %281  ;;  %v279_v29 = vpop.xlane.xlu0 %278 }
  0xd7   : > { %v303_v32 = vmul.f32 0.0625, %v282_v28  ;;  %v302_v33 = vmul.f32 0.0625, %v279_v29  ;;  %v502_v18 = vrot.slane %v444_v2, %v1280_v55  ;;  %v506_v19 = vrot.slane %v445_v3, %v1282_v56 }
  0xd8   : > { %v498_v28 = vsel %vm461_vm1, %v497_v11, %v493_v10  ;;  %v761_v29 = vrot.slane %v725_v12, %v1282_v56  ;;  %v727_v34 = vunpack.c.l.b16 %v663_v17  ;;  %v744_v17 = vsel %vm461_vm1, %v743_v1, %v739_v51 }
  0xd9   : > { %v312_v43 = vpack.c.bf16 %v303_v32, %v302_v33  ;;  %v726_v33 = vunpack.c.l.b16 %v656_v16  ;;  %v507_v39 = vsel %vm461_vm1, %v506_v19, %v502_v18  ;;  %v533_v46 = vsel %vm532_vm5, %v498_v28, %v531_v7 }
  0xda   : > { %v573_v48 = vpop.xlane.xlu1 %572  ;;  %v570_v49 = vpop.xlane.xlu0 %569  ;;  %v535_v57 = vsel %vm534_vm6, %v507_v39, %v533_v46  ;;  %v770_v61 = vrot.slane %v727_v34, %v1282_v56  ;;  %v762_v12 = vsel %vm461_vm1, %v761_v29, %v757_v15 }
  0xdb   : > { %v412_v52 = vrot.slane %v312_v43, %v1270_v35  ;;  %v419_v53 = vrot.slane %v312_v43, %v1272_v36  ;;  %v596_v4 = vpack.c.bf16 %v573_v48, %v570_v49  ;;  %v766_v58 = vrot.slane %v726_v33, %v1280_v55 }
  0xdd   : > { %v446_v0 = vunpack.c.l.b16 %v412_v52  ;;  %v447_v8 = vunpack.c.l.b16 %v419_v53  ;;  %v670_v20 = vrot.slane %v596_v4, %v1270_v35  ;;  %v677_v26 = vrot.slane %v596_v4, %v1272_v36 }
  0xde   : > { %v288_v5 = vpop.xlane.xlu1 %287  ;;  %v285_v6 = vpop.xlane.xlu0 %284  ;;  %v771_v18 = vsel %vm461_vm1, %v770_v61, %v766_v58 }
  0xdf   : > { %v305_v9 = vmul.f32 0.0625, %v288_v5  ;;  %v304_v13 = vmul.f32 0.0625, %v285_v6  ;;  %v511_v24 = vrot.slane %v446_v0, %v1280_v55  ;;  %v515_v25 = vrot.slane %v447_v8, %v1282_v56 }
  0xe0   : > { %v728_v40 = vunpack.c.l.b16 %v670_v20  ;;  %v729_v48 = vunpack.c.l.b16 %v677_v26  ;;  %v808_v20 = vsel %vm526_vm2, %v1328_v14, %v744_v17 }
  0xe1   : > { %v313_v21 = vpack.c.bf16 %v305_v9, %v304_v13  ;;  %v516_v47 = vsel %vm461_vm1, %v515_v25, %v511_v24  ;;  %v809_v31 = vsel %vm528_vm3, %v762_v12, %v808_v20 }
  0xe2   : > { %v579_v22 = vpop.xlane.xlu1 %578  ;;  %v576_v23 = vpop.xlane.xlu0 %575  ;;  %v537_v62 = vsel %vm536_vm7, %v516_v47, %v535_v57  ;;  %v775_v63 = vrot.slane %v728_v40, %v1280_v55  ;;  %v779_v5 = vrot.slane %v729_v48, %v1282_v56  ;;  %v810_v1 = vsel %vm530_vm4, %v771_v18, %v809_v31 }
  0xe3   : > { %v597_v27 = vpack.c.bf16 %v579_v22, %v576_v23  ;;  %v426_v30 = vrot.slane %v313_v21, %v1270_v35  ;;  %v433_v32 = vrot.slane %v313_v21, %v1272_v36 }
  0xe4   : > { %v780_v21 = vsel %vm461_vm1, %v779_v5, %v775_v63 }
  0xe5   : > { %v684_v37 = vrot.slane %v597_v27, %v1270_v35  ;;  %v691_v38 = vrot.slane %v597_v27, %v1272_v36  ;;  %v448_v41 = vunpack.c.l.b16 %v426_v30  ;;  %v449_v42 = vunpack.c.l.b16 %v433_v32 }
  0xe6   : > { %v585_v43 = vpop.xlane.xlu1 %584  ;;  %v582_v44 = vpop.xlane.xlu0 %581  ;;  %v811_v24 = vsel %vm532_vm5, %v780_v21, %v810_v1 }
  0xe7   : > { %v598_v49 = vpack.c.bf16 %v585_v43, %v582_v44  ;;  %v520_v50 = vrot.slane %v448_v41, %v1280_v55  ;;  %v524_v52 = vrot.slane %v449_v42, %v1282_v56  ;;  %v730_v53 = vunpack.c.l.b16 %v684_v37 }
  0xe8   : > { %v731_v54 = vunpack.c.l.b16 %v691_v38 }
  0xe9   : > { %v698_v59 = vrot.slane %v598_v49, %v1270_v35  ;;  %v705_v60 = vrot.slane %v598_v49, %v1272_v36  ;;  %v525_v2 = vsel %vm461_vm1, %v524_v52, %v520_v50  ;;  %v784_v9 = vrot.slane %v730_v53, %v1280_v55 }
  0xea   : > { %v591_v3 = vpop.xlane.xlu1 %590  ;;  %v588_v4 = vpop.xlane.xlu0 %587  ;;  %v539_v6 = vsel %vm538_vm8, %v525_v2, %v537_v62  ;;  %v788_v10 = vrot.slane %v731_v54, %v1282_v56 }
  0xeb   : > { %v732_v7 = vunpack.c.l.b16 %v698_v59  ;;  %v733_v0 = vunpack.c.l.b16 %v705_v60  ;;  %v540_v8 = vpack.c.b16 %v539_v6, %v539_v6  ;;  %v599_v11 = vpack.c.bf16 %v591_v3, %v588_v4 }
  0xec   : > { %v789_v45 = vsel %vm461_vm1, %v788_v10, %v784_v9 }
  0xed   : > { %v793_v13 = vrot.slane %v732_v7, %v1280_v55  ;;  %v797_v16 = vrot.slane %v733_v0, %v1282_v56  ;;  %543 = vst.msk [vmem:[%s170_s9] sm:$0xf] %vm542_vm9, %v540_v8  ;;  %v712_v19 = vrot.slane %v599_v11, %v1270_v35  ;;  %v719_v15 = vrot.slane %v599_v11, %v1272_v36 }
  0xee   : > { %v812_v14 = vsel %vm534_vm6, %v789_v45, %v811_v24 }
  0xef   : > { %v734_v22 = vunpack.c.l.b16 %v712_v19  ;;  %v735_v51 = vunpack.c.l.b16 %v719_v15  ;;  %v798_v23 = vsel %vm461_vm1, %v797_v16, %v793_v13 }
  0xf0   : > { %v813_v25 = vsel %vm536_vm7, %v798_v23, %v812_v14 }
  0xf1   : > { %v802_v35 = vrot.slane %v734_v22, %v1280_v55  ;;  %v806_v36 = vrot.slane %v735_v51, %v1282_v56  ;;  %825 = sbr.rel (!%p1188_p5) target bundleno = 256 (0x100), region = 32 }
  0xf3   : > { %v807_v26 = vsel %vm461_vm1, %v806_v36, %v802_v35 }
  0xf4   : > { %v814_v27 = vsel %vm538_vm8, %v807_v26, %v813_v25  ;;  %v845_v55 = vld [vmem:[%s170_s9] sm:$0xf] (%p1188_p5) }
  0xf5   : > { %v815_v28 = vpack.c.b16 %v814_v27, %v814_v27  ;;  %846 = vst [vmem:[%s829_s27] sm:$0xf] (%p1188_p5), %v845_v55 }
  0xf7   : > { %966 = vst.msk [vmem:[%s170_s9 + $0x4] sm:$0xf] %vm542_vm9, %v815_v28 }
  0xfe   : > { %v847_v56 = vld [vmem:[%s170_s9 + $0x4] sm:$0xf] }
  0xff   : > { %848 = vst [vmem:[%s829_s27 + $0x8] sm:$0xf] %v847_v56 }
 0x100 PF: > { %s12_s15 = sadd.s32 1, %s1123_s15   ;;  %s1425_s9 = smov %s1103_s10 }
 0x101   : > { %p9_p11 = scmp.ge.s32.totalorder %s12_s15, 6   ;;  %s1426_s10 = smov %s1199_s24 }
 0x102   : > { %s1427_s11 = smov %s1115_s13  ;;  %s1428_s12 = smov %s1119_s14 }
 0x103   : > { %s1429_s13 = smov %s1432_s16  ;;  %s1430_s14 = smov %s1436_s17 }
 0x104   :  { %11 = sbr.rel (!%p9_p11) target bundleno = 4 (0x4), region = 103 }

// kernel: basic_block1_forward.7
= control target key start
LH: loop header
LB: loop body
LE: loop exit
PB: predicated region body
PF: predicated region fallthrough
CT: control target
= control target key end

     0   :  { %s3401_s0 = inlined_call_operand.vmem [shape: bf16[2,16,16,16], index: 0, kind: input, shape index: {}]   ;;  %s3402_s1 = inlined_call_operand.vmem [shape: bf16[2,2,22,22], index: 1, kind: input, shape index: {}]   ;;  %s3403_s2 = inlined_call_operand.vmem [shape: f32[2,16,16,16], index: 2, kind: input, shape index: {}]   ;;  %s3404_s3 = inlined_call_operand.vmem [shape: f32[2,1,16], index: 3, kind: input, shape index: {}]   ;;  %s3405_s4 = inlined_call_operand.vmem [shape: f32[16,16], index: 4, kind: input, shape index: {}]   ;;  %s3406_s5 = inlined_call_operand.vmem [shape: f32[2,49], index: 5, kind: input, shape index: {}]   ;;  %s3407_s6 = inlined_call_operand.vmem [shape: f32[2,16,256], index: 6, kind: output, shape index: {}]  }
   0x1   :  { %3424 = sst [smem:[#allocation10_spill]] %s3402_s1 }
   0x2   :  { %3425 = sst [smem:[#allocation11_spill]] %s3406_s5 }
   0x3   :  { %11 = vsyncpa [#allocation3], 0  ;;  %s2565_s21 = smov 0   ;;  %s2567_s22 = smov 0  }
   0x4   :  { %s2569_s23 = smov 0   ;;  %s2571_s24 = smov 0  }
   0x5   :  { %s2573_s25 = smov 0   ;;  %s2575_s26 = smov 0  }
   0x6   :  { %s2577_s27 = smov 0  }
   0x7 LB: > { %3426 = sst [smem:[#allocation6_spill]] %s2513_s25  ;;  %s2086_s28 = sadd.s32 4294967295, %s2521_s27   ;;  %s2521_s27 = sphi %s2577_s27, %s17_s27   ;;  %s2517_s26 = sphi %s2575_s26, %s3446_s26   ;;  %s2513_s25 = sphi %s2573_s25, %s3445_s25   ;;  %s2509_s24 = sphi %s2571_s24, %s3444_s24   ;;  %s2505_s23 = sphi %s2569_s23, %s3443_s23   ;;  %s2501_s22 = sphi %s2567_s22, %s3448_s22   ;;  %s2497_s21 = sphi %s2565_s21, %s3447_s21  }
   0x8   : > { %3427 = sst [smem:[#allocation7_spill]] %s2517_s26  ;;  %s26_s29 = sadd.s32 1, %s2513_s25 }
   0x9   : > { %p27_p0 = scmp.ge.s32.totalorder %s26_s29, 2  ;;  %s29_s30 = sadd.s32 1, %s2517_s26 }
   0xa   : > { %s188_s7 = sadd.s32 1, %s2501_s22  ;;  %p198_p1 = scmp.ne.s32.totalorder %s2501_s22, %s2497_s21 }
   0xb   : > { %s3450_s29 = smov (%p27_p0, %s26_s29), 0  ;;  %s3452_s30 = smov (!%p27_p0, %s29_s30), %s2517_s26 }
   0xc   : > { %3428 = sst [smem:[#allocation8_spill]] %s3450_s29  ;;  %s184_s8 = ssub.s32 %s2513_s25, %s3450_s29 }
   0xd   : > { %p199_p2 = scmp.eq.s32.totalorder %s2086_s28, 3  ;;  %p31_p3 = scmp.ge.s32.totalorder %s3452_s30, 2 }
   0xe   : > { %p2088_p4 = scmp.ge.s32.totalorder %s2521_s27, 1  ;;  %p212_p6 = scmp.lt.s32.totalorder %s2521_s27, 5 }
   0xf   : > { %p2612_p5 = por %p199_p2, %p198_p1  ;;  %s3454_s30 = smov (%p31_p3, %s3452_s30), 0 }
  0x10   : > { %3430 = sst [smem:[#allocation9_spill]] %s3454_s30  ;;  %p2619_p7 = pnand %p2088_p4, %p212_p6 }
  0x11   : > { %s183_s11 = ssub.s32 %s2517_s26, %s3454_s30  ;;  %p2625_p8 = scmp.eq.s32.totalorder %s2086_s28, 0 }
  0x12   : > { %s185_s13 = sor.u32 %s184_s8, %s183_s11  ;;  %p2375_p9 = pneg %p2619_p7 }
  0x13   : > { %p186_p10 = scmp.eq.s32.totalorder %s185_s13, 0  ;;  %s3433_s5 = sld [smem:[#allocation11_spill]] }
  0x14   : > { %p2376_p11 = pnand %p2625_p8, %p2375_p9 }
  0x15   : > { %s2637_s17 = scalar_select %p186_p10, %s2501_s22, %s188_s7  }
  0x16   : > { %p2450_p13 = pneg %p2376_p11 }
  0x19   : > { %s228_s16 = sshll.u32 %s3433_s5, 4  ;;  %s229_s16 = int_to_ptr.vmem [resolvable:$true] %s228_s16 }
  0x1a   : > { %s2448_s18 = scalar_lea.vmem %s229_s16, 32  ;;  %p2456_p2 = scmp.lt.s32.totalorder %s229_s16, %s229_s16 }
  0x1b   : > { %p2449_p12 = scmp.ne.s32.totalorder %s229_s16, %s2448_s18  ;;  %p2457_p3 = scmp.lt.s32.totalorder %s2448_s18, %s2448_s18 }
  0x1d   : > { %p2451_p0 = pnand %p2450_p13, %p2449_p12  ;;  %p2458_p4 = por %p2457_p3, %p2456_p2 }
  0x1f   : > { %p2452_p1 = pneg %p2451_p0 }
  0x21   : > { %p2459_p6 = pnand %p2458_p4, %p2452_p1 }
  0x23   : > { %2462 = shalt.err (!%p2459_p6)
}
  0x24   : > { %s2523_s19 = smov [#allocation2]   ;;  %283 = sbr.rel (%p2619_p7) target bundleno = 812 (0x32c), region = 44 }
  0x25   : > { %2378 = dma.vmem_to_smem (!%p2376_p11), %s229_s16, 32, %s2523_s19, [#allocation3]  }
  0x2b   : > { %2492 = dma.done.wait (%p2625_p8), [#allocation3], 32  }
  0x2c   : > { %2494 = vsyncadd (%p2625_p8), [#allocation3], 4294967264 }
  0x2d   : > { %289 = sfence }
  0x2e   : > { %s2646_s20 = sshll.u32 %s2505_s23, 3  ;;  %p337_p9 = scmp.lt.s32.totalorder %s2509_s24, 1  ;;  %vm488_vm0 = vcmask 1046528   ;;  %vm578_vm1 = vcmask 1045504   ;;  %vm668_vm2 = vcmask 1044480   ;;  %vm758_vm3 = vcmask 1043456  }
  0x2f   : > { %s422_s28 = sshra.s32 %s2646_s20, 3  ;;  %s2106_s7 = sld [smem:[#allocation2 + $0x1]]  ;;  %vm848_vm4 = vcmask 1042432   ;;  %vm938_vm5 = vcmask 1041408   ;;  %vm1775_vm6 = vcmask 130048  }
  0x30   : > { %s2651_s8 = scalar_select %p337_p9, %s2509_s24, 1  ;;  %vm3306_vm7 = vmpackc.low %vm1775_vm6, %vm1775_vm6 }
  0x31   : > { %s2105_s10 = sshll.u32 %s422_s28, 2  ;;  %s2108_s13 = sld [smem:[#allocation2 + $0x3]] }
  0x32   : > { %s2370_s11 = smul.u32 24, %s2651_s8  ;;  %s2107_s14 = sld [smem:[#allocation2 + $0x2]] }
  0x33   : > { %s3434_s1 = sld [smem:[#allocation10_spill]]  ;;  %s2109_s19 = sld [smem:[#allocation2 + $0x4]] }
  0x34   : > { %s2110_s5 = sld [smem:[#allocation2 + $0x5]]  ;;  %s2111_s30 = sld [smem:[#allocation2 + $0x6]] }
  0x35   : > { %v435_v1 = vstv %s2106_s7  ;;  %s2113_s28 = sld [smem:[#allocation2 + $0x8]]  ;;  %s2667_s15 = sld [smem:[#allocation2 + $0xb]] }
  0x36   : > { %s2669_s12 = sld [smem:[#allocation2 + $0xc]]  ;;  %s3411_s7 = smov 127  }
  0x37   : > { %v451_v3 = vstv %s2108_s13  ;;  %s2676_s13 = sld [smem:[#allocation2 + $0xd]]  ;;  %s2940_s29 = sld [smem:[#allocation2 + $0x86]] }
  0x38   : > { %v443_v7 = vstv %s2107_s14  ;;  %s2681_s14 = sld [smem:[#allocation2 + $0xf]]  ;;  %s2942_s26 = sld [smem:[#allocation2 + $0x8b]] }
  0x39   : > { %s351_s16 = scalar_lea.vmem %s3434_s1, %s2370_s11  ;;  %s2114_s11 = sld [smem:[#allocation2 + $0x9]]  ;;  %v459_v9 = vstv %s2109_s19 }
  0x3a   : > { %s2657_s18 = scalar_lea.vmem %s351_s16, %s2105_s10  ;;  %s2665_s10 = sld [smem:[#allocation2 + $0xa]]  ;;  %v467_v12 = vstv %s2110_s5  ;;  %v475_v13 = vstv %s2111_s30 }
  0x3b   : > { %v426_v0 = vld [vmem:[%s2657_s18] sm:$0xf]  ;;  %v427_v4 = vld [vmem:[%s2657_s18 + $0x4] sm:$0x7]  ;;  %s3409_s16 = smov 125   ;;  %v495_v16 = vstv %s2113_s28  ;;  %s3419_s19 = smov 126   ;;  %v534_v27 = vstv %s2667_s15 }
  0x3c   : > { %v2660_v2 = vunpack.c.l.bf16 %v426_v0  ;;  %v2674_v10 = vunpack.c.l.bf16 %v427_v4  ;;  %v547_v28 = vstv %s2669_s12  ;;  %s2696_s5 = sld [smem:[#allocation2 + $0x11]]  ;;  %s2698_s30 = sld [smem:[#allocation2 + $0x12]] }
  0x3d   : > { %s3415_s28 = smov 123   ;;  %v560_v35 = vstv %s2676_s13  ;;  %s2716_s15 = sld [smem:[#allocation2 + $0x14]] }
  0x3e   : > { %v436_v5 = vmul.f32 %v435_v1, %v2660_v2  ;;  %v452_v6 = vmul.f32 %v451_v3, %v2660_v2  ;;  %v444_v8 = vmul.f32 %v443_v7, %v2660_v2  ;;  %v460_v11 = vmul.f32 %v459_v9, %v2660_v2  ;;  %s2718_s12 = sld [smem:[#allocation2 + $0x16]]  ;;  %s3435_s13 = smov 127  }
  0x3f   : > { %v468_v14 = vmul.f32 %v467_v12, %v2660_v2  ;;  %v476_v15 = vmul.f32 %v475_v13, %v2660_v2  ;;  %v496_v17 = vmul.f32 %v495_v16, %v2660_v2  ;;  %v497_v18 = vmul.f32 %v495_v16, %v2674_v10  ;;  %s2935_s1 = sld [smem:[#allocation2 + $0x8a]]  ;;  %s3440_s25 = smov 126  }
  0x40   : > { %438 = vrot.lane.b32.xlu0 %v436_v5, %s3411_s7  ;;  %454 = vrot.lane.b32.xlu1 %v452_v6, %s3409_s16  ;;  %s2683_s16 = sld [smem:[#allocation2 + $0x10]]  ;;  %s3417_s7 = smov 124   ;;  %v508_v19 = vstv %s2114_s11  ;;  %v521_v20 = vstv %s2665_s10  ;;  %v535_v33 = vmul.f32 %v534_v27, %v2660_v2  ;;  %v536_v34 = vmul.f32 %v534_v27, %v2674_v10 }
  0x41   : > { %v509_v21 = vmul.f32 %v508_v19, %v2660_v2  ;;  %v510_v22 = vmul.f32 %v508_v19, %v2674_v10  ;;  %v522_v23 = vmul.f32 %v521_v20, %v2660_v2  ;;  %v523_v24 = vmul.f32 %v521_v20, %v2674_v10  ;;  %s3413_s11 = smov 122   ;;  %s2705_s10 = sld [smem:[#allocation2 + $0x13]] }
  0x42   : > { %v500_v25 = vrot.slane %v496_v17, 1  ;;  %v501_v26 = vrot.slane %v497_v18, 1  ;;  %v548_v38 = vmul.f32 %v547_v28, %v2660_v2  ;;  %v549_v39 = vmul.f32 %v547_v28, %v2674_v10  ;;  %p339_p7 = scmp.lt.s32.totalorder %s2646_s20, 15 }
  0x43   : > { %v513_v29 = vrot.slane %v509_v21, 1  ;;  %v514_v30 = vrot.slane %v510_v22, 1  ;;  %v526_v31 = vrot.slane %v522_v23, 1  ;;  %v527_v32 = vrot.slane %v523_v24, 1 }
  0x44   : > { %446 = vrot.lane.b32.xlu0 %v444_v8, %s3419_s19  ;;  %462 = vrot.lane.b32.xlu1 %v460_v11, %s3417_s7  ;;  %v502_v36 = vsel %vm488_vm0, %v500_v25, %v501_v26  ;;  %v539_v40 = vrot.slane %v535_v33, 1  ;;  %v540_v41 = vrot.slane %v536_v34, 1  ;;  %v561_v42 = vmul.f32 %v560_v35, %v2660_v2  ;;  %s3456_s20 = smov (!%p339_p7, %s2646_s20), 15 }
  0x45   : > { %v515_v37 = vsel %vm488_vm0, %v513_v29, %v514_v30  ;;  %v562_v43 = vmul.f32 %v560_v35, %v2674_v10  ;;  %v528_v44 = vsel %vm488_vm0, %v526_v31, %v527_v32  ;;  %v552_v45 = vrot.slane %v548_v38, 1 }
  0x46   : > { %v585_v46 = vstv %s2681_s14  ;;  %v598_v47 = vstv %s2683_s16  ;;  %v541_v48 = vsel %vm488_vm0, %v539_v40, %v540_v41  ;;  %v553_v49 = vrot.slane %v549_v39, 1  ;;  %s3436_s16 = smov 125   ;;  %s2740_s14 = sld [smem:[#allocation2 + $0x18]] }
  0x47   : > { %v565_v50 = vrot.slane %v561_v42, 1  ;;  %v586_v51 = vmul.f32 %v585_v46, %v2660_v2  ;;  %v566_v52 = vrot.slane %v562_v43, 1  ;;  %v587_v53 = vmul.f32 %v585_v46, %v2674_v10 }
  0x48   : > { %470 = vrot.lane.b32.xlu0 %v468_v14, %s3415_s28  ;;  %478 = vrot.lane.b32.xlu1 %v476_v15, %s3413_s11  ;;  %s2724_s11 = sld [smem:[#allocation2 + $0x17]]  ;;  %v599_v54 = vmul.f32 %v598_v47, %v2660_v2  ;;  %v600_v55 = vmul.f32 %v598_v47, %v2674_v10  ;;  %v611_v57 = vstv %s2696_s5  ;;  %v624_v58 = vstv %s2698_s30  ;;  %s2743_s5 = sld [smem:[#allocation2 + $0x19]] }
  0x49   : > { %v590_v56 = vrot.slane %v586_v51, 2  ;;  %v591_v59 = vrot.slane %v587_v53, 2  ;;  %v612_v60 = vmul.f32 %v611_v57, %v2660_v2  ;;  %v613_v61 = vmul.f32 %v611_v57, %v2674_v10  ;;  %s2748_s30 = sld [smem:[#allocation2 + $0x1a]] }
  0x4a   : > { %v625_v62 = vmul.f32 %v624_v58, %v2660_v2  ;;  %v626_v63 = vmul.f32 %v624_v58, %v2674_v10  ;;  %v637_v0 = vstv %s2705_s10  ;;  %v554_v1 = vsel %vm488_vm0, %v552_v45, %v553_v49  ;;  %s3437_s10 = smov 122  }
  0x4b   : > { %v567_v3 = vsel %vm488_vm0, %v565_v50, %v566_v52  ;;  %v603_v4 = vrot.slane %v599_v54, 2  ;;  %v604_v5 = vrot.slane %v600_v55, 2  ;;  %v592_v6 = vsel %vm578_vm1, %v590_v56, %v591_v59 }
  0x4c   : > { %503 = vrot.lane.b32.xlu0 %v502_v36, %s3435_s13  ;;  %516 = vrot.lane.b32.xlu1 %v515_v37, %s3419_s19  ;;  %v616_v7 = vrot.slane %v612_v60, 2  ;;  %v638_v8 = vmul.f32 %v637_v0, %v2660_v2  ;;  %v650_v9 = vstv %s2716_s15  ;;  %v675_v11 = vstv %s2718_s12  ;;  %s2758_s15 = sld [smem:[#allocation2 + $0x1b]]  ;;  %s2769_s12 = sld [smem:[#allocation2 + $0x1e]] }
  0x4d   : > { %v617_v12 = vrot.slane %v613_v61, 2  ;;  %v629_v13 = vrot.slane %v625_v62, 2  ;;  %v630_v14 = vrot.slane %v626_v63, 2  ;;  %v605_v16 = vsel %vm578_vm1, %v603_v4, %v604_v5 }
  0x4e   : > { %v688_v15 = vstv %s2724_s11  ;;  %v639_v17 = vmul.f32 %v637_v0, %v2674_v10  ;;  %v651_v18 = vmul.f32 %v650_v9, %v2660_v2  ;;  %v652_v19 = vmul.f32 %v650_v9, %v2674_v10  ;;  %s2767_s11 = sld [smem:[#allocation2 + $0x1d]] }
  0x4f   : > { %v676_v20 = vmul.f32 %v675_v11, %v2660_v2  ;;  %v677_v21 = vmul.f32 %v675_v11, %v2674_v10  ;;  %v689_v22 = vmul.f32 %v688_v15, %v2660_v2  ;;  %v690_v23 = vmul.f32 %v688_v15, %v2674_v10 }
  0x50   : > { %529 = vrot.lane.b32.xlu0 %v528_v44, %s3436_s16  ;;  %542 = vrot.lane.b32.xlu1 %v541_v48, %s3417_s7  ;;  %v618_v24 = vsel %vm578_vm1, %v616_v7, %v617_v12  ;;  %v631_v25 = vsel %vm578_vm1, %v629_v13, %v630_v14  ;;  %v642_v26 = vrot.slane %v638_v8, 2  ;;  %v643_v27 = vrot.slane %v639_v17, 2 }
  0x51   : > { %v655_v28 = vrot.slane %v651_v18, 2  ;;  %v656_v29 = vrot.slane %v652_v19, 2  ;;  %v701_v30 = vstv %s2740_s14  ;;  %v680_v31 = vrot.slane %v676_v20, 3  ;;  %s2782_s14 = sld [smem:[#allocation2 + $0x1f]] }
  0x52   : > { %v714_v32 = vstv %s2743_s5  ;;  %v681_v33 = vrot.slane %v677_v21, 3  ;;  %v693_v34 = vrot.slane %v689_v22, 3  ;;  %v694_v35 = vrot.slane %v690_v23, 3  ;;  %s2786_s5 = sld [smem:[#allocation2 + $0x20]] }
  0x53   : > { %v727_v36 = vstv %s2748_s30  ;;  %v702_v37 = vmul.f32 %v701_v30, %v2660_v2  ;;  %v703_v38 = vmul.f32 %v701_v30, %v2674_v10  ;;  %v644_v39 = vsel %vm578_vm1, %v642_v26, %v643_v27  ;;  %s2795_s30 = sld [smem:[#allocation2 + $0x21]] }
  0x54   : > { %555 = vrot.lane.b32.xlu0 %v554_v1, %s3415_s28  ;;  %568 = vrot.lane.b32.xlu1 %v567_v3, %s3437_s10  ;;  %v657_v40 = vsel %vm578_vm1, %v655_v28, %v656_v29  ;;  %v715_v41 = vmul.f32 %v714_v32, %v2660_v2  ;;  %v716_v42 = vmul.f32 %v714_v32, %v2674_v10  ;;  %v740_v44 = vstv %s2758_s15  ;;  %s2799_s15 = sld [smem:[#allocation2 + $0x22]] }
  0x55   : > { %v728_v43 = vmul.f32 %v727_v36, %v2660_v2  ;;  %v682_v45 = vsel %vm668_vm2, %v680_v31, %v681_v33  ;;  %v695_v46 = vsel %vm668_vm2, %v693_v34, %v694_v35  ;;  %v729_v47 = vmul.f32 %v727_v36, %v2674_v10 }
  0x56   : > { %v706_v48 = vrot.slane %v702_v37, 3  ;;  %v707_v49 = vrot.slane %v703_v38, 3  ;;  %v765_v50 = vstv %s2767_s11  ;;  %v778_v51 = vstv %s2769_s12  ;;  %s2804_s11 = sld [smem:[#allocation2 + $0x24]]  ;;  %s2813_s12 = sld [smem:[#allocation2 + $0x25]] }
  0x57   : > { %v719_v52 = vrot.slane %v715_v41, 3  ;;  %v720_v53 = vrot.slane %v716_v42, 3  ;;  %v741_v54 = vmul.f32 %v740_v44, %v2660_v2  ;;  %v742_v55 = vmul.f32 %v740_v44, %v2674_v10 }
  0x58   : > { %593 = vrot.lane.b32.xlu0 %v592_v6, %s3435_s13  ;;  %606 = vrot.lane.b32.xlu1 %v605_v16, %s3419_s19  ;;  %v732_v56 = vrot.slane %v728_v43, 3  ;;  %v733_v57 = vrot.slane %v729_v47, 3  ;;  %v766_v58 = vmul.f32 %v765_v50, %v2660_v2  ;;  %v767_v59 = vmul.f32 %v765_v50, %v2674_v10 }
  0x59   : > { %v779_v60 = vmul.f32 %v778_v51, %v2660_v2  ;;  %v708_v61 = vsel %vm668_vm2, %v706_v48, %v707_v49  ;;  %v780_v62 = vmul.f32 %v778_v51, %v2674_v10  ;;  %v721_v63 = vsel %vm668_vm2, %v719_v52, %v720_v53 }
  0x5a   : > { %v745_v0 = vrot.slane %v741_v54, 3  ;;  %v746_v1 = vrot.slane %v742_v55, 3  ;;  %v791_v3 = vstv %s2782_s14  ;;  %v804_v4 = vstv %s2786_s5  ;;  %s2821_s14 = sld [smem:[#allocation2 + $0x26]]  ;;  %s2823_s5 = sld [smem:[#allocation2 + $0x27]] }
  0x5b   : > { %v734_v5 = vsel %vm668_vm2, %v732_v56, %v733_v57  ;;  %v770_v6 = vrot.slane %v766_v58, 4  ;;  %v771_v7 = vrot.slane %v767_v59, 4  ;;  %v783_v8 = vrot.slane %v779_v60, 4 }
  0x5c   : > { %619 = vrot.lane.b32.xlu0 %v618_v24, %s3436_s16  ;;  %632 = vrot.lane.b32.xlu1 %v631_v25, %s3417_s7  ;;  %v784_v9 = vrot.slane %v780_v62, 4  ;;  %v792_v11 = vmul.f32 %v791_v3, %v2660_v2  ;;  %v793_v12 = vmul.f32 %v791_v3, %v2674_v10  ;;  %v817_v13 = vstv %s2795_s30  ;;  %s2838_s30 = sld [smem:[#allocation2 + $0x28]] }
  0x5d   : > { %v747_v14 = vsel %vm668_vm2, %v745_v0, %v746_v1  ;;  %v805_v15 = vmul.f32 %v804_v4, %v2660_v2  ;;  %v806_v16 = vmul.f32 %v804_v4, %v2674_v10  ;;  %v830_v17 = vstv %s2799_s15  ;;  %s2842_s15 = sld [smem:[#allocation2 + $0x29]] }
  0x5e   : > { %v772_v18 = vsel %vm758_vm3, %v770_v6, %v771_v7  ;;  %v818_v19 = vmul.f32 %v817_v13, %v2660_v2  ;;  %v819_v20 = vmul.f32 %v817_v13, %v2674_v10  ;;  %v855_v21 = vstv %s2804_s11  ;;  %s2849_s11 = sld [smem:[#allocation2 + $0x2b]] }
  0x5f   : > { %v785_v22 = vsel %vm758_vm3, %v783_v8, %v784_v9  ;;  %v831_v23 = vmul.f32 %v830_v17, %v2660_v2  ;;  %v832_v24 = vmul.f32 %v830_v17, %v2674_v10  ;;  %v796_v25 = vrot.slane %v792_v11, 4 }
  0x60   : > { %645 = vrot.lane.b32.xlu0 %v644_v39, %s3415_s28  ;;  %658 = vrot.lane.b32.xlu1 %v657_v40, %s3437_s10  ;;  %v797_v26 = vrot.slane %v793_v12, 4  ;;  %v809_v27 = vrot.slane %v805_v15, 4  ;;  %v810_v28 = vrot.slane %v806_v16, 4  ;;  %v856_v29 = vmul.f32 %v855_v21, %v2660_v2 }
  0x61   : > { %v868_v30 = vstv %s2813_s12  ;;  %v822_v31 = vrot.slane %v818_v19, 4  ;;  %v823_v32 = vrot.slane %v819_v20, 4  ;;  %v857_v33 = vmul.f32 %v855_v21, %v2674_v10  ;;  %s2866_s12 = sld [smem:[#allocation2 + $0x2d]] }
  0x62   : > { %v835_v34 = vrot.slane %v831_v23, 4  ;;  %v836_v35 = vrot.slane %v832_v24, 4  ;;  %v881_v36 = vstv %s2821_s14  ;;  %v894_v37 = vstv %s2823_s5  ;;  %s2869_s14 = sld [smem:[#allocation2 + $0x2e]]  ;;  %s3438_s5 = smov 123  }
  0x63   : > { %v798_v38 = vsel %vm758_vm3, %v796_v25, %v797_v26  ;;  %v811_v39 = vsel %vm758_vm3, %v809_v27, %v810_v28  ;;  %v869_v40 = vmul.f32 %v868_v30, %v2660_v2  ;;  %v870_v41 = vmul.f32 %v868_v30, %v2674_v10 }
  0x64   : > { %683 = vrot.lane.b32.xlu0 %v682_v45, %s3435_s13  ;;  %696 = vrot.lane.b32.xlu1 %v695_v46, %s3419_s19  ;;  %v860_v42 = vrot.slane %v856_v29, 5  ;;  %v861_v43 = vrot.slane %v857_v33, 5  ;;  %v882_v44 = vmul.f32 %v881_v36, %v2660_v2  ;;  %v883_v45 = vmul.f32 %v881_v36, %v2674_v10 }
  0x65   : > { %v895_v46 = vmul.f32 %v894_v37, %v2660_v2  ;;  %v824_v47 = vsel %vm758_vm3, %v822_v31, %v823_v32  ;;  %v837_v48 = vsel %vm758_vm3, %v835_v34, %v836_v35  ;;  %v873_v49 = vrot.slane %v869_v40, 5 }
  0x66   : > { %v874_v50 = vrot.slane %v870_v41, 5  ;;  %v896_v51 = vmul.f32 %v894_v37, %v2674_v10  ;;  %v907_v52 = vstv %s2838_s30  ;;  %v920_v53 = vstv %s2842_s15  ;;  %s2881_s30 = sld [smem:[#allocation2 + $0x2f]]  ;;  %s2883_s15 = sld [smem:[#allocation2 + $0x30]] }
  0x67   : > { %v862_v54 = vsel %vm848_vm4, %v860_v42, %v861_v43  ;;  %v886_v55 = vrot.slane %v882_v44, 5  ;;  %v887_v56 = vrot.slane %v883_v45, 5  ;;  %v899_v57 = vrot.slane %v895_v46, 5  ;;  %v2156_v46 = vld [vmem:[%s2657_s18 + $0x10] sm:$0x7] }
  0x68   : > { %709 = vrot.lane.b32.xlu0 %v708_v61, %s3436_s16  ;;  %722 = vrot.lane.b32.xlu1 %v721_v63, %s3417_s7  ;;  %v908_v58 = vmul.f32 %v907_v52, %v2660_v2  ;;  %v909_v59 = vmul.f32 %v907_v52, %v2674_v10  ;;  %v945_v60 = vstv %s2849_s11  ;;  %v875_v62 = vsel %vm848_vm4, %v873_v49, %v874_v50  ;;  %s2159_s11 = sld [smem:[#allocation2 + $0x82]] }
  0x69   : > { %v900_v63 = vrot.slane %v896_v51, 5  ;;  %v921_v0 = vmul.f32 %v920_v53, %v2660_v2  ;;  %v922_v1 = vmul.f32 %v920_v53, %v2674_v10  ;;  %v946_v3 = vmul.f32 %v945_v60, %v2660_v2 }
  0x6a   : > { %v947_v4 = vmul.f32 %v945_v60, %v2674_v10  ;;  %v888_v7 = vsel %vm848_vm4, %v886_v55, %v887_v56  ;;  %v912_v8 = vrot.slane %v908_v58, 5  ;;  %v913_v9 = vrot.slane %v909_v59, 5 }
  0x6b   : > { %v901_v11 = vsel %vm848_vm4, %v899_v57, %v900_v63  ;;  %v925_v12 = vrot.slane %v921_v0, 5  ;;  %v926_v13 = vrot.slane %v922_v1, 5  ;;  %v984_v15 = vstv %s2869_s14  ;;  %s2921_s14 = sld [smem:[#allocation2 + $0x88]] }
  0x6c   : > { %735 = vrot.lane.b32.xlu0 %v734_v5, %s3415_s28  ;;  %748 = vrot.lane.b32.xlu1 %v747_v14, %s3437_s10  ;;  %s2851_s28 = sld [smem:[#allocation2 + $0x2c]]  ;;  %v971_v14 = vstv %s2866_s12  ;;  %v950_v16 = vrot.slane %v946_v3, 6  ;;  %v951_v17 = vrot.slane %v947_v4, 6  ;;  %v914_v20 = vsel %vm848_vm4, %v912_v8, %v913_v9  ;;  %s2919_s12 = sld [smem:[#allocation2 + $0x83]] }
  0x6d   : > { %v972_v21 = vmul.f32 %v971_v14, %v2660_v2  ;;  %v927_v23 = vsel %vm848_vm4, %v925_v12, %v926_v13  ;;  %v985_v24 = vmul.f32 %v984_v15, %v2660_v2  ;;  %v986_v25 = vmul.f32 %v984_v15, %v2674_v10 }
  0x6e   : > { %v997_v26 = vstv %s2881_s30  ;;  %v1010_v27 = vstv %s2883_s15  ;;  %v952_v28 = vsel %vm938_vm5, %v950_v16, %v951_v17  ;;  %s2924_s30 = sld [smem:[#allocation2 + $0x84]]  ;;  %s2926_s15 = sld [smem:[#allocation2 + $0x89]]  ;;  %v1042_v50 = vstv %s2159_s11 }
  0x6f   : > { %v976_v30 = vrot.slane %v972_v21, 6  ;;  %v998_v32 = vmul.f32 %v997_v26, %v2660_v2  ;;  %v999_v33 = vmul.f32 %v997_v26, %v2674_v10  ;;  %v989_v34 = vrot.slane %v985_v24, 6  ;;  %s2961_s11 = sld [smem:[#allocation2 + $0x8f]] }
  0x70   : > { %773 = vrot.lane.b32.xlu0 %v772_v18, %s3435_s13  ;;  %786 = vrot.lane.b32.xlu1 %v785_v22, %s3419_s19  ;;  %v973_v22 = vmul.f32 %v971_v14, %v2674_v10  ;;  %v990_v35 = vrot.slane %v986_v25, 6  ;;  %v1011_v36 = vmul.f32 %v1010_v27, %v2660_v2  ;;  %v1012_v37 = vmul.f32 %v1010_v27, %v2674_v10 }
  0x71   : > { %v1002_v40 = vrot.slane %v998_v32, 6  ;;  %v1003_v42 = vrot.slane %v999_v33, 6  ;;  %v2944_v51 = vunpack.c.l.bf16 %v2156_v46  ;;  %v1119_v63 = vstv %s2935_s1  ;;  %s2982_s1 = sld [smem:[#allocation2 + $0x91]] }
  0x72   : > { %v958_v61 = vstv %s2851_s28  ;;  %v977_v31 = vrot.slane %v973_v22, 6  ;;  %s2913_s28 = sld [smem:[#allocation2 + $0x81]]  ;;  %v991_v41 = vsel %vm938_vm5, %v989_v34, %v990_v35  ;;  %v1015_v43 = vrot.slane %v1011_v36, 6 }
  0x73   : > { %v959_v5 = vmul.f32 %v958_v61, %v2660_v2  ;;  %v960_v6 = vmul.f32 %v958_v61, %v2674_v10  ;;  %v1016_v44 = vrot.slane %v1012_v37, 6  ;;  %v1050_v55 = vstv %s2919_s12  ;;  %s2968_s12 = sld [smem:[#allocation2 + $0x90]] }
  0x74   : > { %799 = vrot.lane.b32.xlu0 %v798_v38, %s3436_s16  ;;  %812 = vrot.lane.b32.xlu1 %v811_v39, %s3417_s7  ;;  %v2155_v38 = vld [vmem:[%s2657_s18 + $0xc] sm:$0xf]  ;;  %v978_v39 = vsel %vm938_vm5, %v976_v30, %v977_v31  ;;  %v1058_v56 = vstv %s2924_s30  ;;  %s2953_s18 = sld [smem:[#allocation2 + $0x8c]]  ;;  %v1121_v9 = vmul.f32 %v1119_v63, %v2944_v51  ;;  %s3014_s30 = sld [smem:[#allocation2 + $0x97]] }
  0x75   : > { %v963_v18 = vrot.slane %v959_v5, 6  ;;  %v964_v19 = vrot.slane %v960_v6, 6  ;;  %v2932_v45 = vunpack.c.l.bf16 %v2155_v38  ;;  %v1106_v57 = vstv %s2926_s15  ;;  %s3016_s15 = sld [smem:[#allocation2]] }
  0x76   : > { %v1074_v0 = vstv %s2940_s29  ;;  %v1108_v3 = vmul.f32 %v1106_v57, %v2944_v51  ;;  %v1132_v4 = vstv %s2942_s26  ;;  %s2985_s26 = sld [smem:[#allocation2 + $0x92]]  ;;  %v1182_v21 = vstv %s2961_s11  ;;  %s2998_s29 = sld [smem:[#allocation2 + $0x93]] }
  0x77   : > { %v965_v29 = vsel %vm938_vm5, %v963_v18, %v964_v19  ;;  %v1043_v53 = vmul.f32 %v1042_v50, %v2932_v45  ;;  %v1051_v61 = vmul.f32 %v1050_v55, %v2932_v45  ;;  %v1107_v1 = vmul.f32 %v1106_v57, %v2932_v45  ;;  %s3032_s11 = sld [smem:[#allocation2 + $0x99]] }
  0x78   : > { %825 = vrot.lane.b32.xlu0 %v824_v47, %s3438_s5  ;;  %838 = vrot.lane.b32.xlu1 %v837_v48, %s3437_s10  ;;  %v1004_v47 = vsel %vm938_vm5, %v1002_v40, %v1003_v42  ;;  %v1017_v48 = vsel %vm938_vm5, %v1015_v43, %v1016_v44  ;;  %v1034_v49 = vstv %s2913_s28  ;;  %s2956_s28 = sld [smem:[#allocation2 + $0x8d]]  ;;  %v1120_v8 = vmul.f32 %v1119_v63, %v2932_v45 }
  0x79   : > { %v1035_v52 = vmul.f32 %v1034_v49, %v2932_v45  ;;  %v1133_v12 = vmul.f32 %v1132_v4, %v2932_v45  ;;  %v1134_v13 = vmul.f32 %v1132_v4, %v2944_v51  ;;  %v1111_v14 = vrot.slane %v1107_v1, 1 }
  0x7a   : > { %v1112_v15 = vrot.slane %v1108_v3, 1  ;;  %v1145_v16 = vstv %s2953_s18  ;;  %v1124_v19 = vrot.slane %v1120_v8, 1  ;;  %v1195_v25 = vstv %s2968_s12  ;;  %s3023_s18 = sld [smem:[#allocation2 + $0x98]]  ;;  %s3036_s12 = sld [smem:[#allocation2 + $0x9a]] }
  0x7b   : > { %v1137_v22 = vrot.slane %v1133_v12, 1  ;;  %v1146_v24 = vmul.f32 %v1145_v16, %v2932_v45  ;;  %v1147_v27 = vmul.f32 %v1145_v16, %v2944_v51  ;;  %v1183_v30 = vmul.f32 %v1182_v21, %v2932_v45 }
  0x7c   : > { %863 = vrot.lane.b32.xlu0 %v862_v54, %s3435_s13  ;;  %876 = vrot.lane.b32.xlu1 %v875_v62, %s3419_s19  ;;  %v1093_v54 = vstv %s2921_s14  ;;  %v1059_v62 = vmul.f32 %v1058_v56, %v2932_v45  ;;  %v1113_v26 = vsel %vm488_vm0, %v1111_v14, %v1112_v15  ;;  %v1184_v31 = vmul.f32 %v1182_v21, %v2944_v51  ;;  %s3011_s14 = sld [smem:[#allocation2 + $0x96]] }
  0x7d   : > { %v1094_v59 = vmul.f32 %v1093_v54, %v2932_v45  ;;  %v1095_v60 = vmul.f32 %v1093_v54, %v2944_v51  ;;  %v1196_v32 = vmul.f32 %v1195_v25, %v2932_v45  ;;  %v1197_v33 = vmul.f32 %v1195_v25, %v2944_v51 }
  0x7e   : > { %v1158_v17 = vstv %s2956_s28  ;;  %v1150_v36 = vrot.slane %v1146_v24, 1  ;;  %v1208_v37 = vstv %s2982_s1  ;;  %v1151_v38 = vrot.slane %v1147_v27, 1  ;;  %s3029_s28 = sld [smem:[#allocation2 + $0x7]]  ;;  %s3043_s1 = sld [smem:[#allocation2 + $0x9b]] }
  0x7f   : > { %v1098_v6 = vrot.slane %v1094_v59, 1  ;;  %v1187_v42 = vrot.slane %v1183_v30, 2  ;;  %v1188_v43 = vrot.slane %v1184_v31, 2  ;;  %v1200_v44 = vrot.slane %v1196_v32, 2 }
  0x80   : > { %889 = vrot.lane.b32.xlu0 %v888_v7, %s3436_s16  ;;  %902 = vrot.lane.b32.xlu1 %v901_v11, %s3417_s7  ;;  %s2928_s7 = sld [smem:[#allocation2 + $0x85]]  ;;  %v1099_v7 = vrot.slane %v1095_v60, 1  ;;  %v1075_v11 = vmul.f32 %v1074_v0, %v2932_v45  ;;  %v1201_v46 = vrot.slane %v1197_v33, 2  ;;  %v1152_v50 = vsel %vm488_vm0, %v1150_v36, %v1151_v38 }
  0x81   : > { %v1234_v54 = vstv %s2998_s29  ;;  %v1189_v56 = vsel %vm578_vm1, %v1187_v42, %v1188_v43  ;;  %v1284_v4 = vstv %s3014_s30  ;;  %s3063_s29 = sld [smem:[#allocation2 + $0x9e]]  ;;  %v1323_v24 = vstv %s3036_s12 }
  0x82   : > { %v1100_v18 = vsel %vm488_vm0, %v1098_v6, %v1099_v7  ;;  %v1202_v57 = vsel %vm578_vm1, %v1200_v44, %v1201_v46  ;;  %v1271_v63 = vstv %s3011_s14  ;;  %v1286_v12 = vmul.f32 %v1284_v4, %v2944_v51  ;;  %s3073_s14 = sld [smem:[#allocation2 + $0xa0]]  ;;  %s3082_s30 = sld [smem:[#allocation2 + $0xe]] }
  0x83   : > { %v1272_v7 = vmul.f32 %v1271_v63, %v2932_v45  ;;  %v1273_v8 = vmul.f32 %v1271_v63, %v2944_v51  ;;  %v1324_v36 = vmul.f32 %v1323_v24, %v2932_v45  ;;  %s3120_s12 = sld [smem:[#allocation2 + $0xa6]] }
  0x84   : > { %915 = vrot.lane.b32.xlu0 %v914_v20, %s3438_s5  ;;  %928 = vrot.lane.b32.xlu1 %v927_v23, %s3437_s10  ;;  %v1125_v20 = vrot.slane %v1121_v9, 1  ;;  %v1138_v23 = vrot.slane %v1134_v13, 1  ;;  %v1297_v13 = vstv %s3023_s18  ;;  %s3096_s18 = sld [smem:[#allocation2 + $0xa2]] }
  0x85   : > { %v1276_v21 = vrot.slane %v1272_v7, 3  ;;  %v1299_v27 = vmul.f32 %v1297_v13, %v2944_v51 }
  0x86   : > { %v1066_v58 = vstv %s2928_s7  ;;  %s3002_s7 = sld [smem:[#allocation2 + $0x94]]  ;;  %v1126_v34 = vsel %vm488_vm0, %v1124_v19, %v1125_v20  ;;  %v1139_v35 = vsel %vm488_vm0, %v1137_v22, %v1138_v23  ;;  %v483_v19 = vstv %s3029_s28 }
  0x87   : > { %v1067_v5 = vmul.f32 %v1066_v58, %v2932_v45  ;;  %v1310_v20 = vstv %s3032_s11  ;;  %v1277_v22 = vrot.slane %v1273_v8, 3  ;;  %v1298_v23 = vmul.f32 %v1297_v13, %v2932_v45  ;;  %s3101_s28 = sld [smem:[#allocation2 + $0xa4]]  ;;  %s3115_s11 = sld [smem:[#allocation2 + $0xa5]] }
  0x88   : > { %953 = vrot.lane.b32.xlu0 %v952_v28, %s3435_s13  ;;  %966 = vrot.lane.b32.xlu1 %v965_v29, %s3419_s19  ;;  %s3439_s19 = smov 124   ;;  %v1159_v28 = vmul.f32 %v1158_v17, %v2932_v45  ;;  %v1160_v29 = vmul.f32 %v1158_v17, %v2944_v51  ;;  %v1311_v31 = vmul.f32 %v1310_v20, %v2932_v45  ;;  %v1303_v44 = vrot.slane %v1299_v27, 3 }
  0x89   : > { %v1312_v32 = vmul.f32 %v1310_v20, %v2944_v51  ;;  %v485_v38 = vmul.f32 %v483_v19, %v2674_v10  ;;  %v1302_v43 = vrot.slane %v1298_v23, 3 }
  0x8a   : > { %v1164_v40 = vrot.slane %v1160_v29, 1 }
  0x8b   : > { %v490_v7 = vrot.slane %v485_v38, 1 }
  0x8c   : > { %979 = vrot.lane.b32.xlu0 %v978_v39, %s3436_s16  ;;  %992 = vrot.lane.b32.xlu1 %v991_v41, %s3439_s19  ;;  %v1163_v39 = vrot.slane %v1159_v28, 1  ;;  %v1221_v41 = vstv %s2985_s26  ;;  %v1247_v55 = vstv %s3002_s7  ;;  %s3058_s26 = sld [smem:[#allocation2 + $0x9d]]  ;;  %s3067_s7 = sld [smem:[#allocation2 + $0x9f]] }
  0x8d   : > { %v1222_v49 = vmul.f32 %v1221_v41, %v2932_v45  ;;  %v1248_v1 = vmul.f32 %v1247_v55, %v2932_v45  ;;  %v1249_v3 = vmul.f32 %v1247_v55, %v2944_v51  ;;  %v1336_v28 = vstv %s3043_s1  ;;  %s3127_s1 = sld [smem:[#allocation2 + $0xa7]] }
  0x8f   : > { %v1226_v60 = vrot.slane %v1222_v49, 2  ;;  %v1252_v16 = vrot.slane %v1248_v1, 2  ;;  %v1253_v17 = vrot.slane %v1249_v3, 2 }
  0x90   : > { %1005 = vrot.lane.b32.xlu0 %v1004_v47, %s3438_s5  ;;  %1018 = vrot.lane.b32.xlu1 %v1017_v48, %s3437_s10  ;;  %v1209_v47 = vmul.f32 %v1208_v37, %v2932_v45  ;;  %v1210_v48 = vmul.f32 %v1208_v37, %v2944_v51  ;;  %v1325_v37 = vmul.f32 %v1323_v24, %v2944_v51  ;;  %v1425_v24 = vstv %s3096_s18  ;;  %s3176_s18 = sld [smem:[#allocation2 + $0xae]] }
  0x91   : > { %v1254_v30 = vsel %vm578_vm1, %v1252_v16, %v1253_v17  ;;  %v1427_v38 = vmul.f32 %v1425_v24, %v2944_v51 }
  0x92   : > { %v1213_v58 = vrot.slane %v1209_v47, 2  ;;  %v1214_v59 = vrot.slane %v1210_v48, 2  ;;  %v1315_v47 = vrot.slane %v1311_v31, 3  ;;  %v1316_v48 = vrot.slane %v1312_v32, 3 }
  0x93   : > { %v1360_v49 = vstv %s3058_s26  ;;  %v1329_v55 = vrot.slane %v1325_v37, 3  ;;  %v1426_v37 = vmul.f32 %v1425_v24, %v2932_v45  ;;  %s3140_s26 = sld [smem:[#allocation2 + $0xa8]] }
  0x94   : > { %1037 = vrot.lane.b32.xlu0 %v1035_v52, %s3435_s13  ;;  %1045 = vrot.lane.b32.xlu1 %v1043_v53, %s3440_s25  ;;  %v1165_v52 = vsel %vm488_vm0, %v1163_v39, %v1164_v40  ;;  %v1223_v53 = vmul.f32 %v1221_v41, %v2944_v51  ;;  %v1215_v6 = vsel %vm578_vm1, %v1213_v58, %v1214_v59 }
  0x95   : > { %v1337_v39 = vmul.f32 %v1336_v28, %v2932_v45  ;;  %v1338_v40 = vmul.f32 %v1336_v28, %v2944_v51  ;;  %v1278_v41 = vsel %vm668_vm2, %v1276_v21, %v1277_v22  ;;  %v1362_v63 = vmul.f32 %v1360_v49, %v2944_v51 }
  0x96   : > { %v1227_v0 = vrot.slane %v1223_v53, 2  ;;  %v1317_v3 = vsel %vm668_vm2, %v1315_v47, %v1316_v48 }
  0x97   : > { %v1341_v58 = vrot.slane %v1337_v39, 3  ;;  %v1342_v59 = vrot.slane %v1338_v40, 3 }
  0x98   : > { %1053 = vrot.lane.b32.xlu0 %v1051_v61, %s3436_s16  ;;  %1061 = vrot.lane.b32.xlu1 %v1059_v62, %s3439_s19  ;;  %v1235_v61 = vmul.f32 %v1234_v54, %v2932_v45  ;;  %v1236_v62 = vmul.f32 %v1234_v54, %v2944_v51  ;;  %v1228_v14 = vsel %vm578_vm1, %v1226_v60, %v1227_v0  ;;  %v1328_v54 = vrot.slane %v1324_v36, 3 }
  0x99   : > { %v1386_v60 = vstv %s3067_s7  ;;  %v1399_v0 = vstv %s3073_s14  ;;  %s3153_s7 = sld [smem:[#allocation2 + $0xab]]  ;;  %s3158_s14 = sld [smem:[#allocation2 + $0xac]] }
  0x9a   : > { %v1239_v9 = vrot.slane %v1235_v61, 2  ;;  %v1240_v15 = vrot.slane %v1236_v62, 2  ;;  %v1304_v61 = vsel %vm668_vm2, %v1302_v43, %v1303_v44  ;;  %v1361_v62 = vmul.f32 %v1360_v49, %v2932_v45 }
  0x9b   : > { %v1400_v16 = vmul.f32 %v1399_v0, %v2932_v45  ;;  %v1462_v49 = vstv %s3115_s11  ;;  %s3195_s11 = sld [smem:[#allocation2 + $0xb0]] }
  0x9c   : > { %1069 = vrot.lane.b32.xlu0 %v1067_v5, %s3438_s5  ;;  %1077 = vrot.lane.b32.xlu1 %v1075_v11, %s3437_s10  ;;  %v431_v5 = vstv %s3016_s15  ;;  %v1285_v11 = vmul.f32 %v1284_v4, %v2932_v45  ;;  %v1241_v29 = vsel %vm578_vm1, %v1239_v9, %v1240_v15  ;;  %s3093_s15 = sld [smem:[#allocation2 + $0xa1]]  ;;  %v573_v9 = vstv %s3082_s30  ;;  %s3163_s30 = sld [smem:[#allocation2 + $0x15]] }
  0x9d   : > { %v1343_v15 = vsel %vm668_vm2, %v1341_v58, %v1342_v59  ;;  %v1365_v17 = vrot.slane %v1361_v62, 4  ;;  %v3131_v28 = vmul.f32 %v573_v9, %v2660_v2  ;;  %v1404_v32 = vrot.slane %v1400_v16, 4 }
  0x9e   : > { %v1289_v25 = vrot.slane %v1285_v11, 3  ;;  %v1387_v11 = vmul.f32 %v1386_v60, %v2932_v45  ;;  %v575_v40 = vmul.f32 %v573_v9, %v2674_v10  ;;  %v1431_v58 = vrot.slane %v1427_v38, 4 }
  0x9f   : > { %v1488_v62 = vstv %s3127_s1  ;;  %s2185_s1 = sld [smem:[#allocation2 + $0x9c]] }
  0xa0   : > { %1101 = vrot.lane.b32.xlu0 %v1100_v18, %s3435_s13  ;;  %1114 = vrot.lane.b32.xlu1 %v1113_v26, %s3440_s25  ;;  %v432_v18 = vmul.f32 %v431_v5, %v2660_v2  ;;  %v1290_v26 = vrot.slane %v1286_v12, 3  ;;  %v1388_v12 = vmul.f32 %v1386_v60, %v2944_v51  ;;  %v1463_v60 = vmul.f32 %v1462_v49, %v2932_v45 }
  0xa1   : > { %v1489_v9 = vmul.f32 %v1488_v62, %v2932_v45 }
  0xa2   : > { %v1291_v42 = vsel %vm668_vm2, %v1289_v25, %v1290_v26  ;;  %v1412_v20 = vstv %s3093_s15  ;;  %s3173_s15 = sld [smem:[#allocation2 + $0xad]] }
  0xa3   : > { %v1414_v36 = vmul.f32 %v1412_v20, %v2944_v51 }
  0xa4   : > { %1127 = vrot.lane.b32.xlu0 %v1126_v34, %s3436_s16  ;;  %1140 = vrot.lane.b32.xlu1 %v1139_v35, %s3439_s19  ;;  %v3080_v35 = vmul.f32 %v483_v19, %v2660_v2  ;;  %v1401_v19 = vmul.f32 %v1399_v0, %v2944_v51  ;;  %v580_v0 = vrot.slane %v575_v40, 2 }
  0xa6   : > { %v489_v53 = vrot.slane %v3080_v35, 1  ;;  %v1405_v35 = vrot.slane %v1401_v19, 4 }
  0xa8   : > { %1153 = vrot.lane.b32.xlu0 %v1152_v50, %s3438_s5  ;;  %1166 = vrot.lane.b32.xlu1 %v1165_v52, %s3437_s10  ;;  %v491_v25 = vsel %vm488_vm0, %v489_v53, %v490_v7 }
  0xac   : > { %1190 = vrot.lane.b32.xlu0 %v1189_v56, %s3435_s13  ;;  %1203 = vrot.lane.b32.xlu1 %v1202_v57, %s3440_s25  ;;  %v1373_v56 = vstv %s3063_s29  ;;  %s3149_s29 = sld [smem:[#allocation2 + $0xa9]] }
  0xad   : > { %v1374_v4 = vmul.f32 %v1373_v56, %v2932_v45  ;;  %v1375_v5 = vmul.f32 %v1373_v56, %v2944_v51  ;;  %v1418_v56 = vrot.slane %v1414_v36, 4 }
  0xaf   : > { %v1378_v22 = vrot.slane %v1374_v4, 4  ;;  %v1379_v23 = vrot.slane %v1375_v5, 4 }
  0xb0   : > { %1216 = vrot.lane.b32.xlu0 %v1215_v6, %s3436_s16  ;;  %1229 = vrot.lane.b32.xlu1 %v1228_v14, %s3439_s19  ;;  %v1330_v14 = vsel %vm668_vm2, %v1328_v54, %v1329_v55  ;;  %v1475_v54 = vstv %s3120_s12  ;;  %v1406_v55 = vsel %vm758_vm3, %v1404_v32, %v1405_v35  ;;  %s3208_s12 = sld [smem:[#allocation2 + $0x1c]] }
  0xb1   : > { %v1476_v5 = vmul.f32 %v1475_v54, %v2932_v45  ;;  %v1477_v7 = vmul.f32 %v1475_v54, %v2944_v51 }
  0xb2   : > { %v439_v33 = vpop.permute.xlu0 %438  ;;  %v455_v34 = vpop.permute.xlu1 %454 }
  0xb3   : > { %v441_v46 = vadd.f32 %v439_v33, %v432_v18  ;;  %v1366_v18 = vrot.slane %v1362_v63, 4  ;;  %v1413_v33 = vmul.f32 %v1412_v20, %v2932_v45  ;;  %v1481_v24 = vrot.slane %v1477_v7, 5 }
  0xb4   : > { %1242 = vrot.lane.b32.xlu0 %v1241_v29, %s3438_s5  ;;  %1255 = vrot.lane.b32.xlu1 %v1254_v30, %s3437_s10  ;;  %v1391_v29 = vrot.slane %v1387_v11, 4  ;;  %v1392_v30 = vrot.slane %v1388_v12, 4  ;;  %v1490_v11 = vmul.f32 %v1488_v62, %v2944_v51  ;;  %v1501_v12 = vstv %s3140_s26  ;;  %s2192_s26 = sld [smem:[#allocation2 + $0xa3]] }
  0xb5   : > { %v1417_v53 = vrot.slane %v1413_v33, 4 }
  0xb6   : > { %v447_v50 = vpop.permute.xlu0 %446  ;;  %v463_v52 = vpop.permute.xlu1 %462 }
  0xb7   : > { %v449_v57 = vadd.f32 %v447_v50, %v441_v46  ;;  %v579_v46 = vrot.slane %v3131_v28, 2  ;;  %v1494_v28 = vrot.slane %v1490_v11, 5 }
  0xb8   : > { %1279 = vrot.lane.b32.xlu0 %v1278_v41, %s3435_s13  ;;  %1292 = vrot.lane.b32.xlu1 %v1291_v42, %s3440_s25  ;;  %v1367_v41 = vsel %vm758_vm3, %v1365_v17, %v1366_v18  ;;  %v1380_v42 = vsel %vm758_vm3, %v1378_v22, %v1379_v23  ;;  %v1514_v22 = vstv %s3149_s29  ;;  %s2199_s29 = sld [smem:[#allocation2 + $0xaa]] }
  0xb9   : > { %v457_v1 = vadd.f32 %v455_v34, %v449_v57  ;;  %v1449_v34 = vstv %s3101_s28  ;;  %v1430_v57 = vrot.slane %v1426_v37, 4  ;;  %v581_v17 = vsel %vm578_vm1, %v579_v46, %v580_v0  ;;  %s3190_s28 = sld [smem:[#allocation2 + $0xaf]] }
  0xba   : > { %v471_v6 = vpop.permute.xlu0 %470  ;;  %v479_v8 = vpop.permute.xlu1 %478  ;;  %v1450_v47 = vmul.f32 %v1449_v34, %v2932_v45  ;;  %v1451_v48 = vmul.f32 %v1449_v34, %v2944_v51  ;;  %v1515_v33 = vmul.f32 %v1514_v22, %v2932_v45  ;;  %v1516_v34 = vmul.f32 %v1514_v22, %v2944_v51 }
  0xbb   : > { %v465_v13 = vadd.f32 %v463_v52, %v457_v1  ;;  %v1393_v52 = vsel %vm758_vm3, %v1391_v29, %v1392_v30  ;;  %v1503_v29 = vmul.f32 %v1501_v12, %v2944_v51  ;;  %v1551_v30 = vstv %s3158_s14 }
  0xbc   : > { %1305 = vrot.lane.b32.xlu0 %v1304_v61, %s3436_s16  ;;  %1318 = vrot.lane.b32.xlu1 %v1317_v3, %s3439_s19  ;;  %v1464_v61 = vmul.f32 %v1462_v49, %v2944_v51  ;;  %v1454_v3 = vrot.slane %v1450_v47, 5  ;;  %v1455_v4 = vrot.slane %v1451_v48, 5  ;;  %v663_v37 = vstv %s3163_s30  ;;  %s2096_s30 = sshll.u32 %s2651_s8, 5 }
  0xbd   : > { %v473_v21 = vadd.f32 %v471_v6, %v465_v13  ;;  %v1507_v47 = vrot.slane %v1503_v29, 5  ;;  %v1564_v48 = vstv %s3173_s15  ;;  %s2095_s15 = sshll.u32 %s3456_s20, 1 }
  0xbe   : > { %v504_v26 = vpop.permute.xlu0 %503  ;;  %v517_v27 = vpop.permute.xlu1 %516  ;;  %v1468_v16 = vrot.slane %v1464_v61, 5  ;;  %v1456_v20 = vsel %vm848_vm4, %v1454_v3, %v1455_v4  ;;  %v1566_v0 = vmul.f32 %v1564_v48, %v2944_v51 }
  0xbf   : > { %v481_v31 = vadd.f32 %v479_v8, %v473_v21  ;;  %v1419_v8 = vsel %vm758_vm3, %v1417_v53, %v1418_v56  ;;  %v1480_v21 = vrot.slane %v1476_v5, 5  ;;  %v1577_v53 = vstv %s3176_s18  ;;  %s343_s18 = sadd.s32 %s2096_s30, %s2095_s15  ;;  %s2226_s30 = sshll.u32 (%p2612_p5), %s2509_s24, 2 }
  0xc0   : > { %1331 = vrot.lane.b32.xlu0 %v1330_v14, %s3438_s5  ;;  %1344 = vrot.lane.b32.xlu1 %v1343_v15, %s3437_s10  ;;  %v1432_v14 = vsel %vm758_vm3, %v1430_v57, %v1431_v58  ;;  %v1467_v15 = vrot.slane %v1463_v60, 5  ;;  %v665_v56 = vmul.f32 %v663_v37, %v2674_v10  ;;  %v1579_v3 = vmul.f32 %v1577_v53, %v2944_v51  ;;  %s2102_s20 = sshll.u32 %s343_s18, 3  ;;  %s1915_s15 = sadd.s32 (%p2612_p5), %s2505_s23, %s2226_s30 }
  0xc1   : > { %v493_v39 = vadd.f32 %v491_v25, %v481_v31  ;;  %v1502_v25 = vmul.f32 %v1501_v12, %v2932_v45  ;;  %v1590_v7 = vstv %s3190_s28  ;;  %s2097_s28 = sshll.u32 %s343_s18, 2  ;;  %s2227_s18 = sshll.u32 (%p2612_p5), %s1915_s15, 3 }
  0xc2   : > { %v530_v43 = vpop.permute.xlu0 %529  ;;  %v543_v44 = vpop.permute.xlu1 %542  ;;  %v1469_v32 = vsel %vm848_vm4, %v1467_v15, %v1468_v16 }
  0xc3   : > { %v506_v50 = vadd.f32 %v504_v26, %v493_v39  ;;  %v1538_v26 = vstv %s3153_s7  ;;  %v1506_v46 = vrot.slane %v1502_v25, 5 }
  0xc4   : > { %1368 = vrot.lane.b32.xlu0 %v1367_v41, %s3435_s13  ;;  %1381 = vrot.lane.b32.xlu1 %v1380_v42, %s3440_s25  ;;  %v1539_v38 = vmul.f32 %v1538_v26, %v2932_v45  ;;  %v1540_v39 = vmul.f32 %v1538_v26, %v2944_v51  ;;  %v1482_v41 = vsel %vm848_vm4, %v1480_v21, %v1481_v24 }
  0xc5   : > { %v519_v59 = vadd.f32 %v517_v27, %v506_v50  ;;  %v1493_v27 = vrot.slane %v1489_v9, 5  ;;  %v1552_v42 = vmul.f32 %v1551_v30, %v2932_v45  ;;  %v1519_v50 = vrot.slane %v1515_v33, 5 }
  0xc6   : > { %v556_v63 = vpop.permute.xlu0 %555  ;;  %v569_v1 = vpop.permute.xlu1 %568  ;;  %v1543_v58 = vrot.slane %v1539_v38, 6  ;;  %v1508_v5 = vsel %vm848_vm4, %v1506_v46, %v1507_v47  ;;  %v670_v9 = vrot.slane %v665_v56, 3  ;;  %v1591_v21 = vmul.f32 %v1590_v7, %v2932_v45 }
  0xc7   : > { %v532_v6 = vadd.f32 %v530_v43, %v519_v59  ;;  %v1553_v43 = vmul.f32 %v1551_v30, %v2944_v51  ;;  %v1544_v59 = vrot.slane %v1540_v39, 6  ;;  %v1556_v61 = vrot.slane %v1552_v42, 6 }
  0xc8   : > { %1394 = vrot.lane.b32.xlu0 %v1393_v52, %s3436_s16  ;;  %1407 = vrot.lane.b32.xlu1 %v1406_v55, %s3439_s19  ;;  %v1520_v52 = vrot.slane %v1516_v34, 5  ;;  %v664_v55 = vmul.f32 %v663_v37, %v2660_v2  ;;  %v753_v30 = vstv %s3208_s12  ;;  %v1595_v33 = vrot.slane %v1591_v21, 6 }
  0xc9   : > { %v545_v13 = vadd.f32 %v543_v44, %v532_v6  ;;  %v1495_v44 = vsel %vm848_vm4, %v1493_v27, %v1494_v28  ;;  %v1557_v62 = vrot.slane %v1553_v43, 6  ;;  %v1545_v15 = vsel %vm938_vm5, %v1543_v58, %v1544_v59 }
  0xca   : > { %v594_v18 = vpop.permute.xlu0 %593  ;;  %v607_v19 = vpop.permute.xlu1 %606  ;;  %v1521_v6 = vsel %vm848_vm4, %v1519_v50, %v1520_v52  ;;  %v755_v42 = vmul.f32 %v753_v30, %v2674_v10 }
  0xcb   : > { %v558_v23 = vadd.f32 %v556_v63, %v545_v13  ;;  %v1565_v63 = vmul.f32 %v1564_v48, %v2932_v45  ;;  %v1603_v13 = vstv %s3195_s11  ;;  %v1558_v16 = vsel %vm938_vm5, %v1556_v61, %v1557_v62 }
  0xcc   : > { %1420 = vrot.lane.b32.xlu0 %v1419_v8, %s3438_s5  ;;  %1433 = vrot.lane.b32.xlu1 %v1432_v14, %s3437_s10  ;;  %v669_v8 = vrot.slane %v664_v55, 3  ;;  %v1604_v24 = vmul.f32 %v1603_v13, %v2932_v45  ;;  %v1605_v25 = vmul.f32 %v1603_v13, %v2944_v51  ;;  %v760_v52 = vrot.slane %v755_v42, 4 }
  0xcd   : > { %v571_v31 = vadd.f32 %v569_v1, %v558_v23  ;;  %v1578_v1 = vmul.f32 %v1577_v53, %v2932_v45  ;;  %v1592_v23 = vmul.f32 %v1590_v7, %v2944_v51 }
  0xce   : > { %v620_v35 = vpop.permute.xlu0 %619  ;;  %v633_v36 = vpop.permute.xlu1 %632  ;;  %v671_v26 = vsel %vm668_vm2, %v669_v8, %v670_v9  ;;  %v1609_v37 = vrot.slane %v1605_v25, 6 }
  0xcf   : > { %v583_v40 = vadd.f32 %v581_v17, %v571_v31  ;;  %v1569_v17 = vrot.slane %v1565_v63, 6 }
  0xd0   : > { %1457 = vrot.lane.b32.xlu0 %v1456_v20, %s3435_s13  ;;  %1470 = vrot.lane.b32.xlu1 %v1469_v32, %s3440_s25  ;;  %v1583_v20 = vrot.slane %v1579_v3, 6 }
  0xd1   : > { %v596_v49 = vadd.f32 %v594_v18, %v583_v40  ;;  %v1570_v18 = vrot.slane %v1566_v0, 6 }
  0xd2   : > { %v646_v54 = vpop.permute.xlu0 %645  ;;  %v659_v57 = vpop.permute.xlu1 %658 }
  0xd3   : > { %v609_v60 = vadd.f32 %v607_v19, %v596_v49  ;;  %v1582_v19 = vrot.slane %v1578_v1, 6  ;;  %v1571_v31 = vsel %vm938_vm5, %v1569_v17, %v1570_v18 }
  0xd4   : > { %1483 = vrot.lane.b32.xlu0 %v1482_v41, %s3436_s16  ;;  %1496 = vrot.lane.b32.xlu1 %v1495_v44, %s3439_s19  ;;  %v754_v41 = vmul.f32 %v753_v30, %v2660_v2 }
  0xd5   : > { %v622_v4 = vadd.f32 %v620_v35, %v609_v60  ;;  %v1584_v32 = vsel %vm938_vm5, %v1582_v19, %v1583_v20  ;;  %v1596_v35 = vrot.slane %v1592_v23, 6 }
  0xd6   : > { %v684_v11 = vpop.permute.xlu0 %683  ;;  %v697_v12 = vpop.permute.xlu1 %696  ;;  %v759_v50 = vrot.slane %v754_v41, 4 }
  0xd7   : > { %v635_v14 = vadd.f32 %v633_v36, %v622_v4  ;;  %v1608_v36 = vrot.slane %v1604_v24, 6  ;;  %v1597_v44 = vsel %vm938_vm5, %v1595_v33, %v1596_v35 }
  0xd8   : > { %1509 = vrot.lane.b32.xlu0 %v1508_v5, %s3438_s5  ;;  %1522 = vrot.lane.b32.xlu1 %v1521_v6, %s3437_s10 }
  0xd9   : > { %v648_v22 = vadd.f32 %v646_v54, %v635_v14  ;;  %v1610_v46 = vsel %vm938_vm5, %v1608_v36, %v1609_v37 }
  0xda   : > { %v710_v27 = vpop.permute.xlu0 %709  ;;  %v723_v28 = vpop.permute.xlu1 %722 }
  0xdb   : > { %v661_v29 = vadd.f32 %v659_v57, %v648_v22  ;;  %v761_v57 = vsel %vm758_vm3, %v759_v50, %v760_v52 }
  0xdc   : > { %1546 = vrot.lane.b32.xlu0 %v1545_v15, %s3435_s13  ;;  %1559 = vrot.lane.b32.xlu1 %v1558_v16, %s3440_s25  ;;  %s2140_s25 = sld [smem:[#allocation2 + $0x23]]  ;;  %s2157_s13 = sld [smem:[#allocation2 + $0x80]] }
  0xdd   : > { %v673_v34 = vadd.f32 %v671_v26, %v661_v29 }
  0xde   : > { %v736_v38 = vpop.permute.xlu0 %735  ;;  %v749_v39 = vpop.permute.xlu1 %748 }
  0xdf   : > { %v686_v40 = vadd.f32 %v684_v11, %v673_v34 }
  0xe0   : > { %1572 = vrot.lane.b32.xlu0 %v1571_v31, %s3436_s16  ;;  %1585 = vrot.lane.b32.xlu1 %v1584_v32, %s3439_s19  ;;  %s2147_s19 = sld [smem:[#allocation2 + $0x2a]]  ;;  %s2164_s16 = sld [smem:[#allocation2 + $0x87]] }
  0xe1   : > { %v699_v43 = vadd.f32 %v697_v12, %v686_v40 }
  0xe2   : > { %v774_v47 = vpop.permute.xlu0 %773  ;;  %v787_v48 = vpop.permute.xlu1 %786  ;;  %v843_v62 = vstv %s2140_s25  ;;  %s3277_s25 = scalar_lea.vmem %s3401_s0, %s2097_s28 }
  0xe3   : > { %v712_v49 = vadd.f32 %v710_v27, %v699_v43  ;;  %v844_v0 = vmul.f32 %v843_v62, %v2660_v2  ;;  %v845_v1 = vmul.f32 %v843_v62, %v2674_v10  ;;  %v1030_v43 = vstv %s2157_s13 }
  0xe4   : > { %1598 = vrot.lane.b32.xlu0 %v1597_v44, %s3438_s5  ;;  %1611 = vrot.lane.b32.xlu1 %v1610_v46, %s3437_s10  ;;  %s2171_s10 = sld [smem:[#allocation2 + $0x8e]]  ;;  %s2178_s5 = sld [smem:[#allocation2 + $0x95]] }
  0xe5   : > { %v725_v53 = vadd.f32 %v723_v28, %v712_v49  ;;  %v849_v7 = vrot.slane %v844_v0, 5  ;;  %v850_v8 = vrot.slane %v845_v1, 5 }
  0xe6   : > { %v800_v54 = vpop.permute.xlu0 %799  ;;  %v813_v55 = vpop.permute.xlu1 %812  ;;  %v933_v19 = vstv %s2147_s19 }
  0xe7   : > { %v738_v56 = vadd.f32 %v736_v38, %v725_v53  ;;  %v851_v14 = vsel %vm848_vm4, %v849_v7, %v850_v8  ;;  %v934_v23 = vmul.f32 %v933_v19, %v2660_v2  ;;  %v935_v24 = vmul.f32 %v933_v19, %v2674_v10 }
  0xe9   : > { %v751_v58 = vadd.f32 %v749_v39, %v738_v56  ;;  %v939_v29 = vrot.slane %v934_v23, 6  ;;  %v940_v30 = vrot.slane %v935_v24, 6 }
  0xea   : > { %v826_v59 = vpop.permute.xlu0 %825  ;;  %v839_v60 = vpop.permute.xlu1 %838 }
  0xeb   : > { %v763_v61 = vadd.f32 %v761_v57, %v751_v58  ;;  %v941_v35 = vsel %vm938_vm5, %v939_v29, %v940_v30 }
  0xed   : > { %v776_v63 = vadd.f32 %v774_v47, %v763_v61 }
  0xee   : > { %v864_v3 = vpop.permute.xlu0 %863  ;;  %v877_v4 = vpop.permute.xlu1 %876 }
  0xef   : > { %v789_v5 = vadd.f32 %v787_v48, %v776_v63  ;;  %v1031_v48 = vmul.f32 %v1030_v43, %v2932_v45 }
  0xf1   : > { %v802_v6 = vadd.f32 %v800_v54, %v789_v5  ;;  %v1082_v54 = vstv %s2164_s16  ;;  %s365_s16 = scalar_lea.vmem %s3404_s3, %s2651_s8 }
  0xf2   : > { %v890_v9 = vpop.permute.xlu0 %889  ;;  %v903_v11 = vpop.permute.xlu1 %902  ;;  %v1083_v57 = vmul.f32 %v1082_v54, %v2932_v45  ;;  %v1084_v58 = vmul.f32 %v1082_v54, %v2944_v51 }
  0xf3   : > { %v815_v12 = vadd.f32 %v813_v55, %v802_v6 }
  0xf4   : > { %v1087_v62 = vrot.slane %v1083_v57, 1  ;;  %v1088_v63 = vrot.slane %v1084_v58, 1 }
  0xf5   : > { %v828_v13 = vadd.f32 %v826_v59, %v815_v12 }
  0xf6   : > { %v916_v15 = vpop.permute.xlu0 %915  ;;  %v929_v16 = vpop.permute.xlu1 %928 }
  0xf7   : > { %v841_v17 = vadd.f32 %v839_v60, %v828_v13 }
  0xf9   : > { %v853_v18 = vadd.f32 %v851_v14, %v841_v17 }
  0xfa   : > { %v954_v20 = vpop.permute.xlu0 %953  ;;  %v967_v21 = vpop.permute.xlu1 %966 }
  0xfb   : > { %v866_v22 = vadd.f32 %v864_v3, %v853_v18 }
  0xfd   : > { %v879_v25 = vadd.f32 %v877_v4, %v866_v22  ;;  %v1089_v4 = vsel %vm488_vm0, %v1087_v62, %v1088_v63 }
  0xfe   : > { %v980_v26 = vpop.permute.xlu0 %979  ;;  %v993_v27 = vpop.permute.xlu1 %992 }
  0xff   : > { %v892_v28 = vadd.f32 %v890_v9, %v879_v25  ;;  %v1171_v9 = vstv %s2171_s10 }
 0x100   : > { %v1172_v13 = vmul.f32 %v1171_v9, %v2932_v45  ;;  %v1173_v14 = vmul.f32 %v1171_v9, %v2944_v51 }
 0x101   : > { %v905_v31 = vadd.f32 %v903_v11, %v892_v28  ;;  %v1260_v28 = vstv %s2178_s5 }
 0x102   : > { %v1006_v32 = vpop.permute.xlu0 %1005  ;;  %v1019_v33 = vpop.permute.xlu1 %1018  ;;  %v1176_v18 = vrot.slane %v1172_v13, 2  ;;  %v1177_v19 = vrot.slane %v1173_v14, 2 }
 0x103   : > { %v918_v34 = vadd.f32 %v916_v15, %v905_v31  ;;  %v1261_v31 = vmul.f32 %v1260_v28, %v2932_v45 }
 0x104   : > { %v1178_v24 = vsel %vm578_vm1, %v1176_v18, %v1177_v19 }
 0x105   : > { %v931_v36 = vadd.f32 %v929_v16, %v918_v34 }
 0x106   : > { %v1038_v37 = vpop.permute.xlu0 %1037  ;;  %v1046_v38 = vpop.permute.xlu1 %1045 }
 0x107   : > { %v943_v39 = vadd.f32 %v941_v35, %v931_v36 }
 0x109   : > { %v956_v2 = vadd.f32 %v954_v20, %v943_v39 }
 0x10a   : > { %v1054_v40 = vpop.permute.xlu0 %1053  ;;  %v1062_v41 = vpop.permute.xlu1 %1061 }
 0x10b   : > { %v969_v10 = vadd.f32 %v967_v21, %v956_v2 }
 0x10d   : > { %v982_v42 = vadd.f32 %v980_v26, %v969_v10 }
 0x10e   : > { %v1070_v46 = vpop.permute.xlu0 %1069  ;;  %v1078_v49 = vpop.permute.xlu1 %1077 }
 0x10f   : > { %v995_v44 = vadd.f32 %v993_v27, %v982_v42 }
 0x111   : > { %v1008_v47 = vadd.f32 %v1006_v32, %v995_v44  ;;  %v1262_v32 = vmul.f32 %v1260_v28, %v2944_v51  ;;  %v1349_v44 = vstv %s2185_s1  ;;  %s3290_s1 = scalar_lea.vmem %s3403_s2, %s2102_s20 }
 0x112   : > { %v1102_v52 = vpop.permute.xlu0 %1101  ;;  %v1115_v55 = vpop.permute.xlu1 %1114 }
 0x113   : > { %v1021_v50 = vadd.f32 %v1019_v33, %v1008_v47 }
 0x115   : > { %v1032_v53 = vadd.f32 %v1031_v48, %v1021_v50  ;;  %v1351_v50 = vmul.f32 %v1349_v44, %v2944_v51 }
 0x116   : > { %v1128_v60 = vpop.permute.xlu0 %1127  ;;  %v1141_v0 = vpop.permute.xlu1 %1140 }
 0x117   : > { %v1040_v56 = vadd.f32 %v1038_v37, %v1032_v53  ;;  %v1265_v37 = vrot.slane %v1261_v31, 3 }
 0x119   : > { %v1048_v59 = vadd.f32 %v1046_v38, %v1040_v56  ;;  %v1266_v38 = vrot.slane %v1262_v32, 3  ;;  %v1355_v56 = vrot.slane %v1351_v50, 4 }
 0x11a   : > { %v1154_v5 = vpop.permute.xlu0 %1153  ;;  %v1167_v7 = vpop.permute.xlu1 %1166 }
 0x11b   : > { %v1056_v61 = vadd.f32 %v1054_v40, %v1048_v59  ;;  %v1267_v10 = vsel %vm668_vm2, %v1265_v37, %v1266_v38 }
 0x11d   : > { %v1064_v1 = vadd.f32 %v1062_v41, %v1056_v61 }
 0x11e   : > { %v1191_v11 = vpop.permute.xlu0 %1190  ;;  %v1204_v15 = vpop.permute.xlu1 %1203 }
 0x11f   : > { %v1072_v3 = vadd.f32 %v1070_v46, %v1064_v1  ;;  %v1438_v1 = vstv %s2192_s26 }
 0x121   : > { %v1080_v6 = vadd.f32 %v1078_v49, %v1072_v3  ;;  %v1350_v49 = vmul.f32 %v1349_v44, %v2932_v45 }
 0x122   : > { %v1217_v20 = vpop.permute.xlu0 %1216  ;;  %v1230_v22 = vpop.permute.xlu1 %1229 }
 0x123   : > { %v1091_v8 = vadd.f32 %v1089_v4, %v1080_v6  ;;  %v1440_v6 = vmul.f32 %v1438_v1, %v2944_v51 }
 0x125   : > { %v1104_v12 = vadd.f32 %v1102_v52, %v1091_v8 }
 0x126   : > { %v1243_v26 = vpop.permute.xlu0 %1242  ;;  %v1256_v29 = vpop.permute.xlu1 %1255 }
 0x127   : > { %v1117_v16 = vadd.f32 %v1115_v55, %v1104_v12  ;;  %v1354_v55 = vrot.slane %v1350_v49, 4  ;;  %v1444_v12 = vrot.slane %v1440_v6, 5  ;;  %v1621_v49 = vlaneseq  ;;  %v1773_v6 = vld [vmem:[%s3405_s4] sm:$0xff] }
 0x128   : > { %2319 = vmatprep.mubr.msk.f32.mxu0 %vm1775_vm6, %v1773_v6 }
 0x129   : > { %v1130_v17 = vadd.f32 %v1128_v60, %v1117_v16  ;;  %v1356_v60 = vsel %vm758_vm3, %v1354_v55, %v1355_v56  ;;  %v1622_v50 = vshrl.u32 %v1621_v49, 7 }
 0x12a   : > { %v1280_v33 = vpop.permute.xlu0 %1279  ;;  %v1293_v35 = vpop.permute.xlu1 %1292 }
 0x12b   : > { %v1143_v21 = vadd.f32 %v1141_v0, %v1130_v17  ;;  %v1634_v55 = vsub.s32 1, %v1622_v50 }
 0x12d   : > { %v1156_v23 = vadd.f32 %v1154_v5, %v1143_v21  ;;  %v1439_v5 = vmul.f32 %v1438_v1, %v2932_v45  ;;  %v1527_v21 = vstv %s2199_s29  ;;  %v1689_v1 = vsub.s32 6, %v1622_v50  ;;  %s333_s29 = sand.u32 1, %s2497_s21   ;;  %s1917_s21 = scalar_lea.vmem (%p2612_p5), %s3407_s6, %s2227_s18 }
 0x12e   : > { %v1306_v2 = vpop.permute.xlu0 %1305  ;;  %v1319_v41 = vpop.permute.xlu1 %1318  ;;  %s2093_s7 = sshll.u32 %s333_s29, 4 }
 0x12f   : > { %v1169_v25 = vadd.f32 %v1167_v7, %v1156_v23  ;;  %s335_s14 = scalar_lea.vmem [#allocation4], %s2093_s7 }
 0x131   : > { %v1180_v27 = vadd.f32 %v1178_v24, %v1169_v25  ;;  %v1528_v24 = vmul.f32 %v1527_v21, %v2932_v45  ;;  %v1529_v25 = vmul.f32 %v1527_v21, %v2944_v51  ;;  %v1725_v21 = vld [vmem:[%s3290_s1] sm:$0xff] }
 0x132   : > { %v1332_v46 = vpop.permute.xlu0 %1331  ;;  %v1345_v48 = vpop.permute.xlu1 %1344 }
 0x133   : > { %v1193_v30 = vadd.f32 %v1191_v11, %v1180_v27  ;;  %v1443_v11 = vrot.slane %v1439_v5, 5  ;;  %v1533_v31 = vrot.slane %v1529_v25, 6 }
 0x135   : > { %v1206_v34 = vadd.f32 %v1204_v15, %v1193_v30  ;;  %v1445_v17 = vsel %vm848_vm4, %v1443_v11, %v1444_v12  ;;  %v1532_v30 = vrot.slane %v1528_v24, 6  ;;  %v3284_v11 = vld [vmem:[%s365_s16] ss:$0 sm:$0xff]  ;;  %v2262_v12 = vld [vmem:[%s3277_s25 + $0x8] sm:$0xff]  }
 0x136   : > { %v1369_v53 = vpop.permute.xlu0 %1368  ;;  %v1382_v57 = vpop.permute.xlu1 %1381 }
 0x137   : > { %v1219_v36 = vadd.f32 %v1217_v20, %v1206_v34 }
 0x139   : > { %v1232_v39 = vadd.f32 %v1230_v22, %v1219_v36 }
 0x13a   : > { %v1395_v61 = vpop.permute.xlu0 %1394  ;;  %v1408_v63 = vpop.permute.xlu1 %1407 }
 0x13b   : > { %v1245_v40 = vadd.f32 %v1243_v26, %v1232_v39 }
 0x13d   : > { %v1258_v42 = vadd.f32 %v1256_v29, %v1245_v40 }
 0x13e   : > { %v1421_v4 = vpop.permute.xlu0 %1420  ;;  %v1434_v8 = vpop.permute.xlu1 %1433 }
 0x13f   : > { %v1269_v43 = vadd.f32 %v1267_v10, %v1258_v42 }
 0x141   : > { %v1282_v47 = vadd.f32 %v1280_v33, %v1269_v43 }
 0x142   : > { %v1458_v13 = vpop.permute.xlu0 %1457  ;;  %v1471_v15 = vpop.permute.xlu1 %1470 }
 0x143   : > { %v1295_v52 = vadd.f32 %v1293_v35, %v1282_v47  ;;  %v1534_v35 = vsel %vm938_vm5, %v1532_v30, %v1533_v31 }
 0x145   : > { %v1308_v54 = vadd.f32 %v1306_v2, %v1295_v52  ;;  %v1623_v52 = vsub.s32 0, %v1622_v50 }
 0x146   : > { %v1484_v19 = vpop.permute.xlu0 %1483  ;;  %v1497_v22 = vpop.permute.xlu1 %1496 }
 0x147   : > { %v1321_v58 = vadd.f32 %v1319_v41, %v1308_v54 }
 0x149   : > { %v1334_v59 = vadd.f32 %v1332_v46, %v1321_v58 }
 0x14a   : > { %v1510_v27 = vpop.permute.xlu0 %1509  ;;  %v1523_v29 = vpop.permute.xlu1 %1522 }
 0x14b   : > { %v1347_v62 = vadd.f32 %v1345_v48, %v1334_v59  ;;  %v1656_v59 = vsub.s32 3, %v1622_v50 }
 0x14d   : > { %v1358_v0 = vadd.f32 %v1356_v60, %v1347_v62 }
 0x14e   : > { %v1547_v33 = vpop.permute.xlu0 %1546  ;;  %v1560_v36 = vpop.permute.xlu1 %1559 }
 0x14f   : > { %v1371_v3 = vadd.f32 %v1369_v53, %v1358_v0 }
 0x151   : > { %v1384_v7 = vadd.f32 %v1382_v57, %v1371_v3  ;;  %v1645_v57 = vsub.s32 2, %v1622_v50 }
 0x152   : > { %v1573_v39 = vpop.permute.xlu0 %1572  ;;  %v1586_v40 = vpop.permute.xlu1 %1585 }
 0x153   : > { %v1397_v9 = vadd.f32 %v1395_v61, %v1384_v7  ;;  %v1667_v61 = vsub.s32 4, %v1622_v50  ;;  %v2231_v7 = vld [vmem:[%s3277_s25] sm:$0xff]  }
 0x155   : > { %v1410_v14 = vadd.f32 %v1408_v63, %v1397_v9  ;;  %v1678_v63 = vsub.s32 5, %v1622_v50  ;;  %v2232_v9 = vunpack.c.l.bf16 %v2231_v7 }
 0x156   : > { %v1599_v51 = vpop.permute.xlu0 %1598  ;;  %v1612_v42 = vpop.permute.xlu1 %1611 }
 0x157   : > { %v1423_v16 = vadd.f32 %v1421_v4, %v1410_v14  ;;  %v1700_v4 = vsub.s32 7, %v1622_v50  ;;  %v405_v14 = vmul.f32 %v2232_v9, %v3284_v11 }
 0x159   : > { %v1436_v18 = vadd.f32 %v1434_v8, %v1423_v16  ;;  %v2233_v8 = vunpack.c.h.bf16 %v2231_v7  ;;  %v2236_v16 = vunpack.c.l.bf16 %v2262_v12 }
 0x15b   : > { %v1447_v20 = vadd.f32 %v1445_v17, %v1436_v18  ;;  %v2263_v17 = vld [vmem:[%s3277_s25 + $0x10] sm:$0xff]  }
 0x15d   : > { %v1460_v23 = vadd.f32 %v1458_v13, %v1447_v20  ;;  %v406_v13 = vmul.f32 %v2233_v8, %v3284_v11 }
 0x15f   : > { %v1473_v26 = vadd.f32 %v1471_v15, %v1460_v23  ;;  %v2237_v15 = vunpack.c.h.bf16 %v2262_v12  ;;  %v2240_v23 = vunpack.c.l.bf16 %v2263_v17 }
 0x161   : > { %v1486_v28 = vadd.f32 %v1484_v19, %v1473_v26  ;;  %v1726_v19 = vld [vmem:[%s3290_s1 + $0x8] sm:$0xff]  ;;  %v408_v26 = vmul.f32 %v2237_v15, %v3284_v11 }
 0x163   : > { %v1499_v32 = vadd.f32 %v1497_v22, %v1486_v28  ;;  %v2241_v22 = vunpack.c.h.bf16 %v2263_v17  ;;  %v2264_v28 = vld [vmem:[%s3277_s25 + $0x18] sm:$0xff]  }
 0x165   : > { %v1512_v34 = vadd.f32 %v1510_v27, %v1499_v32  ;;  %v407_v27 = vmul.f32 %v2236_v16, %v3284_v11  ;;  %v1728_v32 = vld [vmem:[%s3290_s1 + $0x18] sm:$0xff] }
 0x167   : > { %v1525_v37 = vadd.f32 %v1523_v29, %v1512_v34  ;;  %v1727_v34 = vld [vmem:[%s3290_s1 + $0x10] sm:$0xff] }
 0x169   : > { %v1536_v38 = vadd.f32 %v1534_v35, %v1525_v37  ;;  %v410_v35 = vmul.f32 %v2241_v22, %v3284_v11  ;;  %v2245_v37 = vunpack.c.h.bf16 %v2264_v28  ;;  %v1734_v22 = vld [vmem:[%s3290_s1 + $0x48] sm:$0xff] }
 0x16b   : > { %v1549_v2 = vadd.f32 %v1547_v33, %v1536_v38  ;;  %v2244_v38 = vunpack.c.l.bf16 %v2264_v28 }
 0x16d   : > { %v1562_v45 = vadd.f32 %v1560_v36, %v1549_v2  ;;  %v409_v36 = vmul.f32 %v2240_v23, %v3284_v11  ;;  %v411_v49 = vmul.f32 %v2244_v38, %v3284_v11  ;;  %v1733_v23 = vld [vmem:[%s3290_s1 + $0x40] sm:$0xff]  ;;  %v1736_v38 = vld [vmem:[%s3290_s1 + $0x58] sm:$0xff] }
 0x16f   : > { %v1575_v10 = vadd.f32 %v1573_v39, %v1562_v45 }
 0x171   : > { %v1588_v41 = vadd.f32 %v1586_v40, %v1575_v10 }
 0x173   : > { %v1601_v43 = vadd.f32 %v1599_v51, %v1588_v41 }
 0x175   : > { %v1614_v44 = vadd.f32 %v1612_v42, %v1601_v43 }
 0x177   : > { %v2206_v46 = vmul.f32 -1.442695, %v1614_v44  ;;  %v1730_v44 = vld [vmem:[%s3290_s1 + $0x28] sm:$0xff] }
 0x179   : > { %2444 = vpow2.f32 %v2206_v46 }
 0x183   : > { %v2445_v47 = vpop.eup %2444 }
 0x184   : > { %v1618_v48 = vadd.f32 1.0, %v2445_v47  ;;  %v1729_v47 = vld [vmem:[%s3290_s1 + $0x20] sm:$0xff] }
 0x186   : > { %2446 = vrcp.f32 %v1618_v48  ;;  %v412_v48 = vmul.f32 %v2245_v37, %v3284_v11 }
 0x190   : > { %v2447_v53 = vpop.eup %2446 }
 0x191   : > { %v1624_v54 = vrot.slane %v2447_v53, %v1623_v52  ;;  %v1635_v56 = vrot.slane %v2447_v53, %v1634_v55  ;;  %v1646_v58 = vrot.slane %v2447_v53, %v1645_v57  ;;  %v1657_v60 = vrot.slane %v2447_v53, %v1656_v59  ;;  %v2265_v55 = vld [vmem:[%s3277_s25 + $0x20] sm:$0xff]  }
 0x192   : > { %v1668_v62 = vrot.slane %v2447_v53, %v1667_v61  ;;  %v1679_v0 = vrot.slane %v2447_v53, %v1678_v63  ;;  %v1690_v3 = vrot.slane %v2447_v53, %v1689_v1  ;;  %v1701_v5 = vrot.slane %v2447_v53, %v1700_v4  ;;  %v1732_v4 = vld [vmem:[%s3290_s1 + $0x38] sm:$0xff] }
 0x193   : > { %1630 = vbcast.lane.b32.xlu1 %v1624_v54, 264  ;;  %1626 = vbcast.lane.b32.xlu0 %v1624_v54, 256  ;;  %v2249_v61 = vunpack.c.h.bf16 %v2265_v55 }
 0x195   : > { %v414_v6 = vmul.f32 %v2249_v61, %v3284_v11 }
 0x197   : > { %1641 = vbcast.lane.b32.xlu1 %v1635_v56, 264  ;;  %1637 = vbcast.lane.b32.xlu0 %v1635_v56, 256 }
 0x19b   : > { %1652 = vbcast.lane.b32.xlu1 %v1646_v58, 264  ;;  %1648 = vbcast.lane.b32.xlu0 %v1646_v58, 256 }
 0x19f   : > { %1663 = vbcast.lane.b32.xlu1 %v1657_v60, 264  ;;  %1659 = vbcast.lane.b32.xlu0 %v1657_v60, 256 }
 0x1a3   : > { %1674 = vbcast.lane.b32.xlu1 %v1668_v62, 264  ;;  %1670 = vbcast.lane.b32.xlu0 %v1668_v62, 256  ;;  %v2248_v62 = vunpack.c.l.bf16 %v2265_v55 }
 0x1a5   : > { %v413_v12 = vmul.f32 %v2248_v62, %v3284_v11 }
 0x1a7   : > { %1685 = vbcast.lane.b32.xlu1 %v1679_v0, 264  ;;  %1681 = vbcast.lane.b32.xlu0 %v1679_v0, 256 }
 0x1ab   : > { %1696 = vbcast.lane.b32.xlu1 %v1690_v3, 264  ;;  %1692 = vbcast.lane.b32.xlu0 %v1690_v3, 256 }
 0x1af   : > { %1707 = vbcast.lane.b32.xlu1 %v1701_v5, 264  ;;  %1703 = vbcast.lane.b32.xlu0 %v1701_v5, 256  ;;  %v1731_v5 = vld [vmem:[%s3290_s1 + $0x30] sm:$0xff] }
 0x205   : > { %v1631_v18 = vpop.permute.xlu1 %1630  ;;  %v1627_v20 = vpop.permute.xlu0 %1626 }
 0x206   : > { %v1710_v24 = vmul.f32 %v1631_v18, %v406_v13  ;;  %v1709_v25 = vmul.f32 %v1627_v20, %v405_v14  ;;  %v2266_v13 = vld [vmem:[%s3277_s25 + $0x28] sm:$0xff]  }
 0x207   : > { %v2253_v16 = vunpack.c.h.bf16 %v2266_v13  ;;  %v2252_v17 = vunpack.c.l.bf16 %v2266_v13 }
 0x208   : > { %v1742_v29 = vadd.f32 %v1726_v19, %v1710_v24  ;;  %v1741_v30 = vadd.f32 %v1725_v21, %v1709_v25 }
 0x209   : > { %v1642_v31 = vpop.permute.xlu1 %1641  ;;  %v1638_v33 = vpop.permute.xlu0 %1637  ;;  %v416_v24 = vmul.f32 %v2253_v16, %v3284_v11  ;;  %v415_v28 = vmul.f32 %v2252_v17, %v3284_v11 }
 0x20a   : > { %v1758_v39 = vmax.f32 %v1742_v29, 0.0  ;;  %v1757_v2 = vmax.f32 %v1741_v30, 0.0  ;;  %v1712_v40 = vmul.f32 %v1642_v31, %v408_v26  ;;  %v1711_v45 = vmul.f32 %v1638_v33, %v407_v27  ;;  %v2267_v29 = vld [vmem:[%s3277_s25 + $0x30] sm:$0xff]  }
 0x20b   : > { %v2256_v33 = vunpack.c.l.bf16 %v2267_v29 }
 0x20c   : > { %v1744_v51 = vadd.f32 %v1728_v32, %v1712_v40  ;;  %v1743_v41 = vadd.f32 %v1727_v34, %v1711_v45  ;;  %v2322_v42 = vpack.c.bf16 %v1758_v39, %v1757_v2  ;;  %v2257_v32 = vunpack.c.h.bf16 %v2267_v29  ;;  %v1735_v39 = vld [vmem:[%s3290_s1 + $0x50] sm:$0xff] }
 0x20d   : > { %v1653_v43 = vpop.permute.xlu1 %1652  ;;  %v1649_v46 = vpop.permute.xlu0 %1648 }
 0x20e   : > { %v1760_v50 = vmax.f32 %v1744_v51, 0.0  ;;  %v1759_v52 = vmax.f32 %v1743_v41, 0.0  ;;  %v1714_v53 = vmul.f32 %v1653_v43, %v410_v35  ;;  %v1713_v54 = vmul.f32 %v1649_v46, %v409_v36  ;;  %2324 = vmatprep.subr.msk.bf16.mxu0 %vm3306_vm7, %v2322_v42 }
 0x20f   : > { %2327 = vmatpush3.bf16.xpose.msk.msra.mxu0 %vm3306_vm7, %v2322_v42  ;;  %v418_v2 = vmul.f32 %v2257_v32, %v3284_v11  ;;  %v417_v41 = vmul.f32 %v2256_v33, %v3284_v11  ;;  %v2268_v42 = vld [vmem:[%s3277_s25 + $0x38] sm:$0xff]  }
 0x210   : > { %v2328_v56 = vpack.c.bf16 %v1760_v50, %v1759_v52  ;;  %v1746_v57 = vadd.f32 %v1730_v44, %v1714_v53  ;;  %v1745_v58 = vadd.f32 %v1729_v47, %v1713_v54  ;;  %v2261_v46 = vunpack.c.h.bf16 %v2268_v42  ;;  %v1738_v53 = vld [vmem:[%s3290_s1 + $0x68] sm:$0xff]  ;;  %v1737_v54 = vld [vmem:[%s3290_s1 + $0x60] sm:$0xff] }
 0x211   : > { %v1664_v59 = vpop.permute.xlu1 %1663  ;;  %v1660_v60 = vpop.permute.xlu0 %1659  ;;  %v2260_v47 = vunpack.c.l.bf16 %v2268_v42 }
 0x212   : > { %v1762_v63 = vmax.f32 %v1746_v57, 0.0  ;;  %v1761_v0 = vmax.f32 %v1745_v58, 0.0  ;;  %v1716_v1 = vmul.f32 %v1664_v59, %v412_v48  ;;  %v1715_v3 = vmul.f32 %v1660_v60, %v411_v49  ;;  %2330 = vmatprep.subr.msk.bf16.mxu0 %vm3306_vm7, %v2328_v56 }
 0x213   : > { %v420_v55 = vmul.f32 %v2261_v46, %v3284_v11  ;;  %v419_v59 = vmul.f32 %v2260_v47, %v3284_v11 }
 0x214   : > { %v2334_v7 = vpack.c.bf16 %v1762_v63, %v1761_v0  ;;  %v1748_v8 = vadd.f32 %v1732_v4, %v1716_v1  ;;  %v1747_v9 = vadd.f32 %v1731_v5, %v1715_v3  ;;  %v1740_v3 = vld [vmem:[%s3290_s1 + $0x78] sm:$0xff]  ;;  %v1739_v4 = vld [vmem:[%s3290_s1 + $0x70] sm:$0xff] }
 0x215   : > { %v1675_v14 = vpop.permute.xlu1 %1674  ;;  %v1671_v15 = vpop.permute.xlu0 %1670 }
 0x216   : > { %v1764_v18 = vmax.f32 %v1748_v8, 0.0  ;;  %v1763_v19 = vmax.f32 %v1747_v9, 0.0  ;;  %v1718_v20 = vmul.f32 %v1675_v14, %v414_v6  ;;  %v1717_v21 = vmul.f32 %v1671_v15, %v413_v12  ;;  %v1774_v12 = vld [vmem:[%s3405_s4 + $0x8] sm:$0xff] }
 0x217   : > { %2333 = vmatpush3.bf16.xpose.msk.msra.mxu0 %vm3306_vm7, %v2328_v56 }
 0x218   : > { %2336 = vmatprep.subr.msk.bf16.mxu0 %vm3306_vm7, %v2334_v7  ;;  %v2340_v25 = vpack.c.bf16 %v1764_v18, %v1763_v19  ;;  %v1750_v26 = vadd.f32 %v1734_v22, %v1718_v20  ;;  %v1749_v27 = vadd.f32 %v1733_v23, %v1717_v21 }
 0x219   : > { %v1686_v30 = vpop.permute.xlu1 %1685  ;;  %v1682_v31 = vpop.permute.xlu0 %1681 }
 0x21a   : > { %v1766_v34 = vmax.f32 %v1750_v26, 0.0  ;;  %v1765_v35 = vmax.f32 %v1749_v27, 0.0  ;;  %v1720_v36 = vmul.f32 %v1686_v30, %v416_v24  ;;  %v1719_v37 = vmul.f32 %v1682_v31, %v415_v28 }
 0x21c   : > { %v2346_v40 = vpack.c.bf16 %v1766_v34, %v1765_v35  ;;  %v1752_v45 = vadd.f32 %v1736_v38, %v1720_v36  ;;  %v1751_v51 = vadd.f32 %v1735_v39, %v1719_v37 }
 0x21d   : > { %v1697_v43 = vpop.permute.xlu1 %1696  ;;  %v1693_v44 = vpop.permute.xlu0 %1692 }
 0x21e   : > { %v1768_v48 = vmax.f32 %v1752_v45, 0.0  ;;  %v1767_v49 = vmax.f32 %v1751_v51, 0.0  ;;  %v1722_v50 = vmul.f32 %v1697_v43, %v418_v2  ;;  %v1721_v52 = vmul.f32 %v1693_v44, %v417_v41 }
 0x21f   : > { %2339 = vmatpush3.bf16.xpose.msk.msra.mxu0 %vm3306_vm7, %v2334_v7 }
 0x220   : > { %2342 = vmatprep.subr.msk.bf16.mxu0 %vm3306_vm7, %v2340_v25  ;;  %v2352_v56 = vpack.c.bf16 %v1768_v48, %v1767_v49  ;;  %v1754_v57 = vadd.f32 %v1738_v53, %v1722_v50  ;;  %v1753_v58 = vadd.f32 %v1737_v54, %v1721_v52 }
 0x221   : > { %v1708_v60 = vpop.permute.xlu1 %1707  ;;  %v1704_v61 = vpop.permute.xlu0 %1703 }
 0x222   : > { %v1770_v62 = vmax.f32 %v1754_v57, 0.0  ;;  %v1769_v63 = vmax.f32 %v1753_v58, 0.0  ;;  %v1724_v0 = vmul.f32 %v1708_v60, %v420_v55  ;;  %v1723_v1 = vmul.f32 %v1704_v61, %v419_v59 }
 0x224   : > { %v2358_v5 = vpack.c.bf16 %v1770_v62, %v1769_v63  ;;  %v1756_v6 = vadd.f32 %v1740_v3, %v1724_v0  ;;  %v1755_v7 = vadd.f32 %v1739_v4, %v1723_v1 }
 0x226   : > { %v1772_v11 = vmax.f32 %v1756_v6, 0.0  ;;  %v1771_v8 = vmax.f32 %v1755_v7, 0.0 }
 0x227   : > { %2345 = vmatpush3.bf16.xpose.msk.msra.mxu0 %vm3306_vm7, %v2340_v25 }
 0x228   : > { %2348 = vmatprep.subr.msk.bf16.mxu0 %vm3306_vm7, %v2346_v40  ;;  %v2364_v9 = vpack.c.bf16 %v1772_v11, %v1771_v8 }
 0x22f   : > { %2351 = vmatpush3.bf16.xpose.msk.msra.mxu0 %vm3306_vm7, %v2346_v40 }
 0x230   : > { %2354 = vmatprep.subr.msk.bf16.mxu0 %vm3306_vm7, %v2352_v56 }
 0x237   : > { %2357 = vmatpush3.bf16.xpose.msk.msra.mxu0 %vm3306_vm7, %v2352_v56 }
 0x238   : > { %2360 = vmatprep.subr.msk.bf16.mxu0 %vm3306_vm7, %v2358_v5 }
 0x23f   : > { %2363 = vmatpush3.bf16.xpose.msk.msra.mxu0 %vm3306_vm7, %v2358_v5 }
 0x240   : > { %2366 = vmatprep.subr.msk.bf16.mxu0 %vm3306_vm7, %v2364_v9 }
 0x247   : > { %2369 = vmatpush3.bf16.xpose.msk.msra.mxu0 %vm3306_vm7, %v2364_v9 }
 0x24e   : > { %2320 = vmatmul.mubr.msk.f32.vlgmr.msra.gmra.mrb[0].mxu0 %vm1775_vm6, %v1774_v12 }
 0x31d   : > { %1913 = sbr.rel (!%p2612_p5) target bundleno = 812 (0x32c), region = 52 }
 0x321   : > { %v2321_v13 = vpop.f32.mrb[0].mxu0 }
 0x322   : > { %1906 = vst [vmem:[%s335_s14 + $0x8] sm:$0xff] %v2321_v13  ;;  %v1896_v14 = vpop.f32.mrb[1].mxu0 }
 0x323   : > { %1905 = vst [vmem:[%s335_s14] sm:$0xff] %v1896_v14 }
 0x329   : > { %v1949_v15 = vld [vmem:[%s335_s14 + $0x8] sm:$0xff] }
 0x32a   : > { %v1947_v10 = vld [vmem:[%s335_s14] sm:$0xff]  ;;  %1950 = vst [vmem:[%s1917_s21 + $0x10] sm:$0xff] %v1949_v15 }
 0x32b   : > { %1948 = vst [vmem:[%s1917_s21] sm:$0xff] %v1947_v10 }
 0x32c PF: > { %s17_s27 = sadd.s32 1, %s2521_s27   ;;  %s3443_s23 = sld [smem:[#allocation6_spill]] }
 0x32d   : > { %p14_p8 = scmp.ge.s32.totalorder %s17_s27, 6   ;;  %s3444_s24 = sld [smem:[#allocation7_spill]] }
 0x32e   : > { %s3445_s25 = sld [smem:[#allocation8_spill]]  ;;  %s3446_s26 = sld [smem:[#allocation9_spill]] }
 0x32f   : > { %s3447_s21 = smov %s2501_s22  ;;  %s3448_s22 = smov %s2637_s17 }
 0x330   :  { %16 = sbr.rel (!%p14_p8) target bundleno = 7 (0x7), region = 128 }
 0x337   :  { %1966 = vsyncpa [#allocation3], 1 }
 0x338   :  { %1968 = vsyncpa [#allocation3 + $0x1], 1 }

</bundles_post_ra>
